<compile_context>
chip_gen: v7x
topology: tpu7x:2x2x1
jax: 0.10.0
libtpu: 0.0.40
codegen_flags: <defaults>
</compile_context>

<pallas_src>
import functools

import jax
import jax.numpy as jnp
from jax import lax
from jax.experimental import pallas as pl
from jax.experimental.pallas import tpu as pltpu


def _round_up(c, m=128):
    return ((c + m - 1) // m) * m


def _bottleneck_kernel(x_ref, w1_ref, s1_ref, b1_ref,
                       w2_ref, s2_ref, b2_ref,
                       w3_ref, s3_ref, b3_ref,
                       *rest, k, s, p, H, W, tH, Wo_t, residual):
    """One (batch, output-row-tile) step of the fused bottleneck."""
    if residual:
        res_ref, o_ref = rest
    else:
        (o_ref,) = rest

    t = pl.program_id(1)
    Wp = x_ref.shape[1]
    Cin_p = x_ref.shape[2]
    Cmid_p = w1_ref.shape[1]
    Cout_p = w3_ref.shape[1]
    hrows = (tH - 1) * s + k                        # input rows incl. halo
    row0 = pl.multiple_of(t * (tH * s), tH * s)     # first (padded) input row

    # ---- conv1 (1x1) + BN1 + ReLU over the halo window (bf16 MXU, f32 acc) --
    xin = x_ref[pl.ds(row0, hrows)]                 # (hrows, Wp, Cin_p) bf16
    m = jnp.dot(xin.reshape(hrows * Wp, Cin_p), w1_ref[...],
                preferred_element_type=jnp.float32)
    m = jnp.maximum(m * s1_ref[...] + b1_ref[...], 0.0)
    # Cast to bf16 ONCE, then zero positions in conv2's zero padding (the 1x1
    # conv + BN + ReLU of a zero-padded pixel is NOT 0). bf16 select = half the
    # VPU work of the old f32 mask, and all k*k taps reuse this bf16 tensor.
    mid = m.reshape(hrows, Wp, Cmid_p).astype(jnp.bfloat16)
    rows = row0 + lax.broadcasted_iota(jnp.int32, (hrows, Wp, 1), 0)
    cols = lax.broadcasted_iota(jnp.int32, (hrows, Wp, 1), 1)
    inside = (rows >= p) & (rows < p + H) & (cols >= p) & (cols < p + W)
    mid = jnp.where(inside, mid, jnp.zeros_like(mid))

    # ---- conv2 (k x k, stride s) as ONE im2col matmul + BN2 + ReLU ----------
    taps = []
    for ki in range(k):                             # static k*k unroll
        for kj in range(k):
            if s == 1:                              # common case: plain slices
                tap = mid[ki:ki + tH, kj:kj + Wo_t, :]
            else:
                tap = lax.slice(
                    mid, (ki, kj, 0),
                    (ki + (tH - 1) * s + 1, kj + (Wo_t - 1) * s + 1, Cmid_p),
                    (s, s, 1))
            taps.append(tap.reshape(tH * Wo_t, Cmid_p))   # already bf16
    col = jnp.concatenate(taps, axis=-1)            # (tH*Wo_t, k*k*Cmid_p)
    a = jnp.dot(col, w2_ref[...], preferred_element_type=jnp.float32)
    a = jnp.maximum(a * s2_ref[...] + b2_ref[...], 0.0)

    # ---- conv3 (1x1) + BN3 (+ residual) + ReLU ------------------------------
    out = jnp.dot(a.astype(jnp.bfloat16), w3_ref[...],
                  preferred_element_type=jnp.float32)
    out = out * s3_ref[...] + b3_ref[...]
    if residual:                                    # Cin == Cout and s == 1
        # Pre-shaped (tH*Wo_t, Cout_p) tile -> single lane-dense VPU add.
        out = out + res_ref[...].astype(jnp.float32)
    out = jnp.maximum(out, 0.0)
    o_ref[...] = out.astype(o_ref.dtype)            # lane/sublane-dense store


def bottleneck_pallas(x_nchw, params, *, k=3, s=1, tile_rows=32):
    """x_nchw: [B, Cin, H, W]; params: PyTorch-shaped conv weights + folded BN
    (scale/bias) vectors.  Returns [B, Cout, Ho, Wo]."""
    w1_t, s1, b1, w2_t, s2, b2, w3_t, s3, b3 = params
    B, Cin, H, W = x_nchw.shape
    Cmid = w1_t.shape[0]
    Cout = w3_t.shape[0]
    out_dtype = x_nchw.dtype
    out_isize = jnp.dtype(out_dtype).itemsize
    p = k // 2
    Ho = (H + 2 * p - k) // s + 1
    Wo = (W + 2 * p - k) // s + 1
    residual = (Cin == Cout) and (s == 1)
    if residual:
        assert Ho == H and Wo == W, "residual needs shape-preserving conv2"

    # --- channel padding to full 128-lane vregs ------------------------------
    Cin_p, Cmid_p, Cout_p = _round_up(Cin), _round_up(Cmid), _round_up(Cout)
    # Sublane-aligned internal output width (extra cols sliced off in HBM).
    Wo_t = _round_up(Wo, 8)

    # --- VMEM-aware output-row tiling ----------------------------------------
    try:
        info = pltpu.get_tpu_info()
        vmem_cap = int(getattr(info, "vmem_capacity_bytes", 64 * 1024 * 1024))
    except Exception:
        vmem_cap = 64 * 1024 * 1024                 # conservative (v7x)
    vmem_limit = int(vmem_cap * 0.75)               # v7x ~48 MiB, v5e/v6e ~96 MiB

    def _est_vmem_bytes(th):
        """Rough per-step VMEM estimate (double-buffered pipeline + temps)."""
        nt = -(-Ho // th)
        ho_p = nt * th
        hp = max(H + 2 * p, (ho_p - 1) * s + k)
        wp = _round_up(max(W + 2 * p, (Wo_t - 1) * s + k), 16)
        hrows = (th - 1) * s + k
        npix = th * Wo_t
        x_buf = 2 * hp * wp * Cin_p * 2                                # bf16 image
        w_buf = 2 * (Cin_p * Cmid_p + k * k * Cmid_p * Cmid_p
                     + Cmid_p * Cout_p) * 2                            # weights
        vec_buf = 2 * (4 * Cmid_p + 2 * Cout_p) * 4                    # BN vecs
        out_buf = 2 * npix * Cout_p * out_isize
        res_buf = 2 * npix * Cout_p * 2 if residual else 0
        tmp = (hrows * wp * Cin_p * 2                                  # xin
               + hrows * wp * Cmid_p * 6                               # m + mid
               + npix * (k * k * Cmid_p) * 4                           # taps+col
               + npix * Cmid_p * 6                                     # a f32+bf16
               + npix * Cout_p * 4)                                    # out f32
        return x_buf + w_buf + vec_buf + out_buf + res_buf + tmp

    budget = int(vmem_limit * 0.85)
    cands = sorted({min(c, Ho) for c in (max(int(tile_rows), 1),
                                         32, 16, 8, 4, 2, 1)}, reverse=True)
    tH = cands[-1]
    for c in cands:
        if _est_vmem_bytes(c) <= budget:
            tH = c
            break
    T = -(-Ho // tH)
    Ho_p = T * tH
    hrows = (tH - 1) * s + k

    # --- spatially padded NHWC input (conv2 zero-pad + tile remainder) -------
    Hp = max(H + 2 * p, (Ho_p - 1) * s + k)
    Wp = _round_up(max(W + 2 * p, (Wo_t - 1) * s + k), 16)   # bf16 sublane pack
    x_nhwc = jnp.transpose(x_nchw, (0, 2, 3, 1))                  # NCHW -> NHWC
    x = jnp.pad(x_nhwc, ((0, 0), (p, Hp - H - p), (p, Wp - W - p),
                         (0, Cin_p - Cin)))
    x = x.astype(jnp.bfloat16)        # bf16 MXU operand, half the DMA bytes

    # --- pre-shaped residual (matches the output tile layout) ----------------
    if residual:
        res = jnp.pad(x_nhwc.astype(jnp.bfloat16),
                      ((0, 0), (0, Ho_p - H), (0, Wo_t - W), (0, Cout_p - Cout)))
        res = res.reshape(B, Ho_p * Wo_t, Cout_p)
    else:
        res = None

    # --- weights -> matmul layout, channel-padded, bf16 ----------------------
    w1 = jnp.transpose(w1_t[:, :, 0, 0], (1, 0))                  # (Cin, Cmid)
    w1 = jnp.pad(w1, ((0, Cin_p - Cin), (0, Cmid_p - Cmid))).astype(jnp.bfloat16)
    w2 = jnp.transpose(w2_t, (2, 3, 1, 0))                        # (k,k,Cmid,Cmid)
    w2 = jnp.pad(w2, ((0, 0), (0, 0), (0, Cmid_p - Cmid), (0, Cmid_p - Cmid)))
    w2 = w2.reshape(k * k * Cmid_p, Cmid_p).astype(jnp.bfloat16)  # im2col layout
    w3 = jnp.transpose(w3_t[:, :, 0, 0], (1, 0))                  # (Cmid, Cout)
    w3 = jnp.pad(w3, ((0, Cmid_p - Cmid), (0, Cout_p - Cout))).astype(jnp.bfloat16)

    def pad_vec(v, c):                # folded BN scale/bias, f32, shape (1, c)
        return jnp.pad(v.astype(jnp.float32), (0, c - v.shape[0]))[None, :]

    s1p, b1p = pad_vec(s1, Cmid_p), pad_vec(b1, Cmid_p)
    s2p, b2p = pad_vec(s2, Cmid_p), pad_vec(b2, Cmid_p)
    s3p, b3p = pad_vec(s3, Cout_p), pad_vec(b3, Cout_p)

    kernel = functools.partial(_bottleneck_kernel, k=k, s=s, p=p, H=H, W=W,
                               tH=tH, Wo_t=Wo_t, residual=residual)

    flops = 2 * B * T * (hrows * Wp * Cin_p * Cmid_p
                         + tH * Wo_t * (k * k * Cmid_p) * Cmid_p
                         + tH * Wo_t * Cmid_p * Cout_p)
    bytes_accessed = (int(x.size) * 2
                      + int(w1.size + w2.size + w3.size) * 2
                      + (int(res.size) * 2 if residual else 0)
                      + B * Ho_p * Wo_t * Cout_p * out_isize)
    cost = pl.CostEstimate(flops=int(flops), transcendentals=0,
                           bytes_accessed=int(bytes_accessed))

    tile_spec = pl.BlockSpec((None, tH * Wo_t, Cout_p), lambda b, t: (b, t, 0))

    def _run(single_buffer_weights):
        # Constant-index operands: single-buffer to reclaim VMEM (w2 can be
        # several MiB at Cmid_p=512); fall back to default double-buffering if
        # this Pallas build rejects pipeline_mode on pallas_call specs.
        if single_buffer_weights:
            def cspec(shape):
                return pl.BlockSpec(shape, lambda b, t: (0, 0),
                                    pipeline_mode=pl.Buffered(1))
        else:
            def cspec(shape):
                return pl.BlockSpec(shape, lambda b, t: (0, 0))

        in_specs = [
            # Full (bf16) image resident per batch element; halo rows sliced
            # in-kernel.  Intermediates / outputs are row-tiled.
            pl.BlockSpec((None, Hp, Wp, Cin_p), lambda b, t: (b, 0, 0, 0)),
            cspec((Cin_p, Cmid_p)),
            cspec((1, Cmid_p)),
            cspec((1, Cmid_p)),
            cspec((k * k * Cmid_p, Cmid_p)),
            cspec((1, Cmid_p)),
            cspec((1, Cmid_p)),
            cspec((Cmid_p, Cout_p)),
            cspec((1, Cout_p)),
            cspec((1, Cout_p)),
        ]
        args = [x, w1, s1p, b1p, w2, s2p, b2p, w3, s3p, b3p]
        if residual:
            in_specs.append(tile_spec)
            args.append(res)

        return pl.pallas_call(
            kernel,
            out_shape=jax.ShapeDtypeStruct((B, Ho_p * Wo_t, Cout_p), out_dtype),
            grid=(B, T),
            in_specs=in_specs,
            out_specs=tile_spec,
            compiler_params=pltpu.CompilerParams(
                dimension_semantics=("parallel", "parallel"),
                vmem_limit_bytes=vmem_limit),
            cost_estimate=cost,
        )(*args)

    try:
        y = _run(True)
    except Exception:
        y = _run(False)

    y = y.reshape(B, Ho_p, Wo_t, Cout_p)[:, :Ho, :Wo, :Cout]   # free in HBM
    # TODO(synk): for stacked bottlenecks keep activations NHWC (and bf16)
    # end-to-end and drop this per-layer NCHW<->NHWC round trip.
    return jnp.transpose(y, (0, 3, 1, 2))                      # NHWC -> NCHW


def make_folded_params(key, inp, oup, k=3, r=4, eps=1e-5):
    """Deterministic synthetic parameters (PyTorch shapes + folded eval-BN)."""
    mid = oup // r
    keys = jax.random.split(key, 6)

    def conv_w(kk, shape):
        w = 0.1 * jax.random.normal(kk, shape, dtype=jnp.float32)
        # Round-trip through bf16 so the kernel (bf16 MXU operands) and the
        # f32 reference share identical weight values.
        return w.astype(jnp.bfloat16).astype(jnp.float32)

    def bn(kk, c):
        kg, kb, km, kv = jax.random.split(kk, 4)
        gamma = 1.0 + 0.1 * jax.random.normal(kg, (c,), dtype=jnp.float32)
        beta = 0.1 * jax.random.normal(kb, (c,), dtype=jnp.float32)
        mean = 0.1 * jax.random.normal(km, (c,), dtype=jnp.float32)
        var = jnp.abs(jax.random.normal(kv, (c,), dtype=jnp.float32)) + 0.5
        scale = gamma / jnp.sqrt(var + eps)
        bias = beta - mean * scale
        return scale, bias

    w1 = conv_w(keys[0], (mid, inp, 1, 1))
    w2 = conv_w(keys[1], (mid, mid, k, k))
    w3 = conv_w(keys[2], (oup, mid, 1, 1))
    s1, b1 = bn(keys[3], mid)
    s2, b2 = bn(keys[4], mid)
    s3, b3 = bn(keys[5], oup)
    return (w1, s1, b1, w2, s2, b2, w3, s3, b3)


def bottleneck_reference(x, params, *, k=3, s=1):
    """Plain-JAX NCHW reference mirroring the PyTorch forward (eval-mode BN)."""
    w1, s1, b1, w2, s2, b2, w3, s3, b3 = params
    residual = (x.shape[1] == w3.shape[0]) and (s == 1)

    def conv(y, w, stride, pad):
        return lax.conv_general_dilated(
            y, w, (stride, stride), [(pad, pad), (pad, pad)],
            dimension_numbers=("NCHW", "OIHW", "NCHW"),
            precision=lax.Precision.HIGHEST)

    def bn(y, sc, bi):
        return y * sc[None, :, None, None] + bi[None, :, None, None]

    out = jax.nn.relu(bn(conv(x, w1, 1, 0), s1, b1))
    out = jax.nn.relu(bn(conv(out, w2, s, k // 2), s2, b2))
    out = bn(conv(out, w3, 1, 0), s3, b3)
    if residual:
        out = out + x
    return jax.nn.relu(out)


if __name__ == "__main__":
    key = jax.random.PRNGKey(0)
    kx, kp1, kp2 = jax.random.split(key, 3)

    # Case 1: inp == oup, s == 1 -> residual branch active.
    B, inp, oup, H, W, k, s, r = 2, 16, 16, 16, 16, 3, 1, 4
    x = jax.random.normal(kx, (B, inp, H, W), dtype=jnp.float32)
    x = x.astype(jnp.bfloat16).astype(jnp.float32)   # kernel & ref see same values
    params = make_folded_params(kp1, inp, oup, k=k, r=r)
    y = jax.block_until_ready(bottleneck_pallas(x, params, k=k, s=s))
    y_ref = jax.block_until_ready(bottleneck_reference(x, params, k=k, s=s))
    assert y.shape == y_ref.shape, (y.shape, y_ref.shape)
    err = float(jnp.max(jnp.abs(y - y_ref)))
    assert jnp.allclose(y, y_ref, atol=3e-2, rtol=3e-2), err

    # Case 2: inp != oup -> no residual branch.
    inp2, oup2 = 16, 32
    x2 = jax.random.normal(kx, (B, inp2, H, W), dtype=jnp.float32)
    x2 = x2.astype(jnp.bfloat16).astype(jnp.float32)
    params2 = make_folded_params(kp2, inp2, oup2, k=k, r=r)
    y2 = jax.block_until_ready(bottleneck_pallas(x2, params2, k=k, s=s))
    y2_ref = jax.block_until_ready(bottleneck_reference(x2, params2, k=k, s=s))
    assert y2.shape == y2_ref.shape, (y2.shape, y2_ref.shape)
    err2 = float(jnp.max(jnp.abs(y2 - y2_ref)))
    assert jnp.allclose(y2, y2_ref, atol=3e-2, rtol=3e-2), err2

    print("KERNEL_OK")
</pallas_src>

<mosaic_0001>
module attributes {stable_mosaic.version = 11 : i64} {
  func.func @_bottleneck_kernel(%arg0: i32, %arg1: i32, %arg2: memref<1x18x32x128xbf16, #tpu.memory_space<vmem>>, %arg3: memref<128x128xbf16, #tpu.memory_space<vmem>>, %arg4: memref<1x128xf32, #tpu.memory_space<vmem>>, %arg5: memref<1x128xf32, #tpu.memory_space<vmem>>, %arg6: memref<1152x128xbf16, #tpu.memory_space<vmem>>, %arg7: memref<1x128xf32, #tpu.memory_space<vmem>>, %arg8: memref<1x128xf32, #tpu.memory_space<vmem>>, %arg9: memref<128x128xbf16, #tpu.memory_space<vmem>>, %arg10: memref<1x128xf32, #tpu.memory_space<vmem>>, %arg11: memref<1x128xf32, #tpu.memory_space<vmem>>, %arg12: memref<1x256x128xbf16, #tpu.memory_space<vmem>>, %arg13: memref<1x256x128xf32, #tpu.memory_space<vmem>>) attributes {dimension_semantics = [#tpu.dimension_semantics<parallel>, #tpu.dimension_semantics<parallel>], iteration_bounds = array<i64: 2, 1>, scalar_prefetch = 0 : i64, scratch_operands = 0 : i64, tpu.core_type = #tpu.core_type<tc>, window_params = [{transform_indices = @transform_0, window_bounds = array<i64: 1, 18, 32, 128>}, {pipeline_mode = #tpu.pipeline_mode<synchronous>, transform_indices = @transform_1, window_bounds = array<i64: 128, 128>}, {pipeline_mode = #tpu.pipeline_mode<synchronous>, transform_indices = @transform_2, window_bounds = array<i64: 1, 128>}, {pipeline_mode = #tpu.pipeline_mode<synchronous>, transform_indices = @transform_3, window_bounds = array<i64: 1, 128>}, {pipeline_mode = #tpu.pipeline_mode<synchronous>, transform_indices = @transform_4, window_bounds = array<i64: 1152, 128>}, {pipeline_mode = #tpu.pipeline_mode<synchronous>, transform_indices = @transform_5, window_bounds = array<i64: 1, 128>}, {pipeline_mode = #tpu.pipeline_mode<synchronous>, transform_indices = @transform_6, window_bounds = array<i64: 1, 128>}, {pipeline_mode = #tpu.pipeline_mode<synchronous>, transform_indices = @transform_7, window_bounds = array<i64: 128, 128>}, {pipeline_mode = #tpu.pipeline_mode<synchronous>, transform_indices = @transform_8, window_bounds = array<i64: 1, 128>}, {pipeline_mode = #tpu.pipeline_mode<synchronous>, transform_indices = @transform_9, window_bounds = array<i64: 1, 128>}, {transform_indices = @transform_10, window_bounds = array<i64: 1, 256, 128>}, {transform_indices = @transform_11, window_bounds = array<i64: 1, 256, 128>}]} {
    %c16_i32 = arith.constant 16 : i32
    %0 = arith.muli %arg1, %c16_i32 : i32
    %1 = tpu.assume_multiple %0, 16 : i32
    %c0 = arith.constant 0 : index
    %2 = arith.index_cast %1 : i32 to index
    %c0_0 = arith.constant 0 : index
    %c0_1 = arith.constant 0 : index
    %3 = vector.load %arg2[%c0, %2, %c0_0, %c0_1] : memref<1x18x32x128xbf16, #tpu.memory_space<vmem>>, vector<1x18x32x128xbf16>
    %4 = vector.shape_cast %3 : vector<1x18x32x128xbf16> to vector<18x32x128xbf16>
    %5 = vector.shape_cast %4 : vector<18x32x128xbf16> to vector<576x128xbf16>
    %c0_2 = arith.constant 0 : index
    %c0_3 = arith.constant 0 : index
    %6 = vector.load %arg3[%c0_2, %c0_3] : memref<128x128xbf16, #tpu.memory_space<vmem>>, vector<128x128xbf16>
    %cst = arith.constant dense<0.000000e+00> : vector<576x128xf32>
    %7 = tpu.matmul %5, %6, %cst {dimension_numbers = #tpu.dot_dimension_numbers<[1], [0], [0], [1], [0, 0, 1, 1], [], []>} : vector<576x128xbf16>, vector<128x128xbf16>, vector<576x128xf32> -> vector<576x128xf32>
    %c0_4 = arith.constant 0 : index
    %c0_5 = arith.constant 0 : index
    %8 = vector.load %arg4[%c0_4, %c0_5] : memref<1x128xf32, #tpu.memory_space<vmem>>, vector<1x128xf32>
    %9 = vector.broadcast %8 : vector<1x128xf32> to vector<576x128xf32>
    %10 = arith.mulf %7, %9 : vector<576x128xf32>
    %c0_6 = arith.constant 0 : index
    %c0_7 = arith.constant 0 : index
    %11 = vector.load %arg5[%c0_6, %c0_7] : memref<1x128xf32, #tpu.memory_space<vmem>>, vector<1x128xf32>
    %12 = vector.broadcast %11 : vector<1x128xf32> to vector<576x128xf32>
    %13 = arith.addf %10, %12 : vector<576x128xf32>
    %cst_8 = arith.constant 0.000000e+00 : f32
    %14 = vector.broadcast %cst_8 : f32 to vector<576x128xf32>
    %15 = arith.maximumf %13, %14 : vector<576x128xf32>
    %16 = vector.shape_cast %15 : vector<576x128xf32> to vector<18x32x128xf32>
    %17 = arith.truncf %16 : vector<18x32x128xf32> to vector<18x32x128xbf16>
    %18 = tpu.iota {dimensions = array<i32: 0>} : vector<18x32x1xi32>
    %19 = vector.broadcast %1 : i32 to vector<18x32x1xi32>
    %20 = arith.addi %19, %18 : vector<18x32x1xi32>
    %21 = tpu.iota {dimensions = array<i32: 1>} : vector<18x32x1xi32>
    %c1_i32 = arith.constant 1 : i32
    %22 = vector.broadcast %c1_i32 : i32 to vector<18x32x1xi32>
    %23 = arith.cmpi sge, %20, %22 : vector<18x32x1xi32>
    %c17_i32 = arith.constant 17 : i32
    %24 = vector.broadcast %c17_i32 : i32 to vector<18x32x1xi32>
    %25 = arith.cmpi slt, %20, %24 : vector<18x32x1xi32>
    %26 = arith.andi %23, %25 : vector<18x32x1xi1>
    %c1_i32_9 = arith.constant 1 : i32
    %27 = vector.broadcast %c1_i32_9 : i32 to vector<18x32x1xi32>
    %28 = arith.cmpi sge, %21, %27 : vector<18x32x1xi32>
    %29 = arith.andi %26, %28 : vector<18x32x1xi1>
    %c17_i32_10 = arith.constant 17 : i32
    %30 = vector.broadcast %c17_i32_10 : i32 to vector<18x32x1xi32>
    %31 = arith.cmpi slt, %21, %30 : vector<18x32x1xi32>
    %32 = arith.andi %29, %31 : vector<18x32x1xi1>
    %cst_11 = arith.constant 0.000000e+00 : bf16
    %33 = vector.broadcast %cst_11 : bf16 to vector<18x32x128xbf16>
    %34 = vector.shape_cast %32 : vector<18x32x1xi1> to vector<18x32x1xi1>
    %35 = vector.broadcast %34 : vector<18x32x1xi1> to vector<18x32x128xi1>
    %36 = arith.select %35, %17, %33 : vector<18x32x128xi1>, vector<18x32x128xbf16>
    %37 = vector.extract_strided_slice %36 {offsets = [0, 0, 0], sizes = [16, 16, 128], strides = [1, 1, 1]} : vector<18x32x128xbf16> to vector<16x16x128xbf16>
    %38 = vector.shape_cast %37 : vector<16x16x128xbf16> to vector<256x128xbf16>
    %39 = vector.extract_strided_slice %36 {offsets = [0, 1, 0], sizes = [16, 16, 128], strides = [1, 1, 1]} : vector<18x32x128xbf16> to vector<16x16x128xbf16>
    %40 = vector.shape_cast %39 : vector<16x16x128xbf16> to vector<256x128xbf16>
    %41 = vector.extract_strided_slice %36 {offsets = [0, 2, 0], sizes = [16, 16, 128], strides = [1, 1, 1]} : vector<18x32x128xbf16> to vector<16x16x128xbf16>
    %42 = vector.shape_cast %41 : vector<16x16x128xbf16> to vector<256x128xbf16>
    %43 = vector.extract_strided_slice %36 {offsets = [1, 0, 0], sizes = [16, 16, 128], strides = [1, 1, 1]} : vector<18x32x128xbf16> to vector<16x16x128xbf16>
    %44 = vector.shape_cast %43 : vector<16x16x128xbf16> to vector<256x128xbf16>
    %45 = vector.extract_strided_slice %36 {offsets = [1, 1, 0], sizes = [16, 16, 128], strides = [1, 1, 1]} : vector<18x32x128xbf16> to vector<16x16x128xbf16>
    %46 = vector.shape_cast %45 : vector<16x16x128xbf16> to vector<256x128xbf16>
    %47 = vector.extract_strided_slice %36 {offsets = [1, 2, 0], sizes = [16, 16, 128], strides = [1, 1, 1]} : vector<18x32x128xbf16> to vector<16x16x128xbf16>
    %48 = vector.shape_cast %47 : vector<16x16x128xbf16> to vector<256x128xbf16>
    %49 = vector.extract_strided_slice %36 {offsets = [2, 0, 0], sizes = [16, 16, 128], strides = [1, 1, 1]} : vector<18x32x128xbf16> to vector<16x16x128xbf16>
    %50 = vector.shape_cast %49 : vector<16x16x128xbf16> to vector<256x128xbf16>
    %51 = vector.extract_strided_slice %36 {offsets = [2, 1, 0], sizes = [16, 16, 128], strides = [1, 1, 1]} : vector<18x32x128xbf16> to vector<16x16x128xbf16>
    %52 = vector.shape_cast %51 : vector<16x16x128xbf16> to vector<256x128xbf16>
    %53 = vector.extract_strided_slice %36 {offsets = [2, 2, 0], sizes = [16, 16, 128], strides = [1, 1, 1]} : vector<18x32x128xbf16> to vector<16x16x128xbf16>
    %54 = vector.shape_cast %53 : vector<16x16x128xbf16> to vector<256x128xbf16>
    %55 = tpu.concatenate %38, %40, %42, %44, %46, %48, %50, %52, %54 in 1 : vector<256x128xbf16>, vector<256x128xbf16>, vector<256x128xbf16>, vector<256x128xbf16>, vector<256x128xbf16>, vector<256x128xbf16>, vector<256x128xbf16>, vector<256x128xbf16>, vector<256x128xbf16> -> vector<256x1152xbf16>
    %c0_12 = arith.constant 0 : index
    %c0_13 = arith.constant 0 : index
    %56 = vector.load %arg6[%c0_12, %c0_13] : memref<1152x128xbf16, #tpu.memory_space<vmem>>, vector<1152x128xbf16>
    %cst_14 = arith.constant dense<0.000000e+00> : vector<256x128xf32>
    %57 = tpu.matmul %55, %56, %cst_14 {dimension_numbers = #tpu.dot_dimension_numbers<[1], [0], [0], [1], [0, 0, 1, 1], [], []>} : vector<256x1152xbf16>, vector<1152x128xbf16>, vector<256x128xf32> -> vector<256x128xf32>
    %c0_15 = arith.constant 0 : index
    %c0_16 = arith.constant 0 : index
    %58 = vector.load %arg7[%c0_15, %c0_16] : memref<1x128xf32, #tpu.memory_space<vmem>>, vector<1x128xf32>
    %59 = vector.broadcast %58 : vector<1x128xf32> to vector<256x128xf32>
    %60 = arith.mulf %57, %59 : vector<256x128xf32>
    %c0_17 = arith.constant 0 : index
    %c0_18 = arith.constant 0 : index
    %61 = vector.load %arg8[%c0_17, %c0_18] : memref<1x128xf32, #tpu.memory_space<vmem>>, vector<1x128xf32>
    %62 = vector.broadcast %61 : vector<1x128xf32> to vector<256x128xf32>
    %63 = arith.addf %60, %62 : vector<256x128xf32>
    %cst_19 = arith.constant 0.000000e+00 : f32
    %64 = vector.broadcast %cst_19 : f32 to vector<256x128xf32>
    %65 = arith.maximumf %63, %64 : vector<256x128xf32>
    %66 = arith.truncf %65 : vector<256x128xf32> to vector<256x128xbf16>
    %c0_20 = arith.constant 0 : index
    %c0_21 = arith.constant 0 : index
    %67 = vector.load %arg9[%c0_20, %c0_21] : memref<128x128xbf16, #tpu.memory_space<vmem>>, vector<128x128xbf16>
    %cst_22 = arith.constant dense<0.000000e+00> : vector<256x128xf32>
    %68 = tpu.matmul %66, %67, %cst_22 {dimension_numbers = #tpu.dot_dimension_numbers<[1], [0], [0], [1], [0, 0, 1, 1], [], []>} : vector<256x128xbf16>, vector<128x128xbf16>, vector<256x128xf32> -> vector<256x128xf32>
    %c0_23 = arith.constant 0 : index
    %c0_24 = arith.constant 0 : index
    %69 = vector.load %arg10[%c0_23, %c0_24] : memref<1x128xf32, #tpu.memory_space<vmem>>, vector<1x128xf32>
    %70 = vector.broadcast %69 : vector<1x128xf32> to vector<256x128xf32>
    %71 = arith.mulf %68, %70 : vector<256x128xf32>
    %c0_25 = arith.constant 0 : index
    %c0_26 = arith.constant 0 : index
    %72 = vector.load %arg11[%c0_25, %c0_26] : memref<1x128xf32, #tpu.memory_space<vmem>>, vector<1x128xf32>
    %73 = vector.broadcast %72 : vector<1x128xf32> to vector<256x128xf32>
    %74 = arith.addf %71, %73 : vector<256x128xf32>
    %c0_27 = arith.constant 0 : index
    %c0_28 = arith.constant 0 : index
    %c0_29 = arith.constant 0 : index
    %75 = vector.load %arg12[%c0_27, %c0_28, %c0_29] : memref<1x256x128xbf16, #tpu.memory_space<vmem>>, vector<1x256x128xbf16>
    %76 = vector.shape_cast %75 : vector<1x256x128xbf16> to vector<256x128xbf16>
    %77 = arith.extf %76 : vector<256x128xbf16> to vector<256x128xf32>
    %78 = arith.addf %74, %77 : vector<256x128xf32>
    %cst_30 = arith.constant 0.000000e+00 : f32
    %79 = vector.broadcast %cst_30 : f32 to vector<256x128xf32>
    %80 = arith.maximumf %78, %79 : vector<256x128xf32>
    %c0_31 = arith.constant 0 : index
    %c0_32 = arith.constant 0 : index
    %c0_33 = arith.constant 0 : index
    %81 = vector.load %arg13[%c0_31, %c0_32, %c0_33] : memref<1x256x128xf32, #tpu.memory_space<vmem>>, vector<1x256x128xf32>
    %82 = vector.shape_cast %81 : vector<1x256x128xf32> to vector<256x128xf32>
    %83 = vector.shape_cast %80 : vector<256x128xf32> to vector<1x256x128xf32>
    tpu.vector_store %arg13[%c0_31, %c0_32, %c0_33], %83 {strides = array<i32>} : memref<1x256x128xf32, #tpu.memory_space<vmem>>, vector<1x256x128xf32>,
    return
  }
  func.func @transform_0(%arg0: i32, %arg1: i32) -> (i32, i32, i32, i32) {
    %c0_i32 = arith.constant 0 : i32
    %c0_i32_0 = arith.constant 0 : i32
    %c0_i32_1 = arith.constant 0 : i32
    %c0_i32_2 = arith.constant 0 : i32
    return %arg0, %c0_i32, %c0_i32_0, %c0_i32_1 : i32, i32, i32, i32
  }
  func.func @transform_1(%arg0: i32, %arg1: i32) -> (i32, i32) {
    %c0_i32 = arith.constant 0 : i32
    %c0_i32_0 = arith.constant 0 : i32
    %c0_i32_1 = arith.constant 0 : i32
    return %c0_i32, %c0_i32_0 : i32, i32
  }
  func.func @transform_2(%arg0: i32, %arg1: i32) -> (i32, i32) {
    %c0_i32 = arith.constant 0 : i32
    %c0_i32_0 = arith.constant 0 : i32
    %c0_i32_1 = arith.constant 0 : i32
    return %c0_i32, %c0_i32_0 : i32, i32
  }
  func.func @transform_3(%arg0: i32, %arg1: i32) -> (i32, i32) {
    %c0_i32 = arith.constant 0 : i32
    %c0_i32_0 = arith.constant 0 : i32
    %c0_i32_1 = arith.constant 0 : i32
    return %c0_i32, %c0_i32_0 : i32, i32
  }
  func.func @transform_4(%arg0: i32, %arg1: i32) -> (i32, i32) {
    %c0_i32 = arith.constant 0 : i32
    %c0_i32_0 = arith.constant 0 : i32
    %c0_i32_1 = arith.constant 0 : i32
    return %c0_i32, %c0_i32_0 : i32, i32
  }
  func.func @transform_5(%arg0: i32, %arg1: i32) -> (i32, i32) {
    %c0_i32 = arith.constant 0 : i32
    %c0_i32_0 = arith.constant 0 : i32
    %c0_i32_1 = arith.constant 0 : i32
    return %c0_i32, %c0_i32_0 : i32, i32
  }
  func.func @transform_6(%arg0: i32, %arg1: i32) -> (i32, i32) {
    %c0_i32 = arith.constant 0 : i32
    %c0_i32_0 = arith.constant 0 : i32
    %c0_i32_1 = arith.constant 0 : i32
    return %c0_i32, %c0_i32_0 : i32, i32
  }
  func.func @transform_7(%arg0: i32, %arg1: i32) -> (i32, i32) {
    %c0_i32 = arith.constant 0 : i32
    %c0_i32_0 = arith.constant 0 : i32
    %c0_i32_1 = arith.constant 0 : i32
    return %c0_i32, %c0_i32_0 : i32, i32
  }
  func.func @transform_8(%arg0: i32, %arg1: i32) -> (i32, i32) {
    %c0_i32 = arith.constant 0 : i32
    %c0_i32_0 = arith.constant 0 : i32
    %c0_i32_1 = arith.constant 0 : i32
    return %c0_i32, %c0_i32_0 : i32, i32
  }
  func.func @transform_9(%arg0: i32, %arg1: i32) -> (i32, i32) {
    %c0_i32 = arith.constant 0 : i32
    %c0_i32_0 = arith.constant 0 : i32
    %c0_i32_1 = arith.constant 0 : i32
    return %c0_i32, %c0_i32_0 : i32, i32
  }
  func.func @transform_10(%arg0: i32, %arg1: i32) -> (i32, i32, i32) {
    %c0_i32 = arith.constant 0 : i32
    %c0_i32_0 = arith.constant 0 : i32
    return %arg0, %arg1, %c0_i32 : i32, i32, i32
  }
  func.func @transform_11(%arg0: i32, %arg1: i32) -> (i32, i32, i32) {
    %c0_i32 = arith.constant 0 : i32
    %c0_i32_0 = arith.constant 0 : i32
    return %arg0, %arg1, %c0_i32 : i32, i32, i32
  }
}

module attributes {stable_mosaic.version = 11 : i64} {
  func.func @_bottleneck_kernel(%arg0: i32, %arg1: i32, %arg2: memref<1x18x32x128xbf16, #tpu.memory_space<vmem>>, %arg3: memref<128x128xbf16, #tpu.memory_space<vmem>>, %arg4: memref<1x128xf32, #tpu.memory_space<vmem>>, %arg5: memref<1x128xf32, #tpu.memory_space<vmem>>, %arg6: memref<1152x128xbf16, #tpu.memory_space<vmem>>, %arg7: memref<1x128xf32, #tpu.memory_space<vmem>>, %arg8: memref<1x128xf32, #tpu.memory_space<vmem>>, %arg9: memref<128x128xbf16, #tpu.memory_space<vmem>>, %arg10: memref<1x128xf32, #tpu.memory_space<vmem>>, %arg11: memref<1x128xf32, #tpu.memory_space<vmem>>, %arg12: memref<1x256x128xbf16, #tpu.memory_space<vmem>>, %arg13: memref<1x256x128xf32, #tpu.memory_space<vmem>>) attributes {dimension_semantics = [#tpu.dimension_semantics<parallel>, #tpu.dimension_semantics<parallel>], iteration_bounds = array<i64: 2, 1>, scalar_prefetch = 0 : i64, scratch_operands = 0 : i64, tpu.core_type = #tpu.core_type<tc>, window_params = [{transform_indices = @transform_0, window_bounds = array<i64: 1, 18, 32, 128>}, {pipeline_mode = #tpu.pipeline_mode<synchronous>, transform_indices = @transform_1, window_bounds = array<i64: 128, 128>}, {pipeline_mode = #tpu.pipeline_mode<synchronous>, transform_indices = @transform_2, window_bounds = array<i64: 1, 128>}, {pipeline_mode = #tpu.pipeline_mode<synchronous>, transform_indices = @transform_3, window_bounds = array<i64: 1, 128>}, {pipeline_mode = #tpu.pipeline_mode<synchronous>, transform_indices = @transform_4, window_bounds = array<i64: 1152, 128>}, {pipeline_mode = #tpu.pipeline_mode<synchronous>, transform_indices = @transform_5, window_bounds = array<i64: 1, 128>}, {pipeline_mode = #tpu.pipeline_mode<synchronous>, transform_indices = @transform_6, window_bounds = array<i64: 1, 128>}, {pipeline_mode = #tpu.pipeline_mode<synchronous>, transform_indices = @transform_7, window_bounds = array<i64: 128, 128>}, {pipeline_mode = #tpu.pipeline_mode<synchronous>, transform_indices = @transform_8, window_bounds = array<i64: 1, 128>}, {pipeline_mode = #tpu.pipeline_mode<synchronous>, transform_indices = @transform_9, window_bounds = array<i64: 1, 128>}, {transform_indices = @transform_10, window_bounds = array<i64: 1, 256, 128>}, {transform_indices = @transform_11, window_bounds = array<i64: 1, 256, 128>}]} {
    %c16_i32 = arith.constant 16 : i32
    %0 = arith.muli %arg1, %c16_i32 : i32
    %1 = tpu.assume_multiple %0, 16 : i32
    %c0 = arith.constant 0 : index
    %2 = arith.index_cast %1 : i32 to index
    %c0_0 = arith.constant 0 : index
    %c0_1 = arith.constant 0 : index
    %3 = vector.load %arg2[%c0, %2, %c0_0, %c0_1] : memref<1x18x32x128xbf16, #tpu.memory_space<vmem>>, vector<1x18x32x128xbf16>
    %4 = vector.shape_cast %3 : vector<1x18x32x128xbf16> to vector<18x32x128xbf16>
    %5 = vector.shape_cast %4 : vector<18x32x128xbf16> to vector<576x128xbf16>
    %c0_2 = arith.constant 0 : index
    %c0_3 = arith.constant 0 : index
    %6 = vector.load %arg3[%c0_2, %c0_3] : memref<128x128xbf16, #tpu.memory_space<vmem>>, vector<128x128xbf16>
    %cst = arith.constant dense<0.000000e+00> : vector<576x128xf32>
    %7 = tpu.matmul %5, %6, %cst {dimension_numbers = #tpu.dot_dimension_numbers<[1], [0], [0], [1], [0, 0, 1, 1], [], []>} : vector<576x128xbf16>, vector<128x128xbf16>, vector<576x128xf32> -> vector<576x128xf32>
    %c0_4 = arith.constant 0 : index
    %c0_5 = arith.constant 0 : index
    %8 = vector.load %arg4[%c0_4, %c0_5] : memref<1x128xf32, #tpu.memory_space<vmem>>, vector<1x128xf32>
    %9 = vector.broadcast %8 : vector<1x128xf32> to vector<576x128xf32>
    %10 = arith.mulf %7, %9 : vector<576x128xf32>
    %c0_6 = arith.constant 0 : index
    %c0_7 = arith.constant 0 : index
    %11 = vector.load %arg5[%c0_6, %c0_7] : memref<1x128xf32, #tpu.memory_space<vmem>>, vector<1x128xf32>
    %12 = vector.broadcast %11 : vector<1x128xf32> to vector<576x128xf32>
    %13 = arith.addf %10, %12 : vector<576x128xf32>
    %cst_8 = arith.constant 0.000000e+00 : f32
    %14 = vector.broadcast %cst_8 : f32 to vector<576x128xf32>
    %15 = arith.maximumf %13, %14 : vector<576x128xf32>
    %16 = vector.shape_cast %15 : vector<576x128xf32> to vector<18x32x128xf32>
    %17 = arith.truncf %16 : vector<18x32x128xf32> to vector<18x32x128xbf16>
    %18 = tpu.iota {dimensions = array<i32: 0>} : vector<18x32x1xi32>
    %19 = vector.broadcast %1 : i32 to vector<18x32x1xi32>
    %20 = arith.addi %19, %18 : vector<18x32x1xi32>
    %21 = tpu.iota {dimensions = array<i32: 1>} : vector<18x32x1xi32>
    %c1_i32 = arith.constant 1 : i32
    %22 = vector.broadcast %c1_i32 : i32 to vector<18x32x1xi32>
    %23 = arith.cmpi sge, %20, %22 : vector<18x32x1xi32>
    %c17_i32 = arith.constant 17 : i32
    %24 = vector.broadcast %c17_i32 : i32 to vector<18x32x1xi32>
    %25 = arith.cmpi slt, %20, %24 : vector<18x32x1xi32>
    %26 = arith.andi %23, %25 : vector<18x32x1xi1>
    %c1_i32_9 = arith.constant 1 : i32
    %27 = vector.broadcast %c1_i32_9 : i32 to vector<18x32x1xi32>
    %28 = arith.cmpi sge, %21, %27 : vector<18x32x1xi32>
    %29 = arith.andi %26, %28 : vector<18x32x1xi1>
    %c17_i32_10 = arith.constant 17 : i32
    %30 = vector.broadcast %c17_i32_10 : i32 to vector<18x32x1xi32>
    %31 = arith.cmpi slt, %21, %30 : vector<18x32x1xi32>
    %32 = arith.andi %29, %31 : vector<18x32x1xi1>
    %cst_11 = arith.constant 0.000000e+00 : bf16
    %33 = vector.broadcast %cst_11 : bf16 to vector<18x32x128xbf16>
    %34 = vector.shape_cast %32 : vector<18x32x1xi1> to vector<18x32x1xi1>
    %35 = vector.broadcast %34 : vector<18x32x1xi1> to vector<18x32x128xi1>
    %36 = arith.select %35, %17, %33 : vector<18x32x128xi1>, vector<18x32x128xbf16>
    %37 = vector.extract_strided_slice %36 {offsets = [0, 0, 0], sizes = [16, 16, 128], strides = [1, 1, 1]} : vector<18x32x128xbf16> to vector<16x16x128xbf16>
    %38 = vector.shape_cast %37 : vector<16x16x128xbf16> to vector<256x128xbf16>
    %39 = vector.extract_strided_slice %36 {offsets = [0, 1, 0], sizes = [16, 16, 128], strides = [1, 1, 1]} : vector<18x32x128xbf16> to vector<16x16x128xbf16>
    %40 = vector.shape_cast %39 : vector<16x16x128xbf16> to vector<256x128xbf16>
    %41 = vector.extract_strided_slice %36 {offsets = [0, 2, 0], sizes = [16, 16, 128], strides = [1, 1, 1]} : vector<18x32x128xbf16> to vector<16x16x128xbf16>
    %42 = vector.shape_cast %41 : vector<16x16x128xbf16> to vector<256x128xbf16>
    %43 = vector.extract_strided_slice %36 {offsets = [1, 0, 0], sizes = [16, 16, 128], strides = [1, 1, 1]} : vector<18x32x128xbf16> to vector<16x16x128xbf16>
    %44 = vector.shape_cast %43 : vector<16x16x128xbf16> to vector<256x128xbf16>
    %45 = vector.extract_strided_slice %36 {offsets = [1, 1, 0], sizes = [16, 16, 128], strides = [1, 1, 1]} : vector<18x32x128xbf16> to vector<16x16x128xbf16>
    %46 = vector.shape_cast %45 : vector<16x16x128xbf16> to vector<256x128xbf16>
    %47 = vector.extract_strided_slice %36 {offsets = [1, 2, 0], sizes = [16, 16, 128], strides = [1, 1, 1]} : vector<18x32x128xbf16> to vector<16x16x128xbf16>
    %48 = vector.shape_cast %47 : vector<16x16x128xbf16> to vector<256x128xbf16>
    %49 = vector.extract_strided_slice %36 {offsets = [2, 0, 0], sizes = [16, 16, 128], strides = [1, 1, 1]} : vector<18x32x128xbf16> to vector<16x16x128xbf16>
    %50 = vector.shape_cast %49 : vector<16x16x128xbf16> to vector<256x128xbf16>
    %51 = vector.extract_strided_slice %36 {offsets = [2, 1, 0], sizes = [16, 16, 128], strides = [1, 1, 1]} : vector<18x32x128xbf16> to vector<16x16x128xbf16>
    %52 = vector.shape_cast %51 : vector<16x16x128xbf16> to vector<256x128xbf16>
    %53 = vector.extract_strided_slice %36 {offsets = [2, 2, 0], sizes = [16, 16, 128], strides = [1, 1, 1]} : vector<18x32x128xbf16> to vector<16x16x128xbf16>
    %54 = vector.shape_cast %53 : vector<16x16x128xbf16> to vector<256x128xbf16>
    %55 = tpu.concatenate %38, %40, %42, %44, %46, %48, %50, %52, %54 in 1 : vector<256x128xbf16>, vector<256x128xbf16>, vector<256x128xbf16>, vector<256x128xbf16>, vector<256x128xbf16>, vector<256x128xbf16>, vector<256x128xbf16>, vector<256x128xbf16>, vector<256x128xbf16> -> vector<256x1152xbf16>
    %c0_12 = arith.constant 0 : index
    %c0_13 = arith.constant 0 : index
    %56 = vector.load %arg6[%c0_12, %c0_13] : memref<1152x128xbf16, #tpu.memory_space<vmem>>, vector<1152x128xbf16>
    %cst_14 = arith.constant dense<0.000000e+00> : vector<256x128xf32>
    %57 = tpu.matmul %55, %56, %cst_14 {dimension_numbers = #tpu.dot_dimension_numbers<[1], [0], [0], [1], [0, 0, 1, 1], [], []>} : vector<256x1152xbf16>, vector<1152x128xbf16>, vector<256x128xf32> -> vector<256x128xf32>
    %c0_15 = arith.constant 0 : index
    %c0_16 = arith.constant 0 : index
    %58 = vector.load %arg7[%c0_15, %c0_16] : memref<1x128xf32, #tpu.memory_space<vmem>>, vector<1x128xf32>
    %59 = vector.broadcast %58 : vector<1x128xf32> to vector<256x128xf32>
    %60 = arith.mulf %57, %59 : vector<256x128xf32>
    %c0_17 = arith.constant 0 : index
    %c0_18 = arith.constant 0 : index
    %61 = vector.load %arg8[%c0_17, %c0_18] : memref<1x128xf32, #tpu.memory_space<vmem>>, vector<1x128xf32>
    %62 = vector.broadcast %61 : vector<1x128xf32> to vector<256x128xf32>
    %63 = arith.addf %60, %62 : vector<256x128xf32>
    %cst_19 = arith.constant 0.000000e+00 : f32
    %64 = vector.broadcast %cst_19 : f32 to vector<256x128xf32>
    %65 = arith.maximumf %63, %64 : vector<256x128xf32>
    %66 = arith.truncf %65 : vector<256x128xf32> to vector<256x128xbf16>
    %c0_20 = arith.constant 0 : index
    %c0_21 = arith.constant 0 : index
    %67 = vector.load %arg9[%c0_20, %c0_21] : memref<128x128xbf16, #tpu.memory_space<vmem>>, vector<128x128xbf16>
    %cst_22 = arith.constant dense<0.000000e+00> : vector<256x128xf32>
    %68 = tpu.matmul %66, %67, %cst_22 {dimension_numbers = #tpu.dot_dimension_numbers<[1], [0], [0], [1], [0, 0, 1, 1], [], []>} : vector<256x128xbf16>, vector<128x128xbf16>, vector<256x128xf32> -> vector<256x128xf32>
    %c0_23 = arith.constant 0 : index
    %c0_24 = arith.constant 0 : index
    %69 = vector.load %arg10[%c0_23, %c0_24] : memref<1x128xf32, #tpu.memory_space<vmem>>, vector<1x128xf32>
    %70 = vector.broadcast %69 : vector<1x128xf32> to vector<256x128xf32>
    %71 = arith.mulf %68, %70 : vector<256x128xf32>
    %c0_25 = arith.constant 0 : index
    %c0_26 = arith.constant 0 : index
    %72 = vector.load %arg11[%c0_25, %c0_26] : memref<1x128xf32, #tpu.memory_space<vmem>>, vector<1x128xf32>
    %73 = vector.broadcast %72 : vector<1x128xf32> to vector<256x128xf32>
    %74 = arith.addf %71, %73 : vector<256x128xf32>
    %c0_27 = arith.constant 0 : index
    %c0_28 = arith.constant 0 : index
    %c0_29 = arith.constant 0 : index
    %75 = vector.load %arg12[%c0_27, %c0_28, %c0_29] : memref<1x256x128xbf16, #tpu.memory_space<vmem>>, vector<1x256x128xbf16>
    %76 = vector.shape_cast %75 : vector<1x256x128xbf16> to vector<256x128xbf16>
    %77 = arith.extf %76 : vector<256x128xbf16> to vector<256x128xf32>
    %78 = arith.addf %74, %77 : vector<256x128xf32>
    %cst_30 = arith.constant 0.000000e+00 : f32
    %79 = vector.broadcast %cst_30 : f32 to vector<256x128xf32>
    %80 = arith.maximumf %78, %79 : vector<256x128xf32>
    %c0_31 = arith.constant 0 : index
    %c0_32 = arith.constant 0 : index
    %c0_33 = arith.constant 0 : index
    %81 = vector.load %arg13[%c0_31, %c0_32, %c0_33] : memref<1x256x128xf32, #tpu.memory_space<vmem>>, vector<1x256x128xf32>
    %82 = vector.shape_cast %81 : vector<1x256x128xf32> to vector<256x128xf32>
    %83 = vector.shape_cast %80 : vector<256x128xf32> to vector<1x256x128xf32>
    tpu.vector_store %arg13[%c0_31, %c0_32, %c0_33], %83 {strides = array<i32>} : memref<1x256x128xf32, #tpu.memory_space<vmem>>, vector<1x256x128xf32>,
    return
  }
  func.func @transform_0(%arg0: i32, %arg1: i32) -> (i32, i32, i32, i32) {
    %c0_i32 = arith.constant 0 : i32
    %c0_i32_0 = arith.constant 0 : i32
    %c0_i32_1 = arith.constant 0 : i32
    %c0_i32_2 = arith.constant 0 : i32
    return %arg0, %c0_i32, %c0_i32_0, %c0_i32_1 : i32, i32, i32, i32
  }
  func.func @transform_1(%arg0: i32, %arg1: i32) -> (i32, i32) {
    %c0_i32 = arith.constant 0 : i32
    %c0_i32_0 = arith.constant 0 : i32
    %c0_i32_1 = arith.constant 0 : i32
    return %c0_i32, %c0_i32_0 : i32, i32
  }
  func.func @transform_2(%arg0: i32, %arg1: i32) -> (i32, i32) {
    %c0_i32 = arith.constant 0 : i32
    %c0_i32_0 = arith.constant 0 : i32
    %c0_i32_1 = arith.constant 0 : i32
    return %c0_i32, %c0_i32_0 : i32, i32
  }
  func.func @transform_3(%arg0: i32, %arg1: i32) -> (i32, i32) {
    %c0_i32 = arith.constant 0 : i32
    %c0_i32_0 = arith.constant 0 : i32
    %c0_i32_1 = arith.constant 0 : i32
    return %c0_i32, %c0_i32_0 : i32, i32
  }
  func.func @transform_4(%arg0: i32, %arg1: i32) -> (i32, i32) {
    %c0_i32 = arith.constant 0 : i32
    %c0_i32_0 = arith.constant 0 : i32
    %c0_i32_1 = arith.constant 0 : i32
    return %c0_i32, %c0_i32_0 : i32, i32
  }
  func.func @transform_5(%arg0: i32, %arg1: i32) -> (i32, i32) {
    %c0_i32 = arith.constant 0 : i32
    %c0_i32_0 = arith.constant 0 : i32
    %c0_i32_1 = arith.constant 0 : i32
    return %c0_i32, %c0_i32_0 : i32, i32
  }
  func.func @transform_6(%arg0: i32, %arg1: i32) -> (i32, i32) {
    %c0_i32 = arith.constant 0 : i32
    %c0_i32_0 = arith.constant 0 : i32
    %c0_i32_1 = arith.constant 0 : i32
    return %c0_i32, %c0_i32_0 : i32, i32
  }
  func.func @transform_7(%arg0: i32, %arg1: i32) -> (i32, i32) {
    %c0_i32 = arith.constant 0 : i32
    %c0_i32_0 = arith.constant 0 : i32
    %c0_i32_1 = arith.constant 0 : i32
    return %c0_i32, %c0_i32_0 : i32, i32
  }
  func.func @transform_8(%arg0: i32, %arg1: i32) -> (i32, i32) {
    %c0_i32 = arith.constant 0 : i32
    %c0_i32_0 = arith.constant 0 : i32
    %c0_i32_1 = arith.constant 0 : i32
    return %c0_i32, %c0_i32_0 : i32, i32
  }
  func.func @transform_9(%arg0: i32, %arg1: i32) -> (i32, i32) {
    %c0_i32 = arith.constant 0 : i32
    %c0_i32_0 = arith.constant 0 : i32
    %c0_i32_1 = arith.constant 0 : i32
    return %c0_i32, %c0_i32_0 : i32, i32
  }
  func.func @transform_10(%arg0: i32, %arg1: i32) -> (i32, i32, i32) {
    %c0_i32 = arith.constant 0 : i32
    %c0_i32_0 = arith.constant 0 : i32
    return %arg0, %arg1, %c0_i32 : i32, i32, i32
  }
  func.func @transform_11(%arg0: i32, %arg1: i32) -> (i32, i32, i32) {
    %c0_i32 = arith.constant 0 : i32
    %c0_i32_0 = arith.constant 0 : i32
    return %arg0, %arg1, %c0_i32 : i32, i32, i32
  }
}

</mosaic_0001>

<bundles_post_ra>
// kernel: tpu_custom_call.1
= control target key start
LH: loop header
LB: loop body
LE: loop exit
PB: predicated region body
PF: predicated region fallthrough
CT: control target
= control target key end

     0   :  { %s7811_s0 = inlined_call_operand.hbm [shape: bf16[2,18,32,128], index: 0, kind: input, shape index: {}]   ;;  %s7812_s1 = inlined_call_operand.hbm [shape: bf16[128,128], index: 1, kind: input, shape index: {}]   ;;  %s7813_s2 = inlined_call_operand.vmem [shape: f32[1,128], index: 2, kind: input, shape index: {}]   ;;  %s7814_s3 = inlined_call_operand.vmem [shape: f32[1,128], index: 3, kind: input, shape index: {}]   ;;  %s7815_s4 = inlined_call_operand.hbm [shape: bf16[1152,128], index: 4, kind: input, shape index: {}]   ;;  %s7816_s5 = inlined_call_operand.vmem [shape: f32[1,128], index: 5, kind: input, shape index: {}]   ;;  %s7817_s6 = inlined_call_operand.vmem [shape: f32[1,128], index: 6, kind: input, shape index: {}]   ;;  %s7818_s7 = inlined_call_operand.hbm [shape: bf16[128,128], index: 7, kind: input, shape index: {}]   ;;  %s7819_s8 = inlined_call_operand.vmem [shape: f32[1,128], index: 8, kind: input, shape index: {}]   ;;  %s7820_s9 = inlined_call_operand.vmem [shape: f32[1,128], index: 9, kind: input, shape index: {}]   ;;  %s7821_s10 = inlined_call_operand.hbm [shape: bf16[2,256,128], index: 10, kind: input, shape index: {}]   ;;  %s7822_s11 = inlined_call_operand.hbm [shape: f32[2,256,128], index: 11, kind: output, shape index: {}]  }
   0x1   :  { %7850 = sst [smem:[#allocation59_spill]] %s7811_s0 }
   0x2   :  { %7851 = sst [smem:[#allocation60_spill]] %s7812_s1 }
   0x3   :  { %7852 = sst [smem:[#allocation61_spill]] %s7819_s8 }
   0x4   :  { %7853 = sst [smem:[#allocation62_spill]] %s7820_s9 }
   0x5   :  { %7854 = sst [smem:[#allocation63_spill]] %s7822_s11 }
   0x6   :  { %16 = vsyncpa [#allocation3], 0 }
   0x7   :  { %18 = vsyncpa [#allocation3 + $0x1], 0 }
   0x8   :  { %19 = vsyncpa [#allocation6], 0 }
   0x9   :  { %20 = vsyncpa [#allocation9], 0 }
   0xa   :  { %21 = vsyncpa [#allocation4], 0 }
   0xb   :  { %23 = vsyncpa [#allocation4 + $0x1], 0  ;;  %s6229_s17 = smov 0   ;;  %s6231_s18 = smov 0  }
   0xc   :  { %s6233_s19 = smov 0   ;;  %s6235_s20 = smov 0  }
   0xd   :  { %s6237_s21 = smov 0   ;;  %s6239_s22 = smov 0  }
   0xe LB: > { %7855 = sst [smem:[#allocation17_spill]] %s6134_s17  ;;  %s6260_s23 = sadd.s32 4294967295, %s6154_s22   ;;  %s6154_s22 = sphi %s6239_s22, %s29_s22   ;;  %s6150_s21 = sphi %s6237_s21, %s8005_s21   ;;  %s6146_s20 = sphi %s6235_s20, %s8004_s20   ;;  %s6142_s19 = sphi %s6233_s19, %s8000_s19   ;;  %s6138_s18 = sphi %s6231_s18, %s8003_s18   ;;  %s6134_s17 = sphi %s6229_s17, %s8002_s17  }
   0xf   : > { %7856 = sst [smem:[#allocation18_spill]] %s6142_s19  ;;  %s4618_s24 = sadd.s32 4294967294, %s6154_s22  }
  0x10   : > { %7857 = sst [smem:[#allocation19_spill]] %s6146_s20  ;;  %p61_p0 = scmp.ne.s32.totalorder %s6138_s18, %s6134_s17 }
  0x11   : > { %7858 = sst [smem:[#allocation20_spill]] %s6154_s22  ;;  %p7825_p1 = scmp.eq.s32.totalorder %s6260_s23, 0 }
  0x12   : > { %p310_p3 = scmp.eq.s32.totalorder %s4618_s24, 1  ;;  %p4619_p5 = scmp.ge.s32.totalorder %s6154_s22, 1 }
  0x13   : > { %p6269_p4 = por %p7825_p1, %p61_p0  ;;  %p317_p7 = scmp.lt.s32.totalorder %s6154_s22, 3 }
  0x14   : > { %p6274_p6 = por %p310_p3, %p61_p0  ;;  %s6156_s28 = smov [#allocation5]  }
  0x15   : > { %s7859_s25 = scalar_select %p6269_p4, 1, 0 }
  0x16   : > { %s7860_s26 = scalar_select %p6274_p6, 1, 0 }
  0x17   : > { %p6279_p8 = pnand %p4619_p5, %p317_p7  ;;  %s329_s29 = sshll.u32 %s6156_s28, 4  ;;  %s330_s29 = int_to_ptr.vmem [resolvable:$true] %s329_s29 }
  0x18   : > { %7861 = sst [smem:[#allocation21_spill]] %s7860_s26  ;;  %s41_s12 = sadd.s32 1, %s6150_s21 }
  0x19   : > { %s7862_s27 = scalar_select %p6279_p8, 1, 0 }
  0x1a   : > { %p5695_p9 = pneg %p6279_p8  ;;  %s7864_s1 = sld [smem:[#allocation60_spill]] }
  0x1c   : > { %p6288_p11 = pnand %p5695_p9, %p7825_p1 }
  0x1e   : > { %s7863_s30 = scalar_select %p6288_p11, 1, 0 }
  0x1f   : > { %p6301_p13 = pneg %p6288_p11 }
  0x20   : > { %s5916_s15 = scalar_lea.hbm %s7864_s1, 1024 }
  0x21   : > { %p5917_p12 = scmp.ne.s32.totalorder %s7864_s1, %s5916_s15  ;;  %p5923_p5 = scmp.lt.u32.totalorder %s5916_s15, %s7864_s1 }
  0x23   : > { %p5919_p0 = pnand %p6301_p13, %p5917_p12 }
  0x25   : > { %p5920_p3 = pneg %p5919_p0 }
  0x27   : > { %p5925_p7 = pnand %p5923_p5, %p5920_p3 }
  0x29   : > { %5928 = shalt.err (!%p5925_p7)
}
  0x2a   : > { %s5929_s13 = scalar_lea.vmem %s330_s29, 1024  ;;  %p5937_p2 = scmp.lt.s32.totalorder %s330_s29, %s330_s29 }
  0x2b   : > { %p5930_p9 = scmp.ne.s32.totalorder %s330_s29, %s5929_s13  ;;  %p5938_p6 = scmp.lt.s32.totalorder %s5929_s13, %s5929_s13 }
  0x2d   : > { %p5932_p10 = pnand %p5930_p9, %p6301_p13  ;;  %p5939_p4 = por %p5938_p6, %p5937_p2 }
  0x2f   : > { %p5933_p1 = pneg %p5932_p10 }
  0x31   : > { %p5940_p8 = pnand %p5939_p4, %p5933_p1 }
  0x33   : > { %5943 = shalt.err (!%p5940_p8)
}
  0x34   : > { %s7829_s14 = smov 64   ;;  %s7831_s17 = smov 4  }
  0x35   : > { %5698 = dma.hbm_to_vmem [thread:$0]  (!%p6288_p11), %s7864_s1, 1024, %s330_s29, [#allocation6], %s7829_s14, %s7829_s14, %s7831_s17  }
  0x36   : > { %p43_p1 = scmp.ge.s32.totalorder %s41_s12, 2  ;;  %s48_s16 = sadd.s32 1, %s6142_s19 }
  0x37   : > { %p55_p2 = scmp.ne.s32.totalorder %s6142_s19, %s6138_s18  ;;  %p56_p4 = scmp.eq.s32.totalorder %s6154_s22, 0 }
  0x38   : > { %s8007_s12 = smov (%p43_p1, %s41_s12), 0  ;;  %p7867_p8 = scmp.eq.s32.totalorder %s6260_s23, 1 }
  0x39   : > { %7866 = sst [smem:[#allocation22_spill]] %s8007_s12  ;;  %p57_p6 = por %p56_p4, %p55_p2 }
  0x3a   : > { %p6328_p10 = por %p7867_p8, %p55_p2  ;;  %s45_s13 = ssub.s32 %s6150_s21, %s8007_s12 }
  0x3b   : > { %p5719_p12 = scmp.lt.s32.totalorder %s6154_s22, 2  ;;  %p46_p0 = scmp.eq.s32.totalorder %s45_s13, 0 }
  0x3c   : > { %s7868_s24 = scalar_select %p6328_p10, 1, 0 }
  0x3d   : > { %s387_s11 = sand.u32 1, %s6154_s22   ;;  %s389_s26 = sand.u32 1, %s6142_s19  }
  0x3e   : > { %7869 = sst [smem:[#allocation23_spill]] %s7868_s24  ;;  %s5674_s15 = smul.u32 288, %s389_s26 }
  0x3f   : > { %s6338_s29 = scalar_select %p46_p0, %s6142_s19, %s48_s16  }
  0x40   : > { %p6340_p3 = pnand %p5719_p12, %p57_p6  ;;  %s5675_s17 = smul.u32 4608, %s6150_s21 }
  0x41   : > { %7870 = sst [smem:[#allocation24_spill]] %s6338_s29  ;;  %s6345_s1 = sshll.u32 %s389_s26, 7 }
  0x42   : > { %s7872_s0 = sld [smem:[#allocation59_spill]]  ;;  %s391_s16 = scalar_lea.vmem [#allocation2], %s5674_s15 }
  0x43   : > { %s398_s13 = sshll.u32 %s391_s16, 4  ;;  %s6354_s29 = scalar_lea.sflag [#allocation3], %s387_s11  ;;  %s6352_s13 = int_to_ptr.vmem [resolvable:$true] %s398_s13 }
  0x44   : > { %p7842_p7 = pneg %p6340_p3 }
  0x48   : > { %s6350_s12 = scalar_lea.hbm %s7872_s0, %s5675_s17  ;;  %s5949_s17 = scalar_lea.hbm %s7872_s0, 9216 }
  0x49   : > { %s5944_s19 = scalar_lea.hbm %s6350_s12, 4608  ;;  %p5950_p2 = scmp.lt.u32.totalorder %s6350_s12, %s7872_s0 }
  0x4a   : > { %p5945_p5 = scmp.ne.s32.totalorder %s6350_s12, %s5944_s19  ;;  %p5951_p4 = scmp.lt.u32.totalorder %s5949_s17, %s5944_s19 }
  0x4b   : > { %p5953_p8 = scmp.lt.u32.totalorder %s5944_s19, %s6350_s12 }
  0x4c   : > { %p5947_p9 = pnand %p7842_p7, %p5945_p5  ;;  %p5952_p6 = por %p5951_p4, %p5950_p2 }
  0x4e   : > { %p5948_p1 = pneg %p5947_p9  ;;  %p5954_p12 = por %p5953_p8, %p5952_p6 }
  0x50   : > { %p5955_p0 = pnand %p5954_p12, %p5948_p1 }
  0x52   : > { %5958 = shalt.err (!%p5955_p0)
}
  0x53   : > { %s5959_s11 = scalar_lea.vmem %s6352_s13, 4608  ;;  %s6159_s15 = smov [#allocation2]  }
  0x54   : > { %p5960_p5 = scmp.ne.s32.totalorder %s6352_s13, %s5959_s11  ;;  %s5964_s16 = sshll.u32 %s6159_s15, 4  ;;  %s5965_s16 = int_to_ptr.vmem [resolvable:$false] %s5964_s16 }
  0x55   : > { %s5966_s22 = scalar_lea.vmem %s5965_s16, 9216  ;;  %p5967_p11 = scmp.lt.s32.totalorder %s6352_s13, %s5965_s16 }
  0x56   : > { %p5962_p9 = pnand %p5960_p5, %p7842_p7  ;;  %p5968_p2 = scmp.lt.s32.totalorder %s5966_s22, %s5959_s11 }
  0x58   : > { %p5963_p10 = pneg %p5962_p9  ;;  %p5969_p4 = por %p5968_p2, %p5967_p11 }
  0x5a   : > { %p5970_p6 = pnand %p5969_p4, %p5963_p10 }
  0x5c   : > { %5973 = shalt.err (!%p5970_p6)
}
  0x5d   : > { %s7873_s19 = smov 4   ;;  %s7874_s9 = smov 64  }
  0x5e   : > { %5708 = dma.hbm_to_vmem [thread:$0]  (!%p6340_p3), %s6350_s12, 4608, %s6352_s13, %s6354_s29, %s7874_s9, %s7874_s9, %s7873_s19  }
  0x5f   : > { %s6160_s20 = smov [#allocation7]   ;;  %s6161_s26 = smov [#allocation8]  }
  0x60   : > { %s348_s17 = sshll.u32 %s6160_s20, 4  ;;  %s367_s15 = sshll.u32 %s6161_s26, 4  ;;  %s349_s17 = int_to_ptr.vmem [resolvable:$true] %s348_s17  ;;  %s6385_s15 = int_to_ptr.vmem [resolvable:$true] %s367_s15 }
  0x61   : > { %s5974_s22 = scalar_lea.hbm %s7815_s4, 9216 }
  0x62   : > { %p5975_p11 = scmp.ne.s32.totalorder %s7815_s4, %s5974_s22  ;;  %p5981_p8 = scmp.lt.u32.totalorder %s5974_s22, %s7815_s4 }
  0x64   : > { %p5977_p10 = pnand %p5975_p11, %p6301_p13 }
  0x66   : > { %p5978_p1 = pneg %p5977_p10 }
  0x68   : > { %p5983_p12 = pnand %p5981_p8, %p5978_p1 }
  0x6a   : > { %5986 = shalt.err (!%p5983_p12)
}
  0x6b   : > { %s5987_s13 = scalar_lea.vmem %s349_s17, 9216  ;;  %p5995_p2 = scmp.lt.s32.totalorder %s349_s17, %s349_s17 }
  0x6c   : > { %p5988_p0 = scmp.ne.s32.totalorder %s349_s17, %s5987_s13  ;;  %p5996_p4 = scmp.lt.s32.totalorder %s5987_s13, %s5987_s13 }
  0x6e   : > { %p5990_p5 = pnand %p5988_p0, %p6301_p13  ;;  %p5997_p6 = por %p5996_p4, %p5995_p2 }
  0x70   : > { %p5991_p9 = pneg %p5990_p5 }
  0x72   : > { %p5998_p7 = pnand %p5997_p6, %p5991_p9 }
  0x74   : > { %6001 = shalt.err (!%p5998_p7)
}
  0x75   : > { %p7875_p11 = scmp.ne.s32.totalorder %s7863_s30, 0  ;;  %s6002_s26 = scalar_lea.hbm %s7818_s7, 1024 }
  0x76   : > { %p6003_p10 = scmp.ne.s32.totalorder %s7818_s7, %s6002_s26  ;;  %p6009_p8 = scmp.lt.u32.totalorder %s6002_s26, %s7818_s7 }
  0x77   : > { %5701 = dma.hbm_to_vmem [thread:$0]  (!%p7875_p11), %s7815_s4, 9216, %s349_s17, [#allocation6], %s7874_s9, %s7874_s9, %s7873_s19  }
  0x78   : > { %p6005_p7 = pnand %p6003_p10, %p6301_p13 }
  0x7a   : > { %p6006_p1 = pneg %p6005_p7 }
  0x7c   : > { %p6011_p12 = pnand %p6009_p8, %p6006_p1 }
  0x7e   : > { %6014 = shalt.err (!%p6011_p12)
}
  0x7f   : > { %s6015_s17 = scalar_lea.vmem %s6385_s15, 1024  ;;  %p6023_p2 = scmp.lt.s32.totalorder %s6385_s15, %s6385_s15 }
  0x80   : > { %p6016_p0 = scmp.ne.s32.totalorder %s6385_s15, %s6015_s17  ;;  %p6024_p4 = scmp.lt.s32.totalorder %s6015_s17, %s6015_s17 }
  0x82   : > { %p6018_p5 = pnand %p6016_p0, %p6301_p13  ;;  %p6025_p6 = por %p6024_p4, %p6023_p2 }
  0x84   : > { %p6019_p9 = pneg %p6018_p5 }
  0x86   : > { %p6026_p10 = pnand %p6025_p6, %p6019_p9 }
  0x88   : > { %6029 = shalt.err (!%p6026_p10)
}
  0x89   : > { %5704 = dma.hbm_to_vmem [thread:$0]  (!%p7875_p11), %s7818_s7, 1024, %s6385_s15, [#allocation9], %s7874_s9, %s7874_s9, %s7873_s19  }
  0x8a   : > { %s4853_s28 = sshll.u32 %s6150_s21, 11  ;;  %s412_s8 = scalar_lea.vmem [#allocation10], %s6345_s1 }
  0x8b   : > { %s421_s24 = sshll.u32 %s412_s8, 4  ;;  %s6439_s11 = scalar_lea.hbm %s7821_s10, %s4853_s28  ;;  %s6441_s24 = int_to_ptr.vmem [resolvable:$true] %s421_s24 }
  0x8c   : > { %s6030_s30 = scalar_lea.hbm %s6439_s11, 2048  ;;  %p7876_p7 = pneg %p6340_p3 }
  0x8d   : > { %p6031_p13 = scmp.ne.s32.totalorder %s6439_s11, %s6030_s30  ;;  %s6035_s16 = scalar_lea.hbm %s7821_s10, 4096 }
  0x8e   : > { %p6036_p8 = scmp.lt.u32.totalorder %s6439_s11, %s7821_s10  ;;  %p6037_p12 = scmp.lt.u32.totalorder %s6035_s16, %s6030_s30 }
  0x8f   : > { %p6033_p1 = pnand %p6031_p13, %p7876_p7  ;;  %p6039_p5 = scmp.lt.u32.totalorder %s6030_s30, %s6439_s11 }
  0x90   : > { %p6038_p0 = por %p6037_p12, %p6036_p8 }
  0x91   : > { %p6034_p11 = pneg %p6033_p1 }
  0x92   : > { %p6040_p9 = por %p6039_p5, %p6038_p0 }
  0x94   : > { %p6041_p2 = pnand %p6040_p9, %p6034_p11 }
  0x96   : > { %6044 = shalt.err (!%p6041_p2)
}
  0x97   : > { %s6045_s17 = scalar_lea.vmem %s6441_s24, 2048  ;;  %p7877_p6 = pmov %p7876_p7 }
  0x98   : > { %p6046_p4 = scmp.ne.s32.totalorder %s6441_s24, %s6045_s17  ;;  %s6162_s13 = smov [#allocation10]  }
  0x99   : > { %s6050_s0 = sshll.u32 %s6162_s13, 4  ;;  %s6051_s0 = int_to_ptr.vmem [resolvable:$false] %s6050_s0 }
  0x9a   : > { %p6048_p10 = pnand %p6046_p4, %p7877_p6  ;;  %s6052_s28 = scalar_lea.vmem %s6051_s0, 4096 }
  0x9b   : > { %p6053_p7 = scmp.lt.s32.totalorder %s6441_s24, %s6051_s0  ;;  %p6054_p1 = scmp.lt.s32.totalorder %s6052_s28, %s6045_s17 }
  0x9c   : > { %p6049_p13 = pneg %p6048_p10 }
  0x9d   : > { %p6055_p8 = por %p6054_p1, %p6053_p7 }
  0x9f   : > { %p6056_p12 = pnand %p6055_p8, %p6049_p13 }
  0xa1   : > { %6059 = shalt.err (!%p6056_p12)
}
  0xa2   : > { %5711 = dma.hbm_to_vmem [thread:$0]  (!%p6340_p3), %s6439_s11, 2048, %s6441_s24, %s6354_s29, %s7874_s9, %s7874_s9, %s7873_s19  }
  0xa3   : > { %p7878_p11 = scmp.ne.s32.totalorder %s7862_s27, 0 }
  0xa5   : > { %433 = sbr.rel (%p7878_p11) target bundleno = 1299 (0x513), region = 64 }
  0xac   : > { %s435_s8 = sand.u32 1, %s6260_s23   ;;  %s6474_s20 = sand.u32 1, %s6138_s18  }
  0xad   : > { %s5676_s26 = smul.u32 288, %s6474_s20  ;;  %s436_s30 = scalar_lea.sflag [#allocation3], %s435_s8 }
  0xae   : > { %p7879_p0 = scmp.ne.s32.totalorder %s7859_s25, 0 }
  0xaf   : > { %s6477_s14 = scalar_lea.vmem [#allocation2], %s5676_s26 }
  0xb0   : > { %6113 = dma.done.wait (%p7879_p0), %s436_s30, 4608  }
  0xb1   : > { %6115 = vsyncadd (%p7879_p0), %s436_s30, 4294962688  ;;  %p7880_p3 = scmp.eq.s32.totalorder %s6260_s23, 0 }
  0xb3   : > { %6117 = dma.done.wait (%p7880_p3), [#allocation6], 10240   ;;  %p7881_p5 = pmov %p7880_p3 }
  0xb4   : > { %p7882_p9 = pmov %p7880_p3 }
  0xb5   : > { %6119 = vsyncadd (%p7881_p5), [#allocation6], 4294957056 }
  0xb6   : > { %6121 = dma.done.wait (%p7882_p9), [#allocation9], 1024   ;;  %p7883_p2 = pmov %p7880_p3 }
  0xb7   : > { %s4632_s27 = sshll.u32 %s6474_s20, 7 }
  0xb8   : > { %6123 = vsyncadd (%p7883_p2), [#allocation9], 4294966272  ;;  %s6492_s29 = scalar_lea.vmem [#allocation10], %s4632_s27 }
  0xb9   : > { %6125 = dma.done.wait (%p7879_p0), %s436_s30, 2048  }
  0xba   : > { %6127 = vsyncadd (%p7879_p0), %s436_s30, 4294965248  ;;  %v5782_v0 = vld [vmem:[#allocation5] sm:$0xff]   ;;  %v5783_v1 = vld [vmem:[#allocation5 + $0x8] sm:$0xff]   ;;  %vm6163_vm0 = vmmov 0   ;;  %vm6165_vm4 = vmmov 1   ;;  %vm2390_vm10 = vcmask 1046528  }
  0xbb   : > { %5474 = vmatprep.subr.bf16.mxu0 %v5782_v0  ;;  %v5784_v2 = vld [vmem:[#allocation5 + $0x10] sm:$0xff]   ;;  %v5785_v3 = vld [vmem:[#allocation5 + $0x18] sm:$0xff]   ;;  %v5790_v4 = vld [vmem:[%s6477_s14] sm:$0xff]   ;;  %vm2149_vm12 = vsmask.f32 7424  ;;  %s7988_s28 = sld [smem:[#allocation61_spill]] }
  0xbc   : > { %5475 = vmatpush3.bf16.msra.mxu0 %v5782_v0  ;;  %5490 = vmatprep.mubr.bf16.mxu0 %v5790_v4  ;;  %v5786_v5 = vld [vmem:[#allocation5 + $0x20] sm:$0xff]   ;;  %v5787_v6 = vld [vmem:[#allocation5 + $0x28] sm:$0xff]   ;;  %v5788_v7 = vld [vmem:[#allocation5 + $0x30] sm:$0xff]   ;;  %s7989_s30 = sld [smem:[#allocation62_spill]]  ;;  %s7990_s23 = sld [smem:[#allocation19_spill]] }
  0xbd   : > { %5476 = vmatprep.subr.bf16.mxu0 %v5783_v1  ;;  %v5789_v8 = vld [vmem:[#allocation5 + $0x38] sm:$0xff]   ;;  %v5791_v9 = vld [vmem:[%s6477_s14 + $0x8] sm:$0xff]   ;;  %v5792_v10 = vld [vmem:[%s6477_s14 + $0x10] sm:$0xff]   ;;  %s7991_s19 = sld [smem:[#allocation23_spill]]  ;;  %s4464_s1 = scalar_lea.sflag [#allocation4], %s6474_s20 }
  0xbe   : > { %v5793_v11 = vld [vmem:[%s6477_s14 + $0x18] sm:$0xff]   ;;  %v5794_v12 = vld [vmem:[%s6477_s14 + $0x20] sm:$0xff]   ;;  %v5795_v15 = vld [vmem:[%s6477_s14 + $0x28] sm:$0xff]   ;;  %s7992_s11 = sld [smem:[#allocation63_spill]]  ;;  %s6166_s22 = smov [#allocation11]  }
  0xbf   : > { %v5824_v13 = vld [vmem:[#allocation7 + $0x40] sm:$0xff]   ;;  %v5826_v16 = vld [vmem:[#allocation7 + $0x48] sm:$0xff]   ;;  %v5796_v17 = vld [vmem:[%s6477_s14 + $0x30] sm:$0xff]   ;;  %s6064_s12 = sshll.u32 %s6166_s22, 4  ;;  %s6065_s12 = int_to_ptr.vmem [resolvable:$false] %s6064_s12 }
  0xc0   : > { %5477 = vmatpush3.bf16.msra.mxu0 %v5783_v1  ;;  %v5825_v14 = vld [vmem:[#allocation7] sm:$0xff]   ;;  %4978 = vmatprep.subr.bf16.mxu1 %v5824_v13  ;;  %v5827_v18 = vld [vmem:[#allocation7 + $0x8] sm:$0xff]   ;;  %v5828_v19 = vld [vmem:[#allocation7 + $0x50] sm:$0xff]   ;;  %v1470_v13 = vlaneseq  ;;  %s6066_s17 = scalar_lea.vmem %s6065_s12, 8192 }
  0xc1   : > { %5478 = vmatprep.subr.bf16.mxu0 %v5784_v2  ;;  %4979 = vmatpush3.bf16.msra.mxu1 %v5825_v14  ;;  %v5829_v20 = vld [vmem:[#allocation7 + $0x140] sm:$0xff]   ;;  %v5830_v21 = vld [vmem:[#allocation7 + $0x10] sm:$0xff]   ;;  %v5797_v23 = vld [vmem:[%s6477_s14 + $0x38] sm:$0xff]  }
  0xc2   : > { %4980 = vmatprep.subr.bf16.mxu1 %v5826_v16  ;;  %v5831_v22 = vld [vmem:[#allocation7 + $0x100] sm:$0xff]   ;;  %v5799_v25 = vld [vmem:[%s6477_s14 + $0x48] sm:$0xff]   ;;  %v5800_v26 = vld [vmem:[%s6477_s14 + $0x50] sm:$0xff]   ;;  %v1471_v14 = vshrl.u32 %v1470_v13, 7 }
  0xc3   : > { %v5798_v24 = vld [vmem:[%s6477_s14 + $0x40] sm:$0xff]   ;;  %v5801_v27 = vld [vmem:[%s6477_s14 + $0x58] sm:$0xff]   ;;  %v5803_v29 = vld [vmem:[%s6477_s14 + $0x68] sm:$0xff]   ;;  %p7993_p6 = scmp.ne.s32.totalorder %s7991_s19, 0 }
  0xc4   : > { %5479 = vmatpush3.bf16.msra.mxu0 %v5784_v2  ;;  %v5802_v28 = vld [vmem:[%s6477_s14 + $0x60] sm:$0xff]   ;;  %v5804_v30 = vld [vmem:[%s6477_s14 + $0x70] sm:$0xff]   ;;  %v5805_v31 = vld [vmem:[%s6477_s14 + $0x78] sm:$0xff]   ;;  %vm1529_vm2 = vcmp.ge.s32.totalorder %v1471_v14, 1 }
  0xc5   : > { %5480 = vmatprep.subr.bf16.mxu0 %v5785_v3  ;;  %4981 = vmatpush3.bf16.msra.mxu1 %v5827_v18  ;;  %v5806_v32 = vld [vmem:[%s6477_s14 + $0x80] sm:$0xff]   ;;  %v5807_v33 = vld [vmem:[%s6477_s14 + $0x88] sm:$0xff]   ;;  %v5808_v34 = vld [vmem:[%s6477_s14 + $0x90] sm:$0xff]  }
  0xc6   : > { %4982 = vmatprep.subr.bf16.mxu1 %v5828_v19  ;;  %v5809_v35 = vld [vmem:[%s6477_s14 + $0x98] sm:$0xff]   ;;  %v5810_v36 = vld [vmem:[%s6477_s14 + $0xa0] sm:$0xff]   ;;  %v5811_v37 = vld [vmem:[%s6477_s14 + $0xa8] sm:$0xff]  }
  0xc7   : > { %v5812_v38 = vld [vmem:[%s6477_s14 + $0xb0] sm:$0xff]   ;;  %v5833_v39 = vld [vmem:[#allocation7 + $0x148] sm:$0xff]   ;;  %v5832_v40 = vld [vmem:[#allocation7 + $0x58] sm:$0xff]  }
  0xc8   : > { %5481 = vmatpush3.bf16.msra.mxu0 %v5785_v3  ;;  %v5835_v41 = vld [vmem:[#allocation7 + $0x108] sm:$0xff]   ;;  %v5834_v42 = vld [vmem:[#allocation7 + $0x18] sm:$0xff]   ;;  %v5814_v44 = vld [vmem:[%s6477_s14 + $0xc0] sm:$0xff]  }
  0xc9   : > { %5482 = vmatprep.subr.bf16.mxu0 %v5786_v5  ;;  %4983 = vmatpush3.bf16.msra.mxu1 %v5830_v21  ;;  %v5813_v43 = vld [vmem:[%s6477_s14 + $0xb8] sm:$0xff]   ;;  %v5837_v45 = vld [vmem:[#allocation7 + $0x150] sm:$0xff]   ;;  %v5836_v46 = vld [vmem:[#allocation7 + $0x60] sm:$0xff]  }
  0xca   : > { %4984 = vmatprep.subr.bf16.mxu1 %v5832_v40  ;;  %v5839_v47 = vld [vmem:[#allocation7 + $0x110] sm:$0xff]   ;;  %v5838_v48 = vld [vmem:[#allocation7 + $0x20] sm:$0xff]   ;;  %v5841_v49 = vld [vmem:[#allocation7 + $0x158] sm:$0xff]  }
  0xcb   : > { %v5840_v50 = vld [vmem:[#allocation7 + $0x68] sm:$0xff]   ;;  %v5843_v51 = vld [vmem:[#allocation7 + $0x118] sm:$0xff]   ;;  %v5816_v54 = vld [vmem:[%s6477_s14 + $0xd0] sm:$0xff]  }
  0xcc   : > { %5483 = vmatpush3.bf16.msra.mxu0 %v5786_v5  ;;  %v5842_v52 = vld [vmem:[#allocation7 + $0x28] sm:$0xff]   ;;  %v5845_v55 = vld [vmem:[#allocation7 + $0x160] sm:$0xff]   ;;  %v5844_v56 = vld [vmem:[#allocation7 + $0x70] sm:$0xff]  }
  0xcd   : > { %5484 = vmatprep.subr.bf16.mxu0 %v5787_v6  ;;  %4985 = vmatpush3.bf16.msra.mxu1 %v5834_v42  ;;  %v5815_v53 = vld [vmem:[%s6477_s14 + $0xc8] sm:$0xff]   ;;  %v5847_v57 = vld [vmem:[#allocation7 + $0x120] sm:$0xff]   ;;  %v5846_v58 = vld [vmem:[#allocation7 + $0x30] sm:$0xff]  }
  0xce   : > { %4986 = vmatprep.subr.bf16.mxu1 %v5836_v46  ;;  %v5849_v59 = vld [vmem:[#allocation7 + $0x168] sm:$0xff]   ;;  %v5848_v60 = vld [vmem:[#allocation7 + $0x78] sm:$0xff]   ;;  %v5818_v0 = vld [vmem:[%s6477_s14 + $0xe0] sm:$0xff]  }
  0xcf   : > { %v5851_v61 = vld [vmem:[#allocation7 + $0x128] sm:$0xff]   ;;  %v5850_v62 = vld [vmem:[#allocation7 + $0x38] sm:$0xff]   ;;  %v5855_v1 = vld [vmem:[#allocation7 + $0x170] sm:$0xff]  }
  0xd0   : > { %5485 = vmatpush3.bf16.msra.mxu0 %v5787_v6  ;;  %v5817_v63 = vld [vmem:[%s6477_s14 + $0xd8] sm:$0xff]   ;;  %v5857_v2 = vld [vmem:[#allocation7 + $0x130] sm:$0xff]   ;;  %v5819_v3 = vld [vmem:[%s6477_s14 + $0xe8] sm:$0xff]  }
  0xd1   : > { %5486 = vmatprep.subr.bf16.mxu0 %v5788_v7  ;;  %4987 = vmatpush3.bf16.msra.mxu1 %v5838_v48  ;;  %v5858_v4 = vld [vmem:[#allocation7 + $0x178] sm:$0xff]   ;;  %v5820_v5 = vld [vmem:[%s6477_s14 + $0xf0] sm:$0xff]   ;;  %v6539_v16 = vld [vmem:[%s7813_s2] ss:$0 sm:$0xff] }
  0xd2   : > { %4988 = vmatprep.subr.bf16.mxu1 %v5840_v50  ;;  %v5859_v6 = vld [vmem:[#allocation7 + $0x138] sm:$0xff]   ;;  %vm1825_vm1 = vmpackc.low %vm6163_vm0, %vm6163_vm0  ;;  %v6545_v19 = vld [vmem:[%s7814_s3] ss:$0 sm:$0xff] }
  0xd3   : > { %vm1830_vm5 = vmpackc.low %vm6165_vm4, %vm6165_vm4 }
  0xd4   : > { %5487 = vmatpush3.bf16.msra.mxu0 %v5788_v7  ;;  %v5854_v7 = vld [vmem:[#allocation7 + $0xc0] sm:$0xff]   ;;  %vm1829_vm6 = vmpackc.low %vm1529_vm2, %vm1529_vm2 }
  0xd5   : > { %5488 = vmatprep.subr.bf16.mxu0 %v5789_v8  ;;  %4989 = vmatpush3.bf16.msra.mxu1 %v5842_v52 }
  0xd6   : > { %4990 = vmatprep.subr.bf16.mxu1 %v5844_v56 }
  0xd8   : > { %5489 = vmatpush3.bf16.msra.mxu0 %v5789_v8  ;;  %v5821_v8 = vld [vmem:[%s6477_s14 + $0xf8] sm:$0xff]  }
  0xd9   : > { %5202 = vmatprep.subr.bf16.mxu0 %v5829_v20  ;;  %4991 = vmatpush3.bf16.msra.mxu1 %v5846_v58 }
  0xda   : > { %4992 = vmatprep.subr.bf16.mxu1 %v5848_v60 }
  0xdb   : > { %5491 = vmatmul.mubr.bf16.vlgmr.msra.gmra.mrb[0].mxu0 %v5791_v9  ;;  %v5822_v9 = vld [vmem:[%s6477_s14 + $0x100] sm:$0xff]  }
  0xdc   : > { %5494 = vmatprep.mubr.bf16.mxu0 %v5792_v10  ;;  %5203 = vmatpush3.bf16.msra.mxu0 %v5831_v22  ;;  %v5823_v10 = vld [vmem:[%s6477_s14 + $0x108] sm:$0xff]   ;;  %v6164_v22 = vmov 0  }
  0xdd   : > { %5204 = vmatprep.subr.bf16.mxu0 %v5833_v39  ;;  %4993 = vmatpush3.bf16.msra.mxu1 %v5850_v62 }
  0xde   : > { %5090 = vmatprep.subr.bf16.mxu1 %v5854_v7 }
  0xe0   : > { %5205 = vmatpush3.bf16.msra.mxu0 %v5835_v41 }
  0xe1   : > { %5206 = vmatprep.subr.bf16.mxu0 %v5837_v45 }
  0xe3   : > { %5495 = vmatmul.mubr.bf16.gmra.mrb[4].mxu0 %v5793_v11  ;;  %v5852_v11 = vld [vmem:[%s6477_s14 + $0x110] sm:$0xff]  }
  0xe4   : > { %5498 = vmatprep.mubr.bf16.mxu0 %v5794_v12  ;;  %5207 = vmatpush3.bf16.msra.mxu0 %v5839_v47  ;;  %v5853_v12 = vld [vmem:[%s6477_s14 + $0x118] sm:$0xff]   ;;  %s4633_s14 = sshll.u32 %s6474_s20, 8 }
  0xe5   : > { %5208 = vmatprep.subr.bf16.mxu0 %v5841_v49  ;;  %s7651_s27 = scalar_lea.vmem [#allocation11], %s4633_s14 }
  0xe6   : > { %s4479_s25 = sshll.u32 %s7651_s27, 4  ;;  %s7759_s25 = int_to_ptr.vmem [resolvable:$true] %s4479_s25 }
  0xe7   : > { %s6060_s16 = scalar_lea.vmem %s7759_s25, 4096  ;;  %p6067_p7 = scmp.lt.s32.totalorder %s7759_s25, %s6065_s12 }
  0xe8   : > { %5209 = vmatpush3.bf16.msra.mxu0 %v5843_v51  ;;  %p6061_p4 = scmp.ne.s32.totalorder %s7759_s25, %s6060_s16  ;;  %p6068_p1 = scmp.lt.s32.totalorder %s6066_s17, %s6060_s16 }
  0xe9   : > { %5210 = vmatprep.subr.bf16.mxu0 %v5845_v55 }
  0xea   : > { %p6062_p10 = pnand %p6061_p4, %p7993_p6  ;;  %p6069_p8 = por %p6068_p1, %p6067_p7 }
  0xeb   : > { %5499 = vmatmul.mubr.bf16.gmra.mrb[8].mxu0 %v5795_v15  ;;  %v6534_v15 = vld [vmem:[#allocation7 + $0x200] sm:$0xff]  }
  0xec   : > { %5502 = vmatprep.mubr.bf16.mxu0 %v5796_v17  ;;  %5211 = vmatpush3.bf16.msra.mxu0 %v5847_v57  ;;  %v1473_v17 = vadd.s32 16, %v1471_v14  ;;  %p6063_p13 = pneg %p6062_p10 }
  0xed   : > { %5212 = vmatprep.subr.bf16.mxu0 %v5849_v59 }
  0xee   : > { %vm1607_vm3 = vcmp.lt.s32.totalorder %v1473_v17, 17  ;;  %p6070_p12 = pnand %p6069_p8, %p6063_p13 }
  0xef   : > { %vm1831_vm7 = vmpackc.low %vm1607_vm3, %vm1607_vm3 }
  0xf0   : > { %5213 = vmatpush3.bf16.msra.mxu0 %v5851_v61  ;;  %v1903_v40 = vsel %vm1831_vm7, 65537, %v6164_v22 }
  0xf1   : > { %5214 = vmatprep.subr.bf16.mxu0 %v5855_v1 }
  0xf3   : > { %5503 = vmatmul.mubr.bf16.gmra.mrb[12].mxu0 %v5797_v23  ;;  %v1897_v23 = vsel %vm1825_vm1, 65537, %v6164_v22 }
  0xf4   : > { %5506 = vmatprep.mubr.bf16.mxu0 %v5798_v24  ;;  %5215 = vmatpush3.bf16.msra.mxu0 %v5857_v2  ;;  %v4683_v50 = vcombine.low %v1903_v40, %v1897_v23  ;;  %v5861_v40 = vld [vmem:[#allocation7 + $0x88] sm:$0xff]  }
  0xf5   : > { %5216 = vmatprep.subr.bf16.mxu0 %v5858_v4 }
  0xf6   : > { %vm6575_vm11 = vcmp.ne.s16.totalorder %v4683_v50, 0 }
  0xf8   : > { %5217 = vmatpush3.bf16.msra.mxu0 %v5859_v6 }
  0xf9   : > { %5562 = vmatprep.subr.bf16.mxu0 %v6534_v15 }
  0xfb   : > { %5507 = vmatmul.mubr.bf16.gmra.mrb[16].mxu0 %v5799_v25 }
  0xfc   : > { %5510 = vmatprep.mubr.bf16.mxu0 %v5800_v26 }
 0x103   : > { %5511 = vmatmul.mubr.bf16.gmra.mrb[20].mxu0 %v5801_v27 }
 0x104   : > { %5514 = vmatprep.mubr.bf16.mxu0 %v5802_v28 }
 0x10b   : > { %5515 = vmatmul.mubr.bf16.gmra.mrb[24].mxu0 %v5803_v29 }
 0x10c   : > { %5518 = vmatprep.mubr.bf16.mxu0 %v5804_v30 }
 0x113   : > { %5519 = vmatmul.mubr.bf16.gmra.mrb[28].mxu0 %v5805_v31  ;;  %v4680_v31 = vcombine.low %v1897_v23, %v1897_v23 }
 0x114   : > { %5522 = vmatprep.mubr.bf16.mxu0 %v5806_v32 }
 0x115   : > { %vm6555_vm8 = vcmp.ne.s16.totalorder %v4680_v31, 0 }
 0x11b   : > { %5523 = vmatmul.mubr.bf16.gmra.mrb[32].mxu0 %v5807_v33 }
 0x11c   : > { %5526 = vmatprep.mubr.bf16.mxu0 %v5808_v34  ;;  %v1901_v34 = vsel %vm1829_vm6, 65537, %v6164_v22 }
 0x123   : > { %5527 = vmatmul.mubr.bf16.gmra.mrb[36].mxu0 %v5809_v35  ;;  %v1902_v35 = vsel %vm1830_vm5, 65537, %v6164_v22 }
 0x124   : > { %5530 = vmatprep.mubr.bf16.mxu0 %v5810_v36 }
 0x12b   : > { %5531 = vmatmul.mubr.bf16.gmra.mrb[40].mxu0 %v5811_v37 }
 0x12c   : > { %5534 = vmatprep.mubr.bf16.mxu0 %v5812_v38 }
 0x133   : > { %5535 = vmatmul.mubr.bf16.gmra.mrb[44].mxu0 %v5813_v43 }
 0x134   : > { %5538 = vmatprep.mubr.bf16.mxu0 %v5814_v44  ;;  %v4682_v44 = vcombine.low %v1901_v34, %v1902_v35 }
 0x136   : > { %vm6569_vm9 = vcmp.ne.s16.totalorder %v4682_v44, 0 }
 0x13b   : > { %5539 = vmatmul.mubr.bf16.gmra.mrb[48].mxu0 %v5815_v53 }
 0x13c   : > { %5542 = vmatprep.mubr.bf16.mxu0 %v5816_v54 }
 0x143   : > { %5543 = vmatmul.mubr.bf16.gmra.mrb[52].mxu0 %v5817_v63 }
 0x144   : > { %5546 = vmatprep.mubr.bf16.mxu0 %v5818_v0 }
 0x14b   : > { %5547 = vmatmul.mubr.bf16.gmra.mrb[56].mxu0 %v5819_v3 }
 0x14c   : > { %5550 = vmatprep.mubr.bf16.mxu0 %v5820_v5 }
 0x153   : > { %5551 = vmatmul.mubr.bf16.gmra.mrb[60].mxu0 %v5821_v8 }
 0x154   : > { %5554 = vmatprep.mubr.bf16.mxu0 %v5822_v9 }
 0x15b   : > { %5555 = vmatmul.mubr.bf16.gmra.mrb[64].mxu0 %v5823_v10 }
 0x15c   : > { %5558 = vmatprep.mubr.bf16.mxu0 %v5852_v11 }
 0x163   : > { %5559 = vmatmul.mubr.bf16.gmra.mrb[68].mxu0 %v5853_v12 }
 0x1ae   : > { %v5492_v18 = vpop.f32.mrb[0].mxu0 }
 0x1af   : > { %v1195_v20 = vmul.f32 %v5492_v18, %v6539_v16  ;;  %v899_v21 = vpop.f32.mrb[1].mxu0 }
 0x1b0   : > { %v1193_v24 = vmul.f32 %v6539_v16, %v899_v21  ;;  %v5493_v25 = vpop.f32.mrb[2].mxu0 }
 0x1b1   : > { %v1274_v26 = vadd.f32 %v6545_v19, %v1195_v20  ;;  %v1196_v27 = vmul.f32 %v5493_v25, %v6539_v16  ;;  %v902_v28 = vpop.f32.mrb[3].mxu0  ;;  %v5856_v25 = vld [vmem:[#allocation7 + $0x80] sm:$0xff]  }
 0x1b2   : > { %v1272_v29 = vadd.f32 %v6545_v19, %v1193_v24  ;;  %v1194_v30 = vmul.f32 %v6539_v16, %v902_v28 }
 0x1b3   : > { %v1275_v32 = vadd.f32 %v6545_v19, %v1196_v27  ;;  %v1346_v36 = vmax.f32 %v1274_v26, 0.0 }
 0x1b4   : > { %v1273_v33 = vadd.f32 %v6545_v19, %v1194_v30  ;;  %v1344_v38 = vmax.f32 %v1272_v29, 0.0  ;;  %v5860_v30 = vld [vmem:[#allocation7 + $0xc8] sm:$0xff]  }
 0x1b5   : > { %v1347_v37 = vmax.f32 %v1275_v32, 0.0 }
 0x1b6   : > { %v1345_v39 = vmax.f32 %v1273_v33, 0.0  ;;  %v5496_v42 = vpop.f32.mrb[4].mxu0 }
 0x1b7   : > { %v1417_v43 = vpack.c.bf16 %v1347_v37, %v1346_v36  ;;  %v1199_v45 = vmul.f32 %v5496_v42, %v6539_v16  ;;  %v915_v46 = vpop.f32.mrb[5].mxu0 }
 0x1b8   : > { %v1416_v47 = vpack.c.bf16 %v1345_v39, %v1344_v38  ;;  %v1197_v48 = vmul.f32 %v6539_v16, %v915_v46  ;;  %v5497_v49 = vpop.f32.mrb[6].mxu0 }
 0x1b9   : > { %v1278_v51 = vadd.f32 %v6545_v19, %v1199_v45  ;;  %v1200_v52 = vmul.f32 %v5497_v49, %v6539_v16  ;;  %v918_v53 = vpop.f32.mrb[7].mxu0  ;;  %v2114_v54 = vsel %vm6555_vm8, %v1417_v43, 0 }
 0x1ba   : > { %v2113_v55 = vsel %vm6555_vm8, %v1416_v47, 0  ;;  %v1276_v56 = vadd.f32 %v6545_v19, %v1197_v48  ;;  %v1198_v57 = vmul.f32 %v6539_v16, %v918_v53  ;;  %v2158_v63 = vshll.u32 %v2114_v54, 16  ;;  %v5862_v48 = vld [vmem:[#allocation7 + $0xd0] sm:$0xff]  }
 0x1bb   : > { %v2391_v59 = vrot.slane %v2113_v55, 1  ;;  %v1279_v60 = vadd.f32 %v6545_v19, %v1200_v52  ;;  %v2153_v62 = vshll.u32 %v2113_v55, 16  ;;  %v1350_v1 = vmax.f32 %v1278_v51, 0.0 }
 0x1bc   : > { %v1277_v61 = vadd.f32 %v6545_v19, %v1198_v57  ;;  %v2392_v3 = vrot.slane %v2114_v54, 1  ;;  %v1348_v4 = vmax.f32 %v1276_v56, 0.0  ;;  %v2151_v7 = vshrl.u32 %v2113_v55, 16 }
 0x1bd   : > { %v1351_v2 = vmax.f32 %v1279_v60, 0.0  ;;  %v2155_v8 = vrot.slane %v2153_v62, 1  ;;  %v2160_v20 = vrot.slane %v2158_v63, 1  ;;  %v5873_v62 = vld [vmem:[#allocation7 + $0x208] sm:$0xff]  }
 0x1be   : > { %v1349_v5 = vmax.f32 %v1277_v61, 0.0  ;;  %v5500_v6 = vpop.f32.mrb[8].mxu0  ;;  %v6581_v12 = vsel %vm2390_vm10, %v2391_v59, %v2392_v3  ;;  %v5863_v61 = vld [vmem:[#allocation7 + $0x90] sm:$0xff]  }
 0x1bf   : > { %v1419_v9 = vpack.c.bf16 %v1351_v2, %v1350_v1  ;;  %v1203_v10 = vmul.f32 %v5500_v6, %v6539_v16  ;;  %v931_v11 = vpop.f32.mrb[9].mxu0  ;;  %v2156_v18 = vor.u32 %v2155_v8, %v2151_v7 }
 0x1c0   : > { %v6583_v13 = vpack.c.bf16 %v1349_v5, %v1348_v4  ;;  %v1201_v14 = vmul.f32 %v6539_v16, %v931_v11  ;;  %v5501_v17 = vpop.f32.mrb[10].mxu0  ;;  %v5864_v4 = vld [vmem:[#allocation7 + $0xd8] sm:$0xff]  }
 0x1c1   : > { %v2116_v21 = vsel %vm6575_vm11, %v1419_v9, 0  ;;  %v1282_v22 = vadd.f32 %v6545_v19, %v1203_v10  ;;  %v1204_v23 = vmul.f32 %v5501_v17, %v6539_v16  ;;  %v934_v24 = vpop.f32.mrb[11].mxu0  ;;  %v2161_v28 = vsel %vm2149_vm12, %v2156_v18, %v2160_v20  ;;  %v5865_v18 = vld [vmem:[#allocation7 + $0x98] sm:$0xff]   ;;  %v5875_v20 = vld [vmem:[#allocation7 + $0x210] sm:$0xff]  }
 0x1c2   : > { %v1280_v26 = vadd.f32 %v6545_v19, %v1201_v14  ;;  %v1202_v27 = vmul.f32 %v6539_v16, %v934_v24  ;;  %v2115_v29 = vsel %vm6569_vm9, %v6583_v13, 0  ;;  %3101 = vmatprep.mubr.bf16.mxu1 %v2161_v28  ;;  %v2395_v33 = vrot.slane %v2116_v21, 1 }
 0x1c3   : > { %v1283_v31 = vadd.f32 %v6545_v19, %v1204_v23  ;;  %v2394_v32 = vrot.slane %v2115_v29, 1  ;;  %4788 = vmatmul.mubr.msk.bf16.vlgmr.msra.gmra.mrb[0].mxu1 %vm6555_vm8, %v1416_v47  ;;  %v2165_v35 = vshll.u32 %v2115_v29, 16  ;;  %v1354_v36 = vmax.f32 %v1282_v22, 0.0 }
 0x1c4   : > { %v1281_v34 = vadd.f32 %v6545_v19, %v1202_v27  ;;  %5091 = vmatpush3.bf16.msra.mxu1 %v5856_v25  ;;  %v2170_v39 = vshll.u32 %v2116_v21, 16  ;;  %v1352_v42 = vmax.f32 %v1280_v26, 0.0  ;;  %v2163_v45 = vshrl.u32 %v2115_v29, 16  ;;  %v5866_v26 = vld [vmem:[#allocation7 + $0xe0] sm:$0xff]  }
 0x1c5   : > { %v1355_v37 = vmax.f32 %v1283_v31, 0.0  ;;  %v6601_v38 = vsel %vm2390_vm10, %v2394_v32, %v2395_v33  ;;  %v2167_v46 = vrot.slane %v2165_v35, 1  ;;  %5092 = vmatprep.subr.bf16.mxu1 %v5860_v30 }
 0x1c6   : > { %v1353_v43 = vmax.f32 %v1281_v34, 0.0  ;;  %v5504_v44 = vpop.f32.mrb[12].mxu0  ;;  %3423 = vmatprep.mubr.bf16.mxu0 %v6601_v38  ;;  %v2172_v55 = vrot.slane %v2170_v39, 1  ;;  %v5867_v39 = vld [vmem:[#allocation7 + $0xa0] sm:$0xff]  }
 0x1c7   : > { %v1421_v49 = vpack.c.bf16 %v1355_v37, %v1354_v36  ;;  %v1207_v47 = vmul.f32 %v5504_v44, %v6539_v16  ;;  %v947_v50 = vpop.f32.mrb[13].mxu0  ;;  %v2168_v54 = vor.u32 %v2167_v46, %v2163_v45  ;;  %v5868_v46 = vld [vmem:[#allocation7 + $0xe8] sm:$0xff]  }
 0x1c8   : > { %v6605_v51 = vpack.c.bf16 %v1353_v43, %v1352_v42  ;;  %v1205_v52 = vmul.f32 %v6539_v16, %v947_v50  ;;  %v5505_v53 = vpop.f32.mrb[14].mxu0  ;;  %5093 = vmatpush3.bf16.msra.mxu1 %v5861_v40  ;;  %v5877_v40 = vld [vmem:[#allocation7 + $0x218] sm:$0xff]  }
 0x1c9   : > { %v2118_v56 = vsel %vm6575_vm11, %v1421_v49, 0  ;;  %v1286_v57 = vadd.f32 %v6545_v19, %v1207_v47  ;;  %v1208_v59 = vmul.f32 %v5505_v53, %v6539_v16  ;;  %v950_v60 = vpop.f32.mrb[15].mxu0  ;;  %v2173_v2 = vsel %vm2149_vm12, %v2168_v54, %v2172_v55  ;;  %5094 = vmatprep.subr.bf16.mxu1 %v5862_v48 }
 0x1ca   : > { %v1284_v63 = vadd.f32 %v6545_v19, %v1205_v52  ;;  %v1206_v1 = vmul.f32 %v6539_v16, %v950_v60  ;;  %v2117_v3 = vsel %vm6569_vm9, %v6605_v51, 0  ;;  %3109 = vmatprep.mubr.bf16.mxu1 %v2173_v2  ;;  %3424 = vmatmul.mubr.bf16.vlgmr.msra.gmra.mrb[72].mxu0 %v2173_v2  ;;  %v2398_v7 = vrot.slane %v2118_v56, 1  ;;  %v5870_v2 = vld [vmem:[#allocation7 + $0xf0] sm:$0xff]  }
 0x1cb   : > { %v1287_v5 = vadd.f32 %v6545_v19, %v1208_v59  ;;  %v2397_v6 = vrot.slane %v2117_v3, 1  ;;  %4789 = vmatmul.mubr.msk.bf16.gmra.mrb[4].mxu1 %vm6569_vm9, %v6583_v13  ;;  %v2177_v9 = vshll.u32 %v2117_v3, 16  ;;  %5563 = vmatpush3.bf16.msra.mxu0 %v6534_v15  ;;  %v1358_v10 = vmax.f32 %v1286_v57, 0.0  ;;  %v5869_v57 = vld [vmem:[#allocation7 + $0xa8] sm:$0xff]   ;;  %v5878_v59 = vld [vmem:[#allocation7 + $0x220] sm:$0xff]  }
 0x1cc   : > { %v1285_v8 = vadd.f32 %v6545_v19, %v1206_v1  ;;  %v2182_v17 = vshll.u32 %v2118_v56, 16  ;;  %5095 = vmatpush3.bf16.msra.mxu1 %v5863_v61  ;;  %5564 = vmatprep.subr.bf16.mxu0 %v5873_v62  ;;  %v1356_v21 = vmax.f32 %v1284_v63, 0.0  ;;  %v2175_v24 = vshrl.u32 %v2117_v3, 16 }
 0x1cd   : > { %v1359_v11 = vmax.f32 %v1287_v5, 0.0  ;;  %v6625_v14 = vsel %vm2390_vm10, %v2397_v6, %v2398_v7  ;;  %v2179_v25 = vrot.slane %v2177_v9, 1  ;;  %5096 = vmatprep.subr.bf16.mxu1 %v5864_v4 }
 0x1ce   : > { %v1357_v22 = vmax.f32 %v1285_v8, 0.0  ;;  %v5508_v23 = vpop.f32.mrb[16].mxu0  ;;  %3431 = vmatprep.mubr.bf16.mxu0 %v6625_v14  ;;  %v2184_v33 = vrot.slane %v2182_v17, 1 }
 0x1cf   : > { %v1423_v15 = vpack.c.bf16 %v1359_v11, %v1358_v10  ;;  %v1211_v27 = vmul.f32 %v5508_v23, %v6539_v16  ;;  %v963_v28 = vpop.f32.mrb[17].mxu0  ;;  %v2180_v32 = vor.u32 %v2179_v25, %v2175_v24  ;;  %5565 = vmatpush3.bf16.msra.mxu0 %v5873_v62 }
 0x1d0   : > { %v6629_v29 = vpack.c.bf16 %v1357_v22, %v1356_v21  ;;  %v1209_v30 = vmul.f32 %v6539_v16, %v963_v28  ;;  %v5509_v31 = vpop.f32.mrb[18].mxu0  ;;  %5097 = vmatpush3.bf16.msra.mxu1 %v5865_v18  ;;  %5566 = vmatprep.subr.bf16.mxu0 %v5875_v20  ;;  %v5871_v21 = vld [vmem:[#allocation7 + $0xb0] sm:$0xff]   ;;  %v5879_v22 = vld [vmem:[#allocation7 + $0x228] sm:$0xff]  }
 0x1d1   : > { %v2120_v34 = vsel %vm6575_vm11, %v1423_v15, 0  ;;  %v1290_v35 = vadd.f32 %v6545_v19, %v1211_v27  ;;  %v1212_v36 = vmul.f32 %v5509_v31, %v6539_v16  ;;  %v966_v37 = vpop.f32.mrb[19].mxu0  ;;  %v6639_v44 = vsel %vm2149_vm12, %v2180_v32, %v2184_v33  ;;  %5098 = vmatprep.subr.bf16.mxu1 %v5866_v26  ;;  %v5874_v15 = vld [vmem:[#allocation7 + $0xf8] sm:$0xff]  }
 0x1d2   : > { %v1288_v42 = vadd.f32 %v6545_v19, %v1209_v30  ;;  %v1210_v43 = vmul.f32 %v6539_v16, %v966_v37  ;;  %v2119_v45 = vsel %vm6569_vm9, %v6629_v29, 0  ;;  %3117 = vmatprep.mubr.bf16.mxu1 %v6639_v44  ;;  %3432 = vmatmul.mubr.bf16.gmra.mrb[76].mxu0 %v6639_v44  ;;  %v2401_v47 = vrot.slane %v2120_v34, 1  ;;  %v5876_v37 = vld [vmem:[#allocation7 + $0xb8] sm:$0xff]  }
 0x1d3   : > { %v1291_v48 = vadd.f32 %v6545_v19, %v1212_v36  ;;  %v2400_v49 = vrot.slane %v2119_v45, 1  ;;  %4790 = vmatmul.mubr.msk.bf16.gmra.mrb[8].mxu1 %vm6569_vm9, %v6605_v51  ;;  %v2189_v52 = vshll.u32 %v2119_v45, 16  ;;  %5567 = vmatpush3.bf16.msra.mxu0 %v5875_v20  ;;  %v1362_v53 = vmax.f32 %v1290_v35, 0.0 }
 0x1d4   : > { %v1289_v50 = vadd.f32 %v6545_v19, %v1210_v43  ;;  %v2194_v56 = vshll.u32 %v2120_v34, 16  ;;  %5099 = vmatpush3.bf16.msra.mxu1 %v5867_v39  ;;  %5568 = vmatprep.subr.bf16.mxu0 %v5877_v40  ;;  %v1360_v60 = vmax.f32 %v1288_v42, 0.0  ;;  %v2187_v63 = vshrl.u32 %v2119_v45, 16  ;;  %v5881_v39 = vld [vmem:[#allocation7 + $0x230] sm:$0xff]  }
 0x1d5   : > { %v1363_v54 = vmax.f32 %v1291_v48, 0.0  ;;  %v6652_v55 = vsel %vm2390_vm10, %v2400_v49, %v2401_v47  ;;  %v2191_v1 = vrot.slane %v2189_v52, 1  ;;  %5100 = vmatprep.subr.bf16.mxu1 %v5868_v46  ;;  %v5880_v48 = vld [vmem:[#allocation7 + $0x1c0] sm:$0xff]  }
 0x1d6   : > { %v1361_v61 = vmax.f32 %v1289_v50, 0.0  ;;  %v5512_v62 = vpop.f32.mrb[20].mxu0  ;;  %3439 = vmatprep.mubr.bf16.mxu0 %v6652_v55  ;;  %v2196_v10 = vrot.slane %v2194_v56, 1 }
 0x1d7   : > { %v1425_v3 = vpack.c.bf16 %v1363_v54, %v1362_v53  ;;  %v1215_v4 = vmul.f32 %v5512_v62, %v6539_v16  ;;  %v979_v5 = vpop.f32.mrb[21].mxu0  ;;  %v2192_v9 = vor.u32 %v2191_v1, %v2187_v63  ;;  %5569 = vmatpush3.bf16.msra.mxu0 %v5877_v40  ;;  %v5883_v63 = vld [vmem:[#allocation7 + $0x238] sm:$0xff]  }
 0x1d8   : > { %v6656_v6 = vpack.c.bf16 %v1361_v61, %v1360_v60  ;;  %v1213_v7 = vmul.f32 %v6539_v16, %v979_v5  ;;  %v5513_v8 = vpop.f32.mrb[22].mxu0  ;;  %5101 = vmatpush3.bf16.msra.mxu1 %v5869_v57  ;;  %5570 = vmatprep.subr.bf16.mxu0 %v5878_v59 }
 0x1d9   : > { %v2122_v11 = vsel %vm6575_vm11, %v1425_v3, 0  ;;  %v1294_v17 = vadd.f32 %v6545_v19, %v1215_v4  ;;  %v1216_v18 = vmul.f32 %v5513_v8, %v6539_v16  ;;  %v982_v20 = vpop.f32.mrb[23].mxu0  ;;  %v6666_v25 = vsel %vm2149_vm12, %v2192_v9, %v2196_v10  ;;  %5102 = vmatprep.subr.bf16.mxu1 %v5870_v2 }
 0x1da   : > { %v1292_v23 = vadd.f32 %v6545_v19, %v1213_v7  ;;  %v1214_v24 = vmul.f32 %v6539_v16, %v982_v20  ;;  %v2121_v26 = vsel %vm6569_vm9, %v6656_v6, 0  ;;  %3125 = vmatprep.mubr.bf16.mxu1 %v6666_v25  ;;  %3440 = vmatmul.mubr.bf16.gmra.mrb[80].mxu0 %v6666_v25  ;;  %v2404_v30 = vrot.slane %v2122_v11, 1 }
 0x1db   : > { %v1295_v27 = vadd.f32 %v6545_v19, %v1216_v18  ;;  %v2403_v28 = vrot.slane %v2121_v26, 1  ;;  %4791 = vmatmul.mubr.msk.bf16.gmra.mrb[12].mxu1 %vm6569_vm9, %v6629_v29  ;;  %v2201_v32 = vshll.u32 %v2121_v26, 16  ;;  %5571 = vmatpush3.bf16.msra.mxu0 %v5878_v59  ;;  %v1366_v33 = vmax.f32 %v1294_v17, 0.0 }
 0x1dc   : > { %v1293_v31 = vadd.f32 %v6545_v19, %v1214_v24  ;;  %v2206_v36 = vshll.u32 %v2122_v11, 16  ;;  %5103 = vmatpush3.bf16.msra.mxu1 %v5871_v21  ;;  %5572 = vmatprep.subr.bf16.mxu0 %v5879_v22  ;;  %v1364_v40 = vmax.f32 %v1292_v23, 0.0  ;;  %v2199_v45 = vshrl.u32 %v2121_v26, 16 }
 0x1dd   : > { %v1367_v34 = vmax.f32 %v1295_v27, 0.0  ;;  %v6679_v35 = vsel %vm2390_vm10, %v2403_v28, %v2404_v30  ;;  %v2203_v46 = vrot.slane %v2201_v32, 1  ;;  %5104 = vmatprep.subr.bf16.mxu1 %v5874_v15 }
 0x1de   : > { %v1365_v42 = vmax.f32 %v1293_v31, 0.0  ;;  %v5516_v43 = vpop.f32.mrb[24].mxu0  ;;  %3447 = vmatprep.mubr.bf16.mxu0 %v6679_v35  ;;  %v2208_v57 = vrot.slane %v2206_v36, 1 }
 0x1df   : > { %v1427_v49 = vpack.c.bf16 %v1367_v34, %v1366_v33  ;;  %v1219_v47 = vmul.f32 %v5516_v43, %v6539_v16  ;;  %v995_v50 = vpop.f32.mrb[25].mxu0  ;;  %v2204_v56 = vor.u32 %v2203_v46, %v2199_v45  ;;  %5573 = vmatpush3.bf16.msra.mxu0 %v5879_v22 }
 0x1e0   : > { %v6683_v52 = vpack.c.bf16 %v1365_v42, %v1364_v40  ;;  %v1217_v53 = vmul.f32 %v6539_v16, %v995_v50  ;;  %v5517_v54 = vpop.f32.mrb[26].mxu0  ;;  %5105 = vmatpush3.bf16.msra.mxu1 %v5876_v37  ;;  %5574 = vmatprep.subr.bf16.mxu0 %v5881_v39 }
 0x1e1   : > { %v2124_v59 = vsel %vm6575_vm11, %v1427_v49, 0  ;;  %v1298_v60 = vadd.f32 %v6545_v19, %v1219_v47  ;;  %v1220_v61 = vmul.f32 %v5517_v54, %v6539_v16  ;;  %v998_v62 = vpop.f32.mrb[27].mxu0  ;;  %v6693_v3 = vsel %vm2149_vm12, %v2204_v56, %v2208_v57  ;;  %5314 = vmatprep.subr.bf16.mxu1 %v5880_v48 }
 0x1e2   : > { %v1296_v1 = vadd.f32 %v6545_v19, %v1217_v53  ;;  %v1218_v2 = vmul.f32 %v6539_v16, %v998_v62  ;;  %v2123_v4 = vsel %vm6569_vm9, %v6683_v52, 0  ;;  %3133 = vmatprep.mubr.bf16.mxu1 %v6693_v3  ;;  %3448 = vmatmul.mubr.bf16.gmra.mrb[84].mxu0 %v6693_v3  ;;  %v2407_v8 = vrot.slane %v2124_v59, 1 }
 0x1e3   : > { %v1299_v5 = vadd.f32 %v6545_v19, %v1220_v61  ;;  %v2406_v7 = vrot.slane %v2123_v4, 1  ;;  %4792 = vmatmul.mubr.msk.bf16.gmra.mrb[16].mxu1 %vm6569_vm9, %v6656_v6  ;;  %v2213_v10 = vshll.u32 %v2123_v4, 16  ;;  %5575 = vmatpush3.bf16.msra.mxu0 %v5881_v39  ;;  %v1370_v11 = vmax.f32 %v1298_v60, 0.0 }
 0x1e4   : > { %v1297_v9 = vadd.f32 %v6545_v19, %v1218_v2  ;;  %v2218_v20 = vshll.u32 %v2124_v59, 16  ;;  %5576 = vmatprep.subr.bf16.mxu0 %v5883_v63  ;;  %v1368_v21 = vmax.f32 %v1296_v1, 0.0  ;;  %v2211_v24 = vshrl.u32 %v2123_v4, 16 }
 0x1e5   : > { %v1371_v17 = vmax.f32 %v1299_v5, 0.0  ;;  %v6706_v18 = vsel %vm2390_vm10, %v2406_v7, %v2407_v8  ;;  %v2215_v26 = vrot.slane %v2213_v10, 1 }
 0x1e6   : > { %v1369_v22 = vmax.f32 %v1297_v9, 0.0  ;;  %v5520_v23 = vpop.f32.mrb[28].mxu0  ;;  %3455 = vmatprep.mubr.bf16.mxu0 %v6706_v18  ;;  %v2220_v34 = vrot.slane %v2218_v20, 1 }
 0x1e7   : > { %v1429_v15 = vpack.c.bf16 %v1371_v17, %v1370_v11  ;;  %v1223_v27 = vmul.f32 %v5520_v23, %v6539_v16  ;;  %v1011_v28 = vpop.f32.mrb[29].mxu0  ;;  %v2216_v33 = vor.u32 %v2215_v26, %v2211_v24  ;;  %5577 = vmatpush3.bf16.msra.mxu0 %v5883_v63 }
 0x1e8   : > { %v6710_v30 = vpack.c.bf16 %v1369_v22, %v1368_v21  ;;  %v1221_v31 = vmul.f32 %v6539_v16, %v1011_v28  ;;  %v5521_v32 = vpop.f32.mrb[30].mxu0 }
 0x1e9   : > { %v2126_v36 = vsel %vm6575_vm11, %v1429_v15, 0  ;;  %v1302_v37 = vadd.f32 %v6545_v19, %v1223_v27  ;;  %v1224_v39 = vmul.f32 %v5521_v32, %v6539_v16  ;;  %v1014_v40 = vpop.f32.mrb[31].mxu0  ;;  %v6720_v45 = vsel %vm2149_vm12, %v2216_v33, %v2220_v34 }
 0x1ea   : > { %v1300_v42 = vadd.f32 %v6545_v19, %v1221_v31  ;;  %v1222_v43 = vmul.f32 %v6539_v16, %v1014_v40  ;;  %v2125_v46 = vsel %vm6569_vm9, %v6710_v30, 0  ;;  %3141 = vmatprep.mubr.bf16.mxu1 %v6720_v45  ;;  %3456 = vmatmul.mubr.bf16.gmra.mrb[88].mxu0 %v6720_v45  ;;  %v2410_v47 = vrot.slane %v2126_v36, 1 }
 0x1eb   : > { %v1303_v48 = vadd.f32 %v6545_v19, %v1224_v39  ;;  %v2409_v49 = vrot.slane %v2125_v46, 1  ;;  %4793 = vmatmul.mubr.msk.bf16.gmra.mrb[20].mxu1 %vm6569_vm9, %v6683_v52  ;;  %v2225_v53 = vshll.u32 %v2125_v46, 16  ;;  %v1374_v54 = vmax.f32 %v1302_v37, 0.0 }
 0x1ec   : > { %v1301_v50 = vadd.f32 %v6545_v19, %v1222_v43  ;;  %v2230_v59 = vshll.u32 %v2126_v36, 16  ;;  %v1372_v60 = vmax.f32 %v1300_v42, 0.0  ;;  %v2223_v63 = vshrl.u32 %v2125_v46, 16 }
 0x1ed   : > { %v1375_v56 = vmax.f32 %v1303_v48, 0.0  ;;  %v6733_v57 = vsel %vm2390_vm10, %v2409_v49, %v2410_v47  ;;  %v2227_v1 = vrot.slane %v2225_v53, 1 }
 0x1ee   : > { %v1373_v61 = vmax.f32 %v1301_v50, 0.0  ;;  %v5524_v62 = vpop.f32.mrb[32].mxu0  ;;  %3463 = vmatprep.mubr.bf16.mxu0 %v6733_v57  ;;  %v2232_v11 = vrot.slane %v2230_v59, 1 }
 0x1ef   : > { %v1431_v2 = vpack.c.bf16 %v1375_v56, %v1374_v54  ;;  %v1227_v4 = vmul.f32 %v5524_v62, %v6539_v16  ;;  %v1027_v5 = vpop.f32.mrb[33].mxu0  ;;  %v2228_v10 = vor.u32 %v2227_v1, %v2223_v63 }
 0x1f0   : > { %v6737_v7 = vpack.c.bf16 %v1373_v61, %v1372_v60  ;;  %v1225_v8 = vmul.f32 %v6539_v16, %v1027_v5  ;;  %v5525_v9 = vpop.f32.mrb[34].mxu0 }
 0x1f1   : > { %v2128_v17 = vsel %vm6575_vm11, %v1431_v2, 0  ;;  %v1306_v20 = vadd.f32 %v6545_v19, %v1227_v4  ;;  %v1228_v21 = vmul.f32 %v5525_v9, %v6539_v16  ;;  %v1030_v22 = vpop.f32.mrb[35].mxu0  ;;  %v6747_v26 = vsel %vm2149_vm12, %v2228_v10, %v2232_v11 }
 0x1f2   : > { %v1304_v23 = vadd.f32 %v6545_v19, %v1225_v8  ;;  %v1226_v24 = vmul.f32 %v6539_v16, %v1030_v22  ;;  %v2127_v15 = vsel %vm6569_vm9, %v6737_v7, 0  ;;  %3149 = vmatprep.mubr.bf16.mxu1 %v6747_v26  ;;  %3464 = vmatmul.mubr.bf16.gmra.mrb[92].mxu0 %v6747_v26  ;;  %v2413_v31 = vrot.slane %v2128_v17, 1 }
 0x1f3   : > { %v1307_v27 = vadd.f32 %v6545_v19, %v1228_v21  ;;  %v2412_v28 = vrot.slane %v2127_v15, 1  ;;  %4794 = vmatmul.mubr.msk.bf16.gmra.mrb[24].mxu1 %vm6569_vm9, %v6710_v30  ;;  %v2237_v33 = vshll.u32 %v2127_v15, 16  ;;  %v1378_v34 = vmax.f32 %v1306_v20, 0.0 }
 0x1f4   : > { %v1305_v32 = vadd.f32 %v6545_v19, %v1226_v24  ;;  %v2242_v39 = vshll.u32 %v2128_v17, 16  ;;  %v1376_v40 = vmax.f32 %v1304_v23, 0.0  ;;  %v2235_v46 = vshrl.u32 %v2127_v15, 16 }
 0x1f5   : > { %v1379_v36 = vmax.f32 %v1307_v27, 0.0  ;;  %v6760_v37 = vsel %vm2390_vm10, %v2412_v28, %v2413_v31  ;;  %v2239_v48 = vrot.slane %v2237_v33, 1 }
 0x1f6   : > { %v1377_v42 = vmax.f32 %v1305_v32, 0.0  ;;  %v5528_v43 = vpop.f32.mrb[36].mxu0  ;;  %3471 = vmatprep.mubr.bf16.mxu0 %v6760_v37  ;;  %v2244_v60 = vrot.slane %v2242_v39, 1 }
 0x1f7   : > { %v1433_v49 = vpack.c.bf16 %v1379_v36, %v1378_v34  ;;  %v1231_v47 = vmul.f32 %v5528_v43, %v6539_v16  ;;  %v1043_v50 = vpop.f32.mrb[37].mxu0  ;;  %v2240_v59 = vor.u32 %v2239_v48, %v2235_v46 }
 0x1f8   : > { %v6764_v53 = vpack.c.bf16 %v1377_v42, %v1376_v40  ;;  %v1229_v54 = vmul.f32 %v6539_v16, %v1043_v50  ;;  %v5529_v56 = vpop.f32.mrb[38].mxu0 }
 0x1f9   : > { %v2130_v61 = vsel %vm6575_vm11, %v1433_v49, 0  ;;  %v1310_v62 = vadd.f32 %v6545_v19, %v1231_v47  ;;  %v1232_v63 = vmul.f32 %v5529_v56, %v6539_v16  ;;  %v1046_v1 = vpop.f32.mrb[39].mxu0  ;;  %v6774_v5 = vsel %vm2149_vm12, %v2240_v59, %v2244_v60 }
 0x1fa   : > { %v1308_v2 = vadd.f32 %v6545_v19, %v1229_v54  ;;  %v1230_v4 = vmul.f32 %v6539_v16, %v1046_v1  ;;  %v2129_v8 = vsel %vm6569_vm9, %v6764_v53, 0  ;;  %3157 = vmatprep.mubr.bf16.mxu1 %v6774_v5  ;;  %3472 = vmatmul.mubr.bf16.gmra.mrb[96].mxu0 %v6774_v5  ;;  %v2416_v11 = vrot.slane %v2130_v61, 1 }
 0x1fb   : > { %v1311_v9 = vadd.f32 %v6545_v19, %v1232_v63  ;;  %v2415_v10 = vrot.slane %v2129_v8, 1  ;;  %4795 = vmatmul.mubr.msk.bf16.gmra.mrb[28].mxu1 %vm6569_vm9, %v6737_v7  ;;  %v2249_v20 = vshll.u32 %v2129_v8, 16  ;;  %v1382_v21 = vmax.f32 %v1310_v62, 0.0 }
 0x1fc   : > { %v1309_v17 = vadd.f32 %v6545_v19, %v1230_v4  ;;  %v2254_v24 = vshll.u32 %v2130_v61, 16  ;;  %v1380_v15 = vmax.f32 %v1308_v2, 0.0  ;;  %v2247_v31 = vshrl.u32 %v2129_v8, 16 }
 0x1fd   : > { %v1383_v22 = vmax.f32 %v1311_v9, 0.0  ;;  %v6787_v23 = vsel %vm2390_vm10, %v2415_v10, %v2416_v11  ;;  %v2251_v32 = vrot.slane %v2249_v20, 1 }
 0x1fe   : > { %v1381_v27 = vmax.f32 %v1309_v17, 0.0  ;;  %v5532_v28 = vpop.f32.mrb[40].mxu0  ;;  %3479 = vmatprep.mubr.bf16.mxu0 %v6787_v23  ;;  %v2256_v46 = vrot.slane %v2254_v24, 1 }
 0x1ff   : > { %v1435_v33 = vpack.c.bf16 %v1383_v22, %v1382_v21  ;;  %v1235_v34 = vmul.f32 %v5532_v28, %v6539_v16  ;;  %v1059_v36 = vpop.f32.mrb[41].mxu0  ;;  %v2252_v43 = vor.u32 %v2251_v32, %v2247_v31 }
 0x200   : > { %v6791_v39 = vpack.c.bf16 %v1381_v27, %v1380_v15  ;;  %v1233_v40 = vmul.f32 %v6539_v16, %v1059_v36  ;;  %v5533_v42 = vpop.f32.mrb[42].mxu0 }
 0x201   : > { %v2132_v48 = vsel %vm6575_vm11, %v1435_v33, 0  ;;  %v1314_v49 = vadd.f32 %v6545_v19, %v1235_v34  ;;  %v1236_v47 = vmul.f32 %v5533_v42, %v6539_v16  ;;  %v1062_v50 = vpop.f32.mrb[43].mxu0  ;;  %v6801_v59 = vsel %vm2149_vm12, %v2252_v43, %v2256_v46 }
 0x202   : > { %v1312_v54 = vadd.f32 %v6545_v19, %v1233_v40  ;;  %v1234_v56 = vmul.f32 %v6539_v16, %v1062_v50  ;;  %7890 = vst [vmem:[#allocation25_spill] sm:$0xff] %v6801_v59  ;;  %v2131_v60 = vsel %vm6569_vm9, %v6791_v39, 0  ;;  %3165 = vmatprep.mubr.bf16.mxu1 %v6801_v59  ;;  %3480 = vmatmul.mubr.bf16.gmra.mrb[100].mxu0 %v6801_v59  ;;  %v2419_v63 = vrot.slane %v2132_v48, 1 }
 0x203   : > { %v1315_v61 = vadd.f32 %v6545_v19, %v1236_v47  ;;  %v2418_v62 = vrot.slane %v2131_v60, 1  ;;  %4796 = vmatmul.mubr.msk.bf16.gmra.mrb[32].mxu1 %vm6569_vm9, %v6764_v53  ;;  %v2261_v2 = vshll.u32 %v2131_v60, 16  ;;  %v1386_v4 = vmax.f32 %v1314_v49, 0.0 }
 0x204   : > { %v1313_v1 = vadd.f32 %v6545_v19, %v1234_v56  ;;  %v2266_v10 = vshll.u32 %v2132_v48, 16  ;;  %v1384_v11 = vmax.f32 %v1312_v54, 0.0  ;;  %v2259_v21 = vshrl.u32 %v2131_v60, 16 }
 0x205   : > { %v1387_v8 = vmax.f32 %v1315_v61, 0.0  ;;  %v6814_v9 = vsel %vm2390_vm10, %v2418_v62, %v2419_v63  ;;  %v2263_v22 = vrot.slane %v2261_v2, 1 }
 0x206   : > { %v1385_v17 = vmax.f32 %v1313_v1, 0.0  ;;  %v5536_v20 = vpop.f32.mrb[44].mxu0  ;;  %3487 = vmatprep.mubr.bf16.mxu0 %v6814_v9  ;;  %v2268_v34 = vrot.slane %v2266_v10, 1 }
 0x207   : > { %v1437_v24 = vpack.c.bf16 %v1387_v8, %v1386_v4  ;;  %v1239_v15 = vmul.f32 %v5536_v20, %v6539_v16  ;;  %v1075_v27 = vpop.f32.mrb[45].mxu0  ;;  %v2264_v33 = vor.u32 %v2263_v22, %v2259_v21 }
 0x208   : > { %v6818_v28 = vpack.c.bf16 %v1385_v17, %v1384_v11  ;;  %v1237_v31 = vmul.f32 %v6539_v16, %v1075_v27  ;;  %v5537_v32 = vpop.f32.mrb[46].mxu0 }
 0x209   : > { %v2134_v36 = vsel %vm6575_vm11, %v1437_v24, 0  ;;  %v1318_v40 = vadd.f32 %v6545_v19, %v1239_v15  ;;  %v1240_v42 = vmul.f32 %v5537_v32, %v6539_v16  ;;  %v1078_v43 = vpop.f32.mrb[47].mxu0  ;;  %v6828_v49 = vsel %vm2149_vm12, %v2264_v33, %v2268_v34 }
 0x20a   : > { %v1316_v46 = vadd.f32 %v6545_v19, %v1237_v31  ;;  %v1238_v48 = vmul.f32 %v6539_v16, %v1078_v43  ;;  %7891 = vst [vmem:[#allocation26_spill] sm:$0xff] %v6828_v49  ;;  %v2133_v47 = vsel %vm6569_vm9, %v6818_v28, 0  ;;  %3173 = vmatprep.mubr.bf16.mxu1 %v6828_v49  ;;  %3488 = vmatmul.mubr.bf16.gmra.mrb[104].mxu0 %v6828_v49  ;;  %v2422_v56 = vrot.slane %v2134_v36, 1 }
 0x20b   : > { %v1319_v50 = vadd.f32 %v6545_v19, %v1240_v42  ;;  %v2421_v54 = vrot.slane %v2133_v47, 1  ;;  %4797 = vmatmul.mubr.msk.bf16.gmra.mrb[36].mxu1 %vm6569_vm9, %v6791_v39  ;;  %v2273_v61 = vshll.u32 %v2133_v47, 16  ;;  %v1390_v62 = vmax.f32 %v1318_v40, 0.0 }
 0x20c   : > { %v1317_v60 = vadd.f32 %v6545_v19, %v1238_v48  ;;  %v2278_v2 = vshll.u32 %v2134_v36, 16  ;;  %v1388_v4 = vmax.f32 %v1316_v46, 0.0  ;;  %v2271_v11 = vshrl.u32 %v2133_v47, 16 }
 0x20d   : > { %v1391_v63 = vmax.f32 %v1319_v50, 0.0  ;;  %v6841_v1 = vsel %vm2390_vm10, %v2421_v54, %v2422_v56  ;;  %v2275_v17 = vrot.slane %v2273_v61, 1 }
 0x20e   : > { %v1389_v8 = vmax.f32 %v1317_v60, 0.0  ;;  %v5540_v10 = vpop.f32.mrb[48].mxu0  ;;  %3495 = vmatprep.mubr.bf16.mxu0 %v6841_v1  ;;  %v2280_v32 = vrot.slane %v2278_v2, 1 }
 0x20f   : > { %v1439_v20 = vpack.c.bf16 %v1391_v63, %v1390_v62  ;;  %v1243_v21 = vmul.f32 %v5540_v10, %v6539_v16  ;;  %v1091_v22 = vpop.f32.mrb[49].mxu0  ;;  %v2276_v31 = vor.u32 %v2275_v17, %v2271_v11 }
 0x210   : > { %v6845_v24 = vpack.c.bf16 %v1389_v8, %v1388_v4  ;;  %v1241_v15 = vmul.f32 %v6539_v16, %v1091_v22  ;;  %v5541_v27 = vpop.f32.mrb[50].mxu0 }
 0x211   : > { %v2136_v33 = vsel %vm6575_vm11, %v1439_v20, 0  ;;  %v1322_v34 = vadd.f32 %v6545_v19, %v1243_v21  ;;  %v1244_v36 = vmul.f32 %v5541_v27, %v6539_v16  ;;  %v1094_v40 = vpop.f32.mrb[51].mxu0  ;;  %v6855_v46 = vsel %vm2149_vm12, %v2276_v31, %v2280_v32 }
 0x212   : > { %v1320_v42 = vadd.f32 %v6545_v19, %v1241_v15  ;;  %v1242_v43 = vmul.f32 %v6539_v16, %v1094_v40  ;;  %7892 = vst [vmem:[#allocation27_spill] sm:$0xff] %v6855_v46  ;;  %v2135_v48 = vsel %vm6569_vm9, %v6845_v24, 0  ;;  %3181 = vmatprep.mubr.bf16.mxu1 %v6855_v46  ;;  %3496 = vmatmul.mubr.bf16.gmra.mrb[108].mxu0 %v6855_v46  ;;  %v2425_v54 = vrot.slane %v2136_v33, 1 }
 0x213   : > { %v1323_v47 = vadd.f32 %v6545_v19, %v1244_v36  ;;  %v2424_v50 = vrot.slane %v2135_v48, 1  ;;  %4798 = vmatmul.mubr.msk.bf16.gmra.mrb[40].mxu1 %vm6569_vm9, %v6818_v28  ;;  %v2285_v60 = vshll.u32 %v2135_v48, 16  ;;  %v1394_v61 = vmax.f32 %v1322_v34, 0.0 }
 0x214   : > { %v1321_v56 = vadd.f32 %v6545_v19, %v1242_v43  ;;  %v2290_v2 = vshll.u32 %v2136_v33, 16  ;;  %v1392_v4 = vmax.f32 %v1320_v42, 0.0  ;;  %v2283_v11 = vshrl.u32 %v2135_v48, 16 }
 0x215   : > { %v1395_v62 = vmax.f32 %v1323_v47, 0.0  ;;  %v6868_v63 = vsel %vm2390_vm10, %v2424_v50, %v2425_v54  ;;  %v2287_v17 = vrot.slane %v2285_v60, 1 }
 0x216   : > { %v1393_v8 = vmax.f32 %v1321_v56, 0.0  ;;  %v5544_v10 = vpop.f32.mrb[52].mxu0  ;;  %3503 = vmatprep.mubr.bf16.mxu0 %v6868_v63  ;;  %v2292_v34 = vrot.slane %v2290_v2, 1 }
 0x217   : > { %v1441_v20 = vpack.c.bf16 %v1395_v62, %v1394_v61  ;;  %v1247_v21 = vmul.f32 %v5544_v10, %v6539_v16  ;;  %v1107_v22 = vpop.f32.mrb[53].mxu0  ;;  %v2288_v32 = vor.u32 %v2287_v17, %v2283_v11 }
 0x218   : > { %v6872_v15 = vpack.c.bf16 %v1393_v8, %v1392_v4  ;;  %v1245_v27 = vmul.f32 %v6539_v16, %v1107_v22  ;;  %v5545_v31 = vpop.f32.mrb[54].mxu0 }
 0x219   : > { %v2138_v33 = vsel %vm6575_vm11, %v1441_v20, 0  ;;  %v1326_v36 = vadd.f32 %v6545_v19, %v1247_v21  ;;  %v1248_v40 = vmul.f32 %v5545_v31, %v6539_v16  ;;  %v1110_v42 = vpop.f32.mrb[55].mxu0  ;;  %v6882_v47 = vsel %vm2149_vm12, %v2288_v32, %v2292_v34 }
 0x21a   : > { %v1324_v43 = vadd.f32 %v6545_v19, %v1245_v27  ;;  %v1246_v48 = vmul.f32 %v6539_v16, %v1110_v42  ;;  %7893 = vst [vmem:[#allocation28_spill] sm:$0xff] %v6882_v47  ;;  %v2137_v50 = vsel %vm6569_vm9, %v6872_v15, 0  ;;  %3189 = vmatprep.mubr.bf16.mxu1 %v6882_v47  ;;  %3504 = vmatmul.mubr.bf16.gmra.mrb[112].mxu0 %v6882_v47  ;;  %v2428_v60 = vrot.slane %v2138_v33, 1 }
 0x21b   : > { %v1327_v54 = vadd.f32 %v6545_v19, %v1248_v40  ;;  %v2427_v56 = vrot.slane %v2137_v50, 1  ;;  %4799 = vmatmul.mubr.msk.bf16.gmra.mrb[44].mxu1 %vm6569_vm9, %v6845_v24  ;;  %v2297_v16 = vshll.u32 %v2137_v50, 16  ;;  %v1398_v62 = vmax.f32 %v1326_v36, 0.0 }
 0x21c   : > { %v1325_v61 = vadd.f32 %v6545_v19, %v1246_v48  ;;  %v2302_v8 = vshll.u32 %v2138_v33, 16  ;;  %v1396_v10 = vmax.f32 %v1324_v43, 0.0  ;;  %v2295_v20 = vshrl.u32 %v2137_v50, 16  ;;  %v6901_v19 = vld [vmem:[%s7813_s2] ss:$0 sm:$0xff] }
 0x21d   : > { %v1399_v2 = vmax.f32 %v1327_v54, 0.0  ;;  %v6895_v4 = vsel %vm2390_vm10, %v2427_v56, %v2428_v60  ;;  %v2299_v21 = vrot.slane %v2297_v16, 1  ;;  %v6912_v43 = vld [vmem:[%s7814_s3] ss:$0 sm:$0xff] }
 0x21e   : > { %v1397_v11 = vmax.f32 %v1325_v61, 0.0  ;;  %v5548_v17 = vpop.f32.mrb[56].mxu0  ;;  %3511 = vmatprep.mubr.bf16.mxu0 %v6895_v4  ;;  %v2304_v40 = vrot.slane %v2302_v8, 1 }
 0x21f   : > { %v1443_v22 = vpack.c.bf16 %v1399_v2, %v1398_v62  ;;  %v1251_v27 = vmul.f32 %v6901_v19, %v5548_v17  ;;  %v1123_v31 = vpop.f32.mrb[57].mxu0  ;;  %v2300_v36 = vor.u32 %v2299_v21, %v2295_v20 }
 0x220   : > { %v6904_v32 = vpack.c.bf16 %v1397_v11, %v1396_v10  ;;  %v1249_v34 = vmul.f32 %v6901_v19, %v1123_v31  ;;  %v5549_v33 = vpop.f32.mrb[58].mxu0 }
 0x221   : > { %v2140_v42 = vsel %vm6575_vm11, %v1443_v22, 0  ;;  %v1330_v48 = vadd.f32 %v6912_v43, %v1251_v27  ;;  %v1252_v50 = vmul.f32 %v6901_v19, %v5549_v33  ;;  %v1126_v54 = vpop.f32.mrb[59].mxu0  ;;  %v6919_v61 = vsel %vm2149_vm12, %v2300_v36, %v2304_v40 }
 0x222   : > { %v1328_v56 = vadd.f32 %v6912_v43, %v1249_v34  ;;  %v1250_v60 = vmul.f32 %v6901_v19, %v1126_v54  ;;  %7894 = vst [vmem:[#allocation29_spill] sm:$0xff] %v6919_v61  ;;  %v2139_v16 = vsel %vm6569_vm9, %v6904_v32, 0  ;;  %3197 = vmatprep.mubr.bf16.mxu1 %v6919_v61  ;;  %3512 = vmatmul.mubr.bf16.gmra.mrb[116].mxu0 %v6919_v61  ;;  %v2431_v8 = vrot.slane %v2140_v42, 1 }
 0x223   : > { %v1331_v62 = vadd.f32 %v6912_v43, %v1252_v50  ;;  %v2430_v2 = vrot.slane %v2139_v16, 1  ;;  %4800 = vmatmul.mubr.msk.bf16.gmra.mrb[48].mxu1 %vm6569_vm9, %v6872_v15  ;;  %v2309_v11 = vshll.u32 %v2139_v16, 16  ;;  %v1402_v17 = vmax.f32 %v1330_v48, 0.0 }
 0x224   : > { %v1329_v10 = vadd.f32 %v6912_v43, %v1250_v60  ;;  %v2314_v22 = vshll.u32 %v2140_v42, 16  ;;  %v1400_v27 = vmax.f32 %v1328_v56, 0.0  ;;  %v2307_v33 = vshrl.u32 %v2139_v16, 16 }
 0x225   : > { %v1403_v20 = vmax.f32 %v1331_v62, 0.0  ;;  %v6932_v21 = vsel %vm2390_vm10, %v2430_v2, %v2431_v8  ;;  %v2311_v36 = vrot.slane %v2309_v11, 1 }
 0x226   : > { %v1401_v31 = vmax.f32 %v1329_v10, 0.0  ;;  %v5552_v34 = vpop.f32.mrb[60].mxu0  ;;  %3519 = vmatprep.mubr.bf16.mxu0 %v6932_v21  ;;  %v2316_v2 = vrot.slane %v2314_v22, 1 }
 0x227   : > { %v1445_v40 = vpack.c.bf16 %v1403_v20, %v1402_v17  ;;  %v1255_v50 = vmul.f32 %v6901_v19, %v5552_v34  ;;  %v1139_v54 = vpop.f32.mrb[61].mxu0  ;;  %v2312_v61 = vor.u32 %v2311_v36, %v2307_v33 }
 0x228   : > { %v6936_v60 = vpack.c.bf16 %v1401_v31, %v1400_v27  ;;  %v1253_v48 = vmul.f32 %v6901_v19, %v1139_v54  ;;  %v5553_v62 = vpop.f32.mrb[62].mxu0 }
 0x229   : > { %v2142_v42 = vsel %vm6575_vm11, %v1445_v40, 0  ;;  %v1334_v56 = vadd.f32 %v6912_v43, %v1255_v50  ;;  %v1256_v8 = vmul.f32 %v6901_v19, %v5553_v62  ;;  %v1142_v16 = vpop.f32.mrb[63].mxu0  ;;  %v6946_v17 = vsel %vm2149_vm12, %v2312_v61, %v2316_v2 }
 0x22a   : > { %v1332_v10 = vadd.f32 %v6912_v43, %v1253_v48  ;;  %v1254_v11 = vmul.f32 %v6901_v19, %v1142_v16  ;;  %7895 = vst [vmem:[#allocation30_spill] sm:$0xff] %v6946_v17  ;;  %v2141_v20 = vsel %vm6569_vm9, %v6936_v60, 0  ;;  %3205 = vmatprep.mubr.bf16.mxu1 %v6946_v17  ;;  %3520 = vmatmul.mubr.bf16.gmra.mrb[120].mxu0 %v6946_v17  ;;  %v2434_v31 = vrot.slane %v2142_v42, 1 }
 0x22b   : > { %v1335_v22 = vadd.f32 %v6912_v43, %v1256_v8  ;;  %v2433_v27 = vrot.slane %v2141_v20, 1  ;;  %4801 = vmatmul.mubr.msk.bf16.gmra.mrb[52].mxu1 %vm6569_vm9, %v6904_v32  ;;  %v2321_v61 = vshll.u32 %v2141_v20, 16  ;;  %v1406_v33 = vmax.f32 %v1334_v56, 0.0 }
 0x22c   : > { %v1333_v34 = vadd.f32 %v6912_v43, %v1254_v11  ;;  %v2326_v50 = vshll.u32 %v2142_v42, 16  ;;  %v1404_v54 = vmax.f32 %v1332_v10, 0.0  ;;  %v2319_v2 = vshrl.u32 %v2141_v20, 16 }
 0x22d   : > { %v1407_v36 = vmax.f32 %v1335_v22, 0.0  ;;  %v6959_v40 = vsel %vm2390_vm10, %v2433_v27, %v2434_v31  ;;  %v2323_v8 = vrot.slane %v2321_v61, 1 }
 0x22e   : > { %v1405_v48 = vmax.f32 %v1333_v34, 0.0  ;;  %v5556_v62 = vpop.f32.mrb[64].mxu0  ;;  %3527 = vmatprep.mubr.bf16.mxu0 %v6959_v40  ;;  %v2328_v27 = vrot.slane %v2326_v50, 1 }
 0x22f   : > { %v1447_v16 = vpack.c.bf16 %v1407_v36, %v1406_v33  ;;  %v1259_v11 = vmul.f32 %v6901_v19, %v5556_v62  ;;  %v1155_v17 = vpop.f32.mrb[65].mxu0  ;;  %v2324_v46 = vor.u32 %v2323_v8, %v2319_v2 }
 0x230   : > { %v6963_v47 = vpack.c.bf16 %v1405_v48, %v1404_v54  ;;  %v1257_v56 = vmul.f32 %v6901_v19, %v1155_v17  ;;  %v5557_v22 = vpop.f32.mrb[66].mxu0 }
 0x231   : > { %v2144_v42 = vsel %vm6575_vm11, %v1447_v16, 0  ;;  %v1338_v10 = vadd.f32 %v6912_v43, %v1259_v11  ;;  %v1260_v31 = vmul.f32 %v6901_v19, %v5557_v22  ;;  %v1158_v20 = vpop.f32.mrb[67].mxu0  ;;  %v6973_v33 = vsel %vm2149_vm12, %v2324_v46, %v2328_v27 }
 0x232   : > { %v1336_v34 = vadd.f32 %v6912_v43, %v1257_v56  ;;  %v1258_v61 = vmul.f32 %v6901_v19, %v1158_v20  ;;  %7896 = vst [vmem:[#allocation31_spill] sm:$0xff] %v6973_v33  ;;  %v2143_v17 = vsel %vm6569_vm9, %v6963_v47, 0  ;;  %3213 = vmatprep.mubr.bf16.mxu1 %v6973_v33  ;;  %3528 = vmatmul.mubr.bf16.gmra.mrb[124].mxu0 %v6973_v33  ;;  %v2437_v48 = vrot.slane %v2144_v42, 1 }
 0x233   : > { %v1410_v36 = vmax.f32 %v1338_v10, 0.0  ;;  %v1339_v50 = vadd.f32 %v6912_v43, %v1260_v31  ;;  %v2436_v54 = vrot.slane %v2143_v17, 1  ;;  %4802 = vmatmul.mubr.msk.bf16.gmra.mrb[56].mxu1 %vm6569_vm9, %v6936_v60  ;;  %v2333_v46 = vshll.u32 %v2143_v17, 16 }
 0x234   : > { %v1408_v62 = vmax.f32 %v1336_v34, 0.0  ;;  %v1337_v2 = vadd.f32 %v6912_v43, %v1258_v61  ;;  %v2338_v11 = vshll.u32 %v2144_v42, 16  ;;  %v2331_v22 = vshrl.u32 %v2143_v17, 16 }
 0x235   : > { %v1411_v8 = vmax.f32 %v1339_v50, 0.0  ;;  %v6986_v16 = vsel %vm2390_vm10, %v2436_v54, %v2437_v48  ;;  %v2335_v27 = vrot.slane %v2333_v46, 1 }
 0x236   : > { %v1409_v56 = vmax.f32 %v1337_v2, 0.0  ;;  %3535 = vmatprep.mubr.bf16.mxu0 %v6986_v16  ;;  %v5560_v10 = vpop.f32.mrb[68].mxu0  ;;  %v2340_v49 = vrot.slane %v2338_v11, 1 }
 0x237   : > { %v1449_v31 = vpack.c.bf16 %v1411_v8, %v1410_v36  ;;  %v1263_v20 = vmul.f32 %v6901_v19, %v5560_v10  ;;  %v1171_v34 = vpop.f32.mrb[69].mxu0  ;;  %v2336_v33 = vor.u32 %v2335_v27, %v2331_v22 }
 0x238   : > { %v6990_v61 = vpack.c.bf16 %v1409_v56, %v1408_v62  ;;  %v1261_v50 = vmul.f32 %v6901_v19, %v1171_v34  ;;  %v5561_v59 = vpop.f32.mrb[70].mxu0 }
 0x239   : > { %v2146_v42 = vsel %vm6575_vm11, %v1449_v31, 0  ;;  %v1342_v54 = vadd.f32 %v6912_v43, %v1263_v20  ;;  %v1264_v17 = vmul.f32 %v6901_v19, %v5561_v59  ;;  %v1174_v48 = vpop.f32.mrb[71].mxu0  ;;  %v6998_v36 = vsel %vm2149_vm12, %v2336_v33, %v2340_v49 }
 0x23a   : > { %v2145_v62 = vsel %vm6569_vm9, %v6990_v61, 0  ;;  %v2471_v2 = vrot.slane %v2146_v42, 1  ;;  %v2463_v46 = vshll.u32 %v2146_v42, 16  ;;  %3221 = vmatprep.mubr.bf16.mxu1 %v6998_v36  ;;  %3536 = vmatmul.mubr.bf16.gmra.mrb[128].mxu0 %v6998_v36  ;;  %v1340_v49 = vadd.f32 %v6912_v43, %v1261_v50 }
 0x23b   : > { %v2470_v0 = vrot.slane %v2145_v62, 1  ;;  %v2456_v8 = vshrl.u32 %v2145_v62, 16  ;;  %v2458_v11 = vshll.u32 %v2145_v62, 16  ;;  %4803 = vmatmul.mubr.msk.bf16.gmra.mrb[60].mxu1 %vm6569_vm9, %v6963_v47  ;;  %v1414_v59 = vmax.f32 %v1342_v54, 0.0  ;;  %v5886_v62 = vld [vmem:[#allocation7 + $0x1d0] sm:$0xff]  }
 0x23c   : > { %v1343_v33 = vadd.f32 %v6912_v43, %v1264_v17  ;;  %v1262_v56 = vmul.f32 %v6901_v19, %v1174_v48  ;;  %4804 = vmatprep.mubr.msk.bf16.mxu1 %vm6569_vm9, %v6583_v13  ;;  %v2465_v10 = vrot.slane %v2463_v46, 1  ;;  %v1412_v31 = vmax.f32 %v1340_v49, 0.0  ;;  %v5882_v17 = vld [vmem:[#allocation7 + $0x180] sm:$0xff]   ;;  %v5884_v13 = vld [vmem:[#allocation7 + $0x1c8] sm:$0xff]   ;;  %v5888_v46 = vld [vmem:[#allocation7 + $0x1d8] sm:$0xff]  }
 0x23d   : > { %v7015_v22 = vsel %vm2390_vm10, %v2470_v0, %v2471_v2  ;;  %v2460_v27 = vrot.slane %v2458_v11, 1  ;;  %v5887_v2 = vld [vmem:[#allocation7 + $0x190] sm:$0xff]   ;;  %v5890_v0 = vld [vmem:[#allocation7 + $0x1e0] sm:$0xff]   ;;  %v5892_v11 = vld [vmem:[#allocation7 + $0x1e8] sm:$0xff]  }
 0x23e   : > { %3543 = vmatprep.mubr.bf16.mxu0 %v7015_v22  ;;  %v1415_v20 = vmax.f32 %v1343_v33, 0.0  ;;  %v1341_v34 = vadd.f32 %v6912_v43, %v1262_v56  ;;  %v5885_v43 = vld [vmem:[#allocation7 + $0x188] sm:$0xff]   ;;  %v5895_v49 = vld [vmem:[#allocation7 + $0x1b0] sm:$0xff]   ;;  %v5896_v33 = vld [vmem:[#allocation7 + $0x1f8] sm:$0xff]  }
 0x23f   : > { %v2461_v50 = vor.u32 %v2460_v27, %v2456_v8  ;;  %v5891_v8 = vld [vmem:[#allocation7 + $0x1a0] sm:$0xff]  }
 0x240   : > { %v7019_v42 = vpack.c.bf16 %v1415_v20, %v1414_v59  ;;  %v1413_v54 = vmax.f32 %v1341_v34, 0.0  ;;  %v5894_v59 = vld [vmem:[#allocation7 + $0x1f0] sm:$0xff]   ;;  %v7050_v56 = vld [vmem:[#allocation7 + $0x200] sm:$0xff]  }
 0x241   : > { %v7022_v19 = vsel %vm2149_vm12, %v2461_v50, %v2465_v10 }
 0x242   : > { %v7024_v48 = vpack.c.bf16 %v1413_v54, %v1412_v31  ;;  %3544 = vmatmul.mubr.bf16.gmra.mrb[132].mxu0 %v7022_v19 }
 0x243   : > { %3263 = vmatmul.mubr.bf16.vlgmr.msra.gmra.mrb[64].mxu1 %v6581_v12  ;;  %5578 = vmatprep.mubr.bf16.mxu0 %v6625_v14  ;;  %v5889_v12 = vld [vmem:[#allocation7 + $0x198] sm:$0xff]  }
 0x244   : > { %5315 = vmatpush3.bf16.msra.mxu1 %v5882_v17  ;;  %4805 = vmatprep.mubr.msk.bf16.mxu1 %vm6569_vm9, %v6605_v51 }
 0x245   : > { %5316 = vmatprep.subr.bf16.mxu1 %v5884_v13 }
 0x248   : > { %5317 = vmatpush3.bf16.msra.mxu1 %v5885_v43 }
 0x249   : > { %5318 = vmatprep.subr.bf16.mxu1 %v5886_v62 }
 0x24a   : > { %5579 = vmatmul.mubr.bf16.vlgmr.msra.gmra.mrb[136].mxu0 %v6652_v55 }
 0x24b   : > { %3271 = vmatmul.mubr.bf16.gmra.mrb[68].mxu1 %v6601_v38  ;;  %5582 = vmatprep.mubr.bf16.mxu0 %v6679_v35  ;;  %v5893_v38 = vld [vmem:[#allocation7 + $0x1a8] sm:$0xff]  }
 0x24c   : > { %4806 = vmatprep.mubr.msk.bf16.mxu1 %vm6569_vm9, %v6629_v29  ;;  %5319 = vmatpush3.bf16.msra.mxu1 %v5887_v2 }
 0x24d   : > { %5320 = vmatprep.subr.bf16.mxu1 %v5888_v46 }
 0x250   : > { %5321 = vmatpush3.bf16.msra.mxu1 %v5889_v12 }
 0x251   : > { %5322 = vmatprep.subr.bf16.mxu1 %v5890_v0 }
 0x252   : > { %5583 = vmatmul.mubr.bf16.gmra.mrb[140].mxu0 %v6706_v18 }
 0x253   : > { %3279 = vmatmul.mubr.bf16.gmra.mrb[72].mxu1 %v6625_v14  ;;  %5586 = vmatprep.mubr.bf16.mxu0 %v6733_v57  ;;  %v5897_v14 = vld [vmem:[#allocation7 + $0x1b8] sm:$0xff]  }
 0x254   : > { %4807 = vmatprep.mubr.msk.bf16.mxu1 %vm6569_vm9, %v6656_v6  ;;  %5323 = vmatpush3.bf16.msra.mxu1 %v5891_v8 }
 0x255   : > { %5324 = vmatprep.subr.bf16.mxu1 %v5892_v11 }
 0x258   : > { %5325 = vmatpush3.bf16.msra.mxu1 %v5893_v38 }
 0x259   : > { %5326 = vmatprep.subr.bf16.mxu1 %v5894_v59 }
 0x25a   : > { %5587 = vmatmul.mubr.bf16.gmra.mrb[144].mxu0 %v6760_v37 }
 0x25b   : > { %3287 = vmatmul.mubr.bf16.gmra.mrb[76].mxu1 %v6652_v55  ;;  %5590 = vmatprep.mubr.bf16.mxu0 %v6787_v23 }
 0x25c   : > { %4808 = vmatprep.mubr.msk.bf16.mxu1 %vm6569_vm9, %v6683_v52  ;;  %5327 = vmatpush3.bf16.msra.mxu1 %v5895_v49 }
 0x25d   : > { %5328 = vmatprep.subr.bf16.mxu1 %v5896_v33 }
 0x260   : > { %5329 = vmatpush3.bf16.msra.mxu1 %v5897_v14  ;;  %v2147_v14 = vsel %vm6555_vm8, %v7024_v48, 0 }
 0x261   : > { %5658 = vmatprep.subr.bf16.mxu1 %v7050_v56 }
 0x262   : > { %5591 = vmatmul.mubr.bf16.gmra.mrb[148].mxu0 %v6814_v9 }
 0x263   : > { %3295 = vmatmul.mubr.bf16.gmra.mrb[80].mxu1 %v6679_v35  ;;  %5594 = vmatprep.mubr.bf16.mxu0 %v6841_v1 }
 0x264   : > { %4809 = vmatprep.mubr.msk.bf16.mxu1 %vm6569_vm9, %v6710_v30 }
 0x26a   : > { %5595 = vmatmul.mubr.bf16.gmra.mrb[152].mxu0 %v6868_v63 }
 0x26b   : > { %3303 = vmatmul.mubr.bf16.gmra.mrb[84].mxu1 %v6706_v18  ;;  %5598 = vmatprep.mubr.bf16.mxu0 %v6895_v4 }
 0x26c   : > { %4810 = vmatprep.mubr.msk.bf16.mxu1 %vm6569_vm9, %v6737_v7 }
 0x272   : > { %5599 = vmatmul.mubr.bf16.gmra.mrb[156].mxu0 %v6932_v21 }
 0x273   : > { %3311 = vmatmul.mubr.bf16.gmra.mrb[88].mxu1 %v6733_v57  ;;  %5602 = vmatprep.mubr.bf16.mxu0 %v6959_v40 }
 0x274   : > { %4811 = vmatprep.mubr.msk.bf16.mxu1 %vm6569_vm9, %v6764_v53 }
 0x27a   : > { %5603 = vmatmul.mubr.bf16.gmra.mrb[160].mxu0 %v6986_v16 }
 0x27b   : > { %3319 = vmatmul.mubr.bf16.gmra.mrb[92].mxu1 %v6760_v37 }
 0x27c   : > { %4812 = vmatprep.mubr.msk.bf16.mxu1 %vm6569_vm9, %v6791_v39 }
 0x283   : > { %3327 = vmatmul.mubr.bf16.gmra.mrb[96].mxu1 %v6787_v23 }
 0x284   : > { %4813 = vmatprep.mubr.msk.bf16.mxu1 %vm6569_vm9, %v6818_v28 }
 0x28b   : > { %3335 = vmatmul.mubr.bf16.gmra.mrb[100].mxu1 %v6814_v9 }
 0x28c   : > { %4814 = vmatprep.mubr.msk.bf16.mxu1 %vm6569_vm9, %v6845_v24 }
 0x293   : > { %3343 = vmatmul.mubr.bf16.gmra.mrb[104].mxu1 %v6841_v1 }
 0x294   : > { %4815 = vmatprep.mubr.msk.bf16.mxu1 %vm6569_vm9, %v6872_v15 }
 0x296   : > { %v4994_v55 = vpop.f32.mrb[0].mxu1 }
 0x297   : > { %v4995_v35 = vpop.f32.mrb[1].mxu1 }
 0x298   : > { %v7088_v18 = vadd.f32 %v4995_v35, %v4994_v55  ;;  %v4997_v57 = vpop.f32.mrb[2].mxu1 }
 0x299   : > { %v4998_v37 = vpop.f32.mrb[3].mxu1 }
 0x29a   : > { %v7090_v23 = vadd.f32 %v4998_v37, %v4997_v57 }
 0x29b   : > { %3351 = vmatmul.mubr.bf16.gmra.mrb[108].mxu1 %v6868_v63 }
 0x29c   : > { %4816 = vmatprep.mubr.msk.bf16.mxu1 %vm6569_vm9, %v6904_v32 }
 0x29d   : > { %v5218_v9 = vpop.f32.mrb[72].mxu0 }
 0x29e   : > { %v5000_v1 = vpop.f32.mrb[4].mxu1  ;;  %v5219_v27 = vpop.f32.mrb[73].mxu0 }
 0x29f   : > { %v7096_v10 = vadd.f32 %v5219_v27, %v5218_v9  ;;  %v5001_v31 = vpop.f32.mrb[5].mxu1  ;;  %v5221_v20 = vpop.f32.mrb[74].mxu0  ;;  %v2489_v27 = vrot.slane %v2147_v14, 1 }
 0x2a0   : > { %v7098_v34 = vadd.f32 %v5001_v31, %v5000_v1  ;;  %v5003_v50 = vpop.f32.mrb[6].mxu1  ;;  %v5222_v54 = vpop.f32.mrb[75].mxu0 }
 0x2a1   : > { %v7100_v17 = vadd.f32 %v5222_v54, %v5221_v20  ;;  %v5004_v13 = vpop.f32.mrb[7].mxu1  ;;  %v2477_v54 = vshll.u32 %v2147_v14, 16 }
 0x2a2   : > { %v7102_v43 = vadd.f32 %v5004_v13, %v5003_v50 }
 0x2a3   : > { %3359 = vmatmul.mubr.bf16.gmra.mrb[112].mxu1 %v6895_v4  ;;  %v2148_v4 = vsel %vm6555_vm8, %v7019_v42, 0 }
 0x2a4   : > { %4817 = vmatprep.mubr.msk.bf16.mxu1 %vm6569_vm9, %v6936_v60 }
 0x2a5   : > { %v5224_v63 = vpop.f32.mrb[76].mxu0 }
 0x2a6   : > { %v5006_v62 = vpop.f32.mrb[8].mxu1  ;;  %v5225_v2 = vpop.f32.mrb[77].mxu0 }
 0x2a7   : > { %v7108_v46 = vadd.f32 %v5225_v2, %v5224_v63  ;;  %v5007_v12 = vpop.f32.mrb[9].mxu1  ;;  %v5227_v0 = vpop.f32.mrb[78].mxu0  ;;  %v2479_v2 = vrot.slane %v2477_v54, 1 }
 0x2a8   : > { %v7110_v8 = vadd.f32 %v5007_v12, %v5006_v62  ;;  %v5009_v11 = vpop.f32.mrb[10].mxu1  ;;  %v5228_v38 = vpop.f32.mrb[79].mxu0  ;;  %v2475_v62 = vshrl.u32 %v2147_v14, 16  ;;  %v2482_v12 = vshll.u32 %v2148_v4, 16 }
 0x2a9   : > { %v7112_v59 = vadd.f32 %v5228_v38, %v5227_v0  ;;  %v5010_v49 = vpop.f32.mrb[11].mxu1 }
 0x2aa   : > { %v7114_v33 = vadd.f32 %v5010_v49, %v5009_v11  ;;  %v2480_v0 = vor.u32 %v2479_v2, %v2475_v62  ;;  %v2484_v11 = vrot.slane %v2482_v12, 1 }
 0x2ab   : > { %3367 = vmatmul.mubr.bf16.gmra.mrb[116].mxu1 %v6932_v21  ;;  %v2490_v21 = vrot.slane %v2148_v4, 1 }
 0x2ac   : > { %4818 = vmatprep.mubr.msk.bf16.mxu1 %vm6569_vm9, %v6963_v47 }
 0x2ad   : > { %v5230_v55 = vpop.f32.mrb[80].mxu0  ;;  %v7139_v38 = vsel %vm2390_vm10, %v2489_v27, %v2490_v21 }
 0x2ae   : > { %v5012_v35 = vpop.f32.mrb[12].mxu1  ;;  %v5231_v57 = vpop.f32.mrb[81].mxu0 }
 0x2af   : > { %v7126_v37 = vadd.f32 %v5231_v57, %v5230_v55  ;;  %v5013_v9 = vpop.f32.mrb[13].mxu1  ;;  %v5233_v1 = vpop.f32.mrb[82].mxu0  ;;  %v7142_v57 = vsel %vm2149_vm12, %v2480_v0, %v2484_v11 }
 0x2b0   : > { %v7128_v31 = vadd.f32 %v5013_v9, %v5012_v35  ;;  %v5015_v20 = vpop.f32.mrb[14].mxu1  ;;  %v5234_v50 = vpop.f32.mrb[83].mxu0 }
 0x2b1   : > { %v7130_v13 = vadd.f32 %v5234_v50, %v5233_v1  ;;  %v5016_v42 = vpop.f32.mrb[15].mxu1 }
 0x2b2   : > { %v7132_v63 = vadd.f32 %v5016_v42, %v5015_v20 }
 0x2b3   : > { %3375 = vmatmul.mubr.bf16.gmra.mrb[120].mxu1 %v6959_v40 }
 0x2b4   : > { %4819 = vmatprep.mubr.msk.bf16.mxu1 %vm6569_vm9, %v6990_v61 }
 0x2b5   : > { %v5236_v49 = vpop.f32.mrb[84].mxu0 }
 0x2b6   : > { %v5018_v55 = vpop.f32.mrb[16].mxu1  ;;  %v5237_v35 = vpop.f32.mrb[85].mxu0 }
 0x2b7   : > { %v7144_v14 = vadd.f32 %v5237_v35, %v5236_v49  ;;  %v5019_v4 = vpop.f32.mrb[17].mxu1  ;;  %v5239_v9 = vpop.f32.mrb[86].mxu0 }
 0x2b8   : > { %v7146_v40 = vadd.f32 %v5019_v4, %v5018_v55  ;;  %v5021_v1 = vpop.f32.mrb[18].mxu1  ;;  %v5240_v20 = vpop.f32.mrb[87].mxu0 }
 0x2b9   : > { %v7148_v50 = vadd.f32 %v5240_v20, %v5239_v9  ;;  %v5022_v54 = vpop.f32.mrb[19].mxu1 }
 0x2ba   : > { %v7150_v42 = vadd.f32 %v5022_v54, %v5021_v1 }
 0x2bb   : > { %3383 = vmatmul.mubr.bf16.gmra.mrb[124].mxu1 %v6986_v16  ;;  %v5909_v16 = vld [vmem:[#allocation7 + $0x208] sm:$0xff]  }
 0x2bc   : > { %3584 = vmatprep.mubr.bf16.mxu1 %v6639_v44 }
 0x2bd   : > { %v5242_v21 = vpop.f32.mrb[88].mxu0 }
 0x2be   : > { %v5024_v27 = vpop.f32.mrb[20].mxu1  ;;  %v5243_v62 = vpop.f32.mrb[89].mxu0 }
 0x2bf   : > { %v7154_v2 = vadd.f32 %v5243_v62, %v5242_v21  ;;  %v5025_v12 = vpop.f32.mrb[21].mxu1  ;;  %v5245_v0 = vpop.f32.mrb[90].mxu0 }
 0x2c0   : > { %v7156_v11 = vadd.f32 %v5025_v12, %v5024_v27  ;;  %v5027_v49 = vpop.f32.mrb[22].mxu1  ;;  %v5246_v55 = vpop.f32.mrb[91].mxu0 }
 0x2c1   : > { %v7158_v35 = vadd.f32 %v5246_v55, %v5245_v0  ;;  %v5028_v4 = vpop.f32.mrb[23].mxu1 }
 0x2c2   : > { %v7160_v9 = vadd.f32 %v5028_v4, %v5027_v49  ;;  %v5911_v4 = vld [vmem:[#allocation7 + $0x218] sm:$0xff]  }
 0x2c3   : > { %4820 = vmatmul.mubr.msk.bf16.vlgmr.msra.gmra.mrb[128].mxu1 %vm6569_vm9, %v6605_v51 }
 0x2c4   : > { %5666 = vmatpush3.bf16.msra.mxu1 %v7050_v56  ;;  %3592 = vmatprep.mubr.bf16.mxu1 %v6666_v25  ;;  %v5910_v56 = vld [vmem:[#allocation7 + $0x210] sm:$0xff]  }
 0x2c5   : > { %v5248_v44 = vpop.f32.mrb[92].mxu0  ;;  %5659 = vmatprep.subr.bf16.mxu1 %v5909_v16 }
 0x2c6   : > { %v5030_v1 = vpop.f32.mrb[24].mxu1  ;;  %v5249_v20 = vpop.f32.mrb[93].mxu0 }
 0x2c7   : > { %v7167_v54 = vadd.f32 %v5249_v20, %v5248_v44  ;;  %v5031_v21 = vpop.f32.mrb[25].mxu1  ;;  %v5251_v27 = vpop.f32.mrb[94].mxu0 }
 0x2c8   : > { %v7169_v62 = vadd.f32 %v5031_v21, %v5030_v1  ;;  %v5033_v12 = vpop.f32.mrb[26].mxu1  ;;  %v5252_v0 = vpop.f32.mrb[95].mxu0  ;;  %5667 = vmatpush3.bf16.msra.mxu1 %v5909_v16 }
 0x2c9   : > { %v7171_v49 = vadd.f32 %v5252_v0, %v5251_v27  ;;  %v5034_v51 = vpop.f32.mrb[27].mxu1  ;;  %5660 = vmatprep.subr.bf16.mxu1 %v5910_v56 }
 0x2ca   : > { %v7173_v25 = vadd.f32 %v5034_v51, %v5033_v12 }
 0x2cb   : > { %4821 = vmatmul.mubr.msk.bf16.gmra.mrb[132].mxu1 %vm6569_vm9, %v6629_v29 }
 0x2cc   : > { %7897 = vst [vmem:[#allocation32_spill] sm:$0xff] %v7173_v25  ;;  %3600 = vmatprep.mubr.bf16.mxu1 %v6693_v3  ;;  %5668 = vmatpush3.bf16.msra.mxu1 %v5910_v56  ;;  %v5912_v25 = vld [vmem:[#allocation7 + $0x220] sm:$0xff]  }
 0x2cd   : > { %v5254_v55 = vpop.f32.mrb[96].mxu0  ;;  %5661 = vmatprep.subr.bf16.mxu1 %v5911_v4 }
 0x2ce   : > { %v5036_v44 = vpop.f32.mrb[28].mxu1  ;;  %v5255_v1 = vpop.f32.mrb[97].mxu0 }
 0x2cf   : > { %v7179_v16 = vadd.f32 %v5255_v1, %v5254_v55  ;;  %v5037_v20 = vpop.f32.mrb[29].mxu1  ;;  %v5257_v21 = vpop.f32.mrb[98].mxu0  ;;  %v5913_v55 = vld [vmem:[#allocation7 + $0x228] sm:$0xff]  }
 0x2d0   : > { %v7181_v27 = vadd.f32 %v5037_v20, %v5036_v44  ;;  %v5039_v12 = vpop.f32.mrb[30].mxu1  ;;  %v5258_v0 = vpop.f32.mrb[99].mxu0  ;;  %5669 = vmatpush3.bf16.msra.mxu1 %v5911_v4 }
 0x2d1   : > { %v7183_v51 = vadd.f32 %v5258_v0, %v5257_v21  ;;  %v5040_v29 = vpop.f32.mrb[31].mxu1  ;;  %5662 = vmatprep.subr.bf16.mxu1 %v5912_v25 }
 0x2d2   : > { %7898 = vst [vmem:[#allocation33_spill] sm:$0xff] %v7181_v27  ;;  %v7185_v3 = vadd.f32 %v5040_v29, %v5039_v12  ;;  %v5914_v27 = vld [vmem:[#allocation7 + $0x230] sm:$0xff]  }
 0x2d3   : > { %4822 = vmatmul.mubr.msk.bf16.gmra.mrb[136].mxu1 %vm6569_vm9, %v6656_v6 }
 0x2d4   : > { %7899 = vst [vmem:[#allocation34_spill] sm:$0xff] %v7185_v3  ;;  %3608 = vmatprep.mubr.bf16.mxu1 %v6720_v45  ;;  %5670 = vmatpush3.bf16.msra.mxu1 %v5912_v25 }
 0x2d5   : > { %v5260_v56 = vpop.f32.mrb[100].mxu0  ;;  %5663 = vmatprep.subr.bf16.mxu1 %v5913_v55 }
 0x2d6   : > { %v5042_v44 = vpop.f32.mrb[32].mxu1  ;;  %v5261_v1 = vpop.f32.mrb[101].mxu0 }
 0x2d7   : > { %v7191_v4 = vadd.f32 %v5261_v1, %v5260_v56  ;;  %v5043_v20 = vpop.f32.mrb[33].mxu1  ;;  %v5263_v21 = vpop.f32.mrb[102].mxu0  ;;  %v5915_v56 = vld [vmem:[#allocation7 + $0x238] sm:$0xff]  }
 0x2d8   : > { %v7193_v0 = vadd.f32 %v5043_v20, %v5042_v44  ;;  %v5045_v12 = vpop.f32.mrb[34].mxu1  ;;  %v5264_v29 = vpop.f32.mrb[103].mxu0  ;;  %5671 = vmatpush3.bf16.msra.mxu1 %v5913_v55 }
 0x2d9   : > { %v7195_v3 = vadd.f32 %v5264_v29, %v5263_v21  ;;  %v5046_v6 = vpop.f32.mrb[35].mxu1  ;;  %5664 = vmatprep.subr.bf16.mxu1 %v5914_v27 }
 0x2da   : > { %7900 = vst [vmem:[#allocation35_spill] sm:$0xff] %v7193_v0  ;;  %v7197_v45 = vadd.f32 %v5046_v6, %v5045_v12 }
 0x2db   : > { %4823 = vmatmul.mubr.msk.bf16.gmra.mrb[140].mxu1 %vm6569_vm9, %v6683_v52 }
 0x2dc   : > { %7901 = vst [vmem:[#allocation36_spill] sm:$0xff] %v7197_v45  ;;  %3616 = vmatprep.mubr.bf16.mxu1 %v6747_v26  ;;  %5672 = vmatpush3.bf16.msra.mxu1 %v5914_v27 }
 0x2dd   : > { %v5266_v25 = vpop.f32.mrb[104].mxu0  ;;  %5665 = vmatprep.subr.bf16.mxu1 %v5915_v56 }
 0x2de   : > { %v5048_v44 = vpop.f32.mrb[36].mxu1  ;;  %v5267_v1 = vpop.f32.mrb[105].mxu0 }
 0x2df   : > { %v7203_v55 = vadd.f32 %v5267_v1, %v5266_v25  ;;  %v5049_v20 = vpop.f32.mrb[37].mxu1  ;;  %v5269_v21 = vpop.f32.mrb[106].mxu0 }
 0x2e0   : > { %v7205_v29 = vadd.f32 %v5049_v20, %v5048_v44  ;;  %v5051_v12 = vpop.f32.mrb[38].mxu1  ;;  %v5270_v6 = vpop.f32.mrb[107].mxu0  ;;  %5673 = vmatpush3.bf16.msra.mxu1 %v5915_v56 }
 0x2e1   : > { %v7207_v45 = vadd.f32 %v5270_v6, %v5269_v21  ;;  %v5052_v52 = vpop.f32.mrb[39].mxu1 }
 0x2e2   : > { %7902 = vst [vmem:[#allocation37_spill] sm:$0xff] %v7205_v29  ;;  %v7209_v0 = vadd.f32 %v5052_v52, %v5051_v12 }
 0x2e3   : > { %4824 = vmatmul.mubr.msk.bf16.gmra.mrb[144].mxu1 %vm6569_vm9, %v6710_v30  ;;  %v7906_v30 = vld [vmem:[#allocation25_spill] sm:$0xff] }
 0x2e4   : > { %3624 = vmatprep.mubr.bf16.mxu1 %v6774_v5 }
 0x2e5   : > { %v5272_v26 = vpop.f32.mrb[108].mxu0 }
 0x2e6   : > { %v5054_v27 = vpop.f32.mrb[40].mxu1  ;;  %v5273_v25 = vpop.f32.mrb[109].mxu0 }
 0x2e7   : > { %v7215_v1 = vadd.f32 %v5273_v25, %v5272_v26  ;;  %v5055_v44 = vpop.f32.mrb[41].mxu1  ;;  %v5275_v20 = vpop.f32.mrb[110].mxu0 }
 0x2e8   : > { %v7217_v29 = vadd.f32 %v5055_v44, %v5054_v27  ;;  %v5057_v56 = vpop.f32.mrb[42].mxu1  ;;  %v5276_v21 = vpop.f32.mrb[111].mxu0 }
 0x2e9   : > { %7903 = vst [vmem:[#allocation38_spill] sm:$0xff] %v7215_v1  ;;  %v7219_v6 = vadd.f32 %v5276_v21, %v5275_v20  ;;  %v5058_v12 = vpop.f32.mrb[43].mxu1 }
 0x2ea   : > { %7904 = vst [vmem:[#allocation39_spill] sm:$0xff] %v7217_v29  ;;  %v7221_v52 = vadd.f32 %v5058_v12, %v5057_v56 }
 0x2eb   : > { %7905 = vst [vmem:[#allocation40_spill] sm:$0xff] %v7219_v6  ;;  %4825 = vmatmul.mubr.msk.bf16.gmra.mrb[148].mxu1 %vm6569_vm9, %v6737_v7  ;;  %v7910_v7 = vld [vmem:[#allocation26_spill] sm:$0xff] }
 0x2ec   : > { %3632 = vmatprep.mubr.bf16.mxu1 %v7906_v30 }
 0x2ed   : > { %v5278_v5 = vpop.f32.mrb[112].mxu0 }
 0x2ee   : > { %v5060_v26 = vpop.f32.mrb[44].mxu1  ;;  %v5279_v25 = vpop.f32.mrb[113].mxu0 }
 0x2ef   : > { %v7227_v1 = vadd.f32 %v5279_v25, %v5278_v5  ;;  %v5061_v27 = vpop.f32.mrb[45].mxu1  ;;  %v5281_v44 = vpop.f32.mrb[114].mxu0 }
 0x2f0   : > { %v7229_v29 = vadd.f32 %v5061_v27, %v5060_v26  ;;  %v5063_v20 = vpop.f32.mrb[46].mxu1  ;;  %v5282_v21 = vpop.f32.mrb[115].mxu0 }
 0x2f1   : > { %7907 = vst [vmem:[#allocation25_spill] sm:$0xff] %v7227_v1  ;;  %v7231_v6 = vadd.f32 %v5282_v21, %v5281_v44  ;;  %v5064_v56 = vpop.f32.mrb[47].mxu1 }
 0x2f2   : > { %7908 = vst [vmem:[#allocation41_spill] sm:$0xff] %v7229_v29  ;;  %v7233_v12 = vadd.f32 %v5064_v56, %v5063_v20 }
 0x2f3   : > { %7909 = vst [vmem:[#allocation42_spill] sm:$0xff] %v7231_v6  ;;  %4826 = vmatmul.mubr.msk.bf16.gmra.mrb[152].mxu1 %vm6569_vm9, %v6764_v53  ;;  %v7914_v53 = vld [vmem:[#allocation27_spill] sm:$0xff] }
 0x2f4   : > { %3640 = vmatprep.mubr.bf16.mxu1 %v7910_v7 }
 0x2f5   : > { %v5284_v30 = vpop.f32.mrb[116].mxu0 }
 0x2f6   : > { %v5066_v5 = vpop.f32.mrb[48].mxu1  ;;  %v5285_v25 = vpop.f32.mrb[117].mxu0 }
 0x2f7   : > { %v7239_v1 = vadd.f32 %v5285_v25, %v5284_v30  ;;  %v5067_v26 = vpop.f32.mrb[49].mxu1  ;;  %v5287_v27 = vpop.f32.mrb[118].mxu0 }
 0x2f8   : > { %v7241_v29 = vadd.f32 %v5067_v26, %v5066_v5  ;;  %v5069_v44 = vpop.f32.mrb[50].mxu1  ;;  %v5288_v21 = vpop.f32.mrb[119].mxu0 }
 0x2f9   : > { %7911 = vst [vmem:[#allocation26_spill] sm:$0xff] %v7239_v1  ;;  %v7243_v6 = vadd.f32 %v5288_v21, %v5287_v27  ;;  %v5070_v20 = vpop.f32.mrb[51].mxu1 }
 0x2fa   : > { %7912 = vst [vmem:[#allocation43_spill] sm:$0xff] %v7241_v29  ;;  %v7245_v56 = vadd.f32 %v5070_v20, %v5069_v44 }
 0x2fb   : > { %7913 = vst [vmem:[#allocation44_spill] sm:$0xff] %v7243_v6  ;;  %4827 = vmatmul.mubr.msk.bf16.gmra.mrb[156].mxu1 %vm6569_vm9, %v6791_v39  ;;  %v7918_v39 = vld [vmem:[#allocation28_spill] sm:$0xff] }
 0x2fc   : > { %3648 = vmatprep.mubr.bf16.mxu1 %v7914_v53 }
 0x2fd   : > { %v5290_v7 = vpop.f32.mrb[120].mxu0 }
 0x2fe   : > { %v5072_v30 = vpop.f32.mrb[52].mxu1  ;;  %v5291_v25 = vpop.f32.mrb[121].mxu0 }
 0x2ff   : > { %v7251_v1 = vadd.f32 %v5291_v25, %v5290_v7  ;;  %v5073_v5 = vpop.f32.mrb[53].mxu1  ;;  %v5293_v26 = vpop.f32.mrb[122].mxu0 }
 0x300   : > { %v7253_v29 = vadd.f32 %v5073_v5, %v5072_v30  ;;  %v5075_v27 = vpop.f32.mrb[54].mxu1  ;;  %v5294_v21 = vpop.f32.mrb[123].mxu0 }
 0x301   : > { %7915 = vst [vmem:[#allocation27_spill] sm:$0xff] %v7251_v1  ;;  %v7255_v6 = vadd.f32 %v5294_v21, %v5293_v26  ;;  %v5076_v44 = vpop.f32.mrb[55].mxu1 }
 0x302   : > { %7916 = vst [vmem:[#allocation45_spill] sm:$0xff] %v7253_v29  ;;  %v7257_v20 = vadd.f32 %v5076_v44, %v5075_v27 }
 0x303   : > { %7917 = vst [vmem:[#allocation46_spill] sm:$0xff] %v7255_v6  ;;  %4828 = vmatmul.mubr.msk.bf16.gmra.mrb[160].mxu1 %vm6569_vm9, %v6818_v28  ;;  %v7923_v28 = vld [vmem:[#allocation29_spill] sm:$0xff] }
 0x304   : > { %3656 = vmatprep.mubr.bf16.mxu1 %v7918_v39 }
 0x305   : > { %v5296_v53 = vpop.f32.mrb[124].mxu0 }
 0x306   : > { %v5078_v7 = vpop.f32.mrb[56].mxu1  ;;  %v5297_v25 = vpop.f32.mrb[125].mxu0 }
 0x307   : > { %v7263_v1 = vadd.f32 %v5297_v25, %v5296_v53  ;;  %v5079_v30 = vpop.f32.mrb[57].mxu1  ;;  %v5299_v5 = vpop.f32.mrb[126].mxu0 }
 0x308   : > { %v7265_v29 = vadd.f32 %v5079_v30, %v5078_v7  ;;  %v5081_v26 = vpop.f32.mrb[58].mxu1  ;;  %v5300_v21 = vpop.f32.mrb[127].mxu0 }
 0x309   : > { %7919 = vst [vmem:[#allocation28_spill] sm:$0xff] %v7263_v1  ;;  %v7267_v6 = vadd.f32 %v5300_v21, %v5299_v5  ;;  %v5082_v27 = vpop.f32.mrb[59].mxu1 }
 0x30a   : > { %7920 = vst [vmem:[#allocation47_spill] sm:$0xff] %v7265_v29  ;;  %v7269_v44 = vadd.f32 %v5082_v27, %v5081_v26 }
 0x30b   : > { %7921 = vst [vmem:[#allocation48_spill] sm:$0xff] %v7267_v6  ;;  %4829 = vmatmul.mubr.msk.bf16.gmra.mrb[164].mxu1 %vm6569_vm9, %v6845_v24  ;;  %v5898_v6 = vld [vmem:[#allocation8] sm:$0xff]   ;;  %v7928_v24 = vld [vmem:[#allocation30_spill] sm:$0xff] }
 0x30c   : > { %7922 = vst [vmem:[#allocation49_spill] sm:$0xff] %v7269_v44  ;;  %3664 = vmatprep.mubr.bf16.mxu1 %v7923_v28  ;;  %5610 = vmatprep.subr.bf16.mxu0 %v5898_v6  ;;  %v5899_v28 = vld [vmem:[#allocation8 + $0x8] sm:$0xff]  }
 0x30d   : > { %v5302_v39 = vpop.f32.mrb[128].mxu0  ;;  %5611 = vmatpush3.bf16.msra.mxu0 %v5898_v6 }
 0x30e   : > { %v5084_v53 = vpop.f32.mrb[60].mxu1  ;;  %v5303_v25 = vpop.f32.mrb[129].mxu0  ;;  %5612 = vmatprep.subr.bf16.mxu0 %v5899_v28 }
 0x30f   : > { %v7275_v1 = vadd.f32 %v5303_v25, %v5302_v39  ;;  %v5085_v7 = vpop.f32.mrb[61].mxu1  ;;  %v5305_v30 = vpop.f32.mrb[130].mxu0 }
 0x310   : > { %v7277_v29 = vadd.f32 %v5085_v7, %v5084_v53  ;;  %v5087_v5 = vpop.f32.mrb[62].mxu1  ;;  %v5306_v21 = vpop.f32.mrb[131].mxu0 }
 0x311   : > { %7924 = vst [vmem:[#allocation29_spill] sm:$0xff] %v7275_v1  ;;  %v7279_v26 = vadd.f32 %v5306_v21, %v5305_v30  ;;  %v5088_v27 = vpop.f32.mrb[63].mxu1  ;;  %5613 = vmatpush3.bf16.msra.mxu0 %v5899_v28 }
 0x312   : > { %7925 = vst [vmem:[#allocation50_spill] sm:$0xff] %v7277_v29  ;;  %v7281_v44 = vadd.f32 %v5088_v27, %v5087_v5 }
 0x313   : > { %7926 = vst [vmem:[#allocation51_spill] sm:$0xff] %v7279_v26  ;;  %4830 = vmatmul.mubr.msk.bf16.gmra.mrb[168].mxu1 %vm6569_vm9, %v6872_v15 }
 0x314   : > { %7927 = vst [vmem:[#allocation52_spill] sm:$0xff] %v7281_v44  ;;  %3672 = vmatprep.mubr.bf16.mxu1 %v7928_v24  ;;  %v5900_v44 = vld [vmem:[#allocation8 + $0x10] sm:$0xff]  }
 0x315   : > { %v5308_v39 = vpop.f32.mrb[132].mxu0  ;;  %5614 = vmatprep.subr.bf16.mxu0 %v5900_v44 }
 0x316   : > { %v5106_v53 = vpop.f32.mrb[64].mxu1  ;;  %v5309_v25 = vpop.f32.mrb[133].mxu0  ;;  %5615 = vmatpush3.bf16.msra.mxu0 %v5900_v44 }
 0x317   : > { %v5107_v7 = vpop.f32.mrb[65].mxu1  ;;  %v7287_v29 = vadd.f32 %v5309_v25, %v5308_v39  ;;  %v5311_v30 = vpop.f32.mrb[134].mxu0  ;;  %v7929_v39 = vld [vmem:[#allocation31_spill] sm:$0xff] }
 0x318   : > { %v5108_v5 = vadd.f32 %v5107_v7, %v5106_v53  ;;  %v5109_v21 = vpop.f32.mrb[66].mxu1  ;;  %v5312_v27 = vpop.f32.mrb[135].mxu0  ;;  %v5901_v53 = vld [vmem:[#allocation8 + $0x18] sm:$0xff]  }
 0x319   : > { %v5110_v26 = vpop.f32.mrb[67].mxu1  ;;  %v7289_v1 = vadd.f32 %v5312_v27, %v5311_v30  ;;  %5616 = vmatprep.subr.bf16.mxu0 %v5901_v53 }
 0x31a   : > { %v3265_v15 = vadd.f32 %v5108_v5, %v7088_v18  ;;  %v5111_v6 = vadd.f32 %v5110_v26, %v5109_v21  ;;  %5617 = vmatpush3.bf16.msra.mxu0 %v5901_v53 }
 0x31b   : > { %4831 = vmatmul.mubr.msk.bf16.gmra.mrb[172].mxu1 %vm6569_vm9, %v6904_v32 }
 0x31c   : > { %v3268_v24 = vadd.f32 %v5111_v6, %v7090_v23  ;;  %3680 = vmatprep.mubr.bf16.mxu1 %v7929_v39  ;;  %v7298_v28 = vadd.f32 %v7096_v10, %v3265_v15  ;;  %v5902_v10 = vld [vmem:[#allocation8 + $0x20] sm:$0xff]  }
 0x31d   : > { %v7300_v25 = vpop.f32.mrb[136].mxu0  ;;  %5618 = vmatprep.subr.bf16.mxu0 %v5902_v10 }
 0x31e   : > { %v5112_v7 = vpop.f32.mrb[68].mxu1  ;;  %v7302_v30 = vpop.f32.mrb[137].mxu0  ;;  %v7305_v18 = vadd.f32 %v7100_v17, %v3268_v24  ;;  %5619 = vmatpush3.bf16.msra.mxu0 %v5902_v10  ;;  %v5903_v24 = vld [vmem:[#allocation8 + $0x28] sm:$0xff]  }
 0x31f   : > { %v5113_v26 = vpop.f32.mrb[69].mxu1  ;;  %v7307_v32 = vpop.f32.mrb[138].mxu0  ;;  %5620 = vmatprep.subr.bf16.mxu0 %v5903_v24 }
 0x320   : > { %v5114_v23 = vadd.f32 %v5113_v26, %v5112_v7  ;;  %v5115_v44 = vpop.f32.mrb[70].mxu1  ;;  %v7309_v5 = vpop.f32.mrb[139].mxu0 }
 0x321   : > { %v5116_v21 = vpop.f32.mrb[71].mxu1 }
 0x322   : > { %v3273_v27 = vadd.f32 %v5114_v23, %v7098_v34  ;;  %v5117_v15 = vadd.f32 %v5116_v21, %v5115_v44  ;;  %5621 = vmatpush3.bf16.msra.mxu0 %v5903_v24 }
 0x323   : > { %4832 = vmatmul.mubr.msk.bf16.gmra.mrb[176].mxu1 %vm6569_vm9, %v6936_v60 }
 0x324   : > { %v3276_v17 = vadd.f32 %v5117_v15, %v7102_v43  ;;  %3688 = vmatprep.mubr.bf16.mxu1 %v6998_v36  ;;  %v7318_v6 = vadd.f32 %v7108_v46, %v3273_v27  ;;  %v5904_v46 = vld [vmem:[#allocation8 + $0x30] sm:$0xff]   ;;  %v5905_v15 = vld [vmem:[#allocation8 + $0x38] sm:$0xff]  }
 0x325   : > { %v7320_v39 = vpop.f32.mrb[140].mxu0  ;;  %5622 = vmatprep.subr.bf16.mxu0 %v5904_v46 }
 0x326   : > { %v5118_v53 = vpop.f32.mrb[72].mxu1  ;;  %v7322_v7 = vpop.f32.mrb[141].mxu0  ;;  %v7325_v34 = vadd.f32 %v7112_v59, %v3276_v17  ;;  %5623 = vmatpush3.bf16.msra.mxu0 %v5904_v46 }
 0x327   : > { %v5119_v26 = vpop.f32.mrb[73].mxu1  ;;  %v7327_v60 = vpop.f32.mrb[142].mxu0  ;;  %5624 = vmatprep.subr.bf16.mxu0 %v5905_v15 }
 0x328   : > { %v5120_v43 = vadd.f32 %v5119_v26, %v5118_v53  ;;  %v5121_v23 = vpop.f32.mrb[74].mxu1  ;;  %v7329_v36 = vpop.f32.mrb[143].mxu0 }
 0x329   : > { %v5122_v44 = vpop.f32.mrb[75].mxu1 }
 0x32a   : > { %v3281_v10 = vadd.f32 %v5120_v43, %v7110_v8  ;;  %v5123_v21 = vadd.f32 %v5122_v44, %v5121_v23  ;;  %5625 = vmatpush3.bf16.msra.mxu0 %v5905_v15 }
 0x32b   : > { %4833 = vmatmul.mubr.msk.bf16.gmra.mrb[180].mxu1 %vm6569_vm9, %v6963_v47 }
 0x32c   : > { %v3284_v59 = vadd.f32 %v5123_v21, %v7114_v33  ;;  %3696 = vmatprep.mubr.bf16.mxu1 %v7022_v19  ;;  %v7338_v27 = vadd.f32 %v7126_v37, %v3281_v10 }
 0x32d   : > { %v7340_v17 = vpop.f32.mrb[144].mxu0 }
 0x32e   : > { %v5124_v24 = vpop.f32.mrb[76].mxu1  ;;  %v7342_v53 = vpop.f32.mrb[145].mxu0  ;;  %v7345_v8 = vadd.f32 %v7130_v13, %v3284_v59 }
 0x32f   : > { %v5125_v26 = vpop.f32.mrb[77].mxu1  ;;  %v7347_v47 = vpop.f32.mrb[146].mxu0 }
 0x330   : > { %v5126_v33 = vadd.f32 %v5125_v26, %v5124_v24  ;;  %v5127_v43 = vpop.f32.mrb[78].mxu1  ;;  %v7349_v19 = vpop.f32.mrb[147].mxu0 }
 0x331   : > { %v5128_v37 = vpop.f32.mrb[79].mxu1 }
 0x332   : > { %v3289_v23 = vadd.f32 %v5126_v33, %v7128_v31  ;;  %v5129_v46 = vadd.f32 %v5128_v37, %v5127_v43 }
 0x333   : > { %4834 = vmatmul.mubr.msk.bf16.gmra.mrb[184].mxu1 %vm6569_vm9, %v6990_v61 }
 0x334   : > { %v3292_v13 = vadd.f32 %v5129_v46, %v7132_v63  ;;  %3704 = vmatprep.mubr.bf16.mxu1 %v7142_v57  ;;  %v7358_v44 = vadd.f32 %v7144_v14, %v3289_v23 }
 0x335   : > { %v7360_v10 = vpop.f32.mrb[148].mxu0 }
 0x336   : > { %v5130_v21 = vpop.f32.mrb[80].mxu1  ;;  %v7362_v59 = vpop.f32.mrb[149].mxu0  ;;  %v7365_v15 = vadd.f32 %v7148_v50, %v3292_v13 }
 0x337   : > { %v5131_v31 = vpop.f32.mrb[81].mxu1  ;;  %v7367_v24 = vpop.f32.mrb[150].mxu0 }
 0x338   : > { %v5132_v58 = vadd.f32 %v5131_v31, %v5130_v21  ;;  %v5133_v61 = vpop.f32.mrb[82].mxu1  ;;  %v7369_v26 = vpop.f32.mrb[151].mxu0 }
 0x339   : > { %v5134_v63 = vpop.f32.mrb[83].mxu1 }
 0x33a   : > { %v3297_v57 = vadd.f32 %v5132_v58, %v7146_v40  ;;  %v5135_v14 = vadd.f32 %v5134_v63, %v5133_v61 }
 0x33b   : > { %4835 = vmatmul.mubr.msk.bf16.gmra.mrb[188].mxu1 %vm6555_vm8, %v7024_v48 }
 0x33c   : > { %v3300_v33 = vadd.f32 %v5135_v14, %v7150_v42  ;;  %5606 = vmatprep.mubr.bf16.mxu1 %v7015_v22  ;;  %v7378_v50 = vadd.f32 %v7154_v2, %v3297_v57 }
 0x33d   : > { %v7380_v43 = vpop.f32.mrb[152].mxu0 }
 0x33e   : > { %v5136_v37 = vpop.f32.mrb[84].mxu1  ;;  %v7382_v23 = vpop.f32.mrb[153].mxu0  ;;  %v7385_v46 = vadd.f32 %v7158_v35, %v3300_v33 }
 0x33f   : > { %v5137_v40 = vpop.f32.mrb[85].mxu1  ;;  %v7387_v13 = vpop.f32.mrb[154].mxu0 }
 0x340   : > { %7930 = vst [vmem:[#allocation30_spill] sm:$0xff] %v7387_v13  ;;  %v5138_v41 = vadd.f32 %v5137_v40, %v5136_v37  ;;  %v5139_v48 = vpop.f32.mrb[86].mxu1  ;;  %v7389_v21 = vpop.f32.mrb[155].mxu0 }
 0x341   : > { %v5140_v42 = vpop.f32.mrb[87].mxu1 }
 0x342   : > { %v3305_v22 = vadd.f32 %v5138_v41, %v7156_v11  ;;  %v5141_v2 = vadd.f32 %v5140_v42, %v5139_v48  ;;  %v7935_v41 = vld [vmem:[#allocation32_spill] sm:$0xff] }
 0x343   : > { %5607 = vmatmul.mubr.bf16.vlgmr.msra.gmra.mrb[192].mxu1 %v7139_v38 }
 0x344   : > { %v3308_v31 = vadd.f32 %v5141_v2, %v7160_v9  ;;  %v7395_v58 = vadd.f32 %v7167_v54, %v3305_v22 }
 0x345   : > { %v7397_v35 = vpop.f32.mrb[156].mxu0 }
 0x346   : > { %7931 = vst [vmem:[#allocation31_spill] sm:$0xff] %v7397_v35  ;;  %v5142_v61 = vpop.f32.mrb[88].mxu1  ;;  %v7399_v63 = vpop.f32.mrb[157].mxu0  ;;  %v7402_v57 = vadd.f32 %v7171_v49, %v3308_v31 }
 0x347   : > { %7932 = vst [vmem:[#allocation53_spill] sm:$0xff] %v7399_v63  ;;  %v5143_v14 = vpop.f32.mrb[89].mxu1  ;;  %v7404_v33 = vpop.f32.mrb[158].mxu0  ;;  %v7943_v63 = vld [vmem:[#allocation36_spill] sm:$0xff] }
 0x348   : > { %7933 = vst [vmem:[#allocation54_spill] sm:$0xff] %v7404_v33  ;;  %v5144_v11 = vadd.f32 %v5143_v14, %v5142_v61  ;;  %v5145_v37 = vpop.f32.mrb[90].mxu1  ;;  %v7406_v40 = vpop.f32.mrb[159].mxu0 }
 0x349   : > { %7934 = vst [vmem:[#allocation55_spill] sm:$0xff] %v7406_v40  ;;  %v5146_v38 = vpop.f32.mrb[91].mxu1 }
 0x34a   : > { %v3313_v9 = vadd.f32 %v5144_v11, %v7169_v62  ;;  %v5147_v54 = vadd.f32 %v5146_v38, %v5145_v37  ;;  %v7940_v37 = vld [vmem:[#allocation33_spill] sm:$0xff] }
 0x34c   : > { %v3316_v48 = vadd.f32 %v5147_v54, %v7935_v41  ;;  %v7411_v42 = vadd.f32 %v7179_v16, %v3313_v9  ;;  %v7941_v9 = vld [vmem:[#allocation34_spill] sm:$0xff] }
 0x34d   : > { %v7413_v22 = vpop.f32.mrb[160].mxu0 }
 0x34e   : > { %7936 = vst [vmem:[#allocation32_spill] sm:$0xff] %v7413_v22  ;;  %v5148_v49 = vpop.f32.mrb[92].mxu1  ;;  %v7415_v2 = vpop.f32.mrb[161].mxu0  ;;  %v7418_v31 = vadd.f32 %v7183_v51, %v3316_v48 }
 0x34f   : > { %7937 = vst [vmem:[#allocation56_spill] sm:$0xff] %v7415_v2  ;;  %v5149_v61 = vpop.f32.mrb[93].mxu1  ;;  %v7420_v14 = vpop.f32.mrb[162].mxu0 }
 0x350   : > { %7938 = vst [vmem:[#allocation57_spill] sm:$0xff] %v7420_v14  ;;  %v5150_v33 = vadd.f32 %v5149_v61, %v5148_v49  ;;  %v5151_v35 = vpop.f32.mrb[94].mxu1  ;;  %v7422_v62 = vpop.f32.mrb[163].mxu0  ;;  %v7942_v61 = vld [vmem:[#allocation35_spill] sm:$0xff] }
 0x351   : > { %7939 = vst [vmem:[#allocation58_spill] sm:$0xff] %v7422_v62  ;;  %v5152_v11 = vpop.f32.mrb[95].mxu1 }
 0x352   : > { %v3321_v38 = vadd.f32 %v5150_v33, %v7940_v37  ;;  %v5153_v16 = vadd.f32 %v5152_v11, %v5151_v35 }
 0x354   : > { %v3324_v54 = vadd.f32 %v5153_v16, %v7941_v9  ;;  %v7427_v41 = vadd.f32 %v7191_v4, %v3321_v38  ;;  %v7944_v16 = vld [vmem:[#allocation37_spill] sm:$0xff] }
 0x356   : > { %v5154_v22 = vpop.f32.mrb[96].mxu1  ;;  %v7430_v51 = vadd.f32 %v7195_v3, %v3324_v54 }
 0x357   : > { %v5155_v48 = vpop.f32.mrb[97].mxu1 }
 0x358   : > { %v5156_v2 = vadd.f32 %v5155_v48, %v5154_v22  ;;  %v5157_v14 = vpop.f32.mrb[98].mxu1 }
 0x359   : > { %v5158_v49 = vpop.f32.mrb[99].mxu1 }
 0x35a   : > { %v3329_v40 = vadd.f32 %v5156_v2, %v7942_v61  ;;  %v5159_v62 = vadd.f32 %v5158_v49, %v5157_v14  ;;  %v7945_v2 = vld [vmem:[#allocation38_spill] sm:$0xff]  ;;  %v7948_v49 = vld [vmem:[#allocation39_spill] sm:$0xff] }
 0x35c   : > { %v3332_v13 = vadd.f32 %v5159_v62, %v7943_v63  ;;  %v7435_v35 = vadd.f32 %v7203_v55, %v3329_v40  ;;  %v7946_v62 = vld [vmem:[#allocation40_spill] sm:$0xff] }
 0x35e   : > { %v5160_v33 = vpop.f32.mrb[100].mxu1  ;;  %v7438_v4 = vadd.f32 %v7207_v45, %v3332_v13 }
 0x35f   : > { %v5161_v11 = vpop.f32.mrb[101].mxu1 }
 0x360   : > { %v5162_v37 = vadd.f32 %v5161_v11, %v5160_v33  ;;  %v5163_v3 = vpop.f32.mrb[102].mxu1 }
 0x361   : > { %v5164_v38 = vpop.f32.mrb[103].mxu1 }
 0x362   : > { %v3337_v22 = vadd.f32 %v5162_v37, %v7944_v16  ;;  %v5165_v9 = vadd.f32 %v5164_v38, %v5163_v3  ;;  %v7949_v37 = vld [vmem:[#allocation25_spill] sm:$0xff]  ;;  %v7950_v38 = vld [vmem:[#allocation42_spill] sm:$0xff] }
 0x364   : > { %v3340_v54 = vadd.f32 %v5165_v9, %v7209_v0  ;;  %v7443_v14 = vadd.f32 %v7945_v2, %v3337_v22 }
 0x366   : > { %v5166_v63 = vpop.f32.mrb[104].mxu1  ;;  %v7446_v55 = vadd.f32 %v7946_v62, %v3340_v54  ;;  %v7952_v62 = vld [vmem:[#allocation41_spill] sm:$0xff] }
 0x367   : > { %v5167_v40 = vpop.f32.mrb[105].mxu1 }
 0x368   : > { %7947 = vst [vmem:[#allocation33_spill] sm:$0xff] %v7446_v55  ;;  %v5168_v48 = vadd.f32 %v5167_v40, %v5166_v63  ;;  %v5169_v45 = vpop.f32.mrb[106].mxu1 }
 0x369   : > { %v5170_v13 = vpop.f32.mrb[107].mxu1 }
 0x36a   : > { %v3345_v61 = vadd.f32 %v5168_v48, %v7948_v49  ;;  %v5171_v33 = vadd.f32 %v5170_v13, %v5169_v45  ;;  %v7953_v48 = vld [vmem:[#allocation26_spill] sm:$0xff]  ;;  %v7954_v13 = vld [vmem:[#allocation44_spill] sm:$0xff] }
 0x36c   : > { %v3348_v11 = vadd.f32 %v5171_v33, %v7221_v52  ;;  %v7451_v3 = vadd.f32 %v7949_v37, %v3345_v61 }
 0x36e   : > { %v5172_v0 = vpop.f32.mrb[108].mxu1  ;;  %v7454_v16 = vadd.f32 %v7950_v38, %v3348_v11  ;;  %v7956_v38 = vld [vmem:[#allocation43_spill] sm:$0xff] }
 0x36f   : > { %v5173_v22 = vpop.f32.mrb[109].mxu1 }
 0x370   : > { %7951 = vst [vmem:[#allocation34_spill] sm:$0xff] %v7454_v16  ;;  %v5174_v9 = vadd.f32 %v5173_v22, %v5172_v0  ;;  %v5175_v54 = vpop.f32.mrb[110].mxu1 }
 0x371   : > { %v5176_v2 = vpop.f32.mrb[111].mxu1 }
 0x372   : > { %v3353_v63 = vadd.f32 %v5174_v9, %v7952_v62  ;;  %v5177_v40 = vadd.f32 %v5176_v2, %v5175_v54  ;;  %v7957_v9 = vld [vmem:[#allocation27_spill] sm:$0xff]  ;;  %v7959_v2 = vld [vmem:[#allocation46_spill] sm:$0xff] }
 0x374   : > { %v3356_v55 = vadd.f32 %v5177_v40, %v7233_v12  ;;  %v7459_v45 = vadd.f32 %v7953_v48, %v3353_v63 }
 0x376   : > { %v5178_v52 = vpop.f32.mrb[112].mxu1  ;;  %v7462_v49 = vadd.f32 %v7954_v13, %v3356_v55  ;;  %v7961_v13 = vld [vmem:[#allocation45_spill] sm:$0xff] }
 0x377   : > { %v5179_v61 = vpop.f32.mrb[113].mxu1 }
 0x378   : > { %7955 = vst [vmem:[#allocation35_spill] sm:$0xff] %v7462_v49  ;;  %v5180_v33 = vadd.f32 %v5179_v61, %v5178_v52  ;;  %v5181_v11 = vpop.f32.mrb[114].mxu1 }
 0x379   : > { %v5182_v37 = vpop.f32.mrb[115].mxu1 }
 0x37a   : > { %v3361_v0 = vadd.f32 %v5180_v33, %v7956_v38  ;;  %v5183_v22 = vadd.f32 %v5182_v37, %v5181_v11  ;;  %v7962_v33 = vld [vmem:[#allocation28_spill] sm:$0xff] }
 0x37b   : > { %v7964_v37 = vld [vmem:[#allocation48_spill] sm:$0xff] }
 0x37c   : > { %v3364_v16 = vadd.f32 %v5183_v22, %v7245_v56  ;;  %v7467_v54 = vadd.f32 %v7957_v9, %v3361_v0 }
 0x37e   : > { %7958 = vst [vmem:[#allocation36_spill] sm:$0xff] %v7467_v54  ;;  %v5184_v12 = vpop.f32.mrb[116].mxu1  ;;  %v7470_v62 = vadd.f32 %v7959_v2, %v3364_v16  ;;  %v7966_v2 = vld [vmem:[#allocation47_spill] sm:$0xff] }
 0x37f   : > { %v5185_v63 = vpop.f32.mrb[117].mxu1 }
 0x380   : > { %7960 = vst [vmem:[#allocation37_spill] sm:$0xff] %v7470_v62  ;;  %v5186_v40 = vadd.f32 %v5185_v63, %v5184_v12  ;;  %v5187_v55 = vpop.f32.mrb[118].mxu1  ;;  %v7967_v62 = vld [vmem:[#allocation49_spill] sm:$0xff] }
 0x381   : > { %v5188_v48 = vpop.f32.mrb[119].mxu1 }
 0x382   : > { %v3369_v52 = vadd.f32 %v5186_v40, %v7961_v13  ;;  %v5189_v61 = vadd.f32 %v5188_v48, %v5187_v55  ;;  %v7968_v40 = vld [vmem:[#allocation29_spill] sm:$0xff]  ;;  %v7969_v48 = vld [vmem:[#allocation51_spill] sm:$0xff] }
 0x384   : > { %v3372_v49 = vadd.f32 %v5189_v61, %v7257_v20  ;;  %v7475_v11 = vadd.f32 %v7962_v33, %v3369_v52 }
 0x386   : > { %7963 = vst [vmem:[#allocation38_spill] sm:$0xff] %v7475_v11  ;;  %v5190_v56 = vpop.f32.mrb[120].mxu1  ;;  %v7478_v38 = vadd.f32 %v7964_v37, %v3372_v49  ;;  %v7970_v37 = vld [vmem:[#allocation50_spill] sm:$0xff] }
 0x387   : > { %v5191_v0 = vpop.f32.mrb[121].mxu1 }
 0x388   : > { %7965 = vst [vmem:[#allocation40_spill] sm:$0xff] %v7478_v38  ;;  %v5192_v22 = vadd.f32 %v5191_v0, %v5190_v56  ;;  %v5193_v16 = vpop.f32.mrb[122].mxu1  ;;  %v7971_v38 = vld [vmem:[#allocation52_spill] sm:$0xff] }
 0x389   : > { %v5194_v9 = vpop.f32.mrb[123].mxu1 }
 0x38a   : > { %v3377_v12 = vadd.f32 %v5192_v22, %v7966_v2  ;;  %v5195_v63 = vadd.f32 %v5194_v9, %v5193_v16 }
 0x38c   : > { %v3380_v54 = vadd.f32 %v5195_v63, %v7967_v62  ;;  %v7483_v55 = vadd.f32 %v7968_v40, %v3377_v12 }
 0x38e   : > { %v5196_v20 = vpop.f32.mrb[124].mxu1  ;;  %v7486_v13 = vadd.f32 %v7969_v48, %v3380_v54 }
 0x38f   : > { %v5197_v52 = vpop.f32.mrb[125].mxu1 }
 0x390   : > { %v5198_v61 = vadd.f32 %v5197_v52, %v5196_v20  ;;  %v5199_v49 = vpop.f32.mrb[126].mxu1  ;;  %v7500_v20 = vld [vmem:[%s7816_s5] ss:$0 sm:$0xff] }
 0x391   : > { %v5200_v33 = vpop.f32.mrb[127].mxu1 }
 0x392   : > { %v3385_v56 = vadd.f32 %v5198_v61, %v7970_v37  ;;  %v5201_v0 = vadd.f32 %v5200_v33, %v5199_v49 }
 0x394   : > { %v3388_v11 = vadd.f32 %v5201_v0, %v7971_v38  ;;  %v7491_v22 = vadd.f32 %v7287_v29, %v3385_v56 }
 0x396   : > { %v5330_v62 = vpop.f32.mrb[128].mxu1  ;;  %v7494_v16 = vadd.f32 %v7289_v1, %v3388_v11  ;;  %v7507_v1 = vld [vmem:[%s7817_s6] ss:$0 sm:$0xff] }
 0x397   : > { %v5331_v9 = vpop.f32.mrb[129].mxu1 }
 0x398   : > { %v5332_v2 = vadd.f32 %v5331_v9, %v5330_v62  ;;  %v5333_v54 = vpop.f32.mrb[130].mxu1 }
 0x399   : > { %v5334_v12 = vpop.f32.mrb[131].mxu1 }
 0x39a   : > { %v3587_v63 = vadd.f32 %v5332_v2, %v7298_v28  ;;  %v5335_v40 = vadd.f32 %v5334_v12, %v5333_v54 }
 0x39c   : > { %v3748_v38 = vadd.f32 %v7302_v30, %v3587_v63  ;;  %v3590_v29 = vadd.f32 %v5335_v40, %v7305_v18 }
 0x39e   : > { %v3881_v11 = vmul.f32 %v7500_v20, %v3748_v38  ;;  %v3751_v48 = vadd.f32 %v7309_v5, %v3590_v29  ;;  %v5336_v28 = vpop.f32.mrb[132].mxu1 }
 0x39f   : > { %v5337_v52 = vpop.f32.mrb[133].mxu1 }
 0x3a0   : > { %v3882_v61 = vmul.f32 %v7500_v20, %v3751_v48  ;;  %v5338_v49 = vadd.f32 %v5337_v52, %v5336_v28  ;;  %v5339_v33 = vpop.f32.mrb[134].mxu1  ;;  %v3920_v37 = vadd.f32 %v7507_v1, %v3881_v11 }
 0x3a1   : > { %v5340_v30 = vpop.f32.mrb[135].mxu1 }
 0x3a2   : > { %v3595_v18 = vadd.f32 %v5338_v49, %v7318_v6  ;;  %v5341_v56 = vadd.f32 %v5340_v30, %v5339_v33  ;;  %v3921_v0 = vadd.f32 %v7507_v1, %v3882_v61  ;;  %v3952_v2 = vmax.f32 %v3920_v37, 0.0 }
 0x3a4   : > { %v3756_v62 = vadd.f32 %v7300_v25, %v3595_v18  ;;  %v3598_v9 = vadd.f32 %v5341_v56, %v7325_v34  ;;  %v3953_v5 = vmax.f32 %v3921_v0, 0.0 }
 0x3a6   : > { %v3883_v54 = vmul.f32 %v7500_v20, %v3756_v62  ;;  %v3759_v12 = vadd.f32 %v7307_v32, %v3598_v9  ;;  %v5342_v63 = vpop.f32.mrb[136].mxu1  ;;  %v3984_v40 = vpack.c.bf16 %v3953_v5, %v3952_v2 }
 0x3a7   : > { %v5343_v38 = vpop.f32.mrb[137].mxu1 }
 0x3a8   : > { %v3922_v29 = vadd.f32 %v7507_v1, %v3883_v54  ;;  %v3884_v6 = vmul.f32 %v7500_v20, %v3759_v12  ;;  %v5344_v11 = vadd.f32 %v5343_v38, %v5342_v63  ;;  %v5345_v48 = vpop.f32.mrb[138].mxu1  ;;  %5626 = vmatprep.mubr.bf16.mxu0 %v3984_v40 }
 0x3a9   : > { %v5346_v28 = vpop.f32.mrb[139].mxu1 }
 0x3aa   : > { %v3923_v25 = vadd.f32 %v7507_v1, %v3884_v6  ;;  %v3603_v34 = vadd.f32 %v5344_v11, %v7338_v27  ;;  %v5347_v52 = vadd.f32 %v5346_v28, %v5345_v48  ;;  %v3954_v61 = vmax.f32 %v3922_v29, 0.0 }
 0x3ac   : > { %v3955_v49 = vmax.f32 %v3923_v25, 0.0  ;;  %v3764_v32 = vadd.f32 %v7322_v7, %v3603_v34  ;;  %v3606_v33 = vadd.f32 %v5347_v52, %v7345_v8 }
 0x3ae   : > { %v3985_v37 = vpack.c.bf16 %v3955_v49, %v3954_v61  ;;  %v3885_v30 = vmul.f32 %v7500_v20, %v3764_v32  ;;  %v3767_v18 = vadd.f32 %v7329_v36, %v3606_v33  ;;  %v5348_v56 = vpop.f32.mrb[140].mxu1 }
 0x3af   : > { %v5349_v0 = vpop.f32.mrb[141].mxu1 }
 0x3b0   : > { %v3886_v62 = vmul.f32 %v7500_v20, %v3767_v18  ;;  %v5350_v9 = vadd.f32 %v5349_v0, %v5348_v56  ;;  %v5351_v2 = vpop.f32.mrb[142].mxu1  ;;  %5627 = vmatmul.mubr.bf16.vlgmr.msra.gmra.mrb[164].mxu0 %v3985_v37  ;;  %v3924_v27 = vadd.f32 %v7507_v1, %v3885_v30 }
 0x3b1   : > { %v5352_v5 = vpop.f32.mrb[143].mxu1 }
 0x3b2   : > { %v3611_v54 = vadd.f32 %v5350_v9, %v7358_v44  ;;  %v5353_v7 = vadd.f32 %v5352_v5, %v5351_v2  ;;  %v3925_v8 = vadd.f32 %v7507_v1, %v3886_v62  ;;  %v3956_v36 = vmax.f32 %v3924_v27, 0.0 }
 0x3b4   : > { %v3772_v12 = vadd.f32 %v7320_v39, %v3611_v54  ;;  %v3614_v63 = vadd.f32 %v5353_v7, %v7365_v15  ;;  %v3957_v40 = vmax.f32 %v3925_v8, 0.0 }
 0x3b6   : > { %v3887_v38 = vmul.f32 %v7500_v20, %v3772_v12  ;;  %v3775_v29 = vadd.f32 %v7327_v60, %v3614_v63  ;;  %v5354_v6 = vpop.f32.mrb[144].mxu1  ;;  %v3986_v11 = vpack.c.bf16 %v3957_v40, %v3956_v36 }
 0x3b7   : > { %v5355_v48 = vpop.f32.mrb[145].mxu1 }
 0x3b8   : > { %v3888_v28 = vmul.f32 %v7500_v20, %v3775_v29  ;;  %v5356_v25 = vadd.f32 %v5355_v48, %v5354_v6  ;;  %v5357_v44 = vpop.f32.mrb[146].mxu1  ;;  %5630 = vmatprep.mubr.bf16.mxu0 %v3986_v11  ;;  %v3926_v34 = vadd.f32 %v7507_v1, %v3887_v38 }
 0x3b9   : > { %v5358_v52 = vpop.f32.mrb[147].mxu1 }
 0x3ba   : > { %v3619_v39 = vadd.f32 %v5356_v25, %v7378_v50  ;;  %v5359_v15 = vadd.f32 %v5358_v52, %v5357_v44  ;;  %v3927_v61 = vadd.f32 %v7507_v1, %v3888_v28  ;;  %v3958_v32 = vmax.f32 %v3926_v34, 0.0 }
 0x3bc   : > { %v3780_v49 = vadd.f32 %v7342_v53, %v3619_v39  ;;  %v3622_v60 = vadd.f32 %v5359_v15, %v7385_v46  ;;  %v3959_v33 = vmax.f32 %v3927_v61, 0.0 }
 0x3be   : > { %v3889_v37 = vmul.f32 %v7500_v20, %v3780_v49  ;;  %v3783_v30 = vadd.f32 %v7349_v19, %v3622_v60  ;;  %v5360_v18 = vpop.f32.mrb[148].mxu1  ;;  %v3987_v56 = vpack.c.bf16 %v3959_v33, %v3958_v32 }
 0x3bf   : > { %v5361_v0 = vpop.f32.mrb[149].mxu1 }
 0x3c0   : > { %v3890_v62 = vmul.f32 %v7500_v20, %v3783_v30  ;;  %v5362_v9 = vadd.f32 %v5361_v0, %v5360_v18  ;;  %v5363_v50 = vpop.f32.mrb[150].mxu1  ;;  %5631 = vmatmul.mubr.bf16.gmra.mrb[168].mxu0 %v3987_v56  ;;  %v3928_v2 = vadd.f32 %v7507_v1, %v3889_v37 }
 0x3c1   : > { %v5364_v27 = vpop.f32.mrb[151].mxu1 }
 0x3c2   : > { %v3627_v53 = vadd.f32 %v5362_v9, %v7395_v58  ;;  %v5365_v46 = vadd.f32 %v5364_v27, %v5363_v50  ;;  %v3929_v5 = vadd.f32 %v7507_v1, %v3890_v62  ;;  %v3960_v7 = vmax.f32 %v3928_v2, 0.0 }
 0x3c4   : > { %v3788_v54 = vadd.f32 %v7340_v17, %v3627_v53  ;;  %v3630_v19 = vadd.f32 %v5365_v46, %v7402_v57  ;;  %v3961_v8 = vmax.f32 %v3929_v5, 0.0 }
 0x3c6   : > { %v3891_v12 = vmul.f32 %v7500_v20, %v3788_v54  ;;  %v3791_v63 = vadd.f32 %v7347_v47, %v3630_v19  ;;  %v5366_v36 = vpop.f32.mrb[152].mxu1  ;;  %v3988_v40 = vpack.c.bf16 %v3961_v8, %v3960_v7 }
 0x3c7   : > { %v5367_v38 = vpop.f32.mrb[153].mxu1 }
 0x3c8   : > { %v3892_v29 = vmul.f32 %v7500_v20, %v3791_v63  ;;  %v5368_v6 = vadd.f32 %v5367_v38, %v5366_v36  ;;  %v5369_v58 = vpop.f32.mrb[154].mxu1  ;;  %5634 = vmatprep.mubr.bf16.mxu0 %v3988_v40  ;;  %v3930_v11 = vadd.f32 %v7507_v1, %v3891_v12 }
 0x3c9   : > { %v5370_v48 = vpop.f32.mrb[155].mxu1 }
 0x3ca   : > { %v3635_v17 = vadd.f32 %v5368_v6, %v7411_v42  ;;  %v5371_v57 = vadd.f32 %v5370_v48, %v5369_v58  ;;  %v3931_v28 = vadd.f32 %v7507_v1, %v3892_v29  ;;  %v3962_v44 = vmax.f32 %v3930_v11, 0.0 }
 0x3cc   : > { %v3796_v25 = vadd.f32 %v7362_v59, %v3635_v17  ;;  %v3638_v47 = vadd.f32 %v5371_v57, %v7418_v31  ;;  %v3963_v34 = vmax.f32 %v3931_v28, 0.0  ;;  %v7972_v28 = vld [vmem:[#allocation33_spill] sm:$0xff] }
 0x3ce   : > { %v3893_v52 = vmul.f32 %v7500_v20, %v3796_v25  ;;  %v3799_v39 = vadd.f32 %v7369_v26, %v3638_v47  ;;  %v5372_v15 = vpop.f32.mrb[156].mxu1  ;;  %v3989_v61 = vpack.c.bf16 %v3963_v34, %v3962_v44  ;;  %v7973_v34 = vld [vmem:[#allocation30_spill] sm:$0xff] }
 0x3cf   : > { %v5373_v49 = vpop.f32.mrb[157].mxu1 }
 0x3d0   : > { %v3894_v60 = vmul.f32 %v7500_v20, %v3799_v39  ;;  %v5374_v32 = vadd.f32 %v5373_v49, %v5372_v15  ;;  %v5375_v42 = vpop.f32.mrb[158].mxu1  ;;  %5635 = vmatmul.mubr.bf16.gmra.mrb[172].mxu0 %v3989_v61  ;;  %v3932_v33 = vadd.f32 %v7507_v1, %v3893_v52 }
 0x3d1   : > { %v5376_v37 = vpop.f32.mrb[159].mxu1 }
 0x3d2   : > { %v3643_v59 = vadd.f32 %v5374_v32, %v7427_v41  ;;  %v5377_v31 = vadd.f32 %v5376_v37, %v5375_v42  ;;  %v3933_v30 = vadd.f32 %v7507_v1, %v3894_v60  ;;  %v3964_v56 = vmax.f32 %v3932_v33, 0.0 }
 0x3d4   : > { %v3804_v18 = vadd.f32 %v7360_v10, %v3643_v59  ;;  %v3646_v26 = vadd.f32 %v5377_v31, %v7430_v51  ;;  %v3965_v0 = vmax.f32 %v3933_v30, 0.0  ;;  %v7974_v59 = vld [vmem:[#allocation53_spill] sm:$0xff]  ;;  %v7975_v30 = vld [vmem:[#allocation34_spill] sm:$0xff] }
 0x3d6   : > { %v3895_v62 = vmul.f32 %v7500_v20, %v3804_v18  ;;  %v3807_v9 = vadd.f32 %v7367_v24, %v3646_v26  ;;  %v5378_v50 = vpop.f32.mrb[160].mxu1  ;;  %v3990_v2 = vpack.c.bf16 %v3965_v0, %v3964_v56 }
 0x3d7   : > { %v5379_v27 = vpop.f32.mrb[161].mxu1 }
 0x3d8   : > { %v3896_v53 = vmul.f32 %v7500_v20, %v3807_v9  ;;  %v5380_v46 = vadd.f32 %v5379_v27, %v5378_v50  ;;  %v5381_v41 = vpop.f32.mrb[162].mxu1  ;;  %5638 = vmatprep.mubr.bf16.mxu0 %v3990_v2  ;;  %v3934_v5 = vadd.f32 %v7507_v1, %v3895_v62  ;;  %v7976_v62 = vld [vmem:[#allocation55_spill] sm:$0xff] }
 0x3d9   : > { %v5382_v54 = vpop.f32.mrb[163].mxu1 }
 0x3da   : > { %v3651_v10 = vadd.f32 %v5380_v46, %v7435_v35  ;;  %v5383_v51 = vadd.f32 %v5382_v54, %v5381_v41  ;;  %v3935_v19 = vadd.f32 %v7507_v1, %v3896_v53  ;;  %v3966_v8 = vmax.f32 %v3934_v5, 0.0 }
 0x3dc   : > { %v3812_v7 = vadd.f32 %v7382_v23, %v3651_v10  ;;  %v3654_v24 = vadd.f32 %v5383_v51, %v7438_v4  ;;  %v3967_v12 = vmax.f32 %v3935_v19, 0.0  ;;  %v7977_v19 = vld [vmem:[#allocation31_spill] sm:$0xff] }
 0x3de   : > { %v3897_v63 = vmul.f32 %v7500_v20, %v3812_v7  ;;  %v3815_v36 = vadd.f32 %v7389_v21, %v3654_v24  ;;  %v5384_v40 = vpop.f32.mrb[164].mxu1  ;;  %v3991_v38 = vpack.c.bf16 %v3967_v12, %v3966_v8  ;;  %v7978_v24 = vld [vmem:[#allocation35_spill] sm:$0xff] }
 0x3df   : > { %v5385_v29 = vpop.f32.mrb[165].mxu1 }
 0x3e0   : > { %v3898_v6 = vmul.f32 %v7500_v20, %v3815_v36  ;;  %v5386_v58 = vadd.f32 %v5385_v29, %v5384_v40  ;;  %v5387_v35 = vpop.f32.mrb[166].mxu1  ;;  %5639 = vmatmul.mubr.bf16.gmra.mrb[176].mxu0 %v3991_v38  ;;  %v3936_v11 = vadd.f32 %v7507_v1, %v3897_v63  ;;  %v7979_v40 = vld [vmem:[#allocation54_spill] sm:$0xff] }
 0x3e1   : > { %v5388_v48 = vpop.f32.mrb[167].mxu1 }
 0x3e2   : > { %v3659_v23 = vadd.f32 %v5386_v58, %v7443_v14  ;;  %v5389_v4 = vadd.f32 %v5388_v48, %v5387_v35  ;;  %v3937_v17 = vadd.f32 %v7507_v1, %v3898_v6  ;;  %v3968_v25 = vmax.f32 %v3936_v11, 0.0 }
 0x3e4   : > { %v3820_v57 = vadd.f32 %v7380_v43, %v3659_v23  ;;  %v3662_v21 = vadd.f32 %v5389_v4, %v7972_v28  ;;  %v3969_v47 = vmax.f32 %v3937_v17, 0.0  ;;  %v7980_v4 = vld [vmem:[#allocation36_spill] sm:$0xff] }
 0x3e6   : > { %v3899_v44 = vmul.f32 %v7500_v20, %v3820_v57  ;;  %v3823_v52 = vadd.f32 %v7973_v34, %v3662_v21  ;;  %v5390_v39 = vpop.f32.mrb[168].mxu1  ;;  %v3992_v15 = vpack.c.bf16 %v3969_v47, %v3968_v25  ;;  %v7981_v21 = vld [vmem:[#allocation56_spill] sm:$0xff]  ;;  %v7982_v47 = vld [vmem:[#allocation37_spill] sm:$0xff] }
 0x3e7   : > { %v5391_v61 = vpop.f32.mrb[169].mxu1 }
 0x3e8   : > { %v3900_v49 = vmul.f32 %v7500_v20, %v3823_v52  ;;  %v5392_v60 = vadd.f32 %v5391_v61, %v5390_v39  ;;  %v5393_v14 = vpop.f32.mrb[170].mxu1  ;;  %5642 = vmatprep.mubr.bf16.mxu0 %v3992_v15  ;;  %v3938_v32 = vadd.f32 %v7507_v1, %v3899_v44  ;;  %v7983_v15 = vld [vmem:[#allocation58_spill] sm:$0xff] }
 0x3e9   : > { %v5394_v42 = vpop.f32.mrb[171].mxu1 }
 0x3ea   : > { %v3667_v43 = vadd.f32 %v5392_v60, %v7451_v3  ;;  %v5395_v33 = vadd.f32 %v5394_v42, %v5393_v14  ;;  %v3939_v37 = vadd.f32 %v7507_v1, %v3900_v49  ;;  %v3970_v26 = vmax.f32 %v3938_v32, 0.0 }
 0x3ec   : > { %v3828_v31 = vadd.f32 %v7974_v59, %v3667_v43  ;;  %v3670_v18 = vadd.f32 %v5395_v33, %v7975_v30  ;;  %v3971_v56 = vmax.f32 %v3939_v37, 0.0  ;;  %v7984_v59 = vld [vmem:[#allocation38_spill] sm:$0xff] }
 0x3ee   : > { %v3901_v0 = vmul.f32 %v7500_v20, %v3828_v31  ;;  %v3831_v9 = vadd.f32 %v7976_v62, %v3670_v18  ;;  %v5396_v50 = vpop.f32.mrb[172].mxu1  ;;  %v3993_v2 = vpack.c.bf16 %v3971_v56, %v3970_v26  ;;  %v7985_v26 = vld [vmem:[#allocation32_spill] sm:$0xff] }
 0x3ef   : > { %v5397_v27 = vpop.f32.mrb[173].mxu1 }
 0x3f0   : > { %v3902_v53 = vmul.f32 %v7500_v20, %v3831_v9  ;;  %v5398_v46 = vadd.f32 %v5397_v27, %v5396_v50  ;;  %v5399_v3 = vpop.f32.mrb[174].mxu1  ;;  %5643 = vmatmul.mubr.bf16.gmra.mrb[180].mxu0 %v3993_v2  ;;  %v3940_v41 = vadd.f32 %v7507_v1, %v3901_v0  ;;  %v7986_v0 = vld [vmem:[#allocation40_spill] sm:$0xff]  ;;  %v7987_v27 = vld [vmem:[#allocation57_spill] sm:$0xff] }
 0x3f1   : > { %v5400_v5 = vpop.f32.mrb[175].mxu1 }
 0x3f2   : > { %v3675_v54 = vadd.f32 %v5398_v46, %v7459_v45  ;;  %v5401_v10 = vadd.f32 %v5400_v5, %v5399_v3  ;;  %v3941_v51 = vadd.f32 %v7507_v1, %v3902_v53  ;;  %v3972_v12 = vmax.f32 %v3940_v41, 0.0 }
 0x3f4   : > { %v3836_v7 = vadd.f32 %v7977_v19, %v3675_v54  ;;  %v3678_v8 = vadd.f32 %v5401_v10, %v7978_v24  ;;  %v3973_v63 = vmax.f32 %v3941_v51, 0.0 }
 0x3f6   : > { %v3903_v36 = vmul.f32 %v7500_v20, %v3836_v7  ;;  %v3839_v38 = vadd.f32 %v7979_v40, %v3678_v8  ;;  %v5402_v29 = vpop.f32.mrb[176].mxu1  ;;  %v3994_v6 = vpack.c.bf16 %v3973_v63, %v3972_v12 }
 0x3f7   : > { %v5403_v58 = vpop.f32.mrb[177].mxu1 }
 0x3f8   : > { %v3904_v35 = vmul.f32 %v7500_v20, %v3839_v38  ;;  %v5404_v11 = vadd.f32 %v5403_v58, %v5402_v29  ;;  %v5405_v45 = vpop.f32.mrb[178].mxu1  ;;  %5646 = vmatprep.mubr.bf16.mxu0 %v3994_v6  ;;  %v3942_v48 = vadd.f32 %v7507_v1, %v3903_v36 }
 0x3f9   : > { %v5406_v23 = vpop.f32.mrb[179].mxu1 }
 0x3fa   : > { %v3683_v17 = vadd.f32 %v5404_v11, %v7980_v4  ;;  %v5407_v57 = vadd.f32 %v5406_v23, %v5405_v45  ;;  %v3943_v28 = vadd.f32 %v7507_v1, %v3904_v35  ;;  %v3974_v34 = vmax.f32 %v3942_v48, 0.0 }
 0x3fc   : > { %v3844_v25 = vadd.f32 %v7981_v21, %v3683_v17  ;;  %v3686_v44 = vadd.f32 %v5407_v57, %v7982_v47  ;;  %v3975_v52 = vmax.f32 %v3943_v28, 0.0 }
 0x3fe   : > { %v3905_v39 = vmul.f32 %v7500_v20, %v3844_v25  ;;  %v3847_v61 = vadd.f32 %v7983_v15, %v3686_v44  ;;  %v5408_v49 = vpop.f32.mrb[180].mxu1  ;;  %v3995_v60 = vpack.c.bf16 %v3975_v52, %v3974_v34 }
 0x3ff   : > { %v5409_v14 = vpop.f32.mrb[181].mxu1 }
 0x400   : > { %v3906_v32 = vmul.f32 %v7500_v20, %v3847_v61  ;;  %v5410_v42 = vadd.f32 %v5409_v14, %v5408_v49  ;;  %v5411_v43 = vpop.f32.mrb[182].mxu1  ;;  %5647 = vmatmul.mubr.bf16.gmra.mrb[184].mxu0 %v3995_v60  ;;  %v3944_v33 = vadd.f32 %v7507_v1, %v3905_v39 }
 0x401   : > { %v5412_v37 = vpop.f32.mrb[183].mxu1 }
 0x402   : > { %v3691_v31 = vadd.f32 %v5410_v42, %v7984_v59  ;;  %v5413_v30 = vadd.f32 %v5412_v37, %v5411_v43  ;;  %v3945_v18 = vadd.f32 %v7507_v1, %v3906_v32  ;;  %v3976_v9 = vmax.f32 %v3944_v33, 0.0  ;;  %v7633_v42 = vld [vmem:[%s7988_s28] ss:$0 sm:$0xff]  ;;  %v4919_v43 = vld [vmem:[%s6492_s29 + $0x8] sm:$0xff]  }
 0x403   : > { %v4861_v59 = vunpack.c.l.bf16 %v4919_v43 }
 0x404   : > { %v3852_v56 = vadd.f32 %v7985_v26, %v3691_v31  ;;  %v3694_v62 = vadd.f32 %v5413_v30, %v7986_v0  ;;  %v3977_v50 = vmax.f32 %v3945_v18, 0.0 }
 0x406   : > { %v3907_v2 = vmul.f32 %v7500_v20, %v3852_v56  ;;  %v3855_v53 = vadd.f32 %v7987_v27, %v3694_v62  ;;  %v5414_v46 = vpop.f32.mrb[184].mxu1  ;;  %v3996_v3 = vpack.c.bf16 %v3977_v50, %v3976_v9  ;;  %v4862_v62 = vunpack.c.h.bf16 %v4919_v43 }
 0x407   : > { %v5415_v41 = vpop.f32.mrb[185].mxu1 }
 0x408   : > { %v3908_v5 = vmul.f32 %v7500_v20, %v3855_v53  ;;  %v5416_v54 = vadd.f32 %v5415_v41, %v5414_v46  ;;  %v5417_v10 = vpop.f32.mrb[186].mxu1  ;;  %5650 = vmatprep.mubr.bf16.mxu0 %v3996_v3  ;;  %v3946_v51 = vadd.f32 %v7507_v1, %v3907_v2 }
 0x409   : > { %v5418_v19 = vpop.f32.mrb[187].mxu1 }
 0x40a   : > { %v5419_v7 = vadd.f32 %v5418_v19, %v5417_v10  ;;  %v3947_v24 = vadd.f32 %v7507_v1, %v3908_v5  ;;  %v3699_v8 = vadd.f32 %v5416_v54, %v7483_v55  ;;  %v3978_v12 = vmax.f32 %v3946_v51, 0.0 }
 0x40c   : > { %v3979_v63 = vmax.f32 %v3947_v24, 0.0  ;;  %v3702_v36 = vadd.f32 %v5419_v7, %v7486_v13  ;;  %v4921_v24 = vld [vmem:[%s6492_s29 + $0x18] sm:$0xff]  }
 0x40e   : > { %v5420_v40 = vpop.f32.mrb[188].mxu1  ;;  %v3997_v38 = vpack.c.bf16 %v3979_v63, %v3978_v12 }
 0x40f   : > { %v5421_v29 = vpop.f32.mrb[189].mxu1 }
 0x410   : > { %v5422_v6 = vadd.f32 %v5421_v29, %v5420_v40  ;;  %v5423_v58 = vpop.f32.mrb[190].mxu1  ;;  %5651 = vmatmul.mubr.bf16.gmra.mrb[188].mxu0 %v3997_v38 }
 0x411   : > { %v5424_v35 = vpop.f32.mrb[191].mxu1 }
 0x412   : > { %v5425_v11 = vadd.f32 %v5424_v35, %v5423_v58  ;;  %v3707_v45 = vadd.f32 %v5422_v6, %v7491_v22 }
 0x414   : > { %v3710_v48 = vadd.f32 %v5425_v11, %v7494_v16  ;;  %v4870_v11 = vunpack.c.h.bf16 %v4921_v24 }
 0x416   : > { %v5608_v23 = vpop.f32.mrb[192].mxu1 }
 0x417   : > { %v3868_v4 = vadd.f32 %v5608_v23, %v3707_v45  ;;  %v3859_v17 = vpop.f32.mrb[193].mxu1 }
 0x418   : > { %v3860_v55 = vadd.f32 %v3859_v17, %v3699_v8  ;;  %v5609_v57 = vpop.f32.mrb[194].mxu1  ;;  %v4920_v8 = vld [vmem:[%s6492_s29 + $0x10] sm:$0xff]  }
 0x419   : > { %v3911_v28 = vmul.f32 %v7500_v20, %v3868_v4  ;;  %v3871_v13 = vadd.f32 %v5609_v57, %v3710_v48  ;;  %v3862_v21 = vpop.f32.mrb[195].mxu1  ;;  %v4865_v29 = vunpack.c.l.bf16 %v4920_v8  ;;  %v4866_v4 = vunpack.c.h.bf16 %v4920_v8 }
 0x41a   : > { %v3909_v25 = vmul.f32 %v7500_v20, %v3860_v55  ;;  %v3863_v47 = vadd.f32 %v3862_v21, %v3702_v36  ;;  %v4869_v36 = vunpack.c.l.bf16 %v4921_v24 }
 0x41b   : > { %v3950_v44 = vadd.f32 %v7507_v1, %v3911_v28  ;;  %v3912_v22 = vmul.f32 %v7500_v20, %v3871_v13 }
 0x41c   : > { %v3948_v16 = vadd.f32 %v7507_v1, %v3909_v25  ;;  %v3910_v34 = vmul.f32 %v7500_v20, %v3863_v47  ;;  %v4856_v20 = vld [vmem:[%s6492_s29] sm:$0xff]  }
 0x41d   : > { %v3951_v52 = vadd.f32 %v7507_v1, %v3912_v22  ;;  %v3982_v15 = vmax.f32 %v3950_v44, 0.0  ;;  %v4857_v18 = vunpack.c.l.bf16 %v4856_v20  ;;  %v4858_v27 = vunpack.c.h.bf16 %v4856_v20 }
 0x41e   : > { %v3949_v39 = vadd.f32 %v7507_v1, %v3910_v34  ;;  %v3980_v49 = vmax.f32 %v3948_v16, 0.0  ;;  %v7640_v1 = vld [vmem:[%s7989_s30] ss:$0 sm:$0xff]  ;;  %v4923_v16 = vld [vmem:[%s6492_s29 + $0x28] sm:$0xff]  }
 0x41f   : > { %v3983_v61 = vmax.f32 %v3951_v52, 0.0  ;;  %v4922_v34 = vld [vmem:[%s6492_s29 + $0x20] sm:$0xff]   ;;  %v4878_v20 = vunpack.c.h.bf16 %v4923_v16 }
 0x420   : > { %v3981_v60 = vmax.f32 %v3949_v39, 0.0 }
 0x421   : > { %v3999_v14 = vpack.c.bf16 %v3983_v61, %v3982_v15  ;;  %v4877_v15 = vunpack.c.l.bf16 %v4923_v16 }
 0x422   : > { %v3998_v32 = vpack.c.bf16 %v3981_v60, %v3980_v49  ;;  %v4873_v60 = vunpack.c.l.bf16 %v4922_v34 }
 0x424   : > { %5654 = vmatprep.mubr.bf16.mxu0 %v3998_v32 }
 0x425   : > { %5655 = vmatmul.mubr.bf16.gmra.mrb[192].mxu0 %v3999_v14 }
 0x483   : > { %v5628_v33 = vpop.f32.mrb[164].mxu0 }
 0x484   : > { %v4234_v37 = vmul.f32 %v5628_v33, %v7633_v42  ;;  %v4098_v31 = vpop.f32.mrb[165].mxu0 }
 0x485   : > { %v4232_v30 = vmul.f32 %v7633_v42, %v4098_v31  ;;  %v5629_v26 = vpop.f32.mrb[166].mxu0  ;;  %v4874_v31 = vunpack.c.h.bf16 %v4922_v34 }
 0x486   : > { %v4273_v56 = vadd.f32 %v7640_v1, %v4234_v37  ;;  %v4235_v0 = vmul.f32 %v5629_v26, %v7633_v42  ;;  %v4101_v9 = vpop.f32.mrb[167].mxu0 }
 0x487   : > { %v4271_v50 = vadd.f32 %v7640_v1, %v4232_v30  ;;  %v4233_v2 = vmul.f32 %v7633_v42, %v4101_v9 }
 0x488   : > { %v4369_v53 = vadd.f32 %v4861_v59, %v4273_v56  ;;  %v4274_v46 = vadd.f32 %v7640_v1, %v4235_v0 }
 0x489   : > { %v4367_v3 = vadd.f32 %v4857_v18, %v4271_v50  ;;  %v4272_v41 = vadd.f32 %v7640_v1, %v4233_v2 }
 0x48a   : > { %v4401_v5 = vmax.f32 %v4369_v53, 0.0  ;;  %v4370_v54 = vadd.f32 %v4862_v62, %v4274_v46  ;;  %v4925_v53 = vld [vmem:[%s6492_s29 + $0x38] sm:$0xff]   ;;  %v4924_v46 = vld [vmem:[%s6492_s29 + $0x30] sm:$0xff]  }
 0x48b   : > { %v4399_v10 = vmax.f32 %v4367_v3, 0.0  ;;  %v4368_v51 = vadd.f32 %v4858_v27, %v4272_v41  ;;  %v4886_v8 = vunpack.c.h.bf16 %v4925_v53 }
 0x48c   : > { %4433 = vst [vmem:[%s7651_s27 + $0x10] sm:$0xff] %v4401_v5  ;;  %v4402_v19 = vmax.f32 %v4370_v54, 0.0  ;;  %v4885_v5 = vunpack.c.l.bf16 %v4925_v53 }
 0x48d   : > { %4431 = vst [vmem:[%s7651_s27] sm:$0xff] %v4399_v10  ;;  %v4400_v7 = vmax.f32 %v4368_v51, 0.0  ;;  %v4881_v51 = vunpack.c.l.bf16 %v4924_v46 }
 0x48e   : > { %4434 = vst [vmem:[%s7651_s27 + $0x18] sm:$0xff] %v4402_v19 }
 0x48f   : > { %4432 = vst [vmem:[%s7651_s27 + $0x8] sm:$0xff] %v4400_v7 }
 0x493   : > { %v5632_v12 = vpop.f32.mrb[168].mxu0 }
 0x494   : > { %v4238_v63 = vmul.f32 %v5632_v12, %v7633_v42  ;;  %v4114_v40 = vpop.f32.mrb[169].mxu0 }
 0x495   : > { %v4236_v38 = vmul.f32 %v7633_v42, %v4114_v40  ;;  %v5633_v6 = vpop.f32.mrb[170].mxu0  ;;  %v4882_v40 = vunpack.c.h.bf16 %v4924_v46 }
 0x496   : > { %v4277_v58 = vadd.f32 %v7640_v1, %v4238_v63  ;;  %v4239_v35 = vmul.f32 %v5633_v6, %v7633_v42  ;;  %v4117_v45 = vpop.f32.mrb[171].mxu0 }
 0x497   : > { %v4275_v48 = vadd.f32 %v7640_v1, %v4236_v38  ;;  %v4237_v23 = vmul.f32 %v7633_v42, %v4117_v45 }
 0x498   : > { %v4373_v17 = vadd.f32 %v4869_v36, %v4277_v58  ;;  %v4278_v55 = vadd.f32 %v7640_v1, %v4239_v35 }
 0x499   : > { %v4371_v57 = vadd.f32 %v4865_v29, %v4275_v48  ;;  %v4276_v28 = vadd.f32 %v7640_v1, %v4237_v23 }
 0x49a   : > { %v4405_v13 = vmax.f32 %v4373_v17, 0.0  ;;  %v4374_v21 = vadd.f32 %v4870_v11, %v4278_v55  ;;  %v4927_v17 = vld [vmem:[%s6492_s29 + $0x48] sm:$0xff]   ;;  %v4926_v55 = vld [vmem:[%s6492_s29 + $0x40] sm:$0xff]  }
 0x49b   : > { %v4403_v25 = vmax.f32 %v4371_v57, 0.0  ;;  %v4372_v47 = vadd.f32 %v4866_v4, %v4276_v28  ;;  %v4894_v34 = vunpack.c.h.bf16 %v4927_v17 }
 0x49c   : > { %4437 = vst [vmem:[%s7651_s27 + $0x30] sm:$0xff] %v4405_v13  ;;  %v4406_v44 = vmax.f32 %v4374_v21, 0.0  ;;  %v4893_v13 = vunpack.c.l.bf16 %v4927_v17 }
 0x49d   : > { %4435 = vst [vmem:[%s7651_s27 + $0x20] sm:$0xff] %v4403_v25  ;;  %v4404_v22 = vmax.f32 %v4372_v47, 0.0  ;;  %v4889_v47 = vunpack.c.l.bf16 %v4926_v55 }
 0x49e   : > { %4438 = vst [vmem:[%s7651_s27 + $0x38] sm:$0xff] %v4406_v44 }
 0x49f   : > { %4436 = vst [vmem:[%s7651_s27 + $0x28] sm:$0xff] %v4404_v22 }
 0x4a3   : > { %v5636_v52 = vpop.f32.mrb[172].mxu0 }
 0x4a4   : > { %v4242_v39 = vmul.f32 %v5636_v52, %v7633_v42  ;;  %v4130_v61 = vpop.f32.mrb[173].mxu0 }
 0x4a5   : > { %v4240_v49 = vmul.f32 %v7633_v42, %v4130_v61  ;;  %v5637_v14 = vpop.f32.mrb[174].mxu0  ;;  %v4890_v61 = vunpack.c.h.bf16 %v4926_v55 }
 0x4a6   : > { %v4281_v32 = vadd.f32 %v7640_v1, %v4242_v39  ;;  %v4243_v43 = vmul.f32 %v5637_v14, %v7633_v42  ;;  %v4133_v33 = vpop.f32.mrb[175].mxu0 }
 0x4a7   : > { %v4279_v37 = vadd.f32 %v7640_v1, %v4240_v49  ;;  %v4241_v59 = vmul.f32 %v7633_v42, %v4133_v33 }
 0x4a8   : > { %v4377_v30 = vadd.f32 %v4877_v15, %v4281_v32  ;;  %v4282_v18 = vadd.f32 %v7640_v1, %v4243_v43 }
 0x4a9   : > { %v4375_v26 = vadd.f32 %v4873_v60, %v4279_v37  ;;  %v4280_v56 = vadd.f32 %v7640_v1, %v4241_v59 }
 0x4aa   : > { %v4409_v0 = vmax.f32 %v4377_v30, 0.0  ;;  %v4378_v62 = vadd.f32 %v4878_v20, %v4282_v18  ;;  %v4929_v30 = vld [vmem:[%s6492_s29 + $0x58] sm:$0xff]   ;;  %v4928_v18 = vld [vmem:[%s6492_s29 + $0x50] sm:$0xff]  }
 0x4ab   : > { %v4407_v9 = vmax.f32 %v4375_v26, 0.0  ;;  %v4376_v50 = vadd.f32 %v4874_v31, %v4280_v56  ;;  %v4902_v46 = vunpack.c.h.bf16 %v4929_v30 }
 0x4ac   : > { %4441 = vst [vmem:[%s7651_s27 + $0x50] sm:$0xff] %v4409_v0  ;;  %v4410_v2 = vmax.f32 %v4378_v62, 0.0  ;;  %v4901_v0 = vunpack.c.l.bf16 %v4929_v30 }
 0x4ad   : > { %4439 = vst [vmem:[%s7651_s27 + $0x40] sm:$0xff] %v4407_v9  ;;  %v4408_v27 = vmax.f32 %v4376_v50, 0.0  ;;  %v4897_v50 = vunpack.c.l.bf16 %v4928_v18 }
 0x4ae   : > { %4442 = vst [vmem:[%s7651_s27 + $0x58] sm:$0xff] %v4410_v2 }
 0x4af   : > { %4440 = vst [vmem:[%s7651_s27 + $0x48] sm:$0xff] %v4408_v27 }
 0x4b3   : > { %v5640_v3 = vpop.f32.mrb[176].mxu0 }
 0x4b4   : > { %v4246_v41 = vmul.f32 %v5640_v3, %v7633_v42  ;;  %v4146_v54 = vpop.f32.mrb[177].mxu0 }
 0x4b5   : > { %v4244_v10 = vmul.f32 %v7633_v42, %v4146_v54  ;;  %v5641_v19 = vpop.f32.mrb[178].mxu0  ;;  %v4898_v54 = vunpack.c.h.bf16 %v4928_v18 }
 0x4b6   : > { %v4285_v7 = vadd.f32 %v7640_v1, %v4246_v41  ;;  %v4247_v24 = vmul.f32 %v5641_v19, %v7633_v42  ;;  %v4149_v12 = vpop.f32.mrb[179].mxu0 }
 0x4b7   : > { %v4283_v63 = vadd.f32 %v7640_v1, %v4244_v10  ;;  %v4245_v36 = vmul.f32 %v7633_v42, %v4149_v12 }
 0x4b8   : > { %v4381_v38 = vadd.f32 %v4885_v5, %v4285_v7  ;;  %v4286_v29 = vadd.f32 %v7640_v1, %v4247_v24 }
 0x4b9   : > { %v4379_v6 = vadd.f32 %v4881_v51, %v4283_v63  ;;  %v4284_v58 = vadd.f32 %v7640_v1, %v4245_v36 }
 0x4ba   : > { %v4413_v35 = vmax.f32 %v4381_v38, 0.0  ;;  %v4382_v11 = vadd.f32 %v4886_v8, %v4286_v29  ;;  %v4931_v38 = vld [vmem:[%s6492_s29 + $0x68] sm:$0xff]   ;;  %v4930_v29 = vld [vmem:[%s6492_s29 + $0x60] sm:$0xff]  }
 0x4bb   : > { %v4411_v45 = vmax.f32 %v4379_v6, 0.0  ;;  %v4380_v48 = vadd.f32 %v4882_v40, %v4284_v58  ;;  %v4910_v55 = vunpack.c.h.bf16 %v4931_v38 }
 0x4bc   : > { %4445 = vst [vmem:[%s7651_s27 + $0x70] sm:$0xff] %v4413_v35  ;;  %v4414_v23 = vmax.f32 %v4382_v11, 0.0  ;;  %v4909_v35 = vunpack.c.l.bf16 %v4931_v38 }
 0x4bd   : > { %4443 = vst [vmem:[%s7651_s27 + $0x60] sm:$0xff] %v4411_v45  ;;  %v4412_v4 = vmax.f32 %v4380_v48, 0.0  ;;  %v4905_v48 = vunpack.c.l.bf16 %v4930_v29 }
 0x4be   : > { %4446 = vst [vmem:[%s7651_s27 + $0x78] sm:$0xff] %v4414_v23 }
 0x4bf   : > { %4444 = vst [vmem:[%s7651_s27 + $0x68] sm:$0xff] %v4412_v4 }
 0x4c3   : > { %v5644_v57 = vpop.f32.mrb[180].mxu0 }
 0x4c4   : > { %v4250_v28 = vmul.f32 %v5644_v57, %v7633_v42  ;;  %v4162_v21 = vpop.f32.mrb[181].mxu0 }
 0x4c5   : > { %v4248_v25 = vmul.f32 %v7633_v42, %v4162_v21  ;;  %v5645_v44 = vpop.f32.mrb[182].mxu0  ;;  %v4906_v21 = vunpack.c.h.bf16 %v4930_v29 }
 0x4c6   : > { %v4289_v22 = vadd.f32 %v7640_v1, %v4250_v28  ;;  %v4251_v16 = vmul.f32 %v5645_v44, %v7633_v42  ;;  %v4165_v52 = vpop.f32.mrb[183].mxu0 }
 0x4c7   : > { %v4287_v39 = vadd.f32 %v7640_v1, %v4248_v25  ;;  %v4249_v15 = vmul.f32 %v7633_v42, %v4165_v52 }
 0x4c8   : > { %v4385_v49 = vadd.f32 %v4893_v13, %v4289_v22  ;;  %v4290_v60 = vadd.f32 %v7640_v1, %v4251_v16 }
 0x4c9   : > { %v4383_v14 = vadd.f32 %v4889_v47, %v4287_v39  ;;  %v4288_v32 = vadd.f32 %v7640_v1, %v4249_v15 }
 0x4ca   : > { %v4417_v43 = vmax.f32 %v4385_v49, 0.0  ;;  %v4386_v20 = vadd.f32 %v4894_v34, %v4290_v60  ;;  %v4933_v49 = vld [vmem:[%s6492_s29 + $0x78] sm:$0xff]   ;;  %v4932_v60 = vld [vmem:[%s6492_s29 + $0x70] sm:$0xff]   ;;  %s4854_s29 = sshll.u32 %s7990_s23, 12 }
 0x4cb   : > { %v4415_v33 = vmax.f32 %v4383_v14, 0.0  ;;  %v4384_v37 = vadd.f32 %v4890_v61, %v4288_v32  ;;  %v4918_v18 = vunpack.c.h.bf16 %v4933_v49  ;;  %s7757_s15 = scalar_lea.hbm %s7992_s11, %s4854_s29 }
 0x4cc   : > { %4449 = vst [vmem:[%s7651_s27 + $0x90] sm:$0xff] %v4417_v43  ;;  %v4418_v59 = vmax.f32 %v4386_v20, 0.0  ;;  %v4917_v43 = vunpack.c.l.bf16 %v4933_v49 }
 0x4cd   : > { %4447 = vst [vmem:[%s7651_s27 + $0x80] sm:$0xff] %v4415_v33  ;;  %v4416_v31 = vmax.f32 %v4384_v37, 0.0  ;;  %v4913_v37 = vunpack.c.l.bf16 %v4932_v60 }
 0x4ce   : > { %4450 = vst [vmem:[%s7651_s27 + $0x98] sm:$0xff] %v4418_v59 }
 0x4cf   : > { %4448 = vst [vmem:[%s7651_s27 + $0x88] sm:$0xff] %v4416_v31 }
 0x4d3   : > { %v5648_v26 = vpop.f32.mrb[184].mxu0 }
 0x4d4   : > { %v4254_v56 = vmul.f32 %v5648_v26, %v7633_v42  ;;  %v4178_v62 = vpop.f32.mrb[185].mxu0 }
 0x4d5   : > { %v4252_v9 = vmul.f32 %v7633_v42, %v4178_v62  ;;  %v5649_v2 = vpop.f32.mrb[186].mxu0  ;;  %v4914_v62 = vunpack.c.h.bf16 %v4932_v60 }
 0x4d6   : > { %v4293_v27 = vadd.f32 %v7640_v1, %v4254_v56  ;;  %v4255_v53 = vmul.f32 %v5649_v2, %v7633_v42  ;;  %v4181_v3 = vpop.f32.mrb[187].mxu0 }
 0x4d7   : > { %v4291_v41 = vadd.f32 %v7640_v1, %v4252_v9  ;;  %v4253_v5 = vmul.f32 %v7633_v42, %v4181_v3 }
 0x4d8   : > { %v4389_v10 = vadd.f32 %v4901_v0, %v4293_v27  ;;  %v4294_v51 = vadd.f32 %v7640_v1, %v4255_v53 }
 0x4d9   : > { %v4387_v19 = vadd.f32 %v4897_v50, %v4291_v41  ;;  %v4292_v7 = vadd.f32 %v7640_v1, %v4253_v5 }
 0x4da   : > { %v4421_v24 = vmax.f32 %v4389_v10, 0.0  ;;  %v4390_v8 = vadd.f32 %v4902_v46, %v4294_v51 }
 0x4db   : > { %v4419_v12 = vmax.f32 %v4387_v19, 0.0  ;;  %v4388_v63 = vadd.f32 %v4898_v54, %v4292_v7 }
 0x4dc   : > { %4453 = vst [vmem:[%s7651_s27 + $0xb0] sm:$0xff] %v4421_v24  ;;  %v4422_v36 = vmax.f32 %v4390_v8, 0.0 }
 0x4dd   : > { %4451 = vst [vmem:[%s7651_s27 + $0xa0] sm:$0xff] %v4419_v12  ;;  %v4420_v40 = vmax.f32 %v4388_v63, 0.0 }
 0x4de   : > { %4454 = vst [vmem:[%s7651_s27 + $0xb8] sm:$0xff] %v4422_v36 }
 0x4df   : > { %4452 = vst [vmem:[%s7651_s27 + $0xa8] sm:$0xff] %v4420_v40 }
 0x4e3   : > { %v5652_v6 = vpop.f32.mrb[188].mxu0 }
 0x4e4   : > { %v4258_v58 = vmul.f32 %v5652_v6, %v7633_v42  ;;  %v4194_v11 = vpop.f32.mrb[189].mxu0 }
 0x4e5   : > { %v4256_v45 = vmul.f32 %v7633_v42, %v4194_v11  ;;  %v5653_v23 = vpop.f32.mrb[190].mxu0 }
 0x4e6   : > { %v4297_v4 = vadd.f32 %v7640_v1, %v4258_v58  ;;  %v4259_v17 = vmul.f32 %v5653_v23, %v7633_v42  ;;  %v4197_v57 = vpop.f32.mrb[191].mxu0 }
 0x4e7   : > { %v4295_v28 = vadd.f32 %v7640_v1, %v4256_v45  ;;  %v4257_v13 = vmul.f32 %v7633_v42, %v4197_v57 }
 0x4e8   : > { %v4393_v25 = vadd.f32 %v4909_v35, %v4297_v4  ;;  %v4298_v47 = vadd.f32 %v7640_v1, %v4259_v17 }
 0x4e9   : > { %v4391_v44 = vadd.f32 %v4905_v48, %v4295_v28  ;;  %v4296_v22 = vadd.f32 %v7640_v1, %v4257_v13 }
 0x4ea   : > { %v4425_v16 = vmax.f32 %v4393_v25, 0.0  ;;  %v4394_v34 = vadd.f32 %v4910_v55, %v4298_v47 }
 0x4eb   : > { %v4423_v52 = vmax.f32 %v4391_v44, 0.0  ;;  %v4392_v39 = vadd.f32 %v4906_v21, %v4296_v22 }
 0x4ec   : > { %4457 = vst [vmem:[%s7651_s27 + $0xd0] sm:$0xff] %v4425_v16  ;;  %v4426_v15 = vmax.f32 %v4394_v34, 0.0 }
 0x4ed   : > { %4455 = vst [vmem:[%s7651_s27 + $0xc0] sm:$0xff] %v4423_v52  ;;  %v4424_v61 = vmax.f32 %v4392_v39, 0.0 }
 0x4ee   : > { %4458 = vst [vmem:[%s7651_s27 + $0xd8] sm:$0xff] %v4426_v15 }
 0x4ef   : > { %4456 = vst [vmem:[%s7651_s27 + $0xc8] sm:$0xff] %v4424_v61 }
 0x4f8   : > { %v5656_v14 = vpop.f32.mrb[192].mxu0 }
 0x4f9   : > { %v4262_v32 = vmul.f32 %v5656_v14, %v7633_v42  ;;  %v4210_v20 = vpop.f32.mrb[193].mxu0 }
 0x4fa   : > { %v4260_v33 = vmul.f32 %v7633_v42, %v4210_v20  ;;  %v5657_v59 = vpop.f32.mrb[194].mxu0 }
 0x4fb   : > { %v4301_v31 = vadd.f32 %v7640_v1, %v4262_v32  ;;  %v4263_v30 = vmul.f32 %v5657_v59, %v7633_v42  ;;  %v4213_v26 = vpop.f32.mrb[195].mxu0 }
 0x4fc   : > { %v4299_v56 = vadd.f32 %v7640_v1, %v4260_v33  ;;  %v4261_v0 = vmul.f32 %v7633_v42, %v4213_v26 }
 0x4fd   : > { %v4397_v9 = vadd.f32 %v4917_v43, %v4301_v31  ;;  %v4302_v50 = vadd.f32 %v7640_v1, %v4263_v30 }
 0x4fe   : > { %v4395_v2 = vadd.f32 %v4913_v37, %v4299_v56  ;;  %v4300_v27 = vadd.f32 %v7640_v1, %v4261_v0 }
 0x4ff   : > { %v4429_v53 = vmax.f32 %v4397_v9, 0.0  ;;  %v4398_v46 = vadd.f32 %v4918_v18, %v4302_v50 }
 0x500   : > { %v4427_v3 = vmax.f32 %v4395_v2, 0.0  ;;  %v4396_v41 = vadd.f32 %v4914_v62, %v4300_v27 }
 0x501   : > { %4461 = vst [vmem:[%s7651_s27 + $0xf0] sm:$0xff] %v4429_v53  ;;  %v4430_v42 = vmax.f32 %v4398_v46, 0.0 }
 0x502   : > { %4459 = vst [vmem:[%s7651_s27 + $0xe0] sm:$0xff] %v4427_v3  ;;  %v4428_v1 = vmax.f32 %v4396_v41, 0.0 }
 0x503   : > { %4462 = vst [vmem:[%s7651_s27 + $0xf8] sm:$0xff] %v4430_v42 }
 0x504   : > { %4460 = vst [vmem:[%s7651_s27 + $0xe8] sm:$0xff] %v4428_v1 }
 0x505   : > { %6073 = shalt.err (!%p6070_p12)
}
 0x506   : > { %s6074_s13 = scalar_lea.hbm %s7757_s15, 4096  ;;  %s6078_s8 = scalar_lea.hbm %s7992_s11, 8192 }
 0x507   : > { %p6075_p11 = scmp.ne.s32.totalorder %s7757_s15, %s6074_s13  ;;  %p6079_p5 = scmp.lt.u32.totalorder %s7757_s15, %s7992_s11 }
 0x508   : > { %p6080_p9 = scmp.lt.u32.totalorder %s6078_s8, %s6074_s13  ;;  %p6082_p4 = scmp.lt.u32.totalorder %s6074_s13, %s7757_s15 }
 0x509   : > { %p6076_p0 = pnand %p6075_p11, %p7993_p6 }
 0x50a   : > { %p6081_p2 = por %p6080_p9, %p6079_p5 }
 0x50b   : > { %p6077_p3 = pneg %p6076_p0 }
 0x50c   : > { %p6083_p10 = por %p6082_p4, %p6081_p2 }
 0x50e   : > { %p6084_p13 = pnand %p6083_p10, %p6077_p3 }
 0x510   : > { %6087 = shalt.err (!%p6084_p13)
}
 0x511   : > { %s6167_s14 = smov 128   ;;  %s6168_s27 = smov 8  }
 0x512   : > { %5693 = dma.vmem_to_hbm [thread:$0]  (%p7993_p6), %s7759_s25, 4096, %s7757_s15, %s4464_s1, %s6167_s14, %s6167_s14, %s6168_s27  }
 0x513 PF: > { %s7994_s23 = sld [smem:[#allocation17_spill]]  ;;  %s7995_s29 = sld [smem:[#allocation21_spill]] }
 0x514   : > { %s7996_s9 = sld [smem:[#allocation20_spill]] }
 0x519   : > { %s4494_s24 = sand.u32 1, %s7994_s23   ;;  %p7997_p7 = scmp.ne.s32.totalorder %s7995_s29, 0 }
 0x51a   : > { %p7998_p1 = scmp.ge.s32.totalorder %s7996_s9, 2  ;;  %s4495_s16 = scalar_lea.sflag [#allocation4], %s4494_s24 }
 0x51c   : > { %p5713_p8 = pnand %p7998_p1, %p7997_p7 }
 0x51e   : > { %6129 = dma.done.wait (!%p5713_p8), %s4495_s16, 4096  }
 0x51f   : > { %6131 = vsyncadd (!%p5713_p8), %s4495_s16, 4294963200  ;;  %s29_s22 = sadd.s32 1, %s7996_s9   ;;  %s7999_s12 = sld [smem:[#allocation18_spill]] }
 0x520   : > { %p26_p12 = scmp.ge.s32.totalorder %s29_s22, 4   ;;  %s8000_s19 = sld [smem:[#allocation24_spill]] }
 0x521   : > { %s8001_s13 = sld [smem:[#allocation22_spill]]  ;;  %s8002_s17 = smov %s6138_s18 }
 0x522   : > { %s8004_s20 = smov %s6150_s21  ;;  %28 = sbr.rel (!%p26_p12) target bundleno = 14 (0xe), region = 133 }
 0x525   : > { %s8003_s18 = smov %s7999_s12 }
 0x527   : > { %s8005_s21 = smov %s8001_s13 }
 0x529   :  { %4500 = vsyncpa [#allocation3], 1 }
 0x52a   :  { %4502 = vsyncpa [#allocation3 + $0x1], 1 }
 0x52b   :  { %4503 = vsyncpa [#allocation6], 1 }
 0x52c   :  { %4504 = vsyncpa [#allocation9], 1 }
 0x52d   :  { %4505 = vsyncpa [#allocation4], 1 }
 0x52e   :  { %4507 = vsyncpa [#allocation4 + $0x1], 1 }

// kernel: tpu_custom_call.1
= control target key start
LH: loop header
LB: loop body
LE: loop exit
PB: predicated region body
PF: predicated region fallthrough
CT: control target
= control target key end

     0   :  { %s7811_s0 = inlined_call_operand.hbm [shape: bf16[2,18,32,128], index: 0, kind: input, shape index: {}]   ;;  %s7812_s1 = inlined_call_operand.hbm [shape: bf16[128,128], index: 1, kind: input, shape index: {}]   ;;  %s7813_s2 = inlined_call_operand.vmem [shape: f32[1,128], index: 2, kind: input, shape index: {}]   ;;  %s7814_s3 = inlined_call_operand.vmem [shape: f32[1,128], index: 3, kind: input, shape index: {}]   ;;  %s7815_s4 = inlined_call_operand.hbm [shape: bf16[1152,128], index: 4, kind: input, shape index: {}]   ;;  %s7816_s5 = inlined_call_operand.vmem [shape: f32[1,128], index: 5, kind: input, shape index: {}]   ;;  %s7817_s6 = inlined_call_operand.vmem [shape: f32[1,128], index: 6, kind: input, shape index: {}]   ;;  %s7818_s7 = inlined_call_operand.hbm [shape: bf16[128,128], index: 7, kind: input, shape index: {}]   ;;  %s7819_s8 = inlined_call_operand.vmem [shape: f32[1,128], index: 8, kind: input, shape index: {}]   ;;  %s7820_s9 = inlined_call_operand.vmem [shape: f32[1,128], index: 9, kind: input, shape index: {}]   ;;  %s7821_s10 = inlined_call_operand.hbm [shape: bf16[2,256,128], index: 10, kind: input, shape index: {}]   ;;  %s7822_s11 = inlined_call_operand.hbm [shape: f32[2,256,128], index: 11, kind: output, shape index: {}]  }
   0x1   :  { %7850 = sst [smem:[#allocation59_spill]] %s7811_s0 }
   0x2   :  { %7851 = sst [smem:[#allocation60_spill]] %s7812_s1 }
   0x3   :  { %7852 = sst [smem:[#allocation61_spill]] %s7819_s8 }
   0x4   :  { %7853 = sst [smem:[#allocation62_spill]] %s7820_s9 }
   0x5   :  { %7854 = sst [smem:[#allocation63_spill]] %s7822_s11 }
   0x6   :  { %16 = vsyncpa [#allocation3], 0 }
   0x7   :  { %18 = vsyncpa [#allocation3 + $0x1], 0 }
   0x8   :  { %19 = vsyncpa [#allocation6], 0 }
   0x9   :  { %20 = vsyncpa [#allocation9], 0 }
   0xa   :  { %21 = vsyncpa [#allocation4], 0 }
   0xb   :  { %23 = vsyncpa [#allocation4 + $0x1], 0  ;;  %s6229_s17 = smov 0   ;;  %s6231_s18 = smov 0  }
   0xc   :  { %s6233_s19 = smov 0   ;;  %s6235_s20 = smov 0  }
   0xd   :  { %s6237_s21 = smov 0   ;;  %s6239_s22 = smov 0  }
   0xe LB: > { %7855 = sst [smem:[#allocation17_spill]] %s6134_s17  ;;  %s6260_s23 = sadd.s32 4294967295, %s6154_s22   ;;  %s6154_s22 = sphi %s6239_s22, %s29_s22   ;;  %s6150_s21 = sphi %s6237_s21, %s8005_s21   ;;  %s6146_s20 = sphi %s6235_s20, %s8004_s20   ;;  %s6142_s19 = sphi %s6233_s19, %s8000_s19   ;;  %s6138_s18 = sphi %s6231_s18, %s8003_s18   ;;  %s6134_s17 = sphi %s6229_s17, %s8002_s17  }
   0xf   : > { %7856 = sst [smem:[#allocation18_spill]] %s6142_s19  ;;  %s4618_s24 = sadd.s32 4294967294, %s6154_s22  }
  0x10   : > { %7857 = sst [smem:[#allocation19_spill]] %s6146_s20  ;;  %p61_p0 = scmp.ne.s32.totalorder %s6138_s18, %s6134_s17 }
  0x11   : > { %7858 = sst [smem:[#allocation20_spill]] %s6154_s22  ;;  %p7825_p1 = scmp.eq.s32.totalorder %s6260_s23, 0 }
  0x12   : > { %p310_p3 = scmp.eq.s32.totalorder %s4618_s24, 1  ;;  %p4619_p5 = scmp.ge.s32.totalorder %s6154_s22, 1 }
  0x13   : > { %p6269_p4 = por %p7825_p1, %p61_p0  ;;  %p317_p7 = scmp.lt.s32.totalorder %s6154_s22, 3 }
  0x14   : > { %p6274_p6 = por %p310_p3, %p61_p0  ;;  %s6156_s28 = smov [#allocation5]  }
  0x15   : > { %s7859_s25 = scalar_select %p6269_p4, 1, 0 }
  0x16   : > { %s7860_s26 = scalar_select %p6274_p6, 1, 0 }
  0x17   : > { %p6279_p8 = pnand %p4619_p5, %p317_p7  ;;  %s329_s29 = sshll.u32 %s6156_s28, 4  ;;  %s330_s29 = int_to_ptr.vmem [resolvable:$true] %s329_s29 }
  0x18   : > { %7861 = sst [smem:[#allocation21_spill]] %s7860_s26  ;;  %s41_s12 = sadd.s32 1, %s6150_s21 }
  0x19   : > { %s7862_s27 = scalar_select %p6279_p8, 1, 0 }
  0x1a   : > { %p5695_p9 = pneg %p6279_p8  ;;  %s7864_s1 = sld [smem:[#allocation60_spill]] }
  0x1c   : > { %p6288_p11 = pnand %p5695_p9, %p7825_p1 }
  0x1e   : > { %s7863_s30 = scalar_select %p6288_p11, 1, 0 }
  0x1f   : > { %p6301_p13 = pneg %p6288_p11 }
  0x20   : > { %s5916_s15 = scalar_lea.hbm %s7864_s1, 1024 }
  0x21   : > { %p5917_p12 = scmp.ne.s32.totalorder %s7864_s1, %s5916_s15  ;;  %p5923_p5 = scmp.lt.u32.totalorder %s5916_s15, %s7864_s1 }
  0x23   : > { %p5919_p0 = pnand %p6301_p13, %p5917_p12 }
  0x25   : > { %p5920_p3 = pneg %p5919_p0 }
  0x27   : > { %p5925_p7 = pnand %p5923_p5, %p5920_p3 }
  0x29   : > { %5928 = shalt.err (!%p5925_p7)
}
  0x2a   : > { %s5929_s13 = scalar_lea.vmem %s330_s29, 1024  ;;  %p5937_p2 = scmp.lt.s32.totalorder %s330_s29, %s330_s29 }
  0x2b   : > { %p5930_p9 = scmp.ne.s32.totalorder %s330_s29, %s5929_s13  ;;  %p5938_p6 = scmp.lt.s32.totalorder %s5929_s13, %s5929_s13 }
  0x2d   : > { %p5932_p10 = pnand %p5930_p9, %p6301_p13  ;;  %p5939_p4 = por %p5938_p6, %p5937_p2 }
  0x2f   : > { %p5933_p1 = pneg %p5932_p10 }
  0x31   : > { %p5940_p8 = pnand %p5939_p4, %p5933_p1 }
  0x33   : > { %5943 = shalt.err (!%p5940_p8)
}
  0x34   : > { %s7829_s14 = smov 64   ;;  %s7831_s17 = smov 4  }
  0x35   : > { %5698 = dma.hbm_to_vmem [thread:$0]  (!%p6288_p11), %s7864_s1, 1024, %s330_s29, [#allocation6], %s7829_s14, %s7829_s14, %s7831_s17  }
  0x36   : > { %p43_p1 = scmp.ge.s32.totalorder %s41_s12, 2  ;;  %s48_s16 = sadd.s32 1, %s6142_s19 }
  0x37   : > { %p55_p2 = scmp.ne.s32.totalorder %s6142_s19, %s6138_s18  ;;  %p56_p4 = scmp.eq.s32.totalorder %s6154_s22, 0 }
  0x38   : > { %s8007_s12 = smov (%p43_p1, %s41_s12), 0  ;;  %p7867_p8 = scmp.eq.s32.totalorder %s6260_s23, 1 }
  0x39   : > { %7866 = sst [smem:[#allocation22_spill]] %s8007_s12  ;;  %p57_p6 = por %p56_p4, %p55_p2 }
  0x3a   : > { %p6328_p10 = por %p7867_p8, %p55_p2  ;;  %s45_s13 = ssub.s32 %s6150_s21, %s8007_s12 }
  0x3b   : > { %p5719_p12 = scmp.lt.s32.totalorder %s6154_s22, 2  ;;  %p46_p0 = scmp.eq.s32.totalorder %s45_s13, 0 }
  0x3c   : > { %s7868_s24 = scalar_select %p6328_p10, 1, 0 }
  0x3d   : > { %s387_s11 = sand.u32 1, %s6154_s22   ;;  %s389_s26 = sand.u32 1, %s6142_s19  }
  0x3e   : > { %7869 = sst [smem:[#allocation23_spill]] %s7868_s24  ;;  %s5674_s15 = smul.u32 288, %s389_s26 }
  0x3f   : > { %s6338_s29 = scalar_select %p46_p0, %s6142_s19, %s48_s16  }
  0x40   : > { %p6340_p3 = pnand %p5719_p12, %p57_p6  ;;  %s5675_s17 = smul.u32 4608, %s6150_s21 }
  0x41   : > { %7870 = sst [smem:[#allocation24_spill]] %s6338_s29  ;;  %s6345_s1 = sshll.u32 %s389_s26, 7 }
  0x42   : > { %s7872_s0 = sld [smem:[#allocation59_spill]]  ;;  %s391_s16 = scalar_lea.vmem [#allocation2], %s5674_s15 }
  0x43   : > { %s398_s13 = sshll.u32 %s391_s16, 4  ;;  %s6354_s29 = scalar_lea.sflag [#allocation3], %s387_s11  ;;  %s6352_s13 = int_to_ptr.vmem [resolvable:$true] %s398_s13 }
  0x44   : > { %p7842_p7 = pneg %p6340_p3 }
  0x48   : > { %s6350_s12 = scalar_lea.hbm %s7872_s0, %s5675_s17  ;;  %s5949_s17 = scalar_lea.hbm %s7872_s0, 9216 }
  0x49   : > { %s5944_s19 = scalar_lea.hbm %s6350_s12, 4608  ;;  %p5950_p2 = scmp.lt.u32.totalorder %s6350_s12, %s7872_s0 }
  0x4a   : > { %p5945_p5 = scmp.ne.s32.totalorder %s6350_s12, %s5944_s19  ;;  %p5951_p4 = scmp.lt.u32.totalorder %s5949_s17, %s5944_s19 }
  0x4b   : > { %p5953_p8 = scmp.lt.u32.totalorder %s5944_s19, %s6350_s12 }
  0x4c   : > { %p5947_p9 = pnand %p7842_p7, %p5945_p5  ;;  %p5952_p6 = por %p5951_p4, %p5950_p2 }
  0x4e   : > { %p5948_p1 = pneg %p5947_p9  ;;  %p5954_p12 = por %p5953_p8, %p5952_p6 }
  0x50   : > { %p5955_p0 = pnand %p5954_p12, %p5948_p1 }
  0x52   : > { %5958 = shalt.err (!%p5955_p0)
}
  0x53   : > { %s5959_s11 = scalar_lea.vmem %s6352_s13, 4608  ;;  %s6159_s15 = smov [#allocation2]  }
  0x54   : > { %p5960_p5 = scmp.ne.s32.totalorder %s6352_s13, %s5959_s11  ;;  %s5964_s16 = sshll.u32 %s6159_s15, 4  ;;  %s5965_s16 = int_to_ptr.vmem [resolvable:$false] %s5964_s16 }
  0x55   : > { %s5966_s22 = scalar_lea.vmem %s5965_s16, 9216  ;;  %p5967_p11 = scmp.lt.s32.totalorder %s6352_s13, %s5965_s16 }
  0x56   : > { %p5962_p9 = pnand %p5960_p5, %p7842_p7  ;;  %p5968_p2 = scmp.lt.s32.totalorder %s5966_s22, %s5959_s11 }
  0x58   : > { %p5963_p10 = pneg %p5962_p9  ;;  %p5969_p4 = por %p5968_p2, %p5967_p11 }
  0x5a   : > { %p5970_p6 = pnand %p5969_p4, %p5963_p10 }
  0x5c   : > { %5973 = shalt.err (!%p5970_p6)
}
  0x5d   : > { %s7873_s19 = smov 4   ;;  %s7874_s9 = smov 64  }
  0x5e   : > { %5708 = dma.hbm_to_vmem [thread:$0]  (!%p6340_p3), %s6350_s12, 4608, %s6352_s13, %s6354_s29, %s7874_s9, %s7874_s9, %s7873_s19  }
  0x5f   : > { %s6160_s20 = smov [#allocation7]   ;;  %s6161_s26 = smov [#allocation8]  }
  0x60   : > { %s348_s17 = sshll.u32 %s6160_s20, 4  ;;  %s367_s15 = sshll.u32 %s6161_s26, 4  ;;  %s349_s17 = int_to_ptr.vmem [resolvable:$true] %s348_s17  ;;  %s6385_s15 = int_to_ptr.vmem [resolvable:$true] %s367_s15 }
  0x61   : > { %s5974_s22 = scalar_lea.hbm %s7815_s4, 9216 }
  0x62   : > { %p5975_p11 = scmp.ne.s32.totalorder %s7815_s4, %s5974_s22  ;;  %p5981_p8 = scmp.lt.u32.totalorder %s5974_s22, %s7815_s4 }
  0x64   : > { %p5977_p10 = pnand %p5975_p11, %p6301_p13 }
  0x66   : > { %p5978_p1 = pneg %p5977_p10 }
  0x68   : > { %p5983_p12 = pnand %p5981_p8, %p5978_p1 }
  0x6a   : > { %5986 = shalt.err (!%p5983_p12)
}
  0x6b   : > { %s5987_s13 = scalar_lea.vmem %s349_s17, 9216  ;;  %p5995_p2 = scmp.lt.s32.totalorder %s349_s17, %s349_s17 }
  0x6c   : > { %p5988_p0 = scmp.ne.s32.totalorder %s349_s17, %s5987_s13  ;;  %p5996_p4 = scmp.lt.s32.totalorder %s5987_s13, %s5987_s13 }
  0x6e   : > { %p5990_p5 = pnand %p5988_p0, %p6301_p13  ;;  %p5997_p6 = por %p5996_p4, %p5995_p2 }
  0x70   : > { %p5991_p9 = pneg %p5990_p5 }
  0x72   : > { %p5998_p7 = pnand %p5997_p6, %p5991_p9 }
  0x74   : > { %6001 = shalt.err (!%p5998_p7)
}
  0x75   : > { %p7875_p11 = scmp.ne.s32.totalorder %s7863_s30, 0  ;;  %s6002_s26 = scalar_lea.hbm %s7818_s7, 1024 }
  0x76   : > { %p6003_p10 = scmp.ne.s32.totalorder %s7818_s7, %s6002_s26  ;;  %p6009_p8 = scmp.lt.u32.totalorder %s6002_s26, %s7818_s7 }
  0x77   : > { %5701 = dma.hbm_to_vmem [thread:$0]  (!%p7875_p11), %s7815_s4, 9216, %s349_s17, [#allocation6], %s7874_s9, %s7874_s9, %s7873_s19  }
  0x78   : > { %p6005_p7 = pnand %p6003_p10, %p6301_p13 }
  0x7a   : > { %p6006_p1 = pneg %p6005_p7 }
  0x7c   : > { %p6011_p12 = pnand %p6009_p8, %p6006_p1 }
  0x7e   : > { %6014 = shalt.err (!%p6011_p12)
}
  0x7f   : > { %s6015_s17 = scalar_lea.vmem %s6385_s15, 1024  ;;  %p6023_p2 = scmp.lt.s32.totalorder %s6385_s15, %s6385_s15 }
  0x80   : > { %p6016_p0 = scmp.ne.s32.totalorder %s6385_s15, %s6015_s17  ;;  %p6024_p4 = scmp.lt.s32.totalorder %s6015_s17, %s6015_s17 }
  0x82   : > { %p6018_p5 = pnand %p6016_p0, %p6301_p13  ;;  %p6025_p6 = por %p6024_p4, %p6023_p2 }
  0x84   : > { %p6019_p9 = pneg %p6018_p5 }
  0x86   : > { %p6026_p10 = pnand %p6025_p6, %p6019_p9 }
  0x88   : > { %6029 = shalt.err (!%p6026_p10)
}
  0x89   : > { %5704 = dma.hbm_to_vmem [thread:$0]  (!%p7875_p11), %s7818_s7, 1024, %s6385_s15, [#allocation9], %s7874_s9, %s7874_s9, %s7873_s19  }
  0x8a   : > { %s4853_s28 = sshll.u32 %s6150_s21, 11  ;;  %s412_s8 = scalar_lea.vmem [#allocation10], %s6345_s1 }
  0x8b   : > { %s421_s24 = sshll.u32 %s412_s8, 4  ;;  %s6439_s11 = scalar_lea.hbm %s7821_s10, %s4853_s28  ;;  %s6441_s24 = int_to_ptr.vmem [resolvable:$true] %s421_s24 }
  0x8c   : > { %s6030_s30 = scalar_lea.hbm %s6439_s11, 2048  ;;  %p7876_p7 = pneg %p6340_p3 }
  0x8d   : > { %p6031_p13 = scmp.ne.s32.totalorder %s6439_s11, %s6030_s30  ;;  %s6035_s16 = scalar_lea.hbm %s7821_s10, 4096 }
  0x8e   : > { %p6036_p8 = scmp.lt.u32.totalorder %s6439_s11, %s7821_s10  ;;  %p6037_p12 = scmp.lt.u32.totalorder %s6035_s16, %s6030_s30 }
  0x8f   : > { %p6033_p1 = pnand %p6031_p13, %p7876_p7  ;;  %p6039_p5 = scmp.lt.u32.totalorder %s6030_s30, %s6439_s11 }
  0x90   : > { %p6038_p0 = por %p6037_p12, %p6036_p8 }
  0x91   : > { %p6034_p11 = pneg %p6033_p1 }
  0x92   : > { %p6040_p9 = por %p6039_p5, %p6038_p0 }
  0x94   : > { %p6041_p2 = pnand %p6040_p9, %p6034_p11 }
  0x96   : > { %6044 = shalt.err (!%p6041_p2)
}
  0x97   : > { %s6045_s17 = scalar_lea.vmem %s6441_s24, 2048  ;;  %p7877_p6 = pmov %p7876_p7 }
  0x98   : > { %p6046_p4 = scmp.ne.s32.totalorder %s6441_s24, %s6045_s17  ;;  %s6162_s13 = smov [#allocation10]  }
  0x99   : > { %s6050_s0 = sshll.u32 %s6162_s13, 4  ;;  %s6051_s0 = int_to_ptr.vmem [resolvable:$false] %s6050_s0 }
  0x9a   : > { %p6048_p10 = pnand %p6046_p4, %p7877_p6  ;;  %s6052_s28 = scalar_lea.vmem %s6051_s0, 4096 }
  0x9b   : > { %p6053_p7 = scmp.lt.s32.totalorder %s6441_s24, %s6051_s0  ;;  %p6054_p1 = scmp.lt.s32.totalorder %s6052_s28, %s6045_s17 }
  0x9c   : > { %p6049_p13 = pneg %p6048_p10 }
  0x9d   : > { %p6055_p8 = por %p6054_p1, %p6053_p7 }
  0x9f   : > { %p6056_p12 = pnand %p6055_p8, %p6049_p13 }
  0xa1   : > { %6059 = shalt.err (!%p6056_p12)
}
  0xa2   : > { %5711 = dma.hbm_to_vmem [thread:$0]  (!%p6340_p3), %s6439_s11, 2048, %s6441_s24, %s6354_s29, %s7874_s9, %s7874_s9, %s7873_s19  }
  0xa3   : > { %p7878_p11 = scmp.ne.s32.totalorder %s7862_s27, 0 }
  0xa5   : > { %433 = sbr.rel (%p7878_p11) target bundleno = 1299 (0x513), region = 64 }
  0xac   : > { %s435_s8 = sand.u32 1, %s6260_s23   ;;  %s6474_s20 = sand.u32 1, %s6138_s18  }
  0xad   : > { %s5676_s26 = smul.u32 288, %s6474_s20  ;;  %s436_s30 = scalar_lea.sflag [#allocation3], %s435_s8 }
  0xae   : > { %p7879_p0 = scmp.ne.s32.totalorder %s7859_s25, 0 }
  0xaf   : > { %s6477_s14 = scalar_lea.vmem [#allocation2], %s5676_s26 }
  0xb0   : > { %6113 = dma.done.wait (%p7879_p0), %s436_s30, 4608  }
  0xb1   : > { %6115 = vsyncadd (%p7879_p0), %s436_s30, 4294962688  ;;  %p7880_p3 = scmp.eq.s32.totalorder %s6260_s23, 0 }
  0xb3   : > { %6117 = dma.done.wait (%p7880_p3), [#allocation6], 10240   ;;  %p7881_p5 = pmov %p7880_p3 }
  0xb4   : > { %p7882_p9 = pmov %p7880_p3 }
  0xb5   : > { %6119 = vsyncadd (%p7881_p5), [#allocation6], 4294957056 }
  0xb6   : > { %6121 = dma.done.wait (%p7882_p9), [#allocation9], 1024   ;;  %p7883_p2 = pmov %p7880_p3 }
  0xb7   : > { %s4632_s27 = sshll.u32 %s6474_s20, 7 }
  0xb8   : > { %6123 = vsyncadd (%p7883_p2), [#allocation9], 4294966272  ;;  %s6492_s29 = scalar_lea.vmem [#allocation10], %s4632_s27 }
  0xb9   : > { %6125 = dma.done.wait (%p7879_p0), %s436_s30, 2048  }
  0xba   : > { %6127 = vsyncadd (%p7879_p0), %s436_s30, 4294965248  ;;  %v5782_v0 = vld [vmem:[#allocation5] sm:$0xff]   ;;  %v5783_v1 = vld [vmem:[#allocation5 + $0x8] sm:$0xff]   ;;  %vm6163_vm0 = vmmov 0   ;;  %vm6165_vm4 = vmmov 1   ;;  %vm2390_vm10 = vcmask 1046528  }
  0xbb   : > { %5474 = vmatprep.subr.bf16.mxu0 %v5782_v0  ;;  %v5784_v2 = vld [vmem:[#allocation5 + $0x10] sm:$0xff]   ;;  %v5785_v3 = vld [vmem:[#allocation5 + $0x18] sm:$0xff]   ;;  %v5790_v4 = vld [vmem:[%s6477_s14] sm:$0xff]   ;;  %vm2149_vm12 = vsmask.f32 7424  ;;  %s7988_s28 = sld [smem:[#allocation61_spill]] }
  0xbc   : > { %5475 = vmatpush3.bf16.msra.mxu0 %v5782_v0  ;;  %5490 = vmatprep.mubr.bf16.mxu0 %v5790_v4  ;;  %v5786_v5 = vld [vmem:[#allocation5 + $0x20] sm:$0xff]   ;;  %v5787_v6 = vld [vmem:[#allocation5 + $0x28] sm:$0xff]   ;;  %v5788_v7 = vld [vmem:[#allocation5 + $0x30] sm:$0xff]   ;;  %s7989_s30 = sld [smem:[#allocation62_spill]]  ;;  %s7990_s23 = sld [smem:[#allocation19_spill]] }
  0xbd   : > { %5476 = vmatprep.subr.bf16.mxu0 %v5783_v1  ;;  %v5789_v8 = vld [vmem:[#allocation5 + $0x38] sm:$0xff]   ;;  %v5791_v9 = vld [vmem:[%s6477_s14 + $0x8] sm:$0xff]   ;;  %v5792_v10 = vld [vmem:[%s6477_s14 + $0x10] sm:$0xff]   ;;  %s7991_s19 = sld [smem:[#allocation23_spill]]  ;;  %s4464_s1 = scalar_lea.sflag [#allocation4], %s6474_s20 }
  0xbe   : > { %v5793_v11 = vld [vmem:[%s6477_s14 + $0x18] sm:$0xff]   ;;  %v5794_v12 = vld [vmem:[%s6477_s14 + $0x20] sm:$0xff]   ;;  %v5795_v15 = vld [vmem:[%s6477_s14 + $0x28] sm:$0xff]   ;;  %s7992_s11 = sld [smem:[#allocation63_spill]]  ;;  %s6166_s22 = smov [#allocation11]  }
  0xbf   : > { %v5824_v13 = vld [vmem:[#allocation7 + $0x40] sm:$0xff]   ;;  %v5826_v16 = vld [vmem:[#allocation7 + $0x48] sm:$0xff]   ;;  %v5796_v17 = vld [vmem:[%s6477_s14 + $0x30] sm:$0xff]   ;;  %s6064_s12 = sshll.u32 %s6166_s22, 4  ;;  %s6065_s12 = int_to_ptr.vmem [resolvable:$false] %s6064_s12 }
  0xc0   : > { %5477 = vmatpush3.bf16.msra.mxu0 %v5783_v1  ;;  %v5825_v14 = vld [vmem:[#allocation7] sm:$0xff]   ;;  %4978 = vmatprep.subr.bf16.mxu1 %v5824_v13  ;;  %v5827_v18 = vld [vmem:[#allocation7 + $0x8] sm:$0xff]   ;;  %v5828_v19 = vld [vmem:[#allocation7 + $0x50] sm:$0xff]   ;;  %v1470_v13 = vlaneseq  ;;  %s6066_s17 = scalar_lea.vmem %s6065_s12, 8192 }
  0xc1   : > { %5478 = vmatprep.subr.bf16.mxu0 %v5784_v2  ;;  %4979 = vmatpush3.bf16.msra.mxu1 %v5825_v14  ;;  %v5829_v20 = vld [vmem:[#allocation7 + $0x140] sm:$0xff]   ;;  %v5830_v21 = vld [vmem:[#allocation7 + $0x10] sm:$0xff]   ;;  %v5797_v23 = vld [vmem:[%s6477_s14 + $0x38] sm:$0xff]  }
  0xc2   : > { %4980 = vmatprep.subr.bf16.mxu1 %v5826_v16  ;;  %v5831_v22 = vld [vmem:[#allocation7 + $0x100] sm:$0xff]   ;;  %v5799_v25 = vld [vmem:[%s6477_s14 + $0x48] sm:$0xff]   ;;  %v5800_v26 = vld [vmem:[%s6477_s14 + $0x50] sm:$0xff]   ;;  %v1471_v14 = vshrl.u32 %v1470_v13, 7 }
  0xc3   : > { %v5798_v24 = vld [vmem:[%s6477_s14 + $0x40] sm:$0xff]   ;;  %v5801_v27 = vld [vmem:[%s6477_s14 + $0x58] sm:$0xff]   ;;  %v5803_v29 = vld [vmem:[%s6477_s14 + $0x68] sm:$0xff]   ;;  %p7993_p6 = scmp.ne.s32.totalorder %s7991_s19, 0 }
  0xc4   : > { %5479 = vmatpush3.bf16.msra.mxu0 %v5784_v2  ;;  %v5802_v28 = vld [vmem:[%s6477_s14 + $0x60] sm:$0xff]   ;;  %v5804_v30 = vld [vmem:[%s6477_s14 + $0x70] sm:$0xff]   ;;  %v5805_v31 = vld [vmem:[%s6477_s14 + $0x78] sm:$0xff]   ;;  %vm1529_vm2 = vcmp.ge.s32.totalorder %v1471_v14, 1 }
  0xc5   : > { %5480 = vmatprep.subr.bf16.mxu0 %v5785_v3  ;;  %4981 = vmatpush3.bf16.msra.mxu1 %v5827_v18  ;;  %v5806_v32 = vld [vmem:[%s6477_s14 + $0x80] sm:$0xff]   ;;  %v5807_v33 = vld [vmem:[%s6477_s14 + $0x88] sm:$0xff]   ;;  %v5808_v34 = vld [vmem:[%s6477_s14 + $0x90] sm:$0xff]  }
  0xc6   : > { %4982 = vmatprep.subr.bf16.mxu1 %v5828_v19  ;;  %v5809_v35 = vld [vmem:[%s6477_s14 + $0x98] sm:$0xff]   ;;  %v5810_v36 = vld [vmem:[%s6477_s14 + $0xa0] sm:$0xff]   ;;  %v5811_v37 = vld [vmem:[%s6477_s14 + $0xa8] sm:$0xff]  }
  0xc7   : > { %v5812_v38 = vld [vmem:[%s6477_s14 + $0xb0] sm:$0xff]   ;;  %v5833_v39 = vld [vmem:[#allocation7 + $0x148] sm:$0xff]   ;;  %v5832_v40 = vld [vmem:[#allocation7 + $0x58] sm:$0xff]  }
  0xc8   : > { %5481 = vmatpush3.bf16.msra.mxu0 %v5785_v3  ;;  %v5835_v41 = vld [vmem:[#allocation7 + $0x108] sm:$0xff]   ;;  %v5834_v42 = vld [vmem:[#allocation7 + $0x18] sm:$0xff]   ;;  %v5814_v44 = vld [vmem:[%s6477_s14 + $0xc0] sm:$0xff]  }
  0xc9   : > { %5482 = vmatprep.subr.bf16.mxu0 %v5786_v5  ;;  %4983 = vmatpush3.bf16.msra.mxu1 %v5830_v21  ;;  %v5813_v43 = vld [vmem:[%s6477_s14 + $0xb8] sm:$0xff]   ;;  %v5837_v45 = vld [vmem:[#allocation7 + $0x150] sm:$0xff]   ;;  %v5836_v46 = vld [vmem:[#allocation7 + $0x60] sm:$0xff]  }
  0xca   : > { %4984 = vmatprep.subr.bf16.mxu1 %v5832_v40  ;;  %v5839_v47 = vld [vmem:[#allocation7 + $0x110] sm:$0xff]   ;;  %v5838_v48 = vld [vmem:[#allocation7 + $0x20] sm:$0xff]   ;;  %v5841_v49 = vld [vmem:[#allocation7 + $0x158] sm:$0xff]  }
  0xcb   : > { %v5840_v50 = vld [vmem:[#allocation7 + $0x68] sm:$0xff]   ;;  %v5843_v51 = vld [vmem:[#allocation7 + $0x118] sm:$0xff]   ;;  %v5816_v54 = vld [vmem:[%s6477_s14 + $0xd0] sm:$0xff]  }
  0xcc   : > { %5483 = vmatpush3.bf16.msra.mxu0 %v5786_v5  ;;  %v5842_v52 = vld [vmem:[#allocation7 + $0x28] sm:$0xff]   ;;  %v5845_v55 = vld [vmem:[#allocation7 + $0x160] sm:$0xff]   ;;  %v5844_v56 = vld [vmem:[#allocation7 + $0x70] sm:$0xff]  }
  0xcd   : > { %5484 = vmatprep.subr.bf16.mxu0 %v5787_v6  ;;  %4985 = vmatpush3.bf16.msra.mxu1 %v5834_v42  ;;  %v5815_v53 = vld [vmem:[%s6477_s14 + $0xc8] sm:$0xff]   ;;  %v5847_v57 = vld [vmem:[#allocation7 + $0x120] sm:$0xff]   ;;  %v5846_v58 = vld [vmem:[#allocation7 + $0x30] sm:$0xff]  }
  0xce   : > { %4986 = vmatprep.subr.bf16.mxu1 %v5836_v46  ;;  %v5849_v59 = vld [vmem:[#allocation7 + $0x168] sm:$0xff]   ;;  %v5848_v60 = vld [vmem:[#allocation7 + $0x78] sm:$0xff]   ;;  %v5818_v0 = vld [vmem:[%s6477_s14 + $0xe0] sm:$0xff]  }
  0xcf   : > { %v5851_v61 = vld [vmem:[#allocation7 + $0x128] sm:$0xff]   ;;  %v5850_v62 = vld [vmem:[#allocation7 + $0x38] sm:$0xff]   ;;  %v5855_v1 = vld [vmem:[#allocation7 + $0x170] sm:$0xff]  }
  0xd0   : > { %5485 = vmatpush3.bf16.msra.mxu0 %v5787_v6  ;;  %v5817_v63 = vld [vmem:[%s6477_s14 + $0xd8] sm:$0xff]   ;;  %v5857_v2 = vld [vmem:[#allocation7 + $0x130] sm:$0xff]   ;;  %v5819_v3 = vld [vmem:[%s6477_s14 + $0xe8] sm:$0xff]  }
  0xd1   : > { %5486 = vmatprep.subr.bf16.mxu0 %v5788_v7  ;;  %4987 = vmatpush3.bf16.msra.mxu1 %v5838_v48  ;;  %v5858_v4 = vld [vmem:[#allocation7 + $0x178] sm:$0xff]   ;;  %v5820_v5 = vld [vmem:[%s6477_s14 + $0xf0] sm:$0xff]   ;;  %v6539_v16 = vld [vmem:[%s7813_s2] ss:$0 sm:$0xff] }
  0xd2   : > { %4988 = vmatprep.subr.bf16.mxu1 %v5840_v50  ;;  %v5859_v6 = vld [vmem:[#allocation7 + $0x138] sm:$0xff]   ;;  %vm1825_vm1 = vmpackc.low %vm6163_vm0, %vm6163_vm0  ;;  %v6545_v19 = vld [vmem:[%s7814_s3] ss:$0 sm:$0xff] }
  0xd3   : > { %vm1830_vm5 = vmpackc.low %vm6165_vm4, %vm6165_vm4 }
  0xd4   : > { %5487 = vmatpush3.bf16.msra.mxu0 %v5788_v7  ;;  %v5854_v7 = vld [vmem:[#allocation7 + $0xc0] sm:$0xff]   ;;  %vm1829_vm6 = vmpackc.low %vm1529_vm2, %vm1529_vm2 }
  0xd5   : > { %5488 = vmatprep.subr.bf16.mxu0 %v5789_v8  ;;  %4989 = vmatpush3.bf16.msra.mxu1 %v5842_v52 }
  0xd6   : > { %4990 = vmatprep.subr.bf16.mxu1 %v5844_v56 }
  0xd8   : > { %5489 = vmatpush3.bf16.msra.mxu0 %v5789_v8  ;;  %v5821_v8 = vld [vmem:[%s6477_s14 + $0xf8] sm:$0xff]  }
  0xd9   : > { %5202 = vmatprep.subr.bf16.mxu0 %v5829_v20  ;;  %4991 = vmatpush3.bf16.msra.mxu1 %v5846_v58 }
  0xda   : > { %4992 = vmatprep.subr.bf16.mxu1 %v5848_v60 }
  0xdb   : > { %5491 = vmatmul.mubr.bf16.vlgmr.msra.gmra.mrb[0].mxu0 %v5791_v9  ;;  %v5822_v9 = vld [vmem:[%s6477_s14 + $0x100] sm:$0xff]  }
  0xdc   : > { %5494 = vmatprep.mubr.bf16.mxu0 %v5792_v10  ;;  %5203 = vmatpush3.bf16.msra.mxu0 %v5831_v22  ;;  %v5823_v10 = vld [vmem:[%s6477_s14 + $0x108] sm:$0xff]   ;;  %v6164_v22 = vmov 0  }
  0xdd   : > { %5204 = vmatprep.subr.bf16.mxu0 %v5833_v39  ;;  %4993 = vmatpush3.bf16.msra.mxu1 %v5850_v62 }
  0xde   : > { %5090 = vmatprep.subr.bf16.mxu1 %v5854_v7 }
  0xe0   : > { %5205 = vmatpush3.bf16.msra.mxu0 %v5835_v41 }
  0xe1   : > { %5206 = vmatprep.subr.bf16.mxu0 %v5837_v45 }
  0xe3   : > { %5495 = vmatmul.mubr.bf16.gmra.mrb[4].mxu0 %v5793_v11  ;;  %v5852_v11 = vld [vmem:[%s6477_s14 + $0x110] sm:$0xff]  }
  0xe4   : > { %5498 = vmatprep.mubr.bf16.mxu0 %v5794_v12  ;;  %5207 = vmatpush3.bf16.msra.mxu0 %v5839_v47  ;;  %v5853_v12 = vld [vmem:[%s6477_s14 + $0x118] sm:$0xff]   ;;  %s4633_s14 = sshll.u32 %s6474_s20, 8 }
  0xe5   : > { %5208 = vmatprep.subr.bf16.mxu0 %v5841_v49  ;;  %s7651_s27 = scalar_lea.vmem [#allocation11], %s4633_s14 }
  0xe6   : > { %s4479_s25 = sshll.u32 %s7651_s27, 4  ;;  %s7759_s25 = int_to_ptr.vmem [resolvable:$true] %s4479_s25 }
  0xe7   : > { %s6060_s16 = scalar_lea.vmem %s7759_s25, 4096  ;;  %p6067_p7 = scmp.lt.s32.totalorder %s7759_s25, %s6065_s12 }
  0xe8   : > { %5209 = vmatpush3.bf16.msra.mxu0 %v5843_v51  ;;  %p6061_p4 = scmp.ne.s32.totalorder %s7759_s25, %s6060_s16  ;;  %p6068_p1 = scmp.lt.s32.totalorder %s6066_s17, %s6060_s16 }
  0xe9   : > { %5210 = vmatprep.subr.bf16.mxu0 %v5845_v55 }
  0xea   : > { %p6062_p10 = pnand %p6061_p4, %p7993_p6  ;;  %p6069_p8 = por %p6068_p1, %p6067_p7 }
  0xeb   : > { %5499 = vmatmul.mubr.bf16.gmra.mrb[8].mxu0 %v5795_v15  ;;  %v6534_v15 = vld [vmem:[#allocation7 + $0x200] sm:$0xff]  }
  0xec   : > { %5502 = vmatprep.mubr.bf16.mxu0 %v5796_v17  ;;  %5211 = vmatpush3.bf16.msra.mxu0 %v5847_v57  ;;  %v1473_v17 = vadd.s32 16, %v1471_v14  ;;  %p6063_p13 = pneg %p6062_p10 }
  0xed   : > { %5212 = vmatprep.subr.bf16.mxu0 %v5849_v59 }
  0xee   : > { %vm1607_vm3 = vcmp.lt.s32.totalorder %v1473_v17, 17  ;;  %p6070_p12 = pnand %p6069_p8, %p6063_p13 }
  0xef   : > { %vm1831_vm7 = vmpackc.low %vm1607_vm3, %vm1607_vm3 }
  0xf0   : > { %5213 = vmatpush3.bf16.msra.mxu0 %v5851_v61  ;;  %v1903_v40 = vsel %vm1831_vm7, 65537, %v6164_v22 }
  0xf1   : > { %5214 = vmatprep.subr.bf16.mxu0 %v5855_v1 }
  0xf3   : > { %5503 = vmatmul.mubr.bf16.gmra.mrb[12].mxu0 %v5797_v23  ;;  %v1897_v23 = vsel %vm1825_vm1, 65537, %v6164_v22 }
  0xf4   : > { %5506 = vmatprep.mubr.bf16.mxu0 %v5798_v24  ;;  %5215 = vmatpush3.bf16.msra.mxu0 %v5857_v2  ;;  %v4683_v50 = vcombine.low %v1903_v40, %v1897_v23  ;;  %v5861_v40 = vld [vmem:[#allocation7 + $0x88] sm:$0xff]  }
  0xf5   : > { %5216 = vmatprep.subr.bf16.mxu0 %v5858_v4 }
  0xf6   : > { %vm6575_vm11 = vcmp.ne.s16.totalorder %v4683_v50, 0 }
  0xf8   : > { %5217 = vmatpush3.bf16.msra.mxu0 %v5859_v6 }
  0xf9   : > { %5562 = vmatprep.subr.bf16.mxu0 %v6534_v15 }
  0xfb   : > { %5507 = vmatmul.mubr.bf16.gmra.mrb[16].mxu0 %v5799_v25 }
  0xfc   : > { %5510 = vmatprep.mubr.bf16.mxu0 %v5800_v26 }
 0x103   : > { %5511 = vmatmul.mubr.bf16.gmra.mrb[20].mxu0 %v5801_v27 }
 0x104   : > { %5514 = vmatprep.mubr.bf16.mxu0 %v5802_v28 }
 0x10b   : > { %5515 = vmatmul.mubr.bf16.gmra.mrb[24].mxu0 %v5803_v29 }
 0x10c   : > { %5518 = vmatprep.mubr.bf16.mxu0 %v5804_v30 }
 0x113   : > { %5519 = vmatmul.mubr.bf16.gmra.mrb[28].mxu0 %v5805_v31  ;;  %v4680_v31 = vcombine.low %v1897_v23, %v1897_v23 }
 0x114   : > { %5522 = vmatprep.mubr.bf16.mxu0 %v5806_v32 }
 0x115   : > { %vm6555_vm8 = vcmp.ne.s16.totalorder %v4680_v31, 0 }
 0x11b   : > { %5523 = vmatmul.mubr.bf16.gmra.mrb[32].mxu0 %v5807_v33 }
 0x11c   : > { %5526 = vmatprep.mubr.bf16.mxu0 %v5808_v34  ;;  %v1901_v34 = vsel %vm1829_vm6, 65537, %v6164_v22 }
 0x123   : > { %5527 = vmatmul.mubr.bf16.gmra.mrb[36].mxu0 %v5809_v35  ;;  %v1902_v35 = vsel %vm1830_vm5, 65537, %v6164_v22 }
 0x124   : > { %5530 = vmatprep.mubr.bf16.mxu0 %v5810_v36 }
 0x12b   : > { %5531 = vmatmul.mubr.bf16.gmra.mrb[40].mxu0 %v5811_v37 }
 0x12c   : > { %5534 = vmatprep.mubr.bf16.mxu0 %v5812_v38 }
 0x133   : > { %5535 = vmatmul.mubr.bf16.gmra.mrb[44].mxu0 %v5813_v43 }
 0x134   : > { %5538 = vmatprep.mubr.bf16.mxu0 %v5814_v44  ;;  %v4682_v44 = vcombine.low %v1901_v34, %v1902_v35 }
 0x136   : > { %vm6569_vm9 = vcmp.ne.s16.totalorder %v4682_v44, 0 }
 0x13b   : > { %5539 = vmatmul.mubr.bf16.gmra.mrb[48].mxu0 %v5815_v53 }
 0x13c   : > { %5542 = vmatprep.mubr.bf16.mxu0 %v5816_v54 }
 0x143   : > { %5543 = vmatmul.mubr.bf16.gmra.mrb[52].mxu0 %v5817_v63 }
 0x144   : > { %5546 = vmatprep.mubr.bf16.mxu0 %v5818_v0 }
 0x14b   : > { %5547 = vmatmul.mubr.bf16.gmra.mrb[56].mxu0 %v5819_v3 }
 0x14c   : > { %5550 = vmatprep.mubr.bf16.mxu0 %v5820_v5 }
 0x153   : > { %5551 = vmatmul.mubr.bf16.gmra.mrb[60].mxu0 %v5821_v8 }
 0x154   : > { %5554 = vmatprep.mubr.bf16.mxu0 %v5822_v9 }
 0x15b   : > { %5555 = vmatmul.mubr.bf16.gmra.mrb[64].mxu0 %v5823_v10 }
 0x15c   : > { %5558 = vmatprep.mubr.bf16.mxu0 %v5852_v11 }
 0x163   : > { %5559 = vmatmul.mubr.bf16.gmra.mrb[68].mxu0 %v5853_v12 }
 0x1ae   : > { %v5492_v18 = vpop.f32.mrb[0].mxu0 }
 0x1af   : > { %v1195_v20 = vmul.f32 %v5492_v18, %v6539_v16  ;;  %v899_v21 = vpop.f32.mrb[1].mxu0 }
 0x1b0   : > { %v1193_v24 = vmul.f32 %v6539_v16, %v899_v21  ;;  %v5493_v25 = vpop.f32.mrb[2].mxu0 }
 0x1b1   : > { %v1274_v26 = vadd.f32 %v6545_v19, %v1195_v20  ;;  %v1196_v27 = vmul.f32 %v5493_v25, %v6539_v16  ;;  %v902_v28 = vpop.f32.mrb[3].mxu0  ;;  %v5856_v25 = vld [vmem:[#allocation7 + $0x80] sm:$0xff]  }
 0x1b2   : > { %v1272_v29 = vadd.f32 %v6545_v19, %v1193_v24  ;;  %v1194_v30 = vmul.f32 %v6539_v16, %v902_v28 }
 0x1b3   : > { %v1275_v32 = vadd.f32 %v6545_v19, %v1196_v27  ;;  %v1346_v36 = vmax.f32 %v1274_v26, 0.0 }
 0x1b4   : > { %v1273_v33 = vadd.f32 %v6545_v19, %v1194_v30  ;;  %v1344_v38 = vmax.f32 %v1272_v29, 0.0  ;;  %v5860_v30 = vld [vmem:[#allocation7 + $0xc8] sm:$0xff]  }
 0x1b5   : > { %v1347_v37 = vmax.f32 %v1275_v32, 0.0 }
 0x1b6   : > { %v1345_v39 = vmax.f32 %v1273_v33, 0.0  ;;  %v5496_v42 = vpop.f32.mrb[4].mxu0 }
 0x1b7   : > { %v1417_v43 = vpack.c.bf16 %v1347_v37, %v1346_v36  ;;  %v1199_v45 = vmul.f32 %v5496_v42, %v6539_v16  ;;  %v915_v46 = vpop.f32.mrb[5].mxu0 }
 0x1b8   : > { %v1416_v47 = vpack.c.bf16 %v1345_v39, %v1344_v38  ;;  %v1197_v48 = vmul.f32 %v6539_v16, %v915_v46  ;;  %v5497_v49 = vpop.f32.mrb[6].mxu0 }
 0x1b9   : > { %v1278_v51 = vadd.f32 %v6545_v19, %v1199_v45  ;;  %v1200_v52 = vmul.f32 %v5497_v49, %v6539_v16  ;;  %v918_v53 = vpop.f32.mrb[7].mxu0  ;;  %v2114_v54 = vsel %vm6555_vm8, %v1417_v43, 0 }
 0x1ba   : > { %v2113_v55 = vsel %vm6555_vm8, %v1416_v47, 0  ;;  %v1276_v56 = vadd.f32 %v6545_v19, %v1197_v48  ;;  %v1198_v57 = vmul.f32 %v6539_v16, %v918_v53  ;;  %v2158_v63 = vshll.u32 %v2114_v54, 16  ;;  %v5862_v48 = vld [vmem:[#allocation7 + $0xd0] sm:$0xff]  }
 0x1bb   : > { %v2391_v59 = vrot.slane %v2113_v55, 1  ;;  %v1279_v60 = vadd.f32 %v6545_v19, %v1200_v52  ;;  %v2153_v62 = vshll.u32 %v2113_v55, 16  ;;  %v1350_v1 = vmax.f32 %v1278_v51, 0.0 }
 0x1bc   : > { %v1277_v61 = vadd.f32 %v6545_v19, %v1198_v57  ;;  %v2392_v3 = vrot.slane %v2114_v54, 1  ;;  %v1348_v4 = vmax.f32 %v1276_v56, 0.0  ;;  %v2151_v7 = vshrl.u32 %v2113_v55, 16 }
 0x1bd   : > { %v1351_v2 = vmax.f32 %v1279_v60, 0.0  ;;  %v2155_v8 = vrot.slane %v2153_v62, 1  ;;  %v2160_v20 = vrot.slane %v2158_v63, 1  ;;  %v5873_v62 = vld [vmem:[#allocation7 + $0x208] sm:$0xff]  }
 0x1be   : > { %v1349_v5 = vmax.f32 %v1277_v61, 0.0  ;;  %v5500_v6 = vpop.f32.mrb[8].mxu0  ;;  %v6581_v12 = vsel %vm2390_vm10, %v2391_v59, %v2392_v3  ;;  %v5863_v61 = vld [vmem:[#allocation7 + $0x90] sm:$0xff]  }
 0x1bf   : > { %v1419_v9 = vpack.c.bf16 %v1351_v2, %v1350_v1  ;;  %v1203_v10 = vmul.f32 %v5500_v6, %v6539_v16  ;;  %v931_v11 = vpop.f32.mrb[9].mxu0  ;;  %v2156_v18 = vor.u32 %v2155_v8, %v2151_v7 }
 0x1c0   : > { %v6583_v13 = vpack.c.bf16 %v1349_v5, %v1348_v4  ;;  %v1201_v14 = vmul.f32 %v6539_v16, %v931_v11  ;;  %v5501_v17 = vpop.f32.mrb[10].mxu0  ;;  %v5864_v4 = vld [vmem:[#allocation7 + $0xd8] sm:$0xff]  }
 0x1c1   : > { %v2116_v21 = vsel %vm6575_vm11, %v1419_v9, 0  ;;  %v1282_v22 = vadd.f32 %v6545_v19, %v1203_v10  ;;  %v1204_v23 = vmul.f32 %v5501_v17, %v6539_v16  ;;  %v934_v24 = vpop.f32.mrb[11].mxu0  ;;  %v2161_v28 = vsel %vm2149_vm12, %v2156_v18, %v2160_v20  ;;  %v5865_v18 = vld [vmem:[#allocation7 + $0x98] sm:$0xff]   ;;  %v5875_v20 = vld [vmem:[#allocation7 + $0x210] sm:$0xff]  }
 0x1c2   : > { %v1280_v26 = vadd.f32 %v6545_v19, %v1201_v14  ;;  %v1202_v27 = vmul.f32 %v6539_v16, %v934_v24  ;;  %v2115_v29 = vsel %vm6569_vm9, %v6583_v13, 0  ;;  %3101 = vmatprep.mubr.bf16.mxu1 %v2161_v28  ;;  %v2395_v33 = vrot.slane %v2116_v21, 1 }
 0x1c3   : > { %v1283_v31 = vadd.f32 %v6545_v19, %v1204_v23  ;;  %v2394_v32 = vrot.slane %v2115_v29, 1  ;;  %4788 = vmatmul.mubr.msk.bf16.vlgmr.msra.gmra.mrb[0].mxu1 %vm6555_vm8, %v1416_v47  ;;  %v2165_v35 = vshll.u32 %v2115_v29, 16  ;;  %v1354_v36 = vmax.f32 %v1282_v22, 0.0 }
 0x1c4   : > { %v1281_v34 = vadd.f32 %v6545_v19, %v1202_v27  ;;  %5091 = vmatpush3.bf16.msra.mxu1 %v5856_v25  ;;  %v2170_v39 = vshll.u32 %v2116_v21, 16  ;;  %v1352_v42 = vmax.f32 %v1280_v26, 0.0  ;;  %v2163_v45 = vshrl.u32 %v2115_v29, 16  ;;  %v5866_v26 = vld [vmem:[#allocation7 + $0xe0] sm:$0xff]  }
 0x1c5   : > { %v1355_v37 = vmax.f32 %v1283_v31, 0.0  ;;  %v6601_v38 = vsel %vm2390_vm10, %v2394_v32, %v2395_v33  ;;  %v2167_v46 = vrot.slane %v2165_v35, 1  ;;  %5092 = vmatprep.subr.bf16.mxu1 %v5860_v30 }
 0x1c6   : > { %v1353_v43 = vmax.f32 %v1281_v34, 0.0  ;;  %v5504_v44 = vpop.f32.mrb[12].mxu0  ;;  %3423 = vmatprep.mubr.bf16.mxu0 %v6601_v38  ;;  %v2172_v55 = vrot.slane %v2170_v39, 1  ;;  %v5867_v39 = vld [vmem:[#allocation7 + $0xa0] sm:$0xff]  }
 0x1c7   : > { %v1421_v49 = vpack.c.bf16 %v1355_v37, %v1354_v36  ;;  %v1207_v47 = vmul.f32 %v5504_v44, %v6539_v16  ;;  %v947_v50 = vpop.f32.mrb[13].mxu0  ;;  %v2168_v54 = vor.u32 %v2167_v46, %v2163_v45  ;;  %v5868_v46 = vld [vmem:[#allocation7 + $0xe8] sm:$0xff]  }
 0x1c8   : > { %v6605_v51 = vpack.c.bf16 %v1353_v43, %v1352_v42  ;;  %v1205_v52 = vmul.f32 %v6539_v16, %v947_v50  ;;  %v5505_v53 = vpop.f32.mrb[14].mxu0  ;;  %5093 = vmatpush3.bf16.msra.mxu1 %v5861_v40  ;;  %v5877_v40 = vld [vmem:[#allocation7 + $0x218] sm:$0xff]  }
 0x1c9   : > { %v2118_v56 = vsel %vm6575_vm11, %v1421_v49, 0  ;;  %v1286_v57 = vadd.f32 %v6545_v19, %v1207_v47  ;;  %v1208_v59 = vmul.f32 %v5505_v53, %v6539_v16  ;;  %v950_v60 = vpop.f32.mrb[15].mxu0  ;;  %v2173_v2 = vsel %vm2149_vm12, %v2168_v54, %v2172_v55  ;;  %5094 = vmatprep.subr.bf16.mxu1 %v5862_v48 }
 0x1ca   : > { %v1284_v63 = vadd.f32 %v6545_v19, %v1205_v52  ;;  %v1206_v1 = vmul.f32 %v6539_v16, %v950_v60  ;;  %v2117_v3 = vsel %vm6569_vm9, %v6605_v51, 0  ;;  %3109 = vmatprep.mubr.bf16.mxu1 %v2173_v2  ;;  %3424 = vmatmul.mubr.bf16.vlgmr.msra.gmra.mrb[72].mxu0 %v2173_v2  ;;  %v2398_v7 = vrot.slane %v2118_v56, 1  ;;  %v5870_v2 = vld [vmem:[#allocation7 + $0xf0] sm:$0xff]  }
 0x1cb   : > { %v1287_v5 = vadd.f32 %v6545_v19, %v1208_v59  ;;  %v2397_v6 = vrot.slane %v2117_v3, 1  ;;  %4789 = vmatmul.mubr.msk.bf16.gmra.mrb[4].mxu1 %vm6569_vm9, %v6583_v13  ;;  %v2177_v9 = vshll.u32 %v2117_v3, 16  ;;  %5563 = vmatpush3.bf16.msra.mxu0 %v6534_v15  ;;  %v1358_v10 = vmax.f32 %v1286_v57, 0.0  ;;  %v5869_v57 = vld [vmem:[#allocation7 + $0xa8] sm:$0xff]   ;;  %v5878_v59 = vld [vmem:[#allocation7 + $0x220] sm:$0xff]  }
 0x1cc   : > { %v1285_v8 = vadd.f32 %v6545_v19, %v1206_v1  ;;  %v2182_v17 = vshll.u32 %v2118_v56, 16  ;;  %5095 = vmatpush3.bf16.msra.mxu1 %v5863_v61  ;;  %5564 = vmatprep.subr.bf16.mxu0 %v5873_v62  ;;  %v1356_v21 = vmax.f32 %v1284_v63, 0.0  ;;  %v2175_v24 = vshrl.u32 %v2117_v3, 16 }
 0x1cd   : > { %v1359_v11 = vmax.f32 %v1287_v5, 0.0  ;;  %v6625_v14 = vsel %vm2390_vm10, %v2397_v6, %v2398_v7  ;;  %v2179_v25 = vrot.slane %v2177_v9, 1  ;;  %5096 = vmatprep.subr.bf16.mxu1 %v5864_v4 }
 0x1ce   : > { %v1357_v22 = vmax.f32 %v1285_v8, 0.0  ;;  %v5508_v23 = vpop.f32.mrb[16].mxu0  ;;  %3431 = vmatprep.mubr.bf16.mxu0 %v6625_v14  ;;  %v2184_v33 = vrot.slane %v2182_v17, 1 }
 0x1cf   : > { %v1423_v15 = vpack.c.bf16 %v1359_v11, %v1358_v10  ;;  %v1211_v27 = vmul.f32 %v5508_v23, %v6539_v16  ;;  %v963_v28 = vpop.f32.mrb[17].mxu0  ;;  %v2180_v32 = vor.u32 %v2179_v25, %v2175_v24  ;;  %5565 = vmatpush3.bf16.msra.mxu0 %v5873_v62 }
 0x1d0   : > { %v6629_v29 = vpack.c.bf16 %v1357_v22, %v1356_v21  ;;  %v1209_v30 = vmul.f32 %v6539_v16, %v963_v28  ;;  %v5509_v31 = vpop.f32.mrb[18].mxu0  ;;  %5097 = vmatpush3.bf16.msra.mxu1 %v5865_v18  ;;  %5566 = vmatprep.subr.bf16.mxu0 %v5875_v20  ;;  %v5871_v21 = vld [vmem:[#allocation7 + $0xb0] sm:$0xff]   ;;  %v5879_v22 = vld [vmem:[#allocation7 + $0x228] sm:$0xff]  }
 0x1d1   : > { %v2120_v34 = vsel %vm6575_vm11, %v1423_v15, 0  ;;  %v1290_v35 = vadd.f32 %v6545_v19, %v1211_v27  ;;  %v1212_v36 = vmul.f32 %v5509_v31, %v6539_v16  ;;  %v966_v37 = vpop.f32.mrb[19].mxu0  ;;  %v6639_v44 = vsel %vm2149_vm12, %v2180_v32, %v2184_v33  ;;  %5098 = vmatprep.subr.bf16.mxu1 %v5866_v26  ;;  %v5874_v15 = vld [vmem:[#allocation7 + $0xf8] sm:$0xff]  }
 0x1d2   : > { %v1288_v42 = vadd.f32 %v6545_v19, %v1209_v30  ;;  %v1210_v43 = vmul.f32 %v6539_v16, %v966_v37  ;;  %v2119_v45 = vsel %vm6569_vm9, %v6629_v29, 0  ;;  %3117 = vmatprep.mubr.bf16.mxu1 %v6639_v44  ;;  %3432 = vmatmul.mubr.bf16.gmra.mrb[76].mxu0 %v6639_v44  ;;  %v2401_v47 = vrot.slane %v2120_v34, 1  ;;  %v5876_v37 = vld [vmem:[#allocation7 + $0xb8] sm:$0xff]  }
 0x1d3   : > { %v1291_v48 = vadd.f32 %v6545_v19, %v1212_v36  ;;  %v2400_v49 = vrot.slane %v2119_v45, 1  ;;  %4790 = vmatmul.mubr.msk.bf16.gmra.mrb[8].mxu1 %vm6569_vm9, %v6605_v51  ;;  %v2189_v52 = vshll.u32 %v2119_v45, 16  ;;  %5567 = vmatpush3.bf16.msra.mxu0 %v5875_v20  ;;  %v1362_v53 = vmax.f32 %v1290_v35, 0.0 }
 0x1d4   : > { %v1289_v50 = vadd.f32 %v6545_v19, %v1210_v43  ;;  %v2194_v56 = vshll.u32 %v2120_v34, 16  ;;  %5099 = vmatpush3.bf16.msra.mxu1 %v5867_v39  ;;  %5568 = vmatprep.subr.bf16.mxu0 %v5877_v40  ;;  %v1360_v60 = vmax.f32 %v1288_v42, 0.0  ;;  %v2187_v63 = vshrl.u32 %v2119_v45, 16  ;;  %v5881_v39 = vld [vmem:[#allocation7 + $0x230] sm:$0xff]  }
 0x1d5   : > { %v1363_v54 = vmax.f32 %v1291_v48, 0.0  ;;  %v6652_v55 = vsel %vm2390_vm10, %v2400_v49, %v2401_v47  ;;  %v2191_v1 = vrot.slane %v2189_v52, 1  ;;  %5100 = vmatprep.subr.bf16.mxu1 %v5868_v46  ;;  %v5880_v48 = vld [vmem:[#allocation7 + $0x1c0] sm:$0xff]  }
 0x1d6   : > { %v1361_v61 = vmax.f32 %v1289_v50, 0.0  ;;  %v5512_v62 = vpop.f32.mrb[20].mxu0  ;;  %3439 = vmatprep.mubr.bf16.mxu0 %v6652_v55  ;;  %v2196_v10 = vrot.slane %v2194_v56, 1 }
 0x1d7   : > { %v1425_v3 = vpack.c.bf16 %v1363_v54, %v1362_v53  ;;  %v1215_v4 = vmul.f32 %v5512_v62, %v6539_v16  ;;  %v979_v5 = vpop.f32.mrb[21].mxu0  ;;  %v2192_v9 = vor.u32 %v2191_v1, %v2187_v63  ;;  %5569 = vmatpush3.bf16.msra.mxu0 %v5877_v40  ;;  %v5883_v63 = vld [vmem:[#allocation7 + $0x238] sm:$0xff]  }
 0x1d8   : > { %v6656_v6 = vpack.c.bf16 %v1361_v61, %v1360_v60  ;;  %v1213_v7 = vmul.f32 %v6539_v16, %v979_v5  ;;  %v5513_v8 = vpop.f32.mrb[22].mxu0  ;;  %5101 = vmatpush3.bf16.msra.mxu1 %v5869_v57  ;;  %5570 = vmatprep.subr.bf16.mxu0 %v5878_v59 }
 0x1d9   : > { %v2122_v11 = vsel %vm6575_vm11, %v1425_v3, 0  ;;  %v1294_v17 = vadd.f32 %v6545_v19, %v1215_v4  ;;  %v1216_v18 = vmul.f32 %v5513_v8, %v6539_v16  ;;  %v982_v20 = vpop.f32.mrb[23].mxu0  ;;  %v6666_v25 = vsel %vm2149_vm12, %v2192_v9, %v2196_v10  ;;  %5102 = vmatprep.subr.bf16.mxu1 %v5870_v2 }
 0x1da   : > { %v1292_v23 = vadd.f32 %v6545_v19, %v1213_v7  ;;  %v1214_v24 = vmul.f32 %v6539_v16, %v982_v20  ;;  %v2121_v26 = vsel %vm6569_vm9, %v6656_v6, 0  ;;  %3125 = vmatprep.mubr.bf16.mxu1 %v6666_v25  ;;  %3440 = vmatmul.mubr.bf16.gmra.mrb[80].mxu0 %v6666_v25  ;;  %v2404_v30 = vrot.slane %v2122_v11, 1 }
 0x1db   : > { %v1295_v27 = vadd.f32 %v6545_v19, %v1216_v18  ;;  %v2403_v28 = vrot.slane %v2121_v26, 1  ;;  %4791 = vmatmul.mubr.msk.bf16.gmra.mrb[12].mxu1 %vm6569_vm9, %v6629_v29  ;;  %v2201_v32 = vshll.u32 %v2121_v26, 16  ;;  %5571 = vmatpush3.bf16.msra.mxu0 %v5878_v59  ;;  %v1366_v33 = vmax.f32 %v1294_v17, 0.0 }
 0x1dc   : > { %v1293_v31 = vadd.f32 %v6545_v19, %v1214_v24  ;;  %v2206_v36 = vshll.u32 %v2122_v11, 16  ;;  %5103 = vmatpush3.bf16.msra.mxu1 %v5871_v21  ;;  %5572 = vmatprep.subr.bf16.mxu0 %v5879_v22  ;;  %v1364_v40 = vmax.f32 %v1292_v23, 0.0  ;;  %v2199_v45 = vshrl.u32 %v2121_v26, 16 }
 0x1dd   : > { %v1367_v34 = vmax.f32 %v1295_v27, 0.0  ;;  %v6679_v35 = vsel %vm2390_vm10, %v2403_v28, %v2404_v30  ;;  %v2203_v46 = vrot.slane %v2201_v32, 1  ;;  %5104 = vmatprep.subr.bf16.mxu1 %v5874_v15 }
 0x1de   : > { %v1365_v42 = vmax.f32 %v1293_v31, 0.0  ;;  %v5516_v43 = vpop.f32.mrb[24].mxu0  ;;  %3447 = vmatprep.mubr.bf16.mxu0 %v6679_v35  ;;  %v2208_v57 = vrot.slane %v2206_v36, 1 }
 0x1df   : > { %v1427_v49 = vpack.c.bf16 %v1367_v34, %v1366_v33  ;;  %v1219_v47 = vmul.f32 %v5516_v43, %v6539_v16  ;;  %v995_v50 = vpop.f32.mrb[25].mxu0  ;;  %v2204_v56 = vor.u32 %v2203_v46, %v2199_v45  ;;  %5573 = vmatpush3.bf16.msra.mxu0 %v5879_v22 }
 0x1e0   : > { %v6683_v52 = vpack.c.bf16 %v1365_v42, %v1364_v40  ;;  %v1217_v53 = vmul.f32 %v6539_v16, %v995_v50  ;;  %v5517_v54 = vpop.f32.mrb[26].mxu0  ;;  %5105 = vmatpush3.bf16.msra.mxu1 %v5876_v37  ;;  %5574 = vmatprep.subr.bf16.mxu0 %v5881_v39 }
 0x1e1   : > { %v2124_v59 = vsel %vm6575_vm11, %v1427_v49, 0  ;;  %v1298_v60 = vadd.f32 %v6545_v19, %v1219_v47  ;;  %v1220_v61 = vmul.f32 %v5517_v54, %v6539_v16  ;;  %v998_v62 = vpop.f32.mrb[27].mxu0  ;;  %v6693_v3 = vsel %vm2149_vm12, %v2204_v56, %v2208_v57  ;;  %5314 = vmatprep.subr.bf16.mxu1 %v5880_v48 }
 0x1e2   : > { %v1296_v1 = vadd.f32 %v6545_v19, %v1217_v53  ;;  %v1218_v2 = vmul.f32 %v6539_v16, %v998_v62  ;;  %v2123_v4 = vsel %vm6569_vm9, %v6683_v52, 0  ;;  %3133 = vmatprep.mubr.bf16.mxu1 %v6693_v3  ;;  %3448 = vmatmul.mubr.bf16.gmra.mrb[84].mxu0 %v6693_v3  ;;  %v2407_v8 = vrot.slane %v2124_v59, 1 }
 0x1e3   : > { %v1299_v5 = vadd.f32 %v6545_v19, %v1220_v61  ;;  %v2406_v7 = vrot.slane %v2123_v4, 1  ;;  %4792 = vmatmul.mubr.msk.bf16.gmra.mrb[16].mxu1 %vm6569_vm9, %v6656_v6  ;;  %v2213_v10 = vshll.u32 %v2123_v4, 16  ;;  %5575 = vmatpush3.bf16.msra.mxu0 %v5881_v39  ;;  %v1370_v11 = vmax.f32 %v1298_v60, 0.0 }
 0x1e4   : > { %v1297_v9 = vadd.f32 %v6545_v19, %v1218_v2  ;;  %v2218_v20 = vshll.u32 %v2124_v59, 16  ;;  %5576 = vmatprep.subr.bf16.mxu0 %v5883_v63  ;;  %v1368_v21 = vmax.f32 %v1296_v1, 0.0  ;;  %v2211_v24 = vshrl.u32 %v2123_v4, 16 }
 0x1e5   : > { %v1371_v17 = vmax.f32 %v1299_v5, 0.0  ;;  %v6706_v18 = vsel %vm2390_vm10, %v2406_v7, %v2407_v8  ;;  %v2215_v26 = vrot.slane %v2213_v10, 1 }
 0x1e6   : > { %v1369_v22 = vmax.f32 %v1297_v9, 0.0  ;;  %v5520_v23 = vpop.f32.mrb[28].mxu0  ;;  %3455 = vmatprep.mubr.bf16.mxu0 %v6706_v18  ;;  %v2220_v34 = vrot.slane %v2218_v20, 1 }
 0x1e7   : > { %v1429_v15 = vpack.c.bf16 %v1371_v17, %v1370_v11  ;;  %v1223_v27 = vmul.f32 %v5520_v23, %v6539_v16  ;;  %v1011_v28 = vpop.f32.mrb[29].mxu0  ;;  %v2216_v33 = vor.u32 %v2215_v26, %v2211_v24  ;;  %5577 = vmatpush3.bf16.msra.mxu0 %v5883_v63 }
 0x1e8   : > { %v6710_v30 = vpack.c.bf16 %v1369_v22, %v1368_v21  ;;  %v1221_v31 = vmul.f32 %v6539_v16, %v1011_v28  ;;  %v5521_v32 = vpop.f32.mrb[30].mxu0 }
 0x1e9   : > { %v2126_v36 = vsel %vm6575_vm11, %v1429_v15, 0  ;;  %v1302_v37 = vadd.f32 %v6545_v19, %v1223_v27  ;;  %v1224_v39 = vmul.f32 %v5521_v32, %v6539_v16  ;;  %v1014_v40 = vpop.f32.mrb[31].mxu0  ;;  %v6720_v45 = vsel %vm2149_vm12, %v2216_v33, %v2220_v34 }
 0x1ea   : > { %v1300_v42 = vadd.f32 %v6545_v19, %v1221_v31  ;;  %v1222_v43 = vmul.f32 %v6539_v16, %v1014_v40  ;;  %v2125_v46 = vsel %vm6569_vm9, %v6710_v30, 0  ;;  %3141 = vmatprep.mubr.bf16.mxu1 %v6720_v45  ;;  %3456 = vmatmul.mubr.bf16.gmra.mrb[88].mxu0 %v6720_v45  ;;  %v2410_v47 = vrot.slane %v2126_v36, 1 }
 0x1eb   : > { %v1303_v48 = vadd.f32 %v6545_v19, %v1224_v39  ;;  %v2409_v49 = vrot.slane %v2125_v46, 1  ;;  %4793 = vmatmul.mubr.msk.bf16.gmra.mrb[20].mxu1 %vm6569_vm9, %v6683_v52  ;;  %v2225_v53 = vshll.u32 %v2125_v46, 16  ;;  %v1374_v54 = vmax.f32 %v1302_v37, 0.0 }
 0x1ec   : > { %v1301_v50 = vadd.f32 %v6545_v19, %v1222_v43  ;;  %v2230_v59 = vshll.u32 %v2126_v36, 16  ;;  %v1372_v60 = vmax.f32 %v1300_v42, 0.0  ;;  %v2223_v63 = vshrl.u32 %v2125_v46, 16 }
 0x1ed   : > { %v1375_v56 = vmax.f32 %v1303_v48, 0.0  ;;  %v6733_v57 = vsel %vm2390_vm10, %v2409_v49, %v2410_v47  ;;  %v2227_v1 = vrot.slane %v2225_v53, 1 }
 0x1ee   : > { %v1373_v61 = vmax.f32 %v1301_v50, 0.0  ;;  %v5524_v62 = vpop.f32.mrb[32].mxu0  ;;  %3463 = vmatprep.mubr.bf16.mxu0 %v6733_v57  ;;  %v2232_v11 = vrot.slane %v2230_v59, 1 }
 0x1ef   : > { %v1431_v2 = vpack.c.bf16 %v1375_v56, %v1374_v54  ;;  %v1227_v4 = vmul.f32 %v5524_v62, %v6539_v16  ;;  %v1027_v5 = vpop.f32.mrb[33].mxu0  ;;  %v2228_v10 = vor.u32 %v2227_v1, %v2223_v63 }
 0x1f0   : > { %v6737_v7 = vpack.c.bf16 %v1373_v61, %v1372_v60  ;;  %v1225_v8 = vmul.f32 %v6539_v16, %v1027_v5  ;;  %v5525_v9 = vpop.f32.mrb[34].mxu0 }
 0x1f1   : > { %v2128_v17 = vsel %vm6575_vm11, %v1431_v2, 0  ;;  %v1306_v20 = vadd.f32 %v6545_v19, %v1227_v4  ;;  %v1228_v21 = vmul.f32 %v5525_v9, %v6539_v16  ;;  %v1030_v22 = vpop.f32.mrb[35].mxu0  ;;  %v6747_v26 = vsel %vm2149_vm12, %v2228_v10, %v2232_v11 }
 0x1f2   : > { %v1304_v23 = vadd.f32 %v6545_v19, %v1225_v8  ;;  %v1226_v24 = vmul.f32 %v6539_v16, %v1030_v22  ;;  %v2127_v15 = vsel %vm6569_vm9, %v6737_v7, 0  ;;  %3149 = vmatprep.mubr.bf16.mxu1 %v6747_v26  ;;  %3464 = vmatmul.mubr.bf16.gmra.mrb[92].mxu0 %v6747_v26  ;;  %v2413_v31 = vrot.slane %v2128_v17, 1 }
 0x1f3   : > { %v1307_v27 = vadd.f32 %v6545_v19, %v1228_v21  ;;  %v2412_v28 = vrot.slane %v2127_v15, 1  ;;  %4794 = vmatmul.mubr.msk.bf16.gmra.mrb[24].mxu1 %vm6569_vm9, %v6710_v30  ;;  %v2237_v33 = vshll.u32 %v2127_v15, 16  ;;  %v1378_v34 = vmax.f32 %v1306_v20, 0.0 }
 0x1f4   : > { %v1305_v32 = vadd.f32 %v6545_v19, %v1226_v24  ;;  %v2242_v39 = vshll.u32 %v2128_v17, 16  ;;  %v1376_v40 = vmax.f32 %v1304_v23, 0.0  ;;  %v2235_v46 = vshrl.u32 %v2127_v15, 16 }
 0x1f5   : > { %v1379_v36 = vmax.f32 %v1307_v27, 0.0  ;;  %v6760_v37 = vsel %vm2390_vm10, %v2412_v28, %v2413_v31  ;;  %v2239_v48 = vrot.slane %v2237_v33, 1 }
 0x1f6   : > { %v1377_v42 = vmax.f32 %v1305_v32, 0.0  ;;  %v5528_v43 = vpop.f32.mrb[36].mxu0  ;;  %3471 = vmatprep.mubr.bf16.mxu0 %v6760_v37  ;;  %v2244_v60 = vrot.slane %v2242_v39, 1 }
 0x1f7   : > { %v1433_v49 = vpack.c.bf16 %v1379_v36, %v1378_v34  ;;  %v1231_v47 = vmul.f32 %v5528_v43, %v6539_v16  ;;  %v1043_v50 = vpop.f32.mrb[37].mxu0  ;;  %v2240_v59 = vor.u32 %v2239_v48, %v2235_v46 }
 0x1f8   : > { %v6764_v53 = vpack.c.bf16 %v1377_v42, %v1376_v40  ;;  %v1229_v54 = vmul.f32 %v6539_v16, %v1043_v50  ;;  %v5529_v56 = vpop.f32.mrb[38].mxu0 }
 0x1f9   : > { %v2130_v61 = vsel %vm6575_vm11, %v1433_v49, 0  ;;  %v1310_v62 = vadd.f32 %v6545_v19, %v1231_v47  ;;  %v1232_v63 = vmul.f32 %v5529_v56, %v6539_v16  ;;  %v1046_v1 = vpop.f32.mrb[39].mxu0  ;;  %v6774_v5 = vsel %vm2149_vm12, %v2240_v59, %v2244_v60 }
 0x1fa   : > { %v1308_v2 = vadd.f32 %v6545_v19, %v1229_v54  ;;  %v1230_v4 = vmul.f32 %v6539_v16, %v1046_v1  ;;  %v2129_v8 = vsel %vm6569_vm9, %v6764_v53, 0  ;;  %3157 = vmatprep.mubr.bf16.mxu1 %v6774_v5  ;;  %3472 = vmatmul.mubr.bf16.gmra.mrb[96].mxu0 %v6774_v5  ;;  %v2416_v11 = vrot.slane %v2130_v61, 1 }
 0x1fb   : > { %v1311_v9 = vadd.f32 %v6545_v19, %v1232_v63  ;;  %v2415_v10 = vrot.slane %v2129_v8, 1  ;;  %4795 = vmatmul.mubr.msk.bf16.gmra.mrb[28].mxu1 %vm6569_vm9, %v6737_v7  ;;  %v2249_v20 = vshll.u32 %v2129_v8, 16  ;;  %v1382_v21 = vmax.f32 %v1310_v62, 0.0 }
 0x1fc   : > { %v1309_v17 = vadd.f32 %v6545_v19, %v1230_v4  ;;  %v2254_v24 = vshll.u32 %v2130_v61, 16  ;;  %v1380_v15 = vmax.f32 %v1308_v2, 0.0  ;;  %v2247_v31 = vshrl.u32 %v2129_v8, 16 }
 0x1fd   : > { %v1383_v22 = vmax.f32 %v1311_v9, 0.0  ;;  %v6787_v23 = vsel %vm2390_vm10, %v2415_v10, %v2416_v11  ;;  %v2251_v32 = vrot.slane %v2249_v20, 1 }
 0x1fe   : > { %v1381_v27 = vmax.f32 %v1309_v17, 0.0  ;;  %v5532_v28 = vpop.f32.mrb[40].mxu0  ;;  %3479 = vmatprep.mubr.bf16.mxu0 %v6787_v23  ;;  %v2256_v46 = vrot.slane %v2254_v24, 1 }
 0x1ff   : > { %v1435_v33 = vpack.c.bf16 %v1383_v22, %v1382_v21  ;;  %v1235_v34 = vmul.f32 %v5532_v28, %v6539_v16  ;;  %v1059_v36 = vpop.f32.mrb[41].mxu0  ;;  %v2252_v43 = vor.u32 %v2251_v32, %v2247_v31 }
 0x200   : > { %v6791_v39 = vpack.c.bf16 %v1381_v27, %v1380_v15  ;;  %v1233_v40 = vmul.f32 %v6539_v16, %v1059_v36  ;;  %v5533_v42 = vpop.f32.mrb[42].mxu0 }
 0x201   : > { %v2132_v48 = vsel %vm6575_vm11, %v1435_v33, 0  ;;  %v1314_v49 = vadd.f32 %v6545_v19, %v1235_v34  ;;  %v1236_v47 = vmul.f32 %v5533_v42, %v6539_v16  ;;  %v1062_v50 = vpop.f32.mrb[43].mxu0  ;;  %v6801_v59 = vsel %vm2149_vm12, %v2252_v43, %v2256_v46 }
 0x202   : > { %v1312_v54 = vadd.f32 %v6545_v19, %v1233_v40  ;;  %v1234_v56 = vmul.f32 %v6539_v16, %v1062_v50  ;;  %7890 = vst [vmem:[#allocation25_spill] sm:$0xff] %v6801_v59  ;;  %v2131_v60 = vsel %vm6569_vm9, %v6791_v39, 0  ;;  %3165 = vmatprep.mubr.bf16.mxu1 %v6801_v59  ;;  %3480 = vmatmul.mubr.bf16.gmra.mrb[100].mxu0 %v6801_v59  ;;  %v2419_v63 = vrot.slane %v2132_v48, 1 }
 0x203   : > { %v1315_v61 = vadd.f32 %v6545_v19, %v1236_v47  ;;  %v2418_v62 = vrot.slane %v2131_v60, 1  ;;  %4796 = vmatmul.mubr.msk.bf16.gmra.mrb[32].mxu1 %vm6569_vm9, %v6764_v53  ;;  %v2261_v2 = vshll.u32 %v2131_v60, 16  ;;  %v1386_v4 = vmax.f32 %v1314_v49, 0.0 }
 0x204   : > { %v1313_v1 = vadd.f32 %v6545_v19, %v1234_v56  ;;  %v2266_v10 = vshll.u32 %v2132_v48, 16  ;;  %v1384_v11 = vmax.f32 %v1312_v54, 0.0  ;;  %v2259_v21 = vshrl.u32 %v2131_v60, 16 }
 0x205   : > { %v1387_v8 = vmax.f32 %v1315_v61, 0.0  ;;  %v6814_v9 = vsel %vm2390_vm10, %v2418_v62, %v2419_v63  ;;  %v2263_v22 = vrot.slane %v2261_v2, 1 }
 0x206   : > { %v1385_v17 = vmax.f32 %v1313_v1, 0.0  ;;  %v5536_v20 = vpop.f32.mrb[44].mxu0  ;;  %3487 = vmatprep.mubr.bf16.mxu0 %v6814_v9  ;;  %v2268_v34 = vrot.slane %v2266_v10, 1 }
 0x207   : > { %v1437_v24 = vpack.c.bf16 %v1387_v8, %v1386_v4  ;;  %v1239_v15 = vmul.f32 %v5536_v20, %v6539_v16  ;;  %v1075_v27 = vpop.f32.mrb[45].mxu0  ;;  %v2264_v33 = vor.u32 %v2263_v22, %v2259_v21 }
 0x208   : > { %v6818_v28 = vpack.c.bf16 %v1385_v17, %v1384_v11  ;;  %v1237_v31 = vmul.f32 %v6539_v16, %v1075_v27  ;;  %v5537_v32 = vpop.f32.mrb[46].mxu0 }
 0x209   : > { %v2134_v36 = vsel %vm6575_vm11, %v1437_v24, 0  ;;  %v1318_v40 = vadd.f32 %v6545_v19, %v1239_v15  ;;  %v1240_v42 = vmul.f32 %v5537_v32, %v6539_v16  ;;  %v1078_v43 = vpop.f32.mrb[47].mxu0  ;;  %v6828_v49 = vsel %vm2149_vm12, %v2264_v33, %v2268_v34 }
 0x20a   : > { %v1316_v46 = vadd.f32 %v6545_v19, %v1237_v31  ;;  %v1238_v48 = vmul.f32 %v6539_v16, %v1078_v43  ;;  %7891 = vst [vmem:[#allocation26_spill] sm:$0xff] %v6828_v49  ;;  %v2133_v47 = vsel %vm6569_vm9, %v6818_v28, 0  ;;  %3173 = vmatprep.mubr.bf16.mxu1 %v6828_v49  ;;  %3488 = vmatmul.mubr.bf16.gmra.mrb[104].mxu0 %v6828_v49  ;;  %v2422_v56 = vrot.slane %v2134_v36, 1 }
 0x20b   : > { %v1319_v50 = vadd.f32 %v6545_v19, %v1240_v42  ;;  %v2421_v54 = vrot.slane %v2133_v47, 1  ;;  %4797 = vmatmul.mubr.msk.bf16.gmra.mrb[36].mxu1 %vm6569_vm9, %v6791_v39  ;;  %v2273_v61 = vshll.u32 %v2133_v47, 16  ;;  %v1390_v62 = vmax.f32 %v1318_v40, 0.0 }
 0x20c   : > { %v1317_v60 = vadd.f32 %v6545_v19, %v1238_v48  ;;  %v2278_v2 = vshll.u32 %v2134_v36, 16  ;;  %v1388_v4 = vmax.f32 %v1316_v46, 0.0  ;;  %v2271_v11 = vshrl.u32 %v2133_v47, 16 }
 0x20d   : > { %v1391_v63 = vmax.f32 %v1319_v50, 0.0  ;;  %v6841_v1 = vsel %vm2390_vm10, %v2421_v54, %v2422_v56  ;;  %v2275_v17 = vrot.slane %v2273_v61, 1 }
 0x20e   : > { %v1389_v8 = vmax.f32 %v1317_v60, 0.0  ;;  %v5540_v10 = vpop.f32.mrb[48].mxu0  ;;  %3495 = vmatprep.mubr.bf16.mxu0 %v6841_v1  ;;  %v2280_v32 = vrot.slane %v2278_v2, 1 }
 0x20f   : > { %v1439_v20 = vpack.c.bf16 %v1391_v63, %v1390_v62  ;;  %v1243_v21 = vmul.f32 %v5540_v10, %v6539_v16  ;;  %v1091_v22 = vpop.f32.mrb[49].mxu0  ;;  %v2276_v31 = vor.u32 %v2275_v17, %v2271_v11 }
 0x210   : > { %v6845_v24 = vpack.c.bf16 %v1389_v8, %v1388_v4  ;;  %v1241_v15 = vmul.f32 %v6539_v16, %v1091_v22  ;;  %v5541_v27 = vpop.f32.mrb[50].mxu0 }
 0x211   : > { %v2136_v33 = vsel %vm6575_vm11, %v1439_v20, 0  ;;  %v1322_v34 = vadd.f32 %v6545_v19, %v1243_v21  ;;  %v1244_v36 = vmul.f32 %v5541_v27, %v6539_v16  ;;  %v1094_v40 = vpop.f32.mrb[51].mxu0  ;;  %v6855_v46 = vsel %vm2149_vm12, %v2276_v31, %v2280_v32 }
 0x212   : > { %v1320_v42 = vadd.f32 %v6545_v19, %v1241_v15  ;;  %v1242_v43 = vmul.f32 %v6539_v16, %v1094_v40  ;;  %7892 = vst [vmem:[#allocation27_spill] sm:$0xff] %v6855_v46  ;;  %v2135_v48 = vsel %vm6569_vm9, %v6845_v24, 0  ;;  %3181 = vmatprep.mubr.bf16.mxu1 %v6855_v46  ;;  %3496 = vmatmul.mubr.bf16.gmra.mrb[108].mxu0 %v6855_v46  ;;  %v2425_v54 = vrot.slane %v2136_v33, 1 }
 0x213   : > { %v1323_v47 = vadd.f32 %v6545_v19, %v1244_v36  ;;  %v2424_v50 = vrot.slane %v2135_v48, 1  ;;  %4798 = vmatmul.mubr.msk.bf16.gmra.mrb[40].mxu1 %vm6569_vm9, %v6818_v28  ;;  %v2285_v60 = vshll.u32 %v2135_v48, 16  ;;  %v1394_v61 = vmax.f32 %v1322_v34, 0.0 }
 0x214   : > { %v1321_v56 = vadd.f32 %v6545_v19, %v1242_v43  ;;  %v2290_v2 = vshll.u32 %v2136_v33, 16  ;;  %v1392_v4 = vmax.f32 %v1320_v42, 0.0  ;;  %v2283_v11 = vshrl.u32 %v2135_v48, 16 }
 0x215   : > { %v1395_v62 = vmax.f32 %v1323_v47, 0.0  ;;  %v6868_v63 = vsel %vm2390_vm10, %v2424_v50, %v2425_v54  ;;  %v2287_v17 = vrot.slane %v2285_v60, 1 }
 0x216   : > { %v1393_v8 = vmax.f32 %v1321_v56, 0.0  ;;  %v5544_v10 = vpop.f32.mrb[52].mxu0  ;;  %3503 = vmatprep.mubr.bf16.mxu0 %v6868_v63  ;;  %v2292_v34 = vrot.slane %v2290_v2, 1 }
 0x217   : > { %v1441_v20 = vpack.c.bf16 %v1395_v62, %v1394_v61  ;;  %v1247_v21 = vmul.f32 %v5544_v10, %v6539_v16  ;;  %v1107_v22 = vpop.f32.mrb[53].mxu0  ;;  %v2288_v32 = vor.u32 %v2287_v17, %v2283_v11 }
 0x218   : > { %v6872_v15 = vpack.c.bf16 %v1393_v8, %v1392_v4  ;;  %v1245_v27 = vmul.f32 %v6539_v16, %v1107_v22  ;;  %v5545_v31 = vpop.f32.mrb[54].mxu0 }
 0x219   : > { %v2138_v33 = vsel %vm6575_vm11, %v1441_v20, 0  ;;  %v1326_v36 = vadd.f32 %v6545_v19, %v1247_v21  ;;  %v1248_v40 = vmul.f32 %v5545_v31, %v6539_v16  ;;  %v1110_v42 = vpop.f32.mrb[55].mxu0  ;;  %v6882_v47 = vsel %vm2149_vm12, %v2288_v32, %v2292_v34 }
 0x21a   : > { %v1324_v43 = vadd.f32 %v6545_v19, %v1245_v27  ;;  %v1246_v48 = vmul.f32 %v6539_v16, %v1110_v42  ;;  %7893 = vst [vmem:[#allocation28_spill] sm:$0xff] %v6882_v47  ;;  %v2137_v50 = vsel %vm6569_vm9, %v6872_v15, 0  ;;  %3189 = vmatprep.mubr.bf16.mxu1 %v6882_v47  ;;  %3504 = vmatmul.mubr.bf16.gmra.mrb[112].mxu0 %v6882_v47  ;;  %v2428_v60 = vrot.slane %v2138_v33, 1 }
 0x21b   : > { %v1327_v54 = vadd.f32 %v6545_v19, %v1248_v40  ;;  %v2427_v56 = vrot.slane %v2137_v50, 1  ;;  %4799 = vmatmul.mubr.msk.bf16.gmra.mrb[44].mxu1 %vm6569_vm9, %v6845_v24  ;;  %v2297_v16 = vshll.u32 %v2137_v50, 16  ;;  %v1398_v62 = vmax.f32 %v1326_v36, 0.0 }
 0x21c   : > { %v1325_v61 = vadd.f32 %v6545_v19, %v1246_v48  ;;  %v2302_v8 = vshll.u32 %v2138_v33, 16  ;;  %v1396_v10 = vmax.f32 %v1324_v43, 0.0  ;;  %v2295_v20 = vshrl.u32 %v2137_v50, 16  ;;  %v6901_v19 = vld [vmem:[%s7813_s2] ss:$0 sm:$0xff] }
 0x21d   : > { %v1399_v2 = vmax.f32 %v1327_v54, 0.0  ;;  %v6895_v4 = vsel %vm2390_vm10, %v2427_v56, %v2428_v60  ;;  %v2299_v21 = vrot.slane %v2297_v16, 1  ;;  %v6912_v43 = vld [vmem:[%s7814_s3] ss:$0 sm:$0xff] }
 0x21e   : > { %v1397_v11 = vmax.f32 %v1325_v61, 0.0  ;;  %v5548_v17 = vpop.f32.mrb[56].mxu0  ;;  %3511 = vmatprep.mubr.bf16.mxu0 %v6895_v4  ;;  %v2304_v40 = vrot.slane %v2302_v8, 1 }
 0x21f   : > { %v1443_v22 = vpack.c.bf16 %v1399_v2, %v1398_v62  ;;  %v1251_v27 = vmul.f32 %v6901_v19, %v5548_v17  ;;  %v1123_v31 = vpop.f32.mrb[57].mxu0  ;;  %v2300_v36 = vor.u32 %v2299_v21, %v2295_v20 }
 0x220   : > { %v6904_v32 = vpack.c.bf16 %v1397_v11, %v1396_v10  ;;  %v1249_v34 = vmul.f32 %v6901_v19, %v1123_v31  ;;  %v5549_v33 = vpop.f32.mrb[58].mxu0 }
 0x221   : > { %v2140_v42 = vsel %vm6575_vm11, %v1443_v22, 0  ;;  %v1330_v48 = vadd.f32 %v6912_v43, %v1251_v27  ;;  %v1252_v50 = vmul.f32 %v6901_v19, %v5549_v33  ;;  %v1126_v54 = vpop.f32.mrb[59].mxu0  ;;  %v6919_v61 = vsel %vm2149_vm12, %v2300_v36, %v2304_v40 }
 0x222   : > { %v1328_v56 = vadd.f32 %v6912_v43, %v1249_v34  ;;  %v1250_v60 = vmul.f32 %v6901_v19, %v1126_v54  ;;  %7894 = vst [vmem:[#allocation29_spill] sm:$0xff] %v6919_v61  ;;  %v2139_v16 = vsel %vm6569_vm9, %v6904_v32, 0  ;;  %3197 = vmatprep.mubr.bf16.mxu1 %v6919_v61  ;;  %3512 = vmatmul.mubr.bf16.gmra.mrb[116].mxu0 %v6919_v61  ;;  %v2431_v8 = vrot.slane %v2140_v42, 1 }
 0x223   : > { %v1331_v62 = vadd.f32 %v6912_v43, %v1252_v50  ;;  %v2430_v2 = vrot.slane %v2139_v16, 1  ;;  %4800 = vmatmul.mubr.msk.bf16.gmra.mrb[48].mxu1 %vm6569_vm9, %v6872_v15  ;;  %v2309_v11 = vshll.u32 %v2139_v16, 16  ;;  %v1402_v17 = vmax.f32 %v1330_v48, 0.0 }
 0x224   : > { %v1329_v10 = vadd.f32 %v6912_v43, %v1250_v60  ;;  %v2314_v22 = vshll.u32 %v2140_v42, 16  ;;  %v1400_v27 = vmax.f32 %v1328_v56, 0.0  ;;  %v2307_v33 = vshrl.u32 %v2139_v16, 16 }
 0x225   : > { %v1403_v20 = vmax.f32 %v1331_v62, 0.0  ;;  %v6932_v21 = vsel %vm2390_vm10, %v2430_v2, %v2431_v8  ;;  %v2311_v36 = vrot.slane %v2309_v11, 1 }
 0x226   : > { %v1401_v31 = vmax.f32 %v1329_v10, 0.0  ;;  %v5552_v34 = vpop.f32.mrb[60].mxu0  ;;  %3519 = vmatprep.mubr.bf16.mxu0 %v6932_v21  ;;  %v2316_v2 = vrot.slane %v2314_v22, 1 }
 0x227   : > { %v1445_v40 = vpack.c.bf16 %v1403_v20, %v1402_v17  ;;  %v1255_v50 = vmul.f32 %v6901_v19, %v5552_v34  ;;  %v1139_v54 = vpop.f32.mrb[61].mxu0  ;;  %v2312_v61 = vor.u32 %v2311_v36, %v2307_v33 }
 0x228   : > { %v6936_v60 = vpack.c.bf16 %v1401_v31, %v1400_v27  ;;  %v1253_v48 = vmul.f32 %v6901_v19, %v1139_v54  ;;  %v5553_v62 = vpop.f32.mrb[62].mxu0 }
 0x229   : > { %v2142_v42 = vsel %vm6575_vm11, %v1445_v40, 0  ;;  %v1334_v56 = vadd.f32 %v6912_v43, %v1255_v50  ;;  %v1256_v8 = vmul.f32 %v6901_v19, %v5553_v62  ;;  %v1142_v16 = vpop.f32.mrb[63].mxu0  ;;  %v6946_v17 = vsel %vm2149_vm12, %v2312_v61, %v2316_v2 }
 0x22a   : > { %v1332_v10 = vadd.f32 %v6912_v43, %v1253_v48  ;;  %v1254_v11 = vmul.f32 %v6901_v19, %v1142_v16  ;;  %7895 = vst [vmem:[#allocation30_spill] sm:$0xff] %v6946_v17  ;;  %v2141_v20 = vsel %vm6569_vm9, %v6936_v60, 0  ;;  %3205 = vmatprep.mubr.bf16.mxu1 %v6946_v17  ;;  %3520 = vmatmul.mubr.bf16.gmra.mrb[120].mxu0 %v6946_v17  ;;  %v2434_v31 = vrot.slane %v2142_v42, 1 }
 0x22b   : > { %v1335_v22 = vadd.f32 %v6912_v43, %v1256_v8  ;;  %v2433_v27 = vrot.slane %v2141_v20, 1  ;;  %4801 = vmatmul.mubr.msk.bf16.gmra.mrb[52].mxu1 %vm6569_vm9, %v6904_v32  ;;  %v2321_v61 = vshll.u32 %v2141_v20, 16  ;;  %v1406_v33 = vmax.f32 %v1334_v56, 0.0 }
 0x22c   : > { %v1333_v34 = vadd.f32 %v6912_v43, %v1254_v11  ;;  %v2326_v50 = vshll.u32 %v2142_v42, 16  ;;  %v1404_v54 = vmax.f32 %v1332_v10, 0.0  ;;  %v2319_v2 = vshrl.u32 %v2141_v20, 16 }
 0x22d   : > { %v1407_v36 = vmax.f32 %v1335_v22, 0.0  ;;  %v6959_v40 = vsel %vm2390_vm10, %v2433_v27, %v2434_v31  ;;  %v2323_v8 = vrot.slane %v2321_v61, 1 }
 0x22e   : > { %v1405_v48 = vmax.f32 %v1333_v34, 0.0  ;;  %v5556_v62 = vpop.f32.mrb[64].mxu0  ;;  %3527 = vmatprep.mubr.bf16.mxu0 %v6959_v40  ;;  %v2328_v27 = vrot.slane %v2326_v50, 1 }
 0x22f   : > { %v1447_v16 = vpack.c.bf16 %v1407_v36, %v1406_v33  ;;  %v1259_v11 = vmul.f32 %v6901_v19, %v5556_v62  ;;  %v1155_v17 = vpop.f32.mrb[65].mxu0  ;;  %v2324_v46 = vor.u32 %v2323_v8, %v2319_v2 }
 0x230   : > { %v6963_v47 = vpack.c.bf16 %v1405_v48, %v1404_v54  ;;  %v1257_v56 = vmul.f32 %v6901_v19, %v1155_v17  ;;  %v5557_v22 = vpop.f32.mrb[66].mxu0 }
 0x231   : > { %v2144_v42 = vsel %vm6575_vm11, %v1447_v16, 0  ;;  %v1338_v10 = vadd.f32 %v6912_v43, %v1259_v11  ;;  %v1260_v31 = vmul.f32 %v6901_v19, %v5557_v22  ;;  %v1158_v20 = vpop.f32.mrb[67].mxu0  ;;  %v6973_v33 = vsel %vm2149_vm12, %v2324_v46, %v2328_v27 }
 0x232   : > { %v1336_v34 = vadd.f32 %v6912_v43, %v1257_v56  ;;  %v1258_v61 = vmul.f32 %v6901_v19, %v1158_v20  ;;  %7896 = vst [vmem:[#allocation31_spill] sm:$0xff] %v6973_v33  ;;  %v2143_v17 = vsel %vm6569_vm9, %v6963_v47, 0  ;;  %3213 = vmatprep.mubr.bf16.mxu1 %v6973_v33  ;;  %3528 = vmatmul.mubr.bf16.gmra.mrb[124].mxu0 %v6973_v33  ;;  %v2437_v48 = vrot.slane %v2144_v42, 1 }
 0x233   : > { %v1410_v36 = vmax.f32 %v1338_v10, 0.0  ;;  %v1339_v50 = vadd.f32 %v6912_v43, %v1260_v31  ;;  %v2436_v54 = vrot.slane %v2143_v17, 1  ;;  %4802 = vmatmul.mubr.msk.bf16.gmra.mrb[56].mxu1 %vm6569_vm9, %v6936_v60  ;;  %v2333_v46 = vshll.u32 %v2143_v17, 16 }
 0x234   : > { %v1408_v62 = vmax.f32 %v1336_v34, 0.0  ;;  %v1337_v2 = vadd.f32 %v6912_v43, %v1258_v61  ;;  %v2338_v11 = vshll.u32 %v2144_v42, 16  ;;  %v2331_v22 = vshrl.u32 %v2143_v17, 16 }
 0x235   : > { %v1411_v8 = vmax.f32 %v1339_v50, 0.0  ;;  %v6986_v16 = vsel %vm2390_vm10, %v2436_v54, %v2437_v48  ;;  %v2335_v27 = vrot.slane %v2333_v46, 1 }
 0x236   : > { %v1409_v56 = vmax.f32 %v1337_v2, 0.0  ;;  %3535 = vmatprep.mubr.bf16.mxu0 %v6986_v16  ;;  %v5560_v10 = vpop.f32.mrb[68].mxu0  ;;  %v2340_v49 = vrot.slane %v2338_v11, 1 }
 0x237   : > { %v1449_v31 = vpack.c.bf16 %v1411_v8, %v1410_v36  ;;  %v1263_v20 = vmul.f32 %v6901_v19, %v5560_v10  ;;  %v1171_v34 = vpop.f32.mrb[69].mxu0  ;;  %v2336_v33 = vor.u32 %v2335_v27, %v2331_v22 }
 0x238   : > { %v6990_v61 = vpack.c.bf16 %v1409_v56, %v1408_v62  ;;  %v1261_v50 = vmul.f32 %v6901_v19, %v1171_v34  ;;  %v5561_v59 = vpop.f32.mrb[70].mxu0 }
 0x239   : > { %v2146_v42 = vsel %vm6575_vm11, %v1449_v31, 0  ;;  %v1342_v54 = vadd.f32 %v6912_v43, %v1263_v20  ;;  %v1264_v17 = vmul.f32 %v6901_v19, %v5561_v59  ;;  %v1174_v48 = vpop.f32.mrb[71].mxu0  ;;  %v6998_v36 = vsel %vm2149_vm12, %v2336_v33, %v2340_v49 }
 0x23a   : > { %v2145_v62 = vsel %vm6569_vm9, %v6990_v61, 0  ;;  %v2471_v2 = vrot.slane %v2146_v42, 1  ;;  %v2463_v46 = vshll.u32 %v2146_v42, 16  ;;  %3221 = vmatprep.mubr.bf16.mxu1 %v6998_v36  ;;  %3536 = vmatmul.mubr.bf16.gmra.mrb[128].mxu0 %v6998_v36  ;;  %v1340_v49 = vadd.f32 %v6912_v43, %v1261_v50 }
 0x23b   : > { %v2470_v0 = vrot.slane %v2145_v62, 1  ;;  %v2456_v8 = vshrl.u32 %v2145_v62, 16  ;;  %v2458_v11 = vshll.u32 %v2145_v62, 16  ;;  %4803 = vmatmul.mubr.msk.bf16.gmra.mrb[60].mxu1 %vm6569_vm9, %v6963_v47  ;;  %v1414_v59 = vmax.f32 %v1342_v54, 0.0  ;;  %v5886_v62 = vld [vmem:[#allocation7 + $0x1d0] sm:$0xff]  }
 0x23c   : > { %v1343_v33 = vadd.f32 %v6912_v43, %v1264_v17  ;;  %v1262_v56 = vmul.f32 %v6901_v19, %v1174_v48  ;;  %4804 = vmatprep.mubr.msk.bf16.mxu1 %vm6569_vm9, %v6583_v13  ;;  %v2465_v10 = vrot.slane %v2463_v46, 1  ;;  %v1412_v31 = vmax.f32 %v1340_v49, 0.0  ;;  %v5882_v17 = vld [vmem:[#allocation7 + $0x180] sm:$0xff]   ;;  %v5884_v13 = vld [vmem:[#allocation7 + $0x1c8] sm:$0xff]   ;;  %v5888_v46 = vld [vmem:[#allocation7 + $0x1d8] sm:$0xff]  }
 0x23d   : > { %v7015_v22 = vsel %vm2390_vm10, %v2470_v0, %v2471_v2  ;;  %v2460_v27 = vrot.slane %v2458_v11, 1  ;;  %v5887_v2 = vld [vmem:[#allocation7 + $0x190] sm:$0xff]   ;;  %v5890_v0 = vld [vmem:[#allocation7 + $0x1e0] sm:$0xff]   ;;  %v5892_v11 = vld [vmem:[#allocation7 + $0x1e8] sm:$0xff]  }
 0x23e   : > { %3543 = vmatprep.mubr.bf16.mxu0 %v7015_v22  ;;  %v1415_v20 = vmax.f32 %v1343_v33, 0.0  ;;  %v1341_v34 = vadd.f32 %v6912_v43, %v1262_v56  ;;  %v5885_v43 = vld [vmem:[#allocation7 + $0x188] sm:$0xff]   ;;  %v5895_v49 = vld [vmem:[#allocation7 + $0x1b0] sm:$0xff]   ;;  %v5896_v33 = vld [vmem:[#allocation7 + $0x1f8] sm:$0xff]  }
 0x23f   : > { %v2461_v50 = vor.u32 %v2460_v27, %v2456_v8  ;;  %v5891_v8 = vld [vmem:[#allocation7 + $0x1a0] sm:$0xff]  }
 0x240   : > { %v7019_v42 = vpack.c.bf16 %v1415_v20, %v1414_v59  ;;  %v1413_v54 = vmax.f32 %v1341_v34, 0.0  ;;  %v5894_v59 = vld [vmem:[#allocation7 + $0x1f0] sm:$0xff]   ;;  %v7050_v56 = vld [vmem:[#allocation7 + $0x200] sm:$0xff]  }
 0x241   : > { %v7022_v19 = vsel %vm2149_vm12, %v2461_v50, %v2465_v10 }
 0x242   : > { %v7024_v48 = vpack.c.bf16 %v1413_v54, %v1412_v31  ;;  %3544 = vmatmul.mubr.bf16.gmra.mrb[132].mxu0 %v7022_v19 }
 0x243   : > { %3263 = vmatmul.mubr.bf16.vlgmr.msra.gmra.mrb[64].mxu1 %v6581_v12  ;;  %5578 = vmatprep.mubr.bf16.mxu0 %v6625_v14  ;;  %v5889_v12 = vld [vmem:[#allocation7 + $0x198] sm:$0xff]  }
 0x244   : > { %5315 = vmatpush3.bf16.msra.mxu1 %v5882_v17  ;;  %4805 = vmatprep.mubr.msk.bf16.mxu1 %vm6569_vm9, %v6605_v51 }
 0x245   : > { %5316 = vmatprep.subr.bf16.mxu1 %v5884_v13 }
 0x248   : > { %5317 = vmatpush3.bf16.msra.mxu1 %v5885_v43 }
 0x249   : > { %5318 = vmatprep.subr.bf16.mxu1 %v5886_v62 }
 0x24a   : > { %5579 = vmatmul.mubr.bf16.vlgmr.msra.gmra.mrb[136].mxu0 %v6652_v55 }
 0x24b   : > { %3271 = vmatmul.mubr.bf16.gmra.mrb[68].mxu1 %v6601_v38  ;;  %5582 = vmatprep.mubr.bf16.mxu0 %v6679_v35  ;;  %v5893_v38 = vld [vmem:[#allocation7 + $0x1a8] sm:$0xff]  }
 0x24c   : > { %4806 = vmatprep.mubr.msk.bf16.mxu1 %vm6569_vm9, %v6629_v29  ;;  %5319 = vmatpush3.bf16.msra.mxu1 %v5887_v2 }
 0x24d   : > { %5320 = vmatprep.subr.bf16.mxu1 %v5888_v46 }
 0x250   : > { %5321 = vmatpush3.bf16.msra.mxu1 %v5889_v12 }
 0x251   : > { %5322 = vmatprep.subr.bf16.mxu1 %v5890_v0 }
 0x252   : > { %5583 = vmatmul.mubr.bf16.gmra.mrb[140].mxu0 %v6706_v18 }
 0x253   : > { %3279 = vmatmul.mubr.bf16.gmra.mrb[72].mxu1 %v6625_v14  ;;  %5586 = vmatprep.mubr.bf16.mxu0 %v6733_v57  ;;  %v5897_v14 = vld [vmem:[#allocation7 + $0x1b8] sm:$0xff]  }
 0x254   : > { %4807 = vmatprep.mubr.msk.bf16.mxu1 %vm6569_vm9, %v6656_v6  ;;  %5323 = vmatpush3.bf16.msra.mxu1 %v5891_v8 }
 0x255   : > { %5324 = vmatprep.subr.bf16.mxu1 %v5892_v11 }
 0x258   : > { %5325 = vmatpush3.bf16.msra.mxu1 %v5893_v38 }
 0x259   : > { %5326 = vmatprep.subr.bf16.mxu1 %v5894_v59 }
 0x25a   : > { %5587 = vmatmul.mubr.bf16.gmra.mrb[144].mxu0 %v6760_v37 }
 0x25b   : > { %3287 = vmatmul.mubr.bf16.gmra.mrb[76].mxu1 %v6652_v55  ;;  %5590 = vmatprep.mubr.bf16.mxu0 %v6787_v23 }
 0x25c   : > { %4808 = vmatprep.mubr.msk.bf16.mxu1 %vm6569_vm9, %v6683_v52  ;;  %5327 = vmatpush3.bf16.msra.mxu1 %v5895_v49 }
 0x25d   : > { %5328 = vmatprep.subr.bf16.mxu1 %v5896_v33 }
 0x260   : > { %5329 = vmatpush3.bf16.msra.mxu1 %v5897_v14  ;;  %v2147_v14 = vsel %vm6555_vm8, %v7024_v48, 0 }
 0x261   : > { %5658 = vmatprep.subr.bf16.mxu1 %v7050_v56 }
 0x262   : > { %5591 = vmatmul.mubr.bf16.gmra.mrb[148].mxu0 %v6814_v9 }
 0x263   : > { %3295 = vmatmul.mubr.bf16.gmra.mrb[80].mxu1 %v6679_v35  ;;  %5594 = vmatprep.mubr.bf16.mxu0 %v6841_v1 }
 0x264   : > { %4809 = vmatprep.mubr.msk.bf16.mxu1 %vm6569_vm9, %v6710_v30 }
 0x26a   : > { %5595 = vmatmul.mubr.bf16.gmra.mrb[152].mxu0 %v6868_v63 }
 0x26b   : > { %3303 = vmatmul.mubr.bf16.gmra.mrb[84].mxu1 %v6706_v18  ;;  %5598 = vmatprep.mubr.bf16.mxu0 %v6895_v4 }
 0x26c   : > { %4810 = vmatprep.mubr.msk.bf16.mxu1 %vm6569_vm9, %v6737_v7 }
 0x272   : > { %5599 = vmatmul.mubr.bf16.gmra.mrb[156].mxu0 %v6932_v21 }
 0x273   : > { %3311 = vmatmul.mubr.bf16.gmra.mrb[88].mxu1 %v6733_v57  ;;  %5602 = vmatprep.mubr.bf16.mxu0 %v6959_v40 }
 0x274   : > { %4811 = vmatprep.mubr.msk.bf16.mxu1 %vm6569_vm9, %v6764_v53 }
 0x27a   : > { %5603 = vmatmul.mubr.bf16.gmra.mrb[160].mxu0 %v6986_v16 }
 0x27b   : > { %3319 = vmatmul.mubr.bf16.gmra.mrb[92].mxu1 %v6760_v37 }
 0x27c   : > { %4812 = vmatprep.mubr.msk.bf16.mxu1 %vm6569_vm9, %v6791_v39 }
 0x283   : > { %3327 = vmatmul.mubr.bf16.gmra.mrb[96].mxu1 %v6787_v23 }
 0x284   : > { %4813 = vmatprep.mubr.msk.bf16.mxu1 %vm6569_vm9, %v6818_v28 }
 0x28b   : > { %3335 = vmatmul.mubr.bf16.gmra.mrb[100].mxu1 %v6814_v9 }
 0x28c   : > { %4814 = vmatprep.mubr.msk.bf16.mxu1 %vm6569_vm9, %v6845_v24 }
 0x293   : > { %3343 = vmatmul.mubr.bf16.gmra.mrb[104].mxu1 %v6841_v1 }
 0x294   : > { %4815 = vmatprep.mubr.msk.bf16.mxu1 %vm6569_vm9, %v6872_v15 }
 0x296   : > { %v4994_v55 = vpop.f32.mrb[0].mxu1 }
 0x297   : > { %v4995_v35 = vpop.f32.mrb[1].mxu1 }
 0x298   : > { %v7088_v18 = vadd.f32 %v4995_v35, %v4994_v55  ;;  %v4997_v57 = vpop.f32.mrb[2].mxu1 }
 0x299   : > { %v4998_v37 = vpop.f32.mrb[3].mxu1 }
 0x29a   : > { %v7090_v23 = vadd.f32 %v4998_v37, %v4997_v57 }
 0x29b   : > { %3351 = vmatmul.mubr.bf16.gmra.mrb[108].mxu1 %v6868_v63 }
 0x29c   : > { %4816 = vmatprep.mubr.msk.bf16.mxu1 %vm6569_vm9, %v6904_v32 }
 0x29d   : > { %v5218_v9 = vpop.f32.mrb[72].mxu0 }
 0x29e   : > { %v5000_v1 = vpop.f32.mrb[4].mxu1  ;;  %v5219_v27 = vpop.f32.mrb[73].mxu0 }
 0x29f   : > { %v7096_v10 = vadd.f32 %v5219_v27, %v5218_v9  ;;  %v5001_v31 = vpop.f32.mrb[5].mxu1  ;;  %v5221_v20 = vpop.f32.mrb[74].mxu0  ;;  %v2489_v27 = vrot.slane %v2147_v14, 1 }
 0x2a0   : > { %v7098_v34 = vadd.f32 %v5001_v31, %v5000_v1  ;;  %v5003_v50 = vpop.f32.mrb[6].mxu1  ;;  %v5222_v54 = vpop.f32.mrb[75].mxu0 }
 0x2a1   : > { %v7100_v17 = vadd.f32 %v5222_v54, %v5221_v20  ;;  %v5004_v13 = vpop.f32.mrb[7].mxu1  ;;  %v2477_v54 = vshll.u32 %v2147_v14, 16 }
 0x2a2   : > { %v7102_v43 = vadd.f32 %v5004_v13, %v5003_v50 }
 0x2a3   : > { %3359 = vmatmul.mubr.bf16.gmra.mrb[112].mxu1 %v6895_v4  ;;  %v2148_v4 = vsel %vm6555_vm8, %v7019_v42, 0 }
 0x2a4   : > { %4817 = vmatprep.mubr.msk.bf16.mxu1 %vm6569_vm9, %v6936_v60 }
 0x2a5   : > { %v5224_v63 = vpop.f32.mrb[76].mxu0 }
 0x2a6   : > { %v5006_v62 = vpop.f32.mrb[8].mxu1  ;;  %v5225_v2 = vpop.f32.mrb[77].mxu0 }
 0x2a7   : > { %v7108_v46 = vadd.f32 %v5225_v2, %v5224_v63  ;;  %v5007_v12 = vpop.f32.mrb[9].mxu1  ;;  %v5227_v0 = vpop.f32.mrb[78].mxu0  ;;  %v2479_v2 = vrot.slane %v2477_v54, 1 }
 0x2a8   : > { %v7110_v8 = vadd.f32 %v5007_v12, %v5006_v62  ;;  %v5009_v11 = vpop.f32.mrb[10].mxu1  ;;  %v5228_v38 = vpop.f32.mrb[79].mxu0  ;;  %v2475_v62 = vshrl.u32 %v2147_v14, 16  ;;  %v2482_v12 = vshll.u32 %v2148_v4, 16 }
 0x2a9   : > { %v7112_v59 = vadd.f32 %v5228_v38, %v5227_v0  ;;  %v5010_v49 = vpop.f32.mrb[11].mxu1 }
 0x2aa   : > { %v7114_v33 = vadd.f32 %v5010_v49, %v5009_v11  ;;  %v2480_v0 = vor.u32 %v2479_v2, %v2475_v62  ;;  %v2484_v11 = vrot.slane %v2482_v12, 1 }
 0x2ab   : > { %3367 = vmatmul.mubr.bf16.gmra.mrb[116].mxu1 %v6932_v21  ;;  %v2490_v21 = vrot.slane %v2148_v4, 1 }
 0x2ac   : > { %4818 = vmatprep.mubr.msk.bf16.mxu1 %vm6569_vm9, %v6963_v47 }
 0x2ad   : > { %v5230_v55 = vpop.f32.mrb[80].mxu0  ;;  %v7139_v38 = vsel %vm2390_vm10, %v2489_v27, %v2490_v21 }
 0x2ae   : > { %v5012_v35 = vpop.f32.mrb[12].mxu1  ;;  %v5231_v57 = vpop.f32.mrb[81].mxu0 }
 0x2af   : > { %v7126_v37 = vadd.f32 %v5231_v57, %v5230_v55  ;;  %v5013_v9 = vpop.f32.mrb[13].mxu1  ;;  %v5233_v1 = vpop.f32.mrb[82].mxu0  ;;  %v7142_v57 = vsel %vm2149_vm12, %v2480_v0, %v2484_v11 }
 0x2b0   : > { %v7128_v31 = vadd.f32 %v5013_v9, %v5012_v35  ;;  %v5015_v20 = vpop.f32.mrb[14].mxu1  ;;  %v5234_v50 = vpop.f32.mrb[83].mxu0 }
 0x2b1   : > { %v7130_v13 = vadd.f32 %v5234_v50, %v5233_v1  ;;  %v5016_v42 = vpop.f32.mrb[15].mxu1 }
 0x2b2   : > { %v7132_v63 = vadd.f32 %v5016_v42, %v5015_v20 }
 0x2b3   : > { %3375 = vmatmul.mubr.bf16.gmra.mrb[120].mxu1 %v6959_v40 }
 0x2b4   : > { %4819 = vmatprep.mubr.msk.bf16.mxu1 %vm6569_vm9, %v6990_v61 }
 0x2b5   : > { %v5236_v49 = vpop.f32.mrb[84].mxu0 }
 0x2b6   : > { %v5018_v55 = vpop.f32.mrb[16].mxu1  ;;  %v5237_v35 = vpop.f32.mrb[85].mxu0 }
 0x2b7   : > { %v7144_v14 = vadd.f32 %v5237_v35, %v5236_v49  ;;  %v5019_v4 = vpop.f32.mrb[17].mxu1  ;;  %v5239_v9 = vpop.f32.mrb[86].mxu0 }
 0x2b8   : > { %v7146_v40 = vadd.f32 %v5019_v4, %v5018_v55  ;;  %v5021_v1 = vpop.f32.mrb[18].mxu1  ;;  %v5240_v20 = vpop.f32.mrb[87].mxu0 }
 0x2b9   : > { %v7148_v50 = vadd.f32 %v5240_v20, %v5239_v9  ;;  %v5022_v54 = vpop.f32.mrb[19].mxu1 }
 0x2ba   : > { %v7150_v42 = vadd.f32 %v5022_v54, %v5021_v1 }
 0x2bb   : > { %3383 = vmatmul.mubr.bf16.gmra.mrb[124].mxu1 %v6986_v16  ;;  %v5909_v16 = vld [vmem:[#allocation7 + $0x208] sm:$0xff]  }
 0x2bc   : > { %3584 = vmatprep.mubr.bf16.mxu1 %v6639_v44 }
 0x2bd   : > { %v5242_v21 = vpop.f32.mrb[88].mxu0 }
 0x2be   : > { %v5024_v27 = vpop.f32.mrb[20].mxu1  ;;  %v5243_v62 = vpop.f32.mrb[89].mxu0 }
 0x2bf   : > { %v7154_v2 = vadd.f32 %v5243_v62, %v5242_v21  ;;  %v5025_v12 = vpop.f32.mrb[21].mxu1  ;;  %v5245_v0 = vpop.f32.mrb[90].mxu0 }
 0x2c0   : > { %v7156_v11 = vadd.f32 %v5025_v12, %v5024_v27  ;;  %v5027_v49 = vpop.f32.mrb[22].mxu1  ;;  %v5246_v55 = vpop.f32.mrb[91].mxu0 }
 0x2c1   : > { %v7158_v35 = vadd.f32 %v5246_v55, %v5245_v0  ;;  %v5028_v4 = vpop.f32.mrb[23].mxu1 }
 0x2c2   : > { %v7160_v9 = vadd.f32 %v5028_v4, %v5027_v49  ;;  %v5911_v4 = vld [vmem:[#allocation7 + $0x218] sm:$0xff]  }
 0x2c3   : > { %4820 = vmatmul.mubr.msk.bf16.vlgmr.msra.gmra.mrb[128].mxu1 %vm6569_vm9, %v6605_v51 }
 0x2c4   : > { %5666 = vmatpush3.bf16.msra.mxu1 %v7050_v56  ;;  %3592 = vmatprep.mubr.bf16.mxu1 %v6666_v25  ;;  %v5910_v56 = vld [vmem:[#allocation7 + $0x210] sm:$0xff]  }
 0x2c5   : > { %v5248_v44 = vpop.f32.mrb[92].mxu0  ;;  %5659 = vmatprep.subr.bf16.mxu1 %v5909_v16 }
 0x2c6   : > { %v5030_v1 = vpop.f32.mrb[24].mxu1  ;;  %v5249_v20 = vpop.f32.mrb[93].mxu0 }
 0x2c7   : > { %v7167_v54 = vadd.f32 %v5249_v20, %v5248_v44  ;;  %v5031_v21 = vpop.f32.mrb[25].mxu1  ;;  %v5251_v27 = vpop.f32.mrb[94].mxu0 }
 0x2c8   : > { %v7169_v62 = vadd.f32 %v5031_v21, %v5030_v1  ;;  %v5033_v12 = vpop.f32.mrb[26].mxu1  ;;  %v5252_v0 = vpop.f32.mrb[95].mxu0  ;;  %5667 = vmatpush3.bf16.msra.mxu1 %v5909_v16 }
 0x2c9   : > { %v7171_v49 = vadd.f32 %v5252_v0, %v5251_v27  ;;  %v5034_v51 = vpop.f32.mrb[27].mxu1  ;;  %5660 = vmatprep.subr.bf16.mxu1 %v5910_v56 }
 0x2ca   : > { %v7173_v25 = vadd.f32 %v5034_v51, %v5033_v12 }
 0x2cb   : > { %4821 = vmatmul.mubr.msk.bf16.gmra.mrb[132].mxu1 %vm6569_vm9, %v6629_v29 }
 0x2cc   : > { %7897 = vst [vmem:[#allocation32_spill] sm:$0xff] %v7173_v25  ;;  %3600 = vmatprep.mubr.bf16.mxu1 %v6693_v3  ;;  %5668 = vmatpush3.bf16.msra.mxu1 %v5910_v56  ;;  %v5912_v25 = vld [vmem:[#allocation7 + $0x220] sm:$0xff]  }
 0x2cd   : > { %v5254_v55 = vpop.f32.mrb[96].mxu0  ;;  %5661 = vmatprep.subr.bf16.mxu1 %v5911_v4 }
 0x2ce   : > { %v5036_v44 = vpop.f32.mrb[28].mxu1  ;;  %v5255_v1 = vpop.f32.mrb[97].mxu0 }
 0x2cf   : > { %v7179_v16 = vadd.f32 %v5255_v1, %v5254_v55  ;;  %v5037_v20 = vpop.f32.mrb[29].mxu1  ;;  %v5257_v21 = vpop.f32.mrb[98].mxu0  ;;  %v5913_v55 = vld [vmem:[#allocation7 + $0x228] sm:$0xff]  }
 0x2d0   : > { %v7181_v27 = vadd.f32 %v5037_v20, %v5036_v44  ;;  %v5039_v12 = vpop.f32.mrb[30].mxu1  ;;  %v5258_v0 = vpop.f32.mrb[99].mxu0  ;;  %5669 = vmatpush3.bf16.msra.mxu1 %v5911_v4 }
 0x2d1   : > { %v7183_v51 = vadd.f32 %v5258_v0, %v5257_v21  ;;  %v5040_v29 = vpop.f32.mrb[31].mxu1  ;;  %5662 = vmatprep.subr.bf16.mxu1 %v5912_v25 }
 0x2d2   : > { %7898 = vst [vmem:[#allocation33_spill] sm:$0xff] %v7181_v27  ;;  %v7185_v3 = vadd.f32 %v5040_v29, %v5039_v12  ;;  %v5914_v27 = vld [vmem:[#allocation7 + $0x230] sm:$0xff]  }
 0x2d3   : > { %4822 = vmatmul.mubr.msk.bf16.gmra.mrb[136].mxu1 %vm6569_vm9, %v6656_v6 }
 0x2d4   : > { %7899 = vst [vmem:[#allocation34_spill] sm:$0xff] %v7185_v3  ;;  %3608 = vmatprep.mubr.bf16.mxu1 %v6720_v45  ;;  %5670 = vmatpush3.bf16.msra.mxu1 %v5912_v25 }
 0x2d5   : > { %v5260_v56 = vpop.f32.mrb[100].mxu0  ;;  %5663 = vmatprep.subr.bf16.mxu1 %v5913_v55 }
 0x2d6   : > { %v5042_v44 = vpop.f32.mrb[32].mxu1  ;;  %v5261_v1 = vpop.f32.mrb[101].mxu0 }
 0x2d7   : > { %v7191_v4 = vadd.f32 %v5261_v1, %v5260_v56  ;;  %v5043_v20 = vpop.f32.mrb[33].mxu1  ;;  %v5263_v21 = vpop.f32.mrb[102].mxu0  ;;  %v5915_v56 = vld [vmem:[#allocation7 + $0x238] sm:$0xff]  }
 0x2d8   : > { %v7193_v0 = vadd.f32 %v5043_v20, %v5042_v44  ;;  %v5045_v12 = vpop.f32.mrb[34].mxu1  ;;  %v5264_v29 = vpop.f32.mrb[103].mxu0  ;;  %5671 = vmatpush3.bf16.msra.mxu1 %v5913_v55 }
 0x2d9   : > { %v7195_v3 = vadd.f32 %v5264_v29, %v5263_v21  ;;  %v5046_v6 = vpop.f32.mrb[35].mxu1  ;;  %5664 = vmatprep.subr.bf16.mxu1 %v5914_v27 }
 0x2da   : > { %7900 = vst [vmem:[#allocation35_spill] sm:$0xff] %v7193_v0  ;;  %v7197_v45 = vadd.f32 %v5046_v6, %v5045_v12 }
 0x2db   : > { %4823 = vmatmul.mubr.msk.bf16.gmra.mrb[140].mxu1 %vm6569_vm9, %v6683_v52 }
 0x2dc   : > { %7901 = vst [vmem:[#allocation36_spill] sm:$0xff] %v7197_v45  ;;  %3616 = vmatprep.mubr.bf16.mxu1 %v6747_v26  ;;  %5672 = vmatpush3.bf16.msra.mxu1 %v5914_v27 }
 0x2dd   : > { %v5266_v25 = vpop.f32.mrb[104].mxu0  ;;  %5665 = vmatprep.subr.bf16.mxu1 %v5915_v56 }
 0x2de   : > { %v5048_v44 = vpop.f32.mrb[36].mxu1  ;;  %v5267_v1 = vpop.f32.mrb[105].mxu0 }
 0x2df   : > { %v7203_v55 = vadd.f32 %v5267_v1, %v5266_v25  ;;  %v5049_v20 = vpop.f32.mrb[37].mxu1  ;;  %v5269_v21 = vpop.f32.mrb[106].mxu0 }
 0x2e0   : > { %v7205_v29 = vadd.f32 %v5049_v20, %v5048_v44  ;;  %v5051_v12 = vpop.f32.mrb[38].mxu1  ;;  %v5270_v6 = vpop.f32.mrb[107].mxu0  ;;  %5673 = vmatpush3.bf16.msra.mxu1 %v5915_v56 }
 0x2e1   : > { %v7207_v45 = vadd.f32 %v5270_v6, %v5269_v21  ;;  %v5052_v52 = vpop.f32.mrb[39].mxu1 }
 0x2e2   : > { %7902 = vst [vmem:[#allocation37_spill] sm:$0xff] %v7205_v29  ;;  %v7209_v0 = vadd.f32 %v5052_v52, %v5051_v12 }
 0x2e3   : > { %4824 = vmatmul.mubr.msk.bf16.gmra.mrb[144].mxu1 %vm6569_vm9, %v6710_v30  ;;  %v7906_v30 = vld [vmem:[#allocation25_spill] sm:$0xff] }
 0x2e4   : > { %3624 = vmatprep.mubr.bf16.mxu1 %v6774_v5 }
 0x2e5   : > { %v5272_v26 = vpop.f32.mrb[108].mxu0 }
 0x2e6   : > { %v5054_v27 = vpop.f32.mrb[40].mxu1  ;;  %v5273_v25 = vpop.f32.mrb[109].mxu0 }
 0x2e7   : > { %v7215_v1 = vadd.f32 %v5273_v25, %v5272_v26  ;;  %v5055_v44 = vpop.f32.mrb[41].mxu1  ;;  %v5275_v20 = vpop.f32.mrb[110].mxu0 }
 0x2e8   : > { %v7217_v29 = vadd.f32 %v5055_v44, %v5054_v27  ;;  %v5057_v56 = vpop.f32.mrb[42].mxu1  ;;  %v5276_v21 = vpop.f32.mrb[111].mxu0 }
 0x2e9   : > { %7903 = vst [vmem:[#allocation38_spill] sm:$0xff] %v7215_v1  ;;  %v7219_v6 = vadd.f32 %v5276_v21, %v5275_v20  ;;  %v5058_v12 = vpop.f32.mrb[43].mxu1 }
 0x2ea   : > { %7904 = vst [vmem:[#allocation39_spill] sm:$0xff] %v7217_v29  ;;  %v7221_v52 = vadd.f32 %v5058_v12, %v5057_v56 }
 0x2eb   : > { %7905 = vst [vmem:[#allocation40_spill] sm:$0xff] %v7219_v6  ;;  %4825 = vmatmul.mubr.msk.bf16.gmra.mrb[148].mxu1 %vm6569_vm9, %v6737_v7  ;;  %v7910_v7 = vld [vmem:[#allocation26_spill] sm:$0xff] }
 0x2ec   : > { %3632 = vmatprep.mubr.bf16.mxu1 %v7906_v30 }
 0x2ed   : > { %v5278_v5 = vpop.f32.mrb[112].mxu0 }
 0x2ee   : > { %v5060_v26 = vpop.f32.mrb[44].mxu1  ;;  %v5279_v25 = vpop.f32.mrb[113].mxu0 }
 0x2ef   : > { %v7227_v1 = vadd.f32 %v5279_v25, %v5278_v5  ;;  %v5061_v27 = vpop.f32.mrb[45].mxu1  ;;  %v5281_v44 = vpop.f32.mrb[114].mxu0 }
 0x2f0   : > { %v7229_v29 = vadd.f32 %v5061_v27, %v5060_v26  ;;  %v5063_v20 = vpop.f32.mrb[46].mxu1  ;;  %v5282_v21 = vpop.f32.mrb[115].mxu0 }
 0x2f1   : > { %7907 = vst [vmem:[#allocation25_spill] sm:$0xff] %v7227_v1  ;;  %v7231_v6 = vadd.f32 %v5282_v21, %v5281_v44  ;;  %v5064_v56 = vpop.f32.mrb[47].mxu1 }
 0x2f2   : > { %7908 = vst [vmem:[#allocation41_spill] sm:$0xff] %v7229_v29  ;;  %v7233_v12 = vadd.f32 %v5064_v56, %v5063_v20 }
 0x2f3   : > { %7909 = vst [vmem:[#allocation42_spill] sm:$0xff] %v7231_v6  ;;  %4826 = vmatmul.mubr.msk.bf16.gmra.mrb[152].mxu1 %vm6569_vm9, %v6764_v53  ;;  %v7914_v53 = vld [vmem:[#allocation27_spill] sm:$0xff] }
 0x2f4   : > { %3640 = vmatprep.mubr.bf16.mxu1 %v7910_v7 }
 0x2f5   : > { %v5284_v30 = vpop.f32.mrb[116].mxu0 }
 0x2f6   : > { %v5066_v5 = vpop.f32.mrb[48].mxu1  ;;  %v5285_v25 = vpop.f32.mrb[117].mxu0 }
 0x2f7   : > { %v7239_v1 = vadd.f32 %v5285_v25, %v5284_v30  ;;  %v5067_v26 = vpop.f32.mrb[49].mxu1  ;;  %v5287_v27 = vpop.f32.mrb[118].mxu0 }
 0x2f8   : > { %v7241_v29 = vadd.f32 %v5067_v26, %v5066_v5  ;;  %v5069_v44 = vpop.f32.mrb[50].mxu1  ;;  %v5288_v21 = vpop.f32.mrb[119].mxu0 }
 0x2f9   : > { %7911 = vst [vmem:[#allocation26_spill] sm:$0xff] %v7239_v1  ;;  %v7243_v6 = vadd.f32 %v5288_v21, %v5287_v27  ;;  %v5070_v20 = vpop.f32.mrb[51].mxu1 }
 0x2fa   : > { %7912 = vst [vmem:[#allocation43_spill] sm:$0xff] %v7241_v29  ;;  %v7245_v56 = vadd.f32 %v5070_v20, %v5069_v44 }
 0x2fb   : > { %7913 = vst [vmem:[#allocation44_spill] sm:$0xff] %v7243_v6  ;;  %4827 = vmatmul.mubr.msk.bf16.gmra.mrb[156].mxu1 %vm6569_vm9, %v6791_v39  ;;  %v7918_v39 = vld [vmem:[#allocation28_spill] sm:$0xff] }
 0x2fc   : > { %3648 = vmatprep.mubr.bf16.mxu1 %v7914_v53 }
 0x2fd   : > { %v5290_v7 = vpop.f32.mrb[120].mxu0 }
 0x2fe   : > { %v5072_v30 = vpop.f32.mrb[52].mxu1  ;;  %v5291_v25 = vpop.f32.mrb[121].mxu0 }
 0x2ff   : > { %v7251_v1 = vadd.f32 %v5291_v25, %v5290_v7  ;;  %v5073_v5 = vpop.f32.mrb[53].mxu1  ;;  %v5293_v26 = vpop.f32.mrb[122].mxu0 }
 0x300   : > { %v7253_v29 = vadd.f32 %v5073_v5, %v5072_v30  ;;  %v5075_v27 = vpop.f32.mrb[54].mxu1  ;;  %v5294_v21 = vpop.f32.mrb[123].mxu0 }
 0x301   : > { %7915 = vst [vmem:[#allocation27_spill] sm:$0xff] %v7251_v1  ;;  %v7255_v6 = vadd.f32 %v5294_v21, %v5293_v26  ;;  %v5076_v44 = vpop.f32.mrb[55].mxu1 }
 0x302   : > { %7916 = vst [vmem:[#allocation45_spill] sm:$0xff] %v7253_v29  ;;  %v7257_v20 = vadd.f32 %v5076_v44, %v5075_v27 }
 0x303   : > { %7917 = vst [vmem:[#allocation46_spill] sm:$0xff] %v7255_v6  ;;  %4828 = vmatmul.mubr.msk.bf16.gmra.mrb[160].mxu1 %vm6569_vm9, %v6818_v28  ;;  %v7923_v28 = vld [vmem:[#allocation29_spill] sm:$0xff] }
 0x304   : > { %3656 = vmatprep.mubr.bf16.mxu1 %v7918_v39 }
 0x305   : > { %v5296_v53 = vpop.f32.mrb[124].mxu0 }
 0x306   : > { %v5078_v7 = vpop.f32.mrb[56].mxu1  ;;  %v5297_v25 = vpop.f32.mrb[125].mxu0 }
 0x307   : > { %v7263_v1 = vadd.f32 %v5297_v25, %v5296_v53  ;;  %v5079_v30 = vpop.f32.mrb[57].mxu1  ;;  %v5299_v5 = vpop.f32.mrb[126].mxu0 }
 0x308   : > { %v7265_v29 = vadd.f32 %v5079_v30, %v5078_v7  ;;  %v5081_v26 = vpop.f32.mrb[58].mxu1  ;;  %v5300_v21 = vpop.f32.mrb[127].mxu0 }
 0x309   : > { %7919 = vst [vmem:[#allocation28_spill] sm:$0xff] %v7263_v1  ;;  %v7267_v6 = vadd.f32 %v5300_v21, %v5299_v5  ;;  %v5082_v27 = vpop.f32.mrb[59].mxu1 }
 0x30a   : > { %7920 = vst [vmem:[#allocation47_spill] sm:$0xff] %v7265_v29  ;;  %v7269_v44 = vadd.f32 %v5082_v27, %v5081_v26 }
 0x30b   : > { %7921 = vst [vmem:[#allocation48_spill] sm:$0xff] %v7267_v6  ;;  %4829 = vmatmul.mubr.msk.bf16.gmra.mrb[164].mxu1 %vm6569_vm9, %v6845_v24  ;;  %v5898_v6 = vld [vmem:[#allocation8] sm:$0xff]   ;;  %v7928_v24 = vld [vmem:[#allocation30_spill] sm:$0xff] }
 0x30c   : > { %7922 = vst [vmem:[#allocation49_spill] sm:$0xff] %v7269_v44  ;;  %3664 = vmatprep.mubr.bf16.mxu1 %v7923_v28  ;;  %5610 = vmatprep.subr.bf16.mxu0 %v5898_v6  ;;  %v5899_v28 = vld [vmem:[#allocation8 + $0x8] sm:$0xff]  }
 0x30d   : > { %v5302_v39 = vpop.f32.mrb[128].mxu0  ;;  %5611 = vmatpush3.bf16.msra.mxu0 %v5898_v6 }
 0x30e   : > { %v5084_v53 = vpop.f32.mrb[60].mxu1  ;;  %v5303_v25 = vpop.f32.mrb[129].mxu0  ;;  %5612 = vmatprep.subr.bf16.mxu0 %v5899_v28 }
 0x30f   : > { %v7275_v1 = vadd.f32 %v5303_v25, %v5302_v39  ;;  %v5085_v7 = vpop.f32.mrb[61].mxu1  ;;  %v5305_v30 = vpop.f32.mrb[130].mxu0 }
 0x310   : > { %v7277_v29 = vadd.f32 %v5085_v7, %v5084_v53  ;;  %v5087_v5 = vpop.f32.mrb[62].mxu1  ;;  %v5306_v21 = vpop.f32.mrb[131].mxu0 }
 0x311   : > { %7924 = vst [vmem:[#allocation29_spill] sm:$0xff] %v7275_v1  ;;  %v7279_v26 = vadd.f32 %v5306_v21, %v5305_v30  ;;  %v5088_v27 = vpop.f32.mrb[63].mxu1  ;;  %5613 = vmatpush3.bf16.msra.mxu0 %v5899_v28 }
 0x312   : > { %7925 = vst [vmem:[#allocation50_spill] sm:$0xff] %v7277_v29  ;;  %v7281_v44 = vadd.f32 %v5088_v27, %v5087_v5 }
 0x313   : > { %7926 = vst [vmem:[#allocation51_spill] sm:$0xff] %v7279_v26  ;;  %4830 = vmatmul.mubr.msk.bf16.gmra.mrb[168].mxu1 %vm6569_vm9, %v6872_v15 }
 0x314   : > { %7927 = vst [vmem:[#allocation52_spill] sm:$0xff] %v7281_v44  ;;  %3672 = vmatprep.mubr.bf16.mxu1 %v7928_v24  ;;  %v5900_v44 = vld [vmem:[#allocation8 + $0x10] sm:$0xff]  }
 0x315   : > { %v5308_v39 = vpop.f32.mrb[132].mxu0  ;;  %5614 = vmatprep.subr.bf16.mxu0 %v5900_v44 }
 0x316   : > { %v5106_v53 = vpop.f32.mrb[64].mxu1  ;;  %v5309_v25 = vpop.f32.mrb[133].mxu0  ;;  %5615 = vmatpush3.bf16.msra.mxu0 %v5900_v44 }
 0x317   : > { %v5107_v7 = vpop.f32.mrb[65].mxu1  ;;  %v7287_v29 = vadd.f32 %v5309_v25, %v5308_v39  ;;  %v5311_v30 = vpop.f32.mrb[134].mxu0  ;;  %v7929_v39 = vld [vmem:[#allocation31_spill] sm:$0xff] }
 0x318   : > { %v5108_v5 = vadd.f32 %v5107_v7, %v5106_v53  ;;  %v5109_v21 = vpop.f32.mrb[66].mxu1  ;;  %v5312_v27 = vpop.f32.mrb[135].mxu0  ;;  %v5901_v53 = vld [vmem:[#allocation8 + $0x18] sm:$0xff]  }
 0x319   : > { %v5110_v26 = vpop.f32.mrb[67].mxu1  ;;  %v7289_v1 = vadd.f32 %v5312_v27, %v5311_v30  ;;  %5616 = vmatprep.subr.bf16.mxu0 %v5901_v53 }
 0x31a   : > { %v3265_v15 = vadd.f32 %v5108_v5, %v7088_v18  ;;  %v5111_v6 = vadd.f32 %v5110_v26, %v5109_v21  ;;  %5617 = vmatpush3.bf16.msra.mxu0 %v5901_v53 }
 0x31b   : > { %4831 = vmatmul.mubr.msk.bf16.gmra.mrb[172].mxu1 %vm6569_vm9, %v6904_v32 }
 0x31c   : > { %v3268_v24 = vadd.f32 %v5111_v6, %v7090_v23  ;;  %3680 = vmatprep.mubr.bf16.mxu1 %v7929_v39  ;;  %v7298_v28 = vadd.f32 %v7096_v10, %v3265_v15  ;;  %v5902_v10 = vld [vmem:[#allocation8 + $0x20] sm:$0xff]  }
 0x31d   : > { %v7300_v25 = vpop.f32.mrb[136].mxu0  ;;  %5618 = vmatprep.subr.bf16.mxu0 %v5902_v10 }
 0x31e   : > { %v5112_v7 = vpop.f32.mrb[68].mxu1  ;;  %v7302_v30 = vpop.f32.mrb[137].mxu0  ;;  %v7305_v18 = vadd.f32 %v7100_v17, %v3268_v24  ;;  %5619 = vmatpush3.bf16.msra.mxu0 %v5902_v10  ;;  %v5903_v24 = vld [vmem:[#allocation8 + $0x28] sm:$0xff]  }
 0x31f   : > { %v5113_v26 = vpop.f32.mrb[69].mxu1  ;;  %v7307_v32 = vpop.f32.mrb[138].mxu0  ;;  %5620 = vmatprep.subr.bf16.mxu0 %v5903_v24 }
 0x320   : > { %v5114_v23 = vadd.f32 %v5113_v26, %v5112_v7  ;;  %v5115_v44 = vpop.f32.mrb[70].mxu1  ;;  %v7309_v5 = vpop.f32.mrb[139].mxu0 }
 0x321   : > { %v5116_v21 = vpop.f32.mrb[71].mxu1 }
 0x322   : > { %v3273_v27 = vadd.f32 %v5114_v23, %v7098_v34  ;;  %v5117_v15 = vadd.f32 %v5116_v21, %v5115_v44  ;;  %5621 = vmatpush3.bf16.msra.mxu0 %v5903_v24 }
 0x323   : > { %4832 = vmatmul.mubr.msk.bf16.gmra.mrb[176].mxu1 %vm6569_vm9, %v6936_v60 }
 0x324   : > { %v3276_v17 = vadd.f32 %v5117_v15, %v7102_v43  ;;  %3688 = vmatprep.mubr.bf16.mxu1 %v6998_v36  ;;  %v7318_v6 = vadd.f32 %v7108_v46, %v3273_v27  ;;  %v5904_v46 = vld [vmem:[#allocation8 + $0x30] sm:$0xff]   ;;  %v5905_v15 = vld [vmem:[#allocation8 + $0x38] sm:$0xff]  }
 0x325   : > { %v7320_v39 = vpop.f32.mrb[140].mxu0  ;;  %5622 = vmatprep.subr.bf16.mxu0 %v5904_v46 }
 0x326   : > { %v5118_v53 = vpop.f32.mrb[72].mxu1  ;;  %v7322_v7 = vpop.f32.mrb[141].mxu0  ;;  %v7325_v34 = vadd.f32 %v7112_v59, %v3276_v17  ;;  %5623 = vmatpush3.bf16.msra.mxu0 %v5904_v46 }
 0x327   : > { %v5119_v26 = vpop.f32.mrb[73].mxu1  ;;  %v7327_v60 = vpop.f32.mrb[142].mxu0  ;;  %5624 = vmatprep.subr.bf16.mxu0 %v5905_v15 }
 0x328   : > { %v5120_v43 = vadd.f32 %v5119_v26, %v5118_v53  ;;  %v5121_v23 = vpop.f32.mrb[74].mxu1  ;;  %v7329_v36 = vpop.f32.mrb[143].mxu0 }
 0x329   : > { %v5122_v44 = vpop.f32.mrb[75].mxu1 }
 0x32a   : > { %v3281_v10 = vadd.f32 %v5120_v43, %v7110_v8  ;;  %v5123_v21 = vadd.f32 %v5122_v44, %v5121_v23  ;;  %5625 = vmatpush3.bf16.msra.mxu0 %v5905_v15 }
 0x32b   : > { %4833 = vmatmul.mubr.msk.bf16.gmra.mrb[180].mxu1 %vm6569_vm9, %v6963_v47 }
 0x32c   : > { %v3284_v59 = vadd.f32 %v5123_v21, %v7114_v33  ;;  %3696 = vmatprep.mubr.bf16.mxu1 %v7022_v19  ;;  %v7338_v27 = vadd.f32 %v7126_v37, %v3281_v10 }
 0x32d   : > { %v7340_v17 = vpop.f32.mrb[144].mxu0 }
 0x32e   : > { %v5124_v24 = vpop.f32.mrb[76].mxu1  ;;  %v7342_v53 = vpop.f32.mrb[145].mxu0  ;;  %v7345_v8 = vadd.f32 %v7130_v13, %v3284_v59 }
 0x32f   : > { %v5125_v26 = vpop.f32.mrb[77].mxu1  ;;  %v7347_v47 = vpop.f32.mrb[146].mxu0 }
 0x330   : > { %v5126_v33 = vadd.f32 %v5125_v26, %v5124_v24  ;;  %v5127_v43 = vpop.f32.mrb[78].mxu1  ;;  %v7349_v19 = vpop.f32.mrb[147].mxu0 }
 0x331   : > { %v5128_v37 = vpop.f32.mrb[79].mxu1 }
 0x332   : > { %v3289_v23 = vadd.f32 %v5126_v33, %v7128_v31  ;;  %v5129_v46 = vadd.f32 %v5128_v37, %v5127_v43 }
 0x333   : > { %4834 = vmatmul.mubr.msk.bf16.gmra.mrb[184].mxu1 %vm6569_vm9, %v6990_v61 }
 0x334   : > { %v3292_v13 = vadd.f32 %v5129_v46, %v7132_v63  ;;  %3704 = vmatprep.mubr.bf16.mxu1 %v7142_v57  ;;  %v7358_v44 = vadd.f32 %v7144_v14, %v3289_v23 }
 0x335   : > { %v7360_v10 = vpop.f32.mrb[148].mxu0 }
 0x336   : > { %v5130_v21 = vpop.f32.mrb[80].mxu1  ;;  %v7362_v59 = vpop.f32.mrb[149].mxu0  ;;  %v7365_v15 = vadd.f32 %v7148_v50, %v3292_v13 }
 0x337   : > { %v5131_v31 = vpop.f32.mrb[81].mxu1  ;;  %v7367_v24 = vpop.f32.mrb[150].mxu0 }
 0x338   : > { %v5132_v58 = vadd.f32 %v5131_v31, %v5130_v21  ;;  %v5133_v61 = vpop.f32.mrb[82].mxu1  ;;  %v7369_v26 = vpop.f32.mrb[151].mxu0 }
 0x339   : > { %v5134_v63 = vpop.f32.mrb[83].mxu1 }
 0x33a   : > { %v3297_v57 = vadd.f32 %v5132_v58, %v7146_v40  ;;  %v5135_v14 = vadd.f32 %v5134_v63, %v5133_v61 }
 0x33b   : > { %4835 = vmatmul.mubr.msk.bf16.gmra.mrb[188].mxu1 %vm6555_vm8, %v7024_v48 }
 0x33c   : > { %v3300_v33 = vadd.f32 %v5135_v14, %v7150_v42  ;;  %5606 = vmatprep.mubr.bf16.mxu1 %v7015_v22  ;;  %v7378_v50 = vadd.f32 %v7154_v2, %v3297_v57 }
 0x33d   : > { %v7380_v43 = vpop.f32.mrb[152].mxu0 }
 0x33e   : > { %v5136_v37 = vpop.f32.mrb[84].mxu1  ;;  %v7382_v23 = vpop.f32.mrb[153].mxu0  ;;  %v7385_v46 = vadd.f32 %v7158_v35, %v3300_v33 }
 0x33f   : > { %v5137_v40 = vpop.f32.mrb[85].mxu1  ;;  %v7387_v13 = vpop.f32.mrb[154].mxu0 }
 0x340   : > { %7930 = vst [vmem:[#allocation30_spill] sm:$0xff] %v7387_v13  ;;  %v5138_v41 = vadd.f32 %v5137_v40, %v5136_v37  ;;  %v5139_v48 = vpop.f32.mrb[86].mxu1  ;;  %v7389_v21 = vpop.f32.mrb[155].mxu0 }
 0x341   : > { %v5140_v42 = vpop.f32.mrb[87].mxu1 }
 0x342   : > { %v3305_v22 = vadd.f32 %v5138_v41, %v7156_v11  ;;  %v5141_v2 = vadd.f32 %v5140_v42, %v5139_v48  ;;  %v7935_v41 = vld [vmem:[#allocation32_spill] sm:$0xff] }
 0x343   : > { %5607 = vmatmul.mubr.bf16.vlgmr.msra.gmra.mrb[192].mxu1 %v7139_v38 }
 0x344   : > { %v3308_v31 = vadd.f32 %v5141_v2, %v7160_v9  ;;  %v7395_v58 = vadd.f32 %v7167_v54, %v3305_v22 }
 0x345   : > { %v7397_v35 = vpop.f32.mrb[156].mxu0 }
 0x346   : > { %7931 = vst [vmem:[#allocation31_spill] sm:$0xff] %v7397_v35  ;;  %v5142_v61 = vpop.f32.mrb[88].mxu1  ;;  %v7399_v63 = vpop.f32.mrb[157].mxu0  ;;  %v7402_v57 = vadd.f32 %v7171_v49, %v3308_v31 }
 0x347   : > { %7932 = vst [vmem:[#allocation53_spill] sm:$0xff] %v7399_v63  ;;  %v5143_v14 = vpop.f32.mrb[89].mxu1  ;;  %v7404_v33 = vpop.f32.mrb[158].mxu0  ;;  %v7943_v63 = vld [vmem:[#allocation36_spill] sm:$0xff] }
 0x348   : > { %7933 = vst [vmem:[#allocation54_spill] sm:$0xff] %v7404_v33  ;;  %v5144_v11 = vadd.f32 %v5143_v14, %v5142_v61  ;;  %v5145_v37 = vpop.f32.mrb[90].mxu1  ;;  %v7406_v40 = vpop.f32.mrb[159].mxu0 }
 0x349   : > { %7934 = vst [vmem:[#allocation55_spill] sm:$0xff] %v7406_v40  ;;  %v5146_v38 = vpop.f32.mrb[91].mxu1 }
 0x34a   : > { %v3313_v9 = vadd.f32 %v5144_v11, %v7169_v62  ;;  %v5147_v54 = vadd.f32 %v5146_v38, %v5145_v37  ;;  %v7940_v37 = vld [vmem:[#allocation33_spill] sm:$0xff] }
 0x34c   : > { %v3316_v48 = vadd.f32 %v5147_v54, %v7935_v41  ;;  %v7411_v42 = vadd.f32 %v7179_v16, %v3313_v9  ;;  %v7941_v9 = vld [vmem:[#allocation34_spill] sm:$0xff] }
 0x34d   : > { %v7413_v22 = vpop.f32.mrb[160].mxu0 }
 0x34e   : > { %7936 = vst [vmem:[#allocation32_spill] sm:$0xff] %v7413_v22  ;;  %v5148_v49 = vpop.f32.mrb[92].mxu1  ;;  %v7415_v2 = vpop.f32.mrb[161].mxu0  ;;  %v7418_v31 = vadd.f32 %v7183_v51, %v3316_v48 }
 0x34f   : > { %7937 = vst [vmem:[#allocation56_spill] sm:$0xff] %v7415_v2  ;;  %v5149_v61 = vpop.f32.mrb[93].mxu1  ;;  %v7420_v14 = vpop.f32.mrb[162].mxu0 }
 0x350   : > { %7938 = vst [vmem:[#allocation57_spill] sm:$0xff] %v7420_v14  ;;  %v5150_v33 = vadd.f32 %v5149_v61, %v5148_v49  ;;  %v5151_v35 = vpop.f32.mrb[94].mxu1  ;;  %v7422_v62 = vpop.f32.mrb[163].mxu0  ;;  %v7942_v61 = vld [vmem:[#allocation35_spill] sm:$0xff] }
 0x351   : > { %7939 = vst [vmem:[#allocation58_spill] sm:$0xff] %v7422_v62  ;;  %v5152_v11 = vpop.f32.mrb[95].mxu1 }
 0x352   : > { %v3321_v38 = vadd.f32 %v5150_v33, %v7940_v37  ;;  %v5153_v16 = vadd.f32 %v5152_v11, %v5151_v35 }
 0x354   : > { %v3324_v54 = vadd.f32 %v5153_v16, %v7941_v9  ;;  %v7427_v41 = vadd.f32 %v7191_v4, %v3321_v38  ;;  %v7944_v16 = vld [vmem:[#allocation37_spill] sm:$0xff] }
 0x356   : > { %v5154_v22 = vpop.f32.mrb[96].mxu1  ;;  %v7430_v51 = vadd.f32 %v7195_v3, %v3324_v54 }
 0x357   : > { %v5155_v48 = vpop.f32.mrb[97].mxu1 }
 0x358   : > { %v5156_v2 = vadd.f32 %v5155_v48, %v5154_v22  ;;  %v5157_v14 = vpop.f32.mrb[98].mxu1 }
 0x359   : > { %v5158_v49 = vpop.f32.mrb[99].mxu1 }
 0x35a   : > { %v3329_v40 = vadd.f32 %v5156_v2, %v7942_v61  ;;  %v5159_v62 = vadd.f32 %v5158_v49, %v5157_v14  ;;  %v7945_v2 = vld [vmem:[#allocation38_spill] sm:$0xff]  ;;  %v7948_v49 = vld [vmem:[#allocation39_spill] sm:$0xff] }
 0x35c   : > { %v3332_v13 = vadd.f32 %v5159_v62, %v7943_v63  ;;  %v7435_v35 = vadd.f32 %v7203_v55, %v3329_v40  ;;  %v7946_v62 = vld [vmem:[#allocation40_spill] sm:$0xff] }
 0x35e   : > { %v5160_v33 = vpop.f32.mrb[100].mxu1  ;;  %v7438_v4 = vadd.f32 %v7207_v45, %v3332_v13 }
 0x35f   : > { %v5161_v11 = vpop.f32.mrb[101].mxu1 }
 0x360   : > { %v5162_v37 = vadd.f32 %v5161_v11, %v5160_v33  ;;  %v5163_v3 = vpop.f32.mrb[102].mxu1 }
 0x361   : > { %v5164_v38 = vpop.f32.mrb[103].mxu1 }
 0x362   : > { %v3337_v22 = vadd.f32 %v5162_v37, %v7944_v16  ;;  %v5165_v9 = vadd.f32 %v5164_v38, %v5163_v3  ;;  %v7949_v37 = vld [vmem:[#allocation25_spill] sm:$0xff]  ;;  %v7950_v38 = vld [vmem:[#allocation42_spill] sm:$0xff] }
 0x364   : > { %v3340_v54 = vadd.f32 %v5165_v9, %v7209_v0  ;;  %v7443_v14 = vadd.f32 %v7945_v2, %v3337_v22 }
 0x366   : > { %v5166_v63 = vpop.f32.mrb[104].mxu1  ;;  %v7446_v55 = vadd.f32 %v7946_v62, %v3340_v54  ;;  %v7952_v62 = vld [vmem:[#allocation41_spill] sm:$0xff] }
 0x367   : > { %v5167_v40 = vpop.f32.mrb[105].mxu1 }
 0x368   : > { %7947 = vst [vmem:[#allocation33_spill] sm:$0xff] %v7446_v55  ;;  %v5168_v48 = vadd.f32 %v5167_v40, %v5166_v63  ;;  %v5169_v45 = vpop.f32.mrb[106].mxu1 }
 0x369   : > { %v5170_v13 = vpop.f32.mrb[107].mxu1 }
 0x36a   : > { %v3345_v61 = vadd.f32 %v5168_v48, %v7948_v49  ;;  %v5171_v33 = vadd.f32 %v5170_v13, %v5169_v45  ;;  %v7953_v48 = vld [vmem:[#allocation26_spill] sm:$0xff]  ;;  %v7954_v13 = vld [vmem:[#allocation44_spill] sm:$0xff] }
 0x36c   : > { %v3348_v11 = vadd.f32 %v5171_v33, %v7221_v52  ;;  %v7451_v3 = vadd.f32 %v7949_v37, %v3345_v61 }
 0x36e   : > { %v5172_v0 = vpop.f32.mrb[108].mxu1  ;;  %v7454_v16 = vadd.f32 %v7950_v38, %v3348_v11  ;;  %v7956_v38 = vld [vmem:[#allocation43_spill] sm:$0xff] }
 0x36f   : > { %v5173_v22 = vpop.f32.mrb[109].mxu1 }
 0x370   : > { %7951 = vst [vmem:[#allocation34_spill] sm:$0xff] %v7454_v16  ;;  %v5174_v9 = vadd.f32 %v5173_v22, %v5172_v0  ;;  %v5175_v54 = vpop.f32.mrb[110].mxu1 }
 0x371   : > { %v5176_v2 = vpop.f32.mrb[111].mxu1 }
 0x372   : > { %v3353_v63 = vadd.f32 %v5174_v9, %v7952_v62  ;;  %v5177_v40 = vadd.f32 %v5176_v2, %v5175_v54  ;;  %v7957_v9 = vld [vmem:[#allocation27_spill] sm:$0xff]  ;;  %v7959_v2 = vld [vmem:[#allocation46_spill] sm:$0xff] }
 0x374   : > { %v3356_v55 = vadd.f32 %v5177_v40, %v7233_v12  ;;  %v7459_v45 = vadd.f32 %v7953_v48, %v3353_v63 }
 0x376   : > { %v5178_v52 = vpop.f32.mrb[112].mxu1  ;;  %v7462_v49 = vadd.f32 %v7954_v13, %v3356_v55  ;;  %v7961_v13 = vld [vmem:[#allocation45_spill] sm:$0xff] }
 0x377   : > { %v5179_v61 = vpop.f32.mrb[113].mxu1 }
 0x378   : > { %7955 = vst [vmem:[#allocation35_spill] sm:$0xff] %v7462_v49  ;;  %v5180_v33 = vadd.f32 %v5179_v61, %v5178_v52  ;;  %v5181_v11 = vpop.f32.mrb[114].mxu1 }
 0x379   : > { %v5182_v37 = vpop.f32.mrb[115].mxu1 }
 0x37a   : > { %v3361_v0 = vadd.f32 %v5180_v33, %v7956_v38  ;;  %v5183_v22 = vadd.f32 %v5182_v37, %v5181_v11  ;;  %v7962_v33 = vld [vmem:[#allocation28_spill] sm:$0xff] }
 0x37b   : > { %v7964_v37 = vld [vmem:[#allocation48_spill] sm:$0xff] }
 0x37c   : > { %v3364_v16 = vadd.f32 %v5183_v22, %v7245_v56  ;;  %v7467_v54 = vadd.f32 %v7957_v9, %v3361_v0 }
 0x37e   : > { %7958 = vst [vmem:[#allocation36_spill] sm:$0xff] %v7467_v54  ;;  %v5184_v12 = vpop.f32.mrb[116].mxu1  ;;  %v7470_v62 = vadd.f32 %v7959_v2, %v3364_v16  ;;  %v7966_v2 = vld [vmem:[#allocation47_spill] sm:$0xff] }
 0x37f   : > { %v5185_v63 = vpop.f32.mrb[117].mxu1 }
 0x380   : > { %7960 = vst [vmem:[#allocation37_spill] sm:$0xff] %v7470_v62  ;;  %v5186_v40 = vadd.f32 %v5185_v63, %v5184_v12  ;;  %v5187_v55 = vpop.f32.mrb[118].mxu1  ;;  %v7967_v62 = vld [vmem:[#allocation49_spill] sm:$0xff] }
 0x381   : > { %v5188_v48 = vpop.f32.mrb[119].mxu1 }
 0x382   : > { %v3369_v52 = vadd.f32 %v5186_v40, %v7961_v13  ;;  %v5189_v61 = vadd.f32 %v5188_v48, %v5187_v55  ;;  %v7968_v40 = vld [vmem:[#allocation29_spill] sm:$0xff]  ;;  %v7969_v48 = vld [vmem:[#allocation51_spill] sm:$0xff] }
 0x384   : > { %v3372_v49 = vadd.f32 %v5189_v61, %v7257_v20  ;;  %v7475_v11 = vadd.f32 %v7962_v33, %v3369_v52 }
 0x386   : > { %7963 = vst [vmem:[#allocation38_spill] sm:$0xff] %v7475_v11  ;;  %v5190_v56 = vpop.f32.mrb[120].mxu1  ;;  %v7478_v38 = vadd.f32 %v7964_v37, %v3372_v49  ;;  %v7970_v37 = vld [vmem:[#allocation50_spill] sm:$0xff] }
 0x387   : > { %v5191_v0 = vpop.f32.mrb[121].mxu1 }
 0x388   : > { %7965 = vst [vmem:[#allocation40_spill] sm:$0xff] %v7478_v38  ;;  %v5192_v22 = vadd.f32 %v5191_v0, %v5190_v56  ;;  %v5193_v16 = vpop.f32.mrb[122].mxu1  ;;  %v7971_v38 = vld [vmem:[#allocation52_spill] sm:$0xff] }
 0x389   : > { %v5194_v9 = vpop.f32.mrb[123].mxu1 }
 0x38a   : > { %v3377_v12 = vadd.f32 %v5192_v22, %v7966_v2  ;;  %v5195_v63 = vadd.f32 %v5194_v9, %v5193_v16 }
 0x38c   : > { %v3380_v54 = vadd.f32 %v5195_v63, %v7967_v62  ;;  %v7483_v55 = vadd.f32 %v7968_v40, %v3377_v12 }
 0x38e   : > { %v5196_v20 = vpop.f32.mrb[124].mxu1  ;;  %v7486_v13 = vadd.f32 %v7969_v48, %v3380_v54 }
 0x38f   : > { %v5197_v52 = vpop.f32.mrb[125].mxu1 }
 0x390   : > { %v5198_v61 = vadd.f32 %v5197_v52, %v5196_v20  ;;  %v5199_v49 = vpop.f32.mrb[126].mxu1  ;;  %v7500_v20 = vld [vmem:[%s7816_s5] ss:$0 sm:$0xff] }
 0x391   : > { %v5200_v33 = vpop.f32.mrb[127].mxu1 }
 0x392   : > { %v3385_v56 = vadd.f32 %v5198_v61, %v7970_v37  ;;  %v5201_v0 = vadd.f32 %v5200_v33, %v5199_v49 }
 0x394   : > { %v3388_v11 = vadd.f32 %v5201_v0, %v7971_v38  ;;  %v7491_v22 = vadd.f32 %v7287_v29, %v3385_v56 }
 0x396   : > { %v5330_v62 = vpop.f32.mrb[128].mxu1  ;;  %v7494_v16 = vadd.f32 %v7289_v1, %v3388_v11  ;;  %v7507_v1 = vld [vmem:[%s7817_s6] ss:$0 sm:$0xff] }
 0x397   : > { %v5331_v9 = vpop.f32.mrb[129].mxu1 }
 0x398   : > { %v5332_v2 = vadd.f32 %v5331_v9, %v5330_v62  ;;  %v5333_v54 = vpop.f32.mrb[130].mxu1 }
 0x399   : > { %v5334_v12 = vpop.f32.mrb[131].mxu1 }
 0x39a   : > { %v3587_v63 = vadd.f32 %v5332_v2, %v7298_v28  ;;  %v5335_v40 = vadd.f32 %v5334_v12, %v5333_v54 }
 0x39c   : > { %v3748_v38 = vadd.f32 %v7302_v30, %v3587_v63  ;;  %v3590_v29 = vadd.f32 %v5335_v40, %v7305_v18 }
 0x39e   : > { %v3881_v11 = vmul.f32 %v7500_v20, %v3748_v38  ;;  %v3751_v48 = vadd.f32 %v7309_v5, %v3590_v29  ;;  %v5336_v28 = vpop.f32.mrb[132].mxu1 }
 0x39f   : > { %v5337_v52 = vpop.f32.mrb[133].mxu1 }
 0x3a0   : > { %v3882_v61 = vmul.f32 %v7500_v20, %v3751_v48  ;;  %v5338_v49 = vadd.f32 %v5337_v52, %v5336_v28  ;;  %v5339_v33 = vpop.f32.mrb[134].mxu1  ;;  %v3920_v37 = vadd.f32 %v7507_v1, %v3881_v11 }
 0x3a1   : > { %v5340_v30 = vpop.f32.mrb[135].mxu1 }
 0x3a2   : > { %v3595_v18 = vadd.f32 %v5338_v49, %v7318_v6  ;;  %v5341_v56 = vadd.f32 %v5340_v30, %v5339_v33  ;;  %v3921_v0 = vadd.f32 %v7507_v1, %v3882_v61  ;;  %v3952_v2 = vmax.f32 %v3920_v37, 0.0 }
 0x3a4   : > { %v3756_v62 = vadd.f32 %v7300_v25, %v3595_v18  ;;  %v3598_v9 = vadd.f32 %v5341_v56, %v7325_v34  ;;  %v3953_v5 = vmax.f32 %v3921_v0, 0.0 }
 0x3a6   : > { %v3883_v54 = vmul.f32 %v7500_v20, %v3756_v62  ;;  %v3759_v12 = vadd.f32 %v7307_v32, %v3598_v9  ;;  %v5342_v63 = vpop.f32.mrb[136].mxu1  ;;  %v3984_v40 = vpack.c.bf16 %v3953_v5, %v3952_v2 }
 0x3a7   : > { %v5343_v38 = vpop.f32.mrb[137].mxu1 }
 0x3a8   : > { %v3922_v29 = vadd.f32 %v7507_v1, %v3883_v54  ;;  %v3884_v6 = vmul.f32 %v7500_v20, %v3759_v12  ;;  %v5344_v11 = vadd.f32 %v5343_v38, %v5342_v63  ;;  %v5345_v48 = vpop.f32.mrb[138].mxu1  ;;  %5626 = vmatprep.mubr.bf16.mxu0 %v3984_v40 }
 0x3a9   : > { %v5346_v28 = vpop.f32.mrb[139].mxu1 }
 0x3aa   : > { %v3923_v25 = vadd.f32 %v7507_v1, %v3884_v6  ;;  %v3603_v34 = vadd.f32 %v5344_v11, %v7338_v27  ;;  %v5347_v52 = vadd.f32 %v5346_v28, %v5345_v48  ;;  %v3954_v61 = vmax.f32 %v3922_v29, 0.0 }
 0x3ac   : > { %v3955_v49 = vmax.f32 %v3923_v25, 0.0  ;;  %v3764_v32 = vadd.f32 %v7322_v7, %v3603_v34  ;;  %v3606_v33 = vadd.f32 %v5347_v52, %v7345_v8 }
 0x3ae   : > { %v3985_v37 = vpack.c.bf16 %v3955_v49, %v3954_v61  ;;  %v3885_v30 = vmul.f32 %v7500_v20, %v3764_v32  ;;  %v3767_v18 = vadd.f32 %v7329_v36, %v3606_v33  ;;  %v5348_v56 = vpop.f32.mrb[140].mxu1 }
 0x3af   : > { %v5349_v0 = vpop.f32.mrb[141].mxu1 }
 0x3b0   : > { %v3886_v62 = vmul.f32 %v7500_v20, %v3767_v18  ;;  %v5350_v9 = vadd.f32 %v5349_v0, %v5348_v56  ;;  %v5351_v2 = vpop.f32.mrb[142].mxu1  ;;  %5627 = vmatmul.mubr.bf16.vlgmr.msra.gmra.mrb[164].mxu0 %v3985_v37  ;;  %v3924_v27 = vadd.f32 %v7507_v1, %v3885_v30 }
 0x3b1   : > { %v5352_v5 = vpop.f32.mrb[143].mxu1 }
 0x3b2   : > { %v3611_v54 = vadd.f32 %v5350_v9, %v7358_v44  ;;  %v5353_v7 = vadd.f32 %v5352_v5, %v5351_v2  ;;  %v3925_v8 = vadd.f32 %v7507_v1, %v3886_v62  ;;  %v3956_v36 = vmax.f32 %v3924_v27, 0.0 }
 0x3b4   : > { %v3772_v12 = vadd.f32 %v7320_v39, %v3611_v54  ;;  %v3614_v63 = vadd.f32 %v5353_v7, %v7365_v15  ;;  %v3957_v40 = vmax.f32 %v3925_v8, 0.0 }
 0x3b6   : > { %v3887_v38 = vmul.f32 %v7500_v20, %v3772_v12  ;;  %v3775_v29 = vadd.f32 %v7327_v60, %v3614_v63  ;;  %v5354_v6 = vpop.f32.mrb[144].mxu1  ;;  %v3986_v11 = vpack.c.bf16 %v3957_v40, %v3956_v36 }
 0x3b7   : > { %v5355_v48 = vpop.f32.mrb[145].mxu1 }
 0x3b8   : > { %v3888_v28 = vmul.f32 %v7500_v20, %v3775_v29  ;;  %v5356_v25 = vadd.f32 %v5355_v48, %v5354_v6  ;;  %v5357_v44 = vpop.f32.mrb[146].mxu1  ;;  %5630 = vmatprep.mubr.bf16.mxu0 %v3986_v11  ;;  %v3926_v34 = vadd.f32 %v7507_v1, %v3887_v38 }
 0x3b9   : > { %v5358_v52 = vpop.f32.mrb[147].mxu1 }
 0x3ba   : > { %v3619_v39 = vadd.f32 %v5356_v25, %v7378_v50  ;;  %v5359_v15 = vadd.f32 %v5358_v52, %v5357_v44  ;;  %v3927_v61 = vadd.f32 %v7507_v1, %v3888_v28  ;;  %v3958_v32 = vmax.f32 %v3926_v34, 0.0 }
 0x3bc   : > { %v3780_v49 = vadd.f32 %v7342_v53, %v3619_v39  ;;  %v3622_v60 = vadd.f32 %v5359_v15, %v7385_v46  ;;  %v3959_v33 = vmax.f32 %v3927_v61, 0.0 }
 0x3be   : > { %v3889_v37 = vmul.f32 %v7500_v20, %v3780_v49  ;;  %v3783_v30 = vadd.f32 %v7349_v19, %v3622_v60  ;;  %v5360_v18 = vpop.f32.mrb[148].mxu1  ;;  %v3987_v56 = vpack.c.bf16 %v3959_v33, %v3958_v32 }
 0x3bf   : > { %v5361_v0 = vpop.f32.mrb[149].mxu1 }
 0x3c0   : > { %v3890_v62 = vmul.f32 %v7500_v20, %v3783_v30  ;;  %v5362_v9 = vadd.f32 %v5361_v0, %v5360_v18  ;;  %v5363_v50 = vpop.f32.mrb[150].mxu1  ;;  %5631 = vmatmul.mubr.bf16.gmra.mrb[168].mxu0 %v3987_v56  ;;  %v3928_v2 = vadd.f32 %v7507_v1, %v3889_v37 }
 0x3c1   : > { %v5364_v27 = vpop.f32.mrb[151].mxu1 }
 0x3c2   : > { %v3627_v53 = vadd.f32 %v5362_v9, %v7395_v58  ;;  %v5365_v46 = vadd.f32 %v5364_v27, %v5363_v50  ;;  %v3929_v5 = vadd.f32 %v7507_v1, %v3890_v62  ;;  %v3960_v7 = vmax.f32 %v3928_v2, 0.0 }
 0x3c4   : > { %v3788_v54 = vadd.f32 %v7340_v17, %v3627_v53  ;;  %v3630_v19 = vadd.f32 %v5365_v46, %v7402_v57  ;;  %v3961_v8 = vmax.f32 %v3929_v5, 0.0 }
 0x3c6   : > { %v3891_v12 = vmul.f32 %v7500_v20, %v3788_v54  ;;  %v3791_v63 = vadd.f32 %v7347_v47, %v3630_v19  ;;  %v5366_v36 = vpop.f32.mrb[152].mxu1  ;;  %v3988_v40 = vpack.c.bf16 %v3961_v8, %v3960_v7 }
 0x3c7   : > { %v5367_v38 = vpop.f32.mrb[153].mxu1 }
 0x3c8   : > { %v3892_v29 = vmul.f32 %v7500_v20, %v3791_v63  ;;  %v5368_v6 = vadd.f32 %v5367_v38, %v5366_v36  ;;  %v5369_v58 = vpop.f32.mrb[154].mxu1  ;;  %5634 = vmatprep.mubr.bf16.mxu0 %v3988_v40  ;;  %v3930_v11 = vadd.f32 %v7507_v1, %v3891_v12 }
 0x3c9   : > { %v5370_v48 = vpop.f32.mrb[155].mxu1 }
 0x3ca   : > { %v3635_v17 = vadd.f32 %v5368_v6, %v7411_v42  ;;  %v5371_v57 = vadd.f32 %v5370_v48, %v5369_v58  ;;  %v3931_v28 = vadd.f32 %v7507_v1, %v3892_v29  ;;  %v3962_v44 = vmax.f32 %v3930_v11, 0.0 }
 0x3cc   : > { %v3796_v25 = vadd.f32 %v7362_v59, %v3635_v17  ;;  %v3638_v47 = vadd.f32 %v5371_v57, %v7418_v31  ;;  %v3963_v34 = vmax.f32 %v3931_v28, 0.0  ;;  %v7972_v28 = vld [vmem:[#allocation33_spill] sm:$0xff] }
 0x3ce   : > { %v3893_v52 = vmul.f32 %v7500_v20, %v3796_v25  ;;  %v3799_v39 = vadd.f32 %v7369_v26, %v3638_v47  ;;  %v5372_v15 = vpop.f32.mrb[156].mxu1  ;;  %v3989_v61 = vpack.c.bf16 %v3963_v34, %v3962_v44  ;;  %v7973_v34 = vld [vmem:[#allocation30_spill] sm:$0xff] }
 0x3cf   : > { %v5373_v49 = vpop.f32.mrb[157].mxu1 }
 0x3d0   : > { %v3894_v60 = vmul.f32 %v7500_v20, %v3799_v39  ;;  %v5374_v32 = vadd.f32 %v5373_v49, %v5372_v15  ;;  %v5375_v42 = vpop.f32.mrb[158].mxu1  ;;  %5635 = vmatmul.mubr.bf16.gmra.mrb[172].mxu0 %v3989_v61  ;;  %v3932_v33 = vadd.f32 %v7507_v1, %v3893_v52 }
 0x3d1   : > { %v5376_v37 = vpop.f32.mrb[159].mxu1 }
 0x3d2   : > { %v3643_v59 = vadd.f32 %v5374_v32, %v7427_v41  ;;  %v5377_v31 = vadd.f32 %v5376_v37, %v5375_v42  ;;  %v3933_v30 = vadd.f32 %v7507_v1, %v3894_v60  ;;  %v3964_v56 = vmax.f32 %v3932_v33, 0.0 }
 0x3d4   : > { %v3804_v18 = vadd.f32 %v7360_v10, %v3643_v59  ;;  %v3646_v26 = vadd.f32 %v5377_v31, %v7430_v51  ;;  %v3965_v0 = vmax.f32 %v3933_v30, 0.0  ;;  %v7974_v59 = vld [vmem:[#allocation53_spill] sm:$0xff]  ;;  %v7975_v30 = vld [vmem:[#allocation34_spill] sm:$0xff] }
 0x3d6   : > { %v3895_v62 = vmul.f32 %v7500_v20, %v3804_v18  ;;  %v3807_v9 = vadd.f32 %v7367_v24, %v3646_v26  ;;  %v5378_v50 = vpop.f32.mrb[160].mxu1  ;;  %v3990_v2 = vpack.c.bf16 %v3965_v0, %v3964_v56 }
 0x3d7   : > { %v5379_v27 = vpop.f32.mrb[161].mxu1 }
 0x3d8   : > { %v3896_v53 = vmul.f32 %v7500_v20, %v3807_v9  ;;  %v5380_v46 = vadd.f32 %v5379_v27, %v5378_v50  ;;  %v5381_v41 = vpop.f32.mrb[162].mxu1  ;;  %5638 = vmatprep.mubr.bf16.mxu0 %v3990_v2  ;;  %v3934_v5 = vadd.f32 %v7507_v1, %v3895_v62  ;;  %v7976_v62 = vld [vmem:[#allocation55_spill] sm:$0xff] }
 0x3d9   : > { %v5382_v54 = vpop.f32.mrb[163].mxu1 }
 0x3da   : > { %v3651_v10 = vadd.f32 %v5380_v46, %v7435_v35  ;;  %v5383_v51 = vadd.f32 %v5382_v54, %v5381_v41  ;;  %v3935_v19 = vadd.f32 %v7507_v1, %v3896_v53  ;;  %v3966_v8 = vmax.f32 %v3934_v5, 0.0 }
 0x3dc   : > { %v3812_v7 = vadd.f32 %v7382_v23, %v3651_v10  ;;  %v3654_v24 = vadd.f32 %v5383_v51, %v7438_v4  ;;  %v3967_v12 = vmax.f32 %v3935_v19, 0.0  ;;  %v7977_v19 = vld [vmem:[#allocation31_spill] sm:$0xff] }
 0x3de   : > { %v3897_v63 = vmul.f32 %v7500_v20, %v3812_v7  ;;  %v3815_v36 = vadd.f32 %v7389_v21, %v3654_v24  ;;  %v5384_v40 = vpop.f32.mrb[164].mxu1  ;;  %v3991_v38 = vpack.c.bf16 %v3967_v12, %v3966_v8  ;;  %v7978_v24 = vld [vmem:[#allocation35_spill] sm:$0xff] }
 0x3df   : > { %v5385_v29 = vpop.f32.mrb[165].mxu1 }
 0x3e0   : > { %v3898_v6 = vmul.f32 %v7500_v20, %v3815_v36  ;;  %v5386_v58 = vadd.f32 %v5385_v29, %v5384_v40  ;;  %v5387_v35 = vpop.f32.mrb[166].mxu1  ;;  %5639 = vmatmul.mubr.bf16.gmra.mrb[176].mxu0 %v3991_v38  ;;  %v3936_v11 = vadd.f32 %v7507_v1, %v3897_v63  ;;  %v7979_v40 = vld [vmem:[#allocation54_spill] sm:$0xff] }
 0x3e1   : > { %v5388_v48 = vpop.f32.mrb[167].mxu1 }
 0x3e2   : > { %v3659_v23 = vadd.f32 %v5386_v58, %v7443_v14  ;;  %v5389_v4 = vadd.f32 %v5388_v48, %v5387_v35  ;;  %v3937_v17 = vadd.f32 %v7507_v1, %v3898_v6  ;;  %v3968_v25 = vmax.f32 %v3936_v11, 0.0 }
 0x3e4   : > { %v3820_v57 = vadd.f32 %v7380_v43, %v3659_v23  ;;  %v3662_v21 = vadd.f32 %v5389_v4, %v7972_v28  ;;  %v3969_v47 = vmax.f32 %v3937_v17, 0.0  ;;  %v7980_v4 = vld [vmem:[#allocation36_spill] sm:$0xff] }
 0x3e6   : > { %v3899_v44 = vmul.f32 %v7500_v20, %v3820_v57  ;;  %v3823_v52 = vadd.f32 %v7973_v34, %v3662_v21  ;;  %v5390_v39 = vpop.f32.mrb[168].mxu1  ;;  %v3992_v15 = vpack.c.bf16 %v3969_v47, %v3968_v25  ;;  %v7981_v21 = vld [vmem:[#allocation56_spill] sm:$0xff]  ;;  %v7982_v47 = vld [vmem:[#allocation37_spill] sm:$0xff] }
 0x3e7   : > { %v5391_v61 = vpop.f32.mrb[169].mxu1 }
 0x3e8   : > { %v3900_v49 = vmul.f32 %v7500_v20, %v3823_v52  ;;  %v5392_v60 = vadd.f32 %v5391_v61, %v5390_v39  ;;  %v5393_v14 = vpop.f32.mrb[170].mxu1  ;;  %5642 = vmatprep.mubr.bf16.mxu0 %v3992_v15  ;;  %v3938_v32 = vadd.f32 %v7507_v1, %v3899_v44  ;;  %v7983_v15 = vld [vmem:[#allocation58_spill] sm:$0xff] }
 0x3e9   : > { %v5394_v42 = vpop.f32.mrb[171].mxu1 }
 0x3ea   : > { %v3667_v43 = vadd.f32 %v5392_v60, %v7451_v3  ;;  %v5395_v33 = vadd.f32 %v5394_v42, %v5393_v14  ;;  %v3939_v37 = vadd.f32 %v7507_v1, %v3900_v49  ;;  %v3970_v26 = vmax.f32 %v3938_v32, 0.0 }
 0x3ec   : > { %v3828_v31 = vadd.f32 %v7974_v59, %v3667_v43  ;;  %v3670_v18 = vadd.f32 %v5395_v33, %v7975_v30  ;;  %v3971_v56 = vmax.f32 %v3939_v37, 0.0  ;;  %v7984_v59 = vld [vmem:[#allocation38_spill] sm:$0xff] }
 0x3ee   : > { %v3901_v0 = vmul.f32 %v7500_v20, %v3828_v31  ;;  %v3831_v9 = vadd.f32 %v7976_v62, %v3670_v18  ;;  %v5396_v50 = vpop.f32.mrb[172].mxu1  ;;  %v3993_v2 = vpack.c.bf16 %v3971_v56, %v3970_v26  ;;  %v7985_v26 = vld [vmem:[#allocation32_spill] sm:$0xff] }
 0x3ef   : > { %v5397_v27 = vpop.f32.mrb[173].mxu1 }
 0x3f0   : > { %v3902_v53 = vmul.f32 %v7500_v20, %v3831_v9  ;;  %v5398_v46 = vadd.f32 %v5397_v27, %v5396_v50  ;;  %v5399_v3 = vpop.f32.mrb[174].mxu1  ;;  %5643 = vmatmul.mubr.bf16.gmra.mrb[180].mxu0 %v3993_v2  ;;  %v3940_v41 = vadd.f32 %v7507_v1, %v3901_v0  ;;  %v7986_v0 = vld [vmem:[#allocation40_spill] sm:$0xff]  ;;  %v7987_v27 = vld [vmem:[#allocation57_spill] sm:$0xff] }
 0x3f1   : > { %v5400_v5 = vpop.f32.mrb[175].mxu1 }
 0x3f2   : > { %v3675_v54 = vadd.f32 %v5398_v46, %v7459_v45  ;;  %v5401_v10 = vadd.f32 %v5400_v5, %v5399_v3  ;;  %v3941_v51 = vadd.f32 %v7507_v1, %v3902_v53  ;;  %v3972_v12 = vmax.f32 %v3940_v41, 0.0 }
 0x3f4   : > { %v3836_v7 = vadd.f32 %v7977_v19, %v3675_v54  ;;  %v3678_v8 = vadd.f32 %v5401_v10, %v7978_v24  ;;  %v3973_v63 = vmax.f32 %v3941_v51, 0.0 }
 0x3f6   : > { %v3903_v36 = vmul.f32 %v7500_v20, %v3836_v7  ;;  %v3839_v38 = vadd.f32 %v7979_v40, %v3678_v8  ;;  %v5402_v29 = vpop.f32.mrb[176].mxu1  ;;  %v3994_v6 = vpack.c.bf16 %v3973_v63, %v3972_v12 }
 0x3f7   : > { %v5403_v58 = vpop.f32.mrb[177].mxu1 }
 0x3f8   : > { %v3904_v35 = vmul.f32 %v7500_v20, %v3839_v38  ;;  %v5404_v11 = vadd.f32 %v5403_v58, %v5402_v29  ;;  %v5405_v45 = vpop.f32.mrb[178].mxu1  ;;  %5646 = vmatprep.mubr.bf16.mxu0 %v3994_v6  ;;  %v3942_v48 = vadd.f32 %v7507_v1, %v3903_v36 }
 0x3f9   : > { %v5406_v23 = vpop.f32.mrb[179].mxu1 }
 0x3fa   : > { %v3683_v17 = vadd.f32 %v5404_v11, %v7980_v4  ;;  %v5407_v57 = vadd.f32 %v5406_v23, %v5405_v45  ;;  %v3943_v28 = vadd.f32 %v7507_v1, %v3904_v35  ;;  %v3974_v34 = vmax.f32 %v3942_v48, 0.0 }
 0x3fc   : > { %v3844_v25 = vadd.f32 %v7981_v21, %v3683_v17  ;;  %v3686_v44 = vadd.f32 %v5407_v57, %v7982_v47  ;;  %v3975_v52 = vmax.f32 %v3943_v28, 0.0 }
 0x3fe   : > { %v3905_v39 = vmul.f32 %v7500_v20, %v3844_v25  ;;  %v3847_v61 = vadd.f32 %v7983_v15, %v3686_v44  ;;  %v5408_v49 = vpop.f32.mrb[180].mxu1  ;;  %v3995_v60 = vpack.c.bf16 %v3975_v52, %v3974_v34 }
 0x3ff   : > { %v5409_v14 = vpop.f32.mrb[181].mxu1 }
 0x400   : > { %v3906_v32 = vmul.f32 %v7500_v20, %v3847_v61  ;;  %v5410_v42 = vadd.f32 %v5409_v14, %v5408_v49  ;;  %v5411_v43 = vpop.f32.mrb[182].mxu1  ;;  %5647 = vmatmul.mubr.bf16.gmra.mrb[184].mxu0 %v3995_v60  ;;  %v3944_v33 = vadd.f32 %v7507_v1, %v3905_v39 }
 0x401   : > { %v5412_v37 = vpop.f32.mrb[183].mxu1 }
 0x402   : > { %v3691_v31 = vadd.f32 %v5410_v42, %v7984_v59  ;;  %v5413_v30 = vadd.f32 %v5412_v37, %v5411_v43  ;;  %v3945_v18 = vadd.f32 %v7507_v1, %v3906_v32  ;;  %v3976_v9 = vmax.f32 %v3944_v33, 0.0  ;;  %v7633_v42 = vld [vmem:[%s7988_s28] ss:$0 sm:$0xff]  ;;  %v4919_v43 = vld [vmem:[%s6492_s29 + $0x8] sm:$0xff]  }
 0x403   : > { %v4861_v59 = vunpack.c.l.bf16 %v4919_v43 }
 0x404   : > { %v3852_v56 = vadd.f32 %v7985_v26, %v3691_v31  ;;  %v3694_v62 = vadd.f32 %v5413_v30, %v7986_v0  ;;  %v3977_v50 = vmax.f32 %v3945_v18, 0.0 }
 0x406   : > { %v3907_v2 = vmul.f32 %v7500_v20, %v3852_v56  ;;  %v3855_v53 = vadd.f32 %v7987_v27, %v3694_v62  ;;  %v5414_v46 = vpop.f32.mrb[184].mxu1  ;;  %v3996_v3 = vpack.c.bf16 %v3977_v50, %v3976_v9  ;;  %v4862_v62 = vunpack.c.h.bf16 %v4919_v43 }
 0x407   : > { %v5415_v41 = vpop.f32.mrb[185].mxu1 }
 0x408   : > { %v3908_v5 = vmul.f32 %v7500_v20, %v3855_v53  ;;  %v5416_v54 = vadd.f32 %v5415_v41, %v5414_v46  ;;  %v5417_v10 = vpop.f32.mrb[186].mxu1  ;;  %5650 = vmatprep.mubr.bf16.mxu0 %v3996_v3  ;;  %v3946_v51 = vadd.f32 %v7507_v1, %v3907_v2 }
 0x409   : > { %v5418_v19 = vpop.f32.mrb[187].mxu1 }
 0x40a   : > { %v5419_v7 = vadd.f32 %v5418_v19, %v5417_v10  ;;  %v3947_v24 = vadd.f32 %v7507_v1, %v3908_v5  ;;  %v3699_v8 = vadd.f32 %v5416_v54, %v7483_v55  ;;  %v3978_v12 = vmax.f32 %v3946_v51, 0.0 }
 0x40c   : > { %v3979_v63 = vmax.f32 %v3947_v24, 0.0  ;;  %v3702_v36 = vadd.f32 %v5419_v7, %v7486_v13  ;;  %v4921_v24 = vld [vmem:[%s6492_s29 + $0x18] sm:$0xff]  }
 0x40e   : > { %v5420_v40 = vpop.f32.mrb[188].mxu1  ;;  %v3997_v38 = vpack.c.bf16 %v3979_v63, %v3978_v12 }
 0x40f   : > { %v5421_v29 = vpop.f32.mrb[189].mxu1 }
 0x410   : > { %v5422_v6 = vadd.f32 %v5421_v29, %v5420_v40  ;;  %v5423_v58 = vpop.f32.mrb[190].mxu1  ;;  %5651 = vmatmul.mubr.bf16.gmra.mrb[188].mxu0 %v3997_v38 }
 0x411   : > { %v5424_v35 = vpop.f32.mrb[191].mxu1 }
 0x412   : > { %v5425_v11 = vadd.f32 %v5424_v35, %v5423_v58  ;;  %v3707_v45 = vadd.f32 %v5422_v6, %v7491_v22 }
 0x414   : > { %v3710_v48 = vadd.f32 %v5425_v11, %v7494_v16  ;;  %v4870_v11 = vunpack.c.h.bf16 %v4921_v24 }
 0x416   : > { %v5608_v23 = vpop.f32.mrb[192].mxu1 }
 0x417   : > { %v3868_v4 = vadd.f32 %v5608_v23, %v3707_v45  ;;  %v3859_v17 = vpop.f32.mrb[193].mxu1 }
 0x418   : > { %v3860_v55 = vadd.f32 %v3859_v17, %v3699_v8  ;;  %v5609_v57 = vpop.f32.mrb[194].mxu1  ;;  %v4920_v8 = vld [vmem:[%s6492_s29 + $0x10] sm:$0xff]  }
 0x419   : > { %v3911_v28 = vmul.f32 %v7500_v20, %v3868_v4  ;;  %v3871_v13 = vadd.f32 %v5609_v57, %v3710_v48  ;;  %v3862_v21 = vpop.f32.mrb[195].mxu1  ;;  %v4865_v29 = vunpack.c.l.bf16 %v4920_v8  ;;  %v4866_v4 = vunpack.c.h.bf16 %v4920_v8 }
 0x41a   : > { %v3909_v25 = vmul.f32 %v7500_v20, %v3860_v55  ;;  %v3863_v47 = vadd.f32 %v3862_v21, %v3702_v36  ;;  %v4869_v36 = vunpack.c.l.bf16 %v4921_v24 }
 0x41b   : > { %v3950_v44 = vadd.f32 %v7507_v1, %v3911_v28  ;;  %v3912_v22 = vmul.f32 %v7500_v20, %v3871_v13 }
 0x41c   : > { %v3948_v16 = vadd.f32 %v7507_v1, %v3909_v25  ;;  %v3910_v34 = vmul.f32 %v7500_v20, %v3863_v47  ;;  %v4856_v20 = vld [vmem:[%s6492_s29] sm:$0xff]  }
 0x41d   : > { %v3951_v52 = vadd.f32 %v7507_v1, %v3912_v22  ;;  %v3982_v15 = vmax.f32 %v3950_v44, 0.0  ;;  %v4857_v18 = vunpack.c.l.bf16 %v4856_v20  ;;  %v4858_v27 = vunpack.c.h.bf16 %v4856_v20 }
 0x41e   : > { %v3949_v39 = vadd.f32 %v7507_v1, %v3910_v34  ;;  %v3980_v49 = vmax.f32 %v3948_v16, 0.0  ;;  %v7640_v1 = vld [vmem:[%s7989_s30] ss:$0 sm:$0xff]  ;;  %v4923_v16 = vld [vmem:[%s6492_s29 + $0x28] sm:$0xff]  }
 0x41f   : > { %v3983_v61 = vmax.f32 %v3951_v52, 0.0  ;;  %v4922_v34 = vld [vmem:[%s6492_s29 + $0x20] sm:$0xff]   ;;  %v4878_v20 = vunpack.c.h.bf16 %v4923_v16 }
 0x420   : > { %v3981_v60 = vmax.f32 %v3949_v39, 0.0 }
 0x421   : > { %v3999_v14 = vpack.c.bf16 %v3983_v61, %v3982_v15  ;;  %v4877_v15 = vunpack.c.l.bf16 %v4923_v16 }
 0x422   : > { %v3998_v32 = vpack.c.bf16 %v3981_v60, %v3980_v49  ;;  %v4873_v60 = vunpack.c.l.bf16 %v4922_v34 }
 0x424   : > { %5654 = vmatprep.mubr.bf16.mxu0 %v3998_v32 }
 0x425   : > { %5655 = vmatmul.mubr.bf16.gmra.mrb[192].mxu0 %v3999_v14 }
 0x483   : > { %v5628_v33 = vpop.f32.mrb[164].mxu0 }
 0x484   : > { %v4234_v37 = vmul.f32 %v5628_v33, %v7633_v42  ;;  %v4098_v31 = vpop.f32.mrb[165].mxu0 }
 0x485   : > { %v4232_v30 = vmul.f32 %v7633_v42, %v4098_v31  ;;  %v5629_v26 = vpop.f32.mrb[166].mxu0  ;;  %v4874_v31 = vunpack.c.h.bf16 %v4922_v34 }
 0x486   : > { %v4273_v56 = vadd.f32 %v7640_v1, %v4234_v37  ;;  %v4235_v0 = vmul.f32 %v5629_v26, %v7633_v42  ;;  %v4101_v9 = vpop.f32.mrb[167].mxu0 }
 0x487   : > { %v4271_v50 = vadd.f32 %v7640_v1, %v4232_v30  ;;  %v4233_v2 = vmul.f32 %v7633_v42, %v4101_v9 }
 0x488   : > { %v4369_v53 = vadd.f32 %v4861_v59, %v4273_v56  ;;  %v4274_v46 = vadd.f32 %v7640_v1, %v4235_v0 }
 0x489   : > { %v4367_v3 = vadd.f32 %v4857_v18, %v4271_v50  ;;  %v4272_v41 = vadd.f32 %v7640_v1, %v4233_v2 }
 0x48a   : > { %v4401_v5 = vmax.f32 %v4369_v53, 0.0  ;;  %v4370_v54 = vadd.f32 %v4862_v62, %v4274_v46  ;;  %v4925_v53 = vld [vmem:[%s6492_s29 + $0x38] sm:$0xff]   ;;  %v4924_v46 = vld [vmem:[%s6492_s29 + $0x30] sm:$0xff]  }
 0x48b   : > { %v4399_v10 = vmax.f32 %v4367_v3, 0.0  ;;  %v4368_v51 = vadd.f32 %v4858_v27, %v4272_v41  ;;  %v4886_v8 = vunpack.c.h.bf16 %v4925_v53 }
 0x48c   : > { %4433 = vst [vmem:[%s7651_s27 + $0x10] sm:$0xff] %v4401_v5  ;;  %v4402_v19 = vmax.f32 %v4370_v54, 0.0  ;;  %v4885_v5 = vunpack.c.l.bf16 %v4925_v53 }
 0x48d   : > { %4431 = vst [vmem:[%s7651_s27] sm:$0xff] %v4399_v10  ;;  %v4400_v7 = vmax.f32 %v4368_v51, 0.0  ;;  %v4881_v51 = vunpack.c.l.bf16 %v4924_v46 }
 0x48e   : > { %4434 = vst [vmem:[%s7651_s27 + $0x18] sm:$0xff] %v4402_v19 }
 0x48f   : > { %4432 = vst [vmem:[%s7651_s27 + $0x8] sm:$0xff] %v4400_v7 }
 0x493   : > { %v5632_v12 = vpop.f32.mrb[168].mxu0 }
 0x494   : > { %v4238_v63 = vmul.f32 %v5632_v12, %v7633_v42  ;;  %v4114_v40 = vpop.f32.mrb[169].mxu0 }
 0x495   : > { %v4236_v38 = vmul.f32 %v7633_v42, %v4114_v40  ;;  %v5633_v6 = vpop.f32.mrb[170].mxu0  ;;  %v4882_v40 = vunpack.c.h.bf16 %v4924_v46 }
 0x496   : > { %v4277_v58 = vadd.f32 %v7640_v1, %v4238_v63  ;;  %v4239_v35 = vmul.f32 %v5633_v6, %v7633_v42  ;;  %v4117_v45 = vpop.f32.mrb[171].mxu0 }
 0x497   : > { %v4275_v48 = vadd.f32 %v7640_v1, %v4236_v38  ;;  %v4237_v23 = vmul.f32 %v7633_v42, %v4117_v45 }
 0x498   : > { %v4373_v17 = vadd.f32 %v4869_v36, %v4277_v58  ;;  %v4278_v55 = vadd.f32 %v7640_v1, %v4239_v35 }
 0x499   : > { %v4371_v57 = vadd.f32 %v4865_v29, %v4275_v48  ;;  %v4276_v28 = vadd.f32 %v7640_v1, %v4237_v23 }
 0x49a   : > { %v4405_v13 = vmax.f32 %v4373_v17, 0.0  ;;  %v4374_v21 = vadd.f32 %v4870_v11, %v4278_v55  ;;  %v4927_v17 = vld [vmem:[%s6492_s29 + $0x48] sm:$0xff]   ;;  %v4926_v55 = vld [vmem:[%s6492_s29 + $0x40] sm:$0xff]  }
 0x49b   : > { %v4403_v25 = vmax.f32 %v4371_v57, 0.0  ;;  %v4372_v47 = vadd.f32 %v4866_v4, %v4276_v28  ;;  %v4894_v34 = vunpack.c.h.bf16 %v4927_v17 }
 0x49c   : > { %4437 = vst [vmem:[%s7651_s27 + $0x30] sm:$0xff] %v4405_v13  ;;  %v4406_v44 = vmax.f32 %v4374_v21, 0.0  ;;  %v4893_v13 = vunpack.c.l.bf16 %v4927_v17 }
 0x49d   : > { %4435 = vst [vmem:[%s7651_s27 + $0x20] sm:$0xff] %v4403_v25  ;;  %v4404_v22 = vmax.f32 %v4372_v47, 0.0  ;;  %v4889_v47 = vunpack.c.l.bf16 %v4926_v55 }
 0x49e   : > { %4438 = vst [vmem:[%s7651_s27 + $0x38] sm:$0xff] %v4406_v44 }
 0x49f   : > { %4436 = vst [vmem:[%s7651_s27 + $0x28] sm:$0xff] %v4404_v22 }
 0x4a3   : > { %v5636_v52 = vpop.f32.mrb[172].mxu0 }
 0x4a4   : > { %v4242_v39 = vmul.f32 %v5636_v52, %v7633_v42  ;;  %v4130_v61 = vpop.f32.mrb[173].mxu0 }
 0x4a5   : > { %v4240_v49 = vmul.f32 %v7633_v42, %v4130_v61  ;;  %v5637_v14 = vpop.f32.mrb[174].mxu0  ;;  %v4890_v61 = vunpack.c.h.bf16 %v4926_v55 }
 0x4a6   : > { %v4281_v32 = vadd.f32 %v7640_v1, %v4242_v39  ;;  %v4243_v43 = vmul.f32 %v5637_v14, %v7633_v42  ;;  %v4133_v33 = vpop.f32.mrb[175].mxu0 }
 0x4a7   : > { %v4279_v37 = vadd.f32 %v7640_v1, %v4240_v49  ;;  %v4241_v59 = vmul.f32 %v7633_v42, %v4133_v33 }
 0x4a8   : > { %v4377_v30 = vadd.f32 %v4877_v15, %v4281_v32  ;;  %v4282_v18 = vadd.f32 %v7640_v1, %v4243_v43 }
 0x4a9   : > { %v4375_v26 = vadd.f32 %v4873_v60, %v4279_v37  ;;  %v4280_v56 = vadd.f32 %v7640_v1, %v4241_v59 }
 0x4aa   : > { %v4409_v0 = vmax.f32 %v4377_v30, 0.0  ;;  %v4378_v62 = vadd.f32 %v4878_v20, %v4282_v18  ;;  %v4929_v30 = vld [vmem:[%s6492_s29 + $0x58] sm:$0xff]   ;;  %v4928_v18 = vld [vmem:[%s6492_s29 + $0x50] sm:$0xff]  }
 0x4ab   : > { %v4407_v9 = vmax.f32 %v4375_v26, 0.0  ;;  %v4376_v50 = vadd.f32 %v4874_v31, %v4280_v56  ;;  %v4902_v46 = vunpack.c.h.bf16 %v4929_v30 }
 0x4ac   : > { %4441 = vst [vmem:[%s7651_s27 + $0x50] sm:$0xff] %v4409_v0  ;;  %v4410_v2 = vmax.f32 %v4378_v62, 0.0  ;;  %v4901_v0 = vunpack.c.l.bf16 %v4929_v30 }
 0x4ad   : > { %4439 = vst [vmem:[%s7651_s27 + $0x40] sm:$0xff] %v4407_v9  ;;  %v4408_v27 = vmax.f32 %v4376_v50, 0.0  ;;  %v4897_v50 = vunpack.c.l.bf16 %v4928_v18 }
 0x4ae   : > { %4442 = vst [vmem:[%s7651_s27 + $0x58] sm:$0xff] %v4410_v2 }
 0x4af   : > { %4440 = vst [vmem:[%s7651_s27 + $0x48] sm:$0xff] %v4408_v27 }
 0x4b3   : > { %v5640_v3 = vpop.f32.mrb[176].mxu0 }
 0x4b4   : > { %v4246_v41 = vmul.f32 %v5640_v3, %v7633_v42  ;;  %v4146_v54 = vpop.f32.mrb[177].mxu0 }
 0x4b5   : > { %v4244_v10 = vmul.f32 %v7633_v42, %v4146_v54  ;;  %v5641_v19 = vpop.f32.mrb[178].mxu0  ;;  %v4898_v54 = vunpack.c.h.bf16 %v4928_v18 }
 0x4b6   : > { %v4285_v7 = vadd.f32 %v7640_v1, %v4246_v41  ;;  %v4247_v24 = vmul.f32 %v5641_v19, %v7633_v42  ;;  %v4149_v12 = vpop.f32.mrb[179].mxu0 }
 0x4b7   : > { %v4283_v63 = vadd.f32 %v7640_v1, %v4244_v10  ;;  %v4245_v36 = vmul.f32 %v7633_v42, %v4149_v12 }
 0x4b8   : > { %v4381_v38 = vadd.f32 %v4885_v5, %v4285_v7  ;;  %v4286_v29 = vadd.f32 %v7640_v1, %v4247_v24 }
 0x4b9   : > { %v4379_v6 = vadd.f32 %v4881_v51, %v4283_v63  ;;  %v4284_v58 = vadd.f32 %v7640_v1, %v4245_v36 }
 0x4ba   : > { %v4413_v35 = vmax.f32 %v4381_v38, 0.0  ;;  %v4382_v11 = vadd.f32 %v4886_v8, %v4286_v29  ;;  %v4931_v38 = vld [vmem:[%s6492_s29 + $0x68] sm:$0xff]   ;;  %v4930_v29 = vld [vmem:[%s6492_s29 + $0x60] sm:$0xff]  }
 0x4bb   : > { %v4411_v45 = vmax.f32 %v4379_v6, 0.0  ;;  %v4380_v48 = vadd.f32 %v4882_v40, %v4284_v58  ;;  %v4910_v55 = vunpack.c.h.bf16 %v4931_v38 }
 0x4bc   : > { %4445 = vst [vmem:[%s7651_s27 + $0x70] sm:$0xff] %v4413_v35  ;;  %v4414_v23 = vmax.f32 %v4382_v11, 0.0  ;;  %v4909_v35 = vunpack.c.l.bf16 %v4931_v38 }
 0x4bd   : > { %4443 = vst [vmem:[%s7651_s27 + $0x60] sm:$0xff] %v4411_v45  ;;  %v4412_v4 = vmax.f32 %v4380_v48, 0.0  ;;  %v4905_v48 = vunpack.c.l.bf16 %v4930_v29 }
 0x4be   : > { %4446 = vst [vmem:[%s7651_s27 + $0x78] sm:$0xff] %v4414_v23 }
 0x4bf   : > { %4444 = vst [vmem:[%s7651_s27 + $0x68] sm:$0xff] %v4412_v4 }
 0x4c3   : > { %v5644_v57 = vpop.f32.mrb[180].mxu0 }
 0x4c4   : > { %v4250_v28 = vmul.f32 %v5644_v57, %v7633_v42  ;;  %v4162_v21 = vpop.f32.mrb[181].mxu0 }
 0x4c5   : > { %v4248_v25 = vmul.f32 %v7633_v42, %v4162_v21  ;;  %v5645_v44 = vpop.f32.mrb[182].mxu0  ;;  %v4906_v21 = vunpack.c.h.bf16 %v4930_v29 }
 0x4c6   : > { %v4289_v22 = vadd.f32 %v7640_v1, %v4250_v28  ;;  %v4251_v16 = vmul.f32 %v5645_v44, %v7633_v42  ;;  %v4165_v52 = vpop.f32.mrb[183].mxu0 }
 0x4c7   : > { %v4287_v39 = vadd.f32 %v7640_v1, %v4248_v25  ;;  %v4249_v15 = vmul.f32 %v7633_v42, %v4165_v52 }
 0x4c8   : > { %v4385_v49 = vadd.f32 %v4893_v13, %v4289_v22  ;;  %v4290_v60 = vadd.f32 %v7640_v1, %v4251_v16 }
 0x4c9   : > { %v4383_v14 = vadd.f32 %v4889_v47, %v4287_v39  ;;  %v4288_v32 = vadd.f32 %v7640_v1, %v4249_v15 }
 0x4ca   : > { %v4417_v43 = vmax.f32 %v4385_v49, 0.0  ;;  %v4386_v20 = vadd.f32 %v4894_v34, %v4290_v60  ;;  %v4933_v49 = vld [vmem:[%s6492_s29 + $0x78] sm:$0xff]   ;;  %v4932_v60 = vld [vmem:[%s6492_s29 + $0x70] sm:$0xff]   ;;  %s4854_s29 = sshll.u32 %s7990_s23, 12 }
 0x4cb   : > { %v4415_v33 = vmax.f32 %v4383_v14, 0.0  ;;  %v4384_v37 = vadd.f32 %v4890_v61, %v4288_v32  ;;  %v4918_v18 = vunpack.c.h.bf16 %v4933_v49  ;;  %s7757_s15 = scalar_lea.hbm %s7992_s11, %s4854_s29 }
 0x4cc   : > { %4449 = vst [vmem:[%s7651_s27 + $0x90] sm:$0xff] %v4417_v43  ;;  %v4418_v59 = vmax.f32 %v4386_v20, 0.0  ;;  %v4917_v43 = vunpack.c.l.bf16 %v4933_v49 }
 0x4cd   : > { %4447 = vst [vmem:[%s7651_s27 + $0x80] sm:$0xff] %v4415_v33  ;;  %v4416_v31 = vmax.f32 %v4384_v37, 0.0  ;;  %v4913_v37 = vunpack.c.l.bf16 %v4932_v60 }
 0x4ce   : > { %4450 = vst [vmem:[%s7651_s27 + $0x98] sm:$0xff] %v4418_v59 }
 0x4cf   : > { %4448 = vst [vmem:[%s7651_s27 + $0x88] sm:$0xff] %v4416_v31 }
 0x4d3   : > { %v5648_v26 = vpop.f32.mrb[184].mxu0 }
 0x4d4   : > { %v4254_v56 = vmul.f32 %v5648_v26, %v7633_v42  ;;  %v4178_v62 = vpop.f32.mrb[185].mxu0 }
 0x4d5   : > { %v4252_v9 = vmul.f32 %v7633_v42, %v4178_v62  ;;  %v5649_v2 = vpop.f32.mrb[186].mxu0  ;;  %v4914_v62 = vunpack.c.h.bf16 %v4932_v60 }
 0x4d6   : > { %v4293_v27 = vadd.f32 %v7640_v1, %v4254_v56  ;;  %v4255_v53 = vmul.f32 %v5649_v2, %v7633_v42  ;;  %v4181_v3 = vpop.f32.mrb[187].mxu0 }
 0x4d7   : > { %v4291_v41 = vadd.f32 %v7640_v1, %v4252_v9  ;;  %v4253_v5 = vmul.f32 %v7633_v42, %v4181_v3 }
 0x4d8   : > { %v4389_v10 = vadd.f32 %v4901_v0, %v4293_v27  ;;  %v4294_v51 = vadd.f32 %v7640_v1, %v4255_v53 }
 0x4d9   : > { %v4387_v19 = vadd.f32 %v4897_v50, %v4291_v41  ;;  %v4292_v7 = vadd.f32 %v7640_v1, %v4253_v5 }
 0x4da   : > { %v4421_v24 = vmax.f32 %v4389_v10, 0.0  ;;  %v4390_v8 = vadd.f32 %v4902_v46, %v4294_v51 }
 0x4db   : > { %v4419_v12 = vmax.f32 %v4387_v19, 0.0  ;;  %v4388_v63 = vadd.f32 %v4898_v54, %v4292_v7 }
 0x4dc   : > { %4453 = vst [vmem:[%s7651_s27 + $0xb0] sm:$0xff] %v4421_v24  ;;  %v4422_v36 = vmax.f32 %v4390_v8, 0.0 }
 0x4dd   : > { %4451 = vst [vmem:[%s7651_s27 + $0xa0] sm:$0xff] %v4419_v12  ;;  %v4420_v40 = vmax.f32 %v4388_v63, 0.0 }
 0x4de   : > { %4454 = vst [vmem:[%s7651_s27 + $0xb8] sm:$0xff] %v4422_v36 }
 0x4df   : > { %4452 = vst [vmem:[%s7651_s27 + $0xa8] sm:$0xff] %v4420_v40 }
 0x4e3   : > { %v5652_v6 = vpop.f32.mrb[188].mxu0 }
 0x4e4   : > { %v4258_v58 = vmul.f32 %v5652_v6, %v7633_v42  ;;  %v4194_v11 = vpop.f32.mrb[189].mxu0 }
 0x4e5   : > { %v4256_v45 = vmul.f32 %v7633_v42, %v4194_v11  ;;  %v5653_v23 = vpop.f32.mrb[190].mxu0 }
 0x4e6   : > { %v4297_v4 = vadd.f32 %v7640_v1, %v4258_v58  ;;  %v4259_v17 = vmul.f32 %v5653_v23, %v7633_v42  ;;  %v4197_v57 = vpop.f32.mrb[191].mxu0 }
 0x4e7   : > { %v4295_v28 = vadd.f32 %v7640_v1, %v4256_v45  ;;  %v4257_v13 = vmul.f32 %v7633_v42, %v4197_v57 }
 0x4e8   : > { %v4393_v25 = vadd.f32 %v4909_v35, %v4297_v4  ;;  %v4298_v47 = vadd.f32 %v7640_v1, %v4259_v17 }
 0x4e9   : > { %v4391_v44 = vadd.f32 %v4905_v48, %v4295_v28  ;;  %v4296_v22 = vadd.f32 %v7640_v1, %v4257_v13 }
 0x4ea   : > { %v4425_v16 = vmax.f32 %v4393_v25, 0.0  ;;  %v4394_v34 = vadd.f32 %v4910_v55, %v4298_v47 }
 0x4eb   : > { %v4423_v52 = vmax.f32 %v4391_v44, 0.0  ;;  %v4392_v39 = vadd.f32 %v4906_v21, %v4296_v22 }
 0x4ec   : > { %4457 = vst [vmem:[%s7651_s27 + $0xd0] sm:$0xff] %v4425_v16  ;;  %v4426_v15 = vmax.f32 %v4394_v34, 0.0 }
 0x4ed   : > { %4455 = vst [vmem:[%s7651_s27 + $0xc0] sm:$0xff] %v4423_v52  ;;  %v4424_v61 = vmax.f32 %v4392_v39, 0.0 }
 0x4ee   : > { %4458 = vst [vmem:[%s7651_s27 + $0xd8] sm:$0xff] %v4426_v15 }
 0x4ef   : > { %4456 = vst [vmem:[%s7651_s27 + $0xc8] sm:$0xff] %v4424_v61 }
 0x4f8   : > { %v5656_v14 = vpop.f32.mrb[192].mxu0 }
 0x4f9   : > { %v4262_v32 = vmul.f32 %v5656_v14, %v7633_v42  ;;  %v4210_v20 = vpop.f32.mrb[193].mxu0 }
 0x4fa   : > { %v4260_v33 = vmul.f32 %v7633_v42, %v4210_v20  ;;  %v5657_v59 = vpop.f32.mrb[194].mxu0 }
 0x4fb   : > { %v4301_v31 = vadd.f32 %v7640_v1, %v4262_v32  ;;  %v4263_v30 = vmul.f32 %v5657_v59, %v7633_v42  ;;  %v4213_v26 = vpop.f32.mrb[195].mxu0 }
 0x4fc   : > { %v4299_v56 = vadd.f32 %v7640_v1, %v4260_v33  ;;  %v4261_v0 = vmul.f32 %v7633_v42, %v4213_v26 }
 0x4fd   : > { %v4397_v9 = vadd.f32 %v4917_v43, %v4301_v31  ;;  %v4302_v50 = vadd.f32 %v7640_v1, %v4263_v30 }
 0x4fe   : > { %v4395_v2 = vadd.f32 %v4913_v37, %v4299_v56  ;;  %v4300_v27 = vadd.f32 %v7640_v1, %v4261_v0 }
 0x4ff   : > { %v4429_v53 = vmax.f32 %v4397_v9, 0.0  ;;  %v4398_v46 = vadd.f32 %v4918_v18, %v4302_v50 }
 0x500   : > { %v4427_v3 = vmax.f32 %v4395_v2, 0.0  ;;  %v4396_v41 = vadd.f32 %v4914_v62, %v4300_v27 }
 0x501   : > { %4461 = vst [vmem:[%s7651_s27 + $0xf0] sm:$0xff] %v4429_v53  ;;  %v4430_v42 = vmax.f32 %v4398_v46, 0.0 }
 0x502   : > { %4459 = vst [vmem:[%s7651_s27 + $0xe0] sm:$0xff] %v4427_v3  ;;  %v4428_v1 = vmax.f32 %v4396_v41, 0.0 }
 0x503   : > { %4462 = vst [vmem:[%s7651_s27 + $0xf8] sm:$0xff] %v4430_v42 }
 0x504   : > { %4460 = vst [vmem:[%s7651_s27 + $0xe8] sm:$0xff] %v4428_v1 }
 0x505   : > { %6073 = shalt.err (!%p6070_p12)
}
 0x506   : > { %s6074_s13 = scalar_lea.hbm %s7757_s15, 4096  ;;  %s6078_s8 = scalar_lea.hbm %s7992_s11, 8192 }
 0x507   : > { %p6075_p11 = scmp.ne.s32.totalorder %s7757_s15, %s6074_s13  ;;  %p6079_p5 = scmp.lt.u32.totalorder %s7757_s15, %s7992_s11 }
 0x508   : > { %p6080_p9 = scmp.lt.u32.totalorder %s6078_s8, %s6074_s13  ;;  %p6082_p4 = scmp.lt.u32.totalorder %s6074_s13, %s7757_s15 }
 0x509   : > { %p6076_p0 = pnand %p6075_p11, %p7993_p6 }
 0x50a   : > { %p6081_p2 = por %p6080_p9, %p6079_p5 }
 0x50b   : > { %p6077_p3 = pneg %p6076_p0 }
 0x50c   : > { %p6083_p10 = por %p6082_p4, %p6081_p2 }
 0x50e   : > { %p6084_p13 = pnand %p6083_p10, %p6077_p3 }
 0x510   : > { %6087 = shalt.err (!%p6084_p13)
}
 0x511   : > { %s6167_s14 = smov 128   ;;  %s6168_s27 = smov 8  }
 0x512   : > { %5693 = dma.vmem_to_hbm [thread:$0]  (%p7993_p6), %s7759_s25, 4096, %s7757_s15, %s4464_s1, %s6167_s14, %s6167_s14, %s6168_s27  }
 0x513 PF: > { %s7994_s23 = sld [smem:[#allocation17_spill]]  ;;  %s7995_s29 = sld [smem:[#allocation21_spill]] }
 0x514   : > { %s7996_s9 = sld [smem:[#allocation20_spill]] }
 0x519   : > { %s4494_s24 = sand.u32 1, %s7994_s23   ;;  %p7997_p7 = scmp.ne.s32.totalorder %s7995_s29, 0 }
 0x51a   : > { %p7998_p1 = scmp.ge.s32.totalorder %s7996_s9, 2  ;;  %s4495_s16 = scalar_lea.sflag [#allocation4], %s4494_s24 }
 0x51c   : > { %p5713_p8 = pnand %p7998_p1, %p7997_p7 }
 0x51e   : > { %6129 = dma.done.wait (!%p5713_p8), %s4495_s16, 4096  }
 0x51f   : > { %6131 = vsyncadd (!%p5713_p8), %s4495_s16, 4294963200  ;;  %s29_s22 = sadd.s32 1, %s7996_s9   ;;  %s7999_s12 = sld [smem:[#allocation18_spill]] }
 0x520   : > { %p26_p12 = scmp.ge.s32.totalorder %s29_s22, 4   ;;  %s8000_s19 = sld [smem:[#allocation24_spill]] }
 0x521   : > { %s8001_s13 = sld [smem:[#allocation22_spill]]  ;;  %s8002_s17 = smov %s6138_s18 }
 0x522   : > { %s8004_s20 = smov %s6150_s21  ;;  %28 = sbr.rel (!%p26_p12) target bundleno = 14 (0xe), region = 133 }
 0x525   : > { %s8003_s18 = smov %s7999_s12 }
 0x527   : > { %s8005_s21 = smov %s8001_s13 }
 0x529   :  { %4500 = vsyncpa [#allocation3], 1 }
 0x52a   :  { %4502 = vsyncpa [#allocation3 + $0x1], 1 }
 0x52b   :  { %4503 = vsyncpa [#allocation6], 1 }
 0x52c   :  { %4504 = vsyncpa [#allocation9], 1 }
 0x52d   :  { %4505 = vsyncpa [#allocation4], 1 }
 0x52e   :  { %4507 = vsyncpa [#allocation4 + $0x1], 1 }

</bundles_post_ra>
